<compile_context>
chip_gen: v6e
topology: v6e:2x2x1
jax: 0.10.0
libtpu: 0.0.40
codegen_flags: <defaults>
</compile_context>

<pallas_src>
import math

import jax
import jax.numpy as jnp
from jax.experimental import pallas as pl
from jax.experimental.pallas import tpu as pltpu

CPAD = 128   # lane-dense channel padding (multiple of 128)


def _vmem_limit(need_bytes):
    """Per-call scoped-VMEM limit: actual need + headroom, clamped to [16 MiB, 64 MiB]."""
    return int(min(max(need_bytes + (8 << 20), 16 << 20), 64 << 20))


# ----------------------------- Pallas kernels ------------------------------ #

def _make_dense_block_kernel(H, W, P, WL, layers, any_bn):
    """Fused DenseBlock: every layer of one block, feature map resident in bf16 VMEM.

    `layers`: static per-layer metadata dicts {'has_bn', 'dilation', 'c_off'}.
    Scratch `feat` is (H+2P, WL+W+P, CPAD) bf16; zero halo == conv zero padding; the
    interior starts at column WL (a multiple of 8 -> sublane-aligned RMW / output copy).
    """
    HW = H * W

    def kernel(x_ref, w3_ref, b3_ref, *rest):
        if any_bn:
            wbn_ref, bbn_ref, o_ref, feat_ref, mid_ref = rest
        else:
            (o_ref, feat_ref) = rest
            wbn_ref = bbn_ref = mid_ref = None

        # Resident bf16 feature map; zero halo acts as conv zero padding.  The input
        # block arrives unpadded (no wrapper-side jnp.pad HBM round-trip).
        feat_ref[...] = jnp.zeros_like(feat_ref)
        feat_ref[P:P + H, WL:WL + W, :] = x_ref[0, :, :, :]
        if any_bn:
            mid_ref[...] = jnp.zeros_like(mid_ref)    # zero halo for bottleneck output

        for li, meta in enumerate(layers):
            d = meta['dilation']

            if meta['has_bn']:
                # Bottleneck 1x1 conv (BN scale folded into weights) + bias + SiLU.
                src = feat_ref[P:P + H, WL:WL + W, :].reshape(HW, CPAD)
                y = jnp.dot(src, wbn_ref[li], preferred_element_type=jnp.float32)
                y = y + bbn_ref[li]
                y = y * jax.nn.sigmoid(y)                                   # SiLU in f32
                mid_ref[P:P + H, WL:WL + W, :] = y.reshape(H, W, CPAD).astype(jnp.bfloat16)
                conv_src = mid_ref
            else:
                conv_src = feat_ref

            # 3x3 dilated conv: hoist the kw (sublane) shifts into ONE lane-stacked slab
            # per layer (3 window reads instead of 9), then 3 K-stacked MXU matmuls
            # (HW, 3*CPAD) x (3*CPAD, CPAD); the kh taps are cheap outer-dim slices.
            r0, c0 = P - d, WL - d
            slab = jnp.concatenate(
                [conv_src[r0:r0 + H + 2 * d, c0 + kw * d:c0 + kw * d + W, :]
                 for kw in range(3)], axis=-1)               # (H+2d, W, 3*CPAD) bf16
            acc = None
            for kh in range(3):
                t = jnp.dot(slab[kh * d:kh * d + H].reshape(HW, 3 * CPAD),
                            w3_ref[li, kh],
                            preferred_element_type=jnp.float32)
                acc = t if acc is None else acc + t
            y = acc + b3_ref[li]
            y = y * jax.nn.sigmoid(y)                                       # SiLU in f32

            # Dense concat via full-width add: this layer's weights/bias are zero outside
            # output lanes [c_off, c_off+growth) and SiLU(0)=0, so y is exactly 0 on the
            # existing lanes and bf16 `old + 0` leaves them bit-exact.  Halo rows/cols of
            # the new channels stay zero == conv zero padding for the next layer.
            feat_ref[P:P + H, WL:WL + W, :] += y.reshape(H, W, CPAD).astype(jnp.bfloat16)

        o_ref[0, :, :, :] = feat_ref[P:P + H, WL:WL + W, :]

    return kernel


def _make_transition_kernel(nb, Ho, Wo, maxpool):
    """Fused 1x1 conv + 2x2 pool + BN + SiLU over `nb` batch elements per grid step.

    Input ref shape (nb, Ho, 2, Wo, 2*CPAD): a metadata-only reshape of the NHWC block
    output that exposes the 2x2 pooling phases as a row phase dim and two aligned
    128-lane column halves -> one contiguous DMA, no strided HBM gathers.
    """
    M = nb * Ho * Wo

    def kernel(x_ref, w_ref, s_ref, b_ref, o_ref):
        def phase(ph, pw):
            v = x_ref[:, :, ph, :, pw * CPAD:(pw + 1) * CPAD]   # (nb, Ho, Wo, CPAD) bf16
            return v.reshape(M, CPAD)

        w = w_ref[...]
        if maxpool:
            # One stacked (4*M, CPAD) matmul over the pool phases (better MXU pipelining
            # than 4 tiny-M matmuls), then max over the phase axis.
            stacked = jnp.concatenate(
                [phase(0, 0), phase(0, 1), phase(1, 0), phase(1, 1)], axis=0)
            y = jnp.dot(stacked, w, preferred_element_type=jnp.float32)
            y = jnp.max(y.reshape(4, M, CPAD), axis=0)
        else:
            # avg-pool commutes with the 1x1 conv: pool first -> 4x less MXU work.
            xs = (phase(0, 0).astype(jnp.float32) + phase(0, 1).astype(jnp.float32) +
                  phase(1, 0).astype(jnp.float32) + phase(1, 1).astype(jnp.float32)) * 0.25
            y = jnp.dot(xs.astype(jnp.bfloat16), w, preferred_element_type=jnp.float32)

        # Reference order is conv -> pool -> BN -> SiLU, so the BN affine is applied AFTER
        # the pool; this is exact for any scale sign (folding s/b into w before the max
        # would compute pool(BN(conv)) instead and differ whenever s < 0).
        y = y * s_ref[...] + b_ref[...]
        y = y * jax.nn.sigmoid(y)
        o_ref[...] = y.reshape(nb, Ho, Wo, CPAD).astype(jnp.bfloat16)

    return kernel


# ------------------------------ kernel wrappers ----------------------------- #

def dense_block_forward(x, blk):
    """x: (N, H, W, CPAD) bf16 (channel-padded). Returns (N, H, W, CPAD) bf16."""
    N, H, W, CP = x.shape
    P = blk['halo']
    WL = max(8, -(-P // 8) * 8)           # sublane-aligned left W halo (>= P, multiple of 8)
    Hp, Wpad = H + 2 * P, WL + W + P
    L = blk['W3'].shape[0]
    any_bn = blk['any_bn']

    scratch = [pltpu.VMEM((Hp, Wpad, CP), jnp.bfloat16)]
    if any_bn:
        scratch.append(pltpu.VMEM((Hp, Wpad, CP), jnp.bfloat16))

    in_specs = [
        pl.BlockSpec((1, H, W, CP), lambda n: (n, 0, 0, 0)),
        pl.BlockSpec((L, 3, 3 * CP, CP), lambda n: (0, 0, 0, 0)),
        pl.BlockSpec((L, 1, CP), lambda n: (0, 0, 0)),
    ]
    args = [x, blk['W3'], blk['B3']]
    if any_bn:
        in_specs += [pl.BlockSpec((L, CP, CP), lambda n: (0, 0, 0)),
                     pl.BlockSpec((L, 1, CP), lambda n: (0, 0, 0))]
        args += [blk['WBN'], blk['BBN']]

    # Re-derive the scoped VMEM limit per config (blocks double-buffered by the pipeline).
    weight_bytes = sum(int(a.size) * a.dtype.itemsize for a in args[1:])
    block_bytes = 2 * H * W * CP * 2                        # in + out bf16 blocks
    scratch_bytes = len(scratch) * Hp * Wpad * CP * 2
    vmem_limit = _vmem_limit(2 * (weight_bytes + block_bytes) + scratch_bytes)
    # TODO(synk): row-tile the spatial axes (with halo overlap) once scratch_bytes
    # approaches the physical VMEM budget (v7x: 64 MiB); not needed at these sizes.

    return pl.pallas_call(
        _make_dense_block_kernel(H, W, P, WL, blk['layers'], any_bn),
        out_shape=jax.ShapeDtypeStruct((N, H, W, CP), jnp.bfloat16),
        grid=(N,),
        in_specs=in_specs,
        out_specs=pl.BlockSpec((1, H, W, CP), lambda n: (n, 0, 0, 0)),
        scratch_shapes=scratch,
        compiler_params=pltpu.CompilerParams(
            dimension_semantics=("parallel",),      # >=2 batch steps -> both v7x TCs busy
            vmem_limit_bytes=vmem_limit),
    )(*args)


def transition_forward(x, op):
    """x: (N, H, W, CPAD) bf16 -> (N, H/2, W/2, CPAD) bf16."""
    N, H, W, CP = x.shape
    assert H % 2 == 0 and W % 2 == 0
    Ho, Wo = H // 2, W // 2
    xr = x.reshape(N, Ho, 2, Wo, 2 * CP)    # metadata-only reshape (no HBM traffic)

    # Block several batch elements per grid step so the matmul M = nb*Ho*Wo is MXU-friendly
    # (>= 256 rows when possible); amortizes the per-grid-step pallas overhead.
    nb = N
    for cand in range(1, N + 1):
        if N % cand == 0 and cand * Ho * Wo >= 256:
            nb = cand
            break

    in_block = nb * Ho * 2 * Wo * 2 * CP * 2
    out_block = nb * Ho * Wo * CP * 2
    weight_bytes = CP * CP * 2 + 2 * CP * 4
    vmem_limit = _vmem_limit(2 * (in_block + out_block + weight_bytes))

    return pl.pallas_call(
        _make_transition_kernel(nb, Ho, Wo, op['maxpool']),
        out_shape=jax.ShapeDtypeStruct((N, Ho, Wo, CP), jnp.bfloat16),
        grid=(N // nb,),
        in_specs=[
            pl.BlockSpec((nb, Ho, 2, Wo, 2 * CP), lambda n: (n, 0, 0, 0, 0)),
            pl.BlockSpec((CP, CP), lambda n: (0, 0)),
            pl.BlockSpec((1, CP), lambda n: (0, 0)),
            pl.BlockSpec((1, CP), lambda n: (0, 0)),
        ],
        out_specs=pl.BlockSpec((nb, Ho, Wo, CP), lambda n: (n, 0, 0, 0)),
        compiler_params=pltpu.CompilerParams(
            dimension_semantics=("parallel",),
            vmem_limit_bytes=vmem_limit),
    )(xr, op['w'], op['s'], op['b'])


# ------------------------------ glue helpers ------------------------------- #

def _add_coord_channels(h):
    """torch.cat((linspace over H, linspace over W, x), dim=C) in NHWC."""
    n, H, W, _ = h.shape
    cx = jnp.broadcast_to(jnp.linspace(-1.0, 1.0, H).reshape(1, H, 1, 1), (n, H, W, 1))
    cy = jnp.broadcast_to(jnp.linspace(-1.0, 1.0, W).reshape(1, 1, W, 1), (n, H, W, 1))
    return jnp.concatenate([cx, cy, h], axis=-1)


# --------------------------- parameter construction ------------------------ #

def _conv_w(key, shape, fan_in):
    return jax.random.normal(key, shape, dtype=jnp.float32) / math.sqrt(fan_in)


def _bn_fold(key, c, eps=1e-5):
    k1, k2, k3, k4 = jax.random.split(key, 4)
    gamma = jax.random.uniform(k1, (c,), minval=0.5, maxval=1.5)
    beta = jax.random.uniform(k2, (c,), minval=-0.1, maxval=0.1)
    mean = jax.random.uniform(k3, (c,), minval=-0.1, maxval=0.1)
    var = jax.random.uniform(k4, (c,), minval=0.5, maxval=1.5)
    scale = gamma / jnp.sqrt(var + eps)
    bias = beta - mean * scale
    return scale.astype(jnp.float32), bias.astype(jnp.float32)


def init_densenet(key, input_size, growth_rate, block_cfg, bn_size=4, drop_rate=0.0,
                  reduction=0.5, with_cc=(), with_dilate=(), mul_dilate=1,
                  last_transit=False, max_pooled=(0,), layer_type='2d'):
    assert layer_type == '2d'  # TODO(synk): '1d' and 'fc' layer types not implemented
    # TODO(synk): training-mode Dropout not implemented (drop_rate=0 -> identity in eval)
    ops = []
    sizes = input_size
    for i, num_layers in enumerate(block_cfg):
        block_md = mul_dilate if i in with_dilate else 0
        block_cc = i in with_cc
        c_in = sizes + (2 if block_cc else 0)
        c_final = c_in + num_layers * growth_rate
        assert c_final <= CPAD  # TODO(synk): tile the channel axis for blocks wider than 128
        W3, B3, WBN, BBN, meta = [], [], [], [], []
        for il in range(num_layers):
            cin = c_in + il * growth_rate
            d = il * block_md + 1
            has_bn = cin >= (bn_size + 1) * growth_rate
            cmid = bn_size * growth_rate if has_bn else cin
            c_off = cin
            wbn_p = jnp.zeros((CPAD, CPAD), jnp.float32)
            bbn_p = jnp.zeros((1, CPAD), jnp.float32)
            if has_bn:
                key, k1, k2 = jax.random.split(key, 3)
                w = _conv_w(k1, (cin, cmid), cin)
                s, b = _bn_fold(k2, cmid)
                wbn_p = wbn_p.at[:cin, :cmid].set(w * s[None, :])   # fold BN scale
                bbn_p = bbn_p.at[0, :cmid].set(b)
            key, k1, k2 = jax.random.split(key, 3)
            w3 = _conv_w(k1, (3, 3, cmid, growth_rate), 9 * cmid)
            s3, b3 = _bn_fold(k2, growth_rate)
            w3f = w3 * s3                                           # fold BN scale
            # K-stacked layout: per kh a (3*CPAD, CPAD) matrix whose rows are the 3 kw
            # taps stacked in 128-lane groups; this layer's outputs sit at lanes
            # [c_off, c_off+growth) (lane-dense full-width writes == dense concat).
            w3p = jnp.zeros((3, 3 * CPAD, CPAD), jnp.float32)
            for kw in range(3):
                w3p = w3p.at[:, kw * CPAD:kw * CPAD + cmid,
                             c_off:c_off + growth_rate].set(w3f[:, kw])
            b3p = jnp.zeros((1, CPAD), jnp.float32)
            b3p = b3p.at[0, c_off:c_off + growth_rate].set(b3)
            W3.append(w3p); B3.append(b3p); WBN.append(wbn_p); BBN.append(bbn_p)
            meta.append({'has_bn': has_bn, 'dilation': d, 'c_off': c_off})
        any_bn = any(m['has_bn'] for m in meta)
        blk = {'type': 'dense_block', 'with_cc': block_cc,
               'c_in': c_in, 'c_final': c_final,
               'halo': max(m['dilation'] for m in meta),
               'layers': tuple(meta), 'any_bn': any_bn,
               'W3': jnp.stack(W3).astype(jnp.bfloat16),
               'B3': jnp.stack(B3)}
        if any_bn:
            blk['WBN'] = jnp.stack(WBN).astype(jnp.bfloat16)
            blk['BBN'] = jnp.stack(BBN)
        ops.append(blk)
        sizes = c_final
        if i < len(block_cfg) - 1 or last_transit:
            sizes_trans = int(sizes * (1.0 - reduction))
            key, k1, k2 = jax.random.split(key, 3)
            w = _conv_w(k1, (sizes, sizes_trans), sizes)
            s, b = _bn_fold(k2, sizes_trans)
            ops.append({'type': 'transition', 'maxpool': i in max_pooled,
                        'c_out': sizes_trans,
                        'w': jnp.zeros((CPAD, CPAD), jnp.float32)
                               .at[:sizes, :sizes_trans].set(w).astype(jnp.bfloat16),
                        's': jnp.zeros((1, CPAD), jnp.float32).at[0, :sizes_trans].set(s),
                        'b': jnp.zeros((1, CPAD), jnp.float32).at[0, :sizes_trans].set(b)})
            sizes = sizes_trans
    return {'ops': ops}, sizes


# --------------------------------- forward --------------------------------- #

def densenet_forward(params, x_nchw):
    x = jnp.transpose(x_nchw, (0, 2, 3, 1)).astype(jnp.float32)   # -> NHWC
    c_valid = x.shape[-1]
    assert c_valid <= CPAD
    # Channel-pad once; lane-dense bf16 activations are carried end-to-end.
    x = jnp.pad(x, ((0, 0), (0, 0), (0, 0), (0, CPAD - c_valid))).astype(jnp.bfloat16)
    for op in params['ops']:
        if op['type'] == 'dense_block':
            if op['with_cc']:
                xc = _add_coord_channels(x[..., :c_valid].astype(jnp.float32))
                c_valid = xc.shape[-1]
                x = jnp.pad(xc, ((0, 0), (0, 0), (0, 0), (0, CPAD - c_valid))
                            ).astype(jnp.bfloat16)
            assert c_valid == op['c_in']
            x = dense_block_forward(x, op)
            c_valid = op['c_final']
        elif op['type'] == 'transition':
            x = transition_forward(x, op)
            c_valid = op['c_out']
        else:
            raise ValueError(op['type'])
    out = x[..., :c_valid].astype(jnp.float32)
    return jnp.transpose(out, (0, 3, 1, 2))   # -> NCHW


# ----------------------------------- main ----------------------------------- #

if __name__ == "__main__":
    key = jax.random.PRNGKey(0)
    kp, kx = jax.random.split(key)

    # Small config: input_size=4 channels, growth_rate=4, two blocks of 2 layers.
    params, c_output = init_densenet(
        kp, input_size=4, growth_rate=4, block_cfg=(2, 2),
        bn_size=4, drop_rate=0.0, reduction=0.5,
        with_cc=(), with_dilate=(), mul_dilate=1,
        last_transit=False, max_pooled=(0,), layer_type='2d')

    x = jax.random.normal(kx, (2, 4, 16, 16), dtype=jnp.float32)  # NCHW input

    fwd = jax.jit(lambda inp: densenet_forward(params, inp))
    y = fwd(x)
    jax.block_until_ready(y)

    # One 2x2 max-pool transition -> spatial 8x8; c_output = 14 channels.
    assert y.shape == (2, c_output, 8, 8), y.shape
    assert bool(jnp.all(jnp.isfinite(y)))
    print("KERNEL_OK")
</pallas_src>

<mosaic_0001>
module attributes {stable_mosaic.version = 11 : i64} {
  func.func @kernel(%arg0: i32, %arg1: memref<1x16x16x128xbf16, #tpu.memory_space<vmem>>, %arg2: memref<2x3x384x128xbf16, #tpu.memory_space<vmem>>, %arg3: memref<2x1x128xf32, #tpu.memory_space<vmem>>, %arg4: memref<1x16x16x128xbf16, #tpu.memory_space<vmem>>, %arg5: memref<18x25x128xbf16, #tpu.memory_space<vmem>>) attributes {dimension_semantics = [#tpu.dimension_semantics<parallel>], iteration_bounds = array<i64: 2>, scalar_prefetch = 0 : i64, scratch_operands = 1 : i64, tpu.core_type = #tpu.core_type<tc>, window_params = [{transform_indices = @transform_0, window_bounds = array<i64: 1, 16, 16, 128>}, {pipeline_mode = #tpu.pipeline_mode<synchronous>, transform_indices = @transform_1, window_bounds = array<i64: 2, 3, 384, 128>}, {pipeline_mode = #tpu.pipeline_mode<synchronous>, transform_indices = @transform_2, window_bounds = array<i64: 2, 1, 128>}, {transform_indices = @transform_3, window_bounds = array<i64: 1, 16, 16, 128>}]} {
    %cst = arith.constant 0.000000e+00 : bf16
    %0 = vector.broadcast %cst : bf16 to vector<18x25x128xbf16>
    %c0 = arith.constant 0 : index
    %c0_0 = arith.constant 0 : index
    %c0_1 = arith.constant 0 : index
    %1 = vector.load %arg5[%c0, %c0_0, %c0_1] : memref<18x25x128xbf16, #tpu.memory_space<vmem>>, vector<18x25x128xbf16>
    tpu.vector_store %arg5[%c0, %c0_0, %c0_1], %0 {strides = array<i32>} : memref<18x25x128xbf16, #tpu.memory_space<vmem>>, vector<18x25x128xbf16>,
    %c0_2 = arith.constant 0 : index
    %c0_3 = arith.constant 0 : index
    %c0_4 = arith.constant 0 : index
    %c0_5 = arith.constant 0 : index
    %2 = vector.load %arg1[%c0_2, %c0_3, %c0_4, %c0_5] : memref<1x16x16x128xbf16, #tpu.memory_space<vmem>>, vector<1x16x16x128xbf16>
    %3 = vector.shape_cast %2 : vector<1x16x16x128xbf16> to vector<16x16x128xbf16>
    %c1 = arith.constant 1 : index
    %c8 = arith.constant 8 : index
    %c0_6 = arith.constant 0 : index
    %4 = vector.load %arg5[%c1, %c8, %c0_6] : memref<18x25x128xbf16, #tpu.memory_space<vmem>>, vector<16x16x128xbf16>
    tpu.vector_store %arg5[%c1, %c8, %c0_6], %3 {strides = array<i32>} : memref<18x25x128xbf16, #tpu.memory_space<vmem>>, vector<16x16x128xbf16>,
    %c0_7 = arith.constant 0 : index
    %c7 = arith.constant 7 : index
    %c0_8 = arith.constant 0 : index
    %5 = vector.load %arg5[%c0_7, %c7, %c0_8] : memref<18x25x128xbf16, #tpu.memory_space<vmem>>, vector<18x16x128xbf16>
    %c0_9 = arith.constant 0 : index
    %c8_10 = arith.constant 8 : index
    %c0_11 = arith.constant 0 : index
    %6 = vector.load %arg5[%c0_9, %c8_10, %c0_11] : memref<18x25x128xbf16, #tpu.memory_space<vmem>>, vector<18x16x128xbf16>
    %c0_12 = arith.constant 0 : index
    %c9 = arith.constant 9 : index
    %c0_13 = arith.constant 0 : index
    %7 = vector.load %arg5[%c0_12, %c9, %c0_13] : memref<18x25x128xbf16, #tpu.memory_space<vmem>>, vector<18x16x128xbf16>
    %8 = tpu.concatenate %5, %6, %7 in 2 : vector<18x16x128xbf16>, vector<18x16x128xbf16>, vector<18x16x128xbf16> -> vector<18x16x384xbf16>
    %9 = vector.extract_strided_slice %8 {offsets = [0, 0, 0], sizes = [16, 16, 384], strides = [1, 1, 1]} : vector<18x16x384xbf16> to vector<16x16x384xbf16>
    %10 = vector.shape_cast %9 : vector<16x16x384xbf16> to vector<256x384xbf16>
    %c0_14 = arith.constant 0 : index
    %c0_15 = arith.constant 0 : index
    %c0_16 = arith.constant 0 : index
    %c0_17 = arith.constant 0 : index
    %11 = vector.load %arg2[%c0_14, %c0_15, %c0_16, %c0_17] : memref<2x3x384x128xbf16, #tpu.memory_space<vmem>>, vector<1x1x384x128xbf16>
    %12 = vector.shape_cast %11 : vector<1x1x384x128xbf16> to vector<384x128xbf16>
    %cst_18 = arith.constant dense<0.000000e+00> : vector<256x128xf32>
    %13 = tpu.matmul %10, %12, %cst_18 {dimension_numbers = #tpu.dot_dimension_numbers<[1], [0], [0], [1], [0, 0, 1, 1], [], []>} : vector<256x384xbf16>, vector<384x128xbf16>, vector<256x128xf32> -> vector<256x128xf32>
    %14 = vector.extract_strided_slice %8 {offsets = [1, 0, 0], sizes = [16, 16, 384], strides = [1, 1, 1]} : vector<18x16x384xbf16> to vector<16x16x384xbf16>
    %15 = vector.shape_cast %14 : vector<16x16x384xbf16> to vector<256x384xbf16>
    %c0_19 = arith.constant 0 : index
    %c1_20 = arith.constant 1 : index
    %c0_21 = arith.constant 0 : index
    %c0_22 = arith.constant 0 : index
    %16 = vector.load %arg2[%c0_19, %c1_20, %c0_21, %c0_22] : memref<2x3x384x128xbf16, #tpu.memory_space<vmem>>, vector<1x1x384x128xbf16>
    %17 = vector.shape_cast %16 : vector<1x1x384x128xbf16> to vector<384x128xbf16>
    %cst_23 = arith.constant dense<0.000000e+00> : vector<256x128xf32>
    %18 = tpu.matmul %15, %17, %cst_23 {dimension_numbers = #tpu.dot_dimension_numbers<[1], [0], [0], [1], [0, 0, 1, 1], [], []>} : vector<256x384xbf16>, vector<384x128xbf16>, vector<256x128xf32> -> vector<256x128xf32>
    %19 = arith.addf %13, %18 : vector<256x128xf32>
    %20 = vector.extract_strided_slice %8 {offsets = [2, 0, 0], sizes = [16, 16, 384], strides = [1, 1, 1]} : vector<18x16x384xbf16> to vector<16x16x384xbf16>
    %21 = vector.shape_cast %20 : vector<16x16x384xbf16> to vector<256x384xbf16>
    %c0_24 = arith.constant 0 : index
    %c2 = arith.constant 2 : index
    %c0_25 = arith.constant 0 : index
    %c0_26 = arith.constant 0 : index
    %22 = vector.load %arg2[%c0_24, %c2, %c0_25, %c0_26] : memref<2x3x384x128xbf16, #tpu.memory_space<vmem>>, vector<1x1x384x128xbf16>
    %23 = vector.shape_cast %22 : vector<1x1x384x128xbf16> to vector<384x128xbf16>
    %cst_27 = arith.constant dense<0.000000e+00> : vector<256x128xf32>
    %24 = tpu.matmul %21, %23, %cst_27 {dimension_numbers = #tpu.dot_dimension_numbers<[1], [0], [0], [1], [0, 0, 1, 1], [], []>} : vector<256x384xbf16>, vector<384x128xbf16>, vector<256x128xf32> -> vector<256x128xf32>
    %25 = arith.addf %19, %24 : vector<256x128xf32>
    %c0_28 = arith.constant 0 : index
    %c0_29 = arith.constant 0 : index
    %c0_30 = arith.constant 0 : index
    %26 = vector.load %arg3[%c0_28, %c0_29, %c0_30] : memref<2x1x128xf32, #tpu.memory_space<vmem>>, vector<1x1x128xf32>
    %27 = vector.shape_cast %26 : vector<1x1x128xf32> to vector<1x128xf32>
    %28 = vector.broadcast %27 : vector<1x128xf32> to vector<256x128xf32>
    %29 = arith.addf %25, %28 : vector<256x128xf32>
    %30 = arith.negf %29 : vector<256x128xf32>
    %31 = math.exp %30 : vector<256x128xf32>
    %cst_31 = arith.constant 1.000000e+00 : f32
    %32 = vector.broadcast %cst_31 : f32 to vector<256x128xf32>
    %33 = arith.addf %32, %31 : vector<256x128xf32>
    %34 = arith.divf %32, %33 : vector<256x128xf32>
    %35 = arith.mulf %29, %34 : vector<256x128xf32>
    %c1_32 = arith.constant 1 : index
    %c8_33 = arith.constant 8 : index
    %c0_34 = arith.constant 0 : index
    %36 = vector.load %arg5[%c1_32, %c8_33, %c0_34] : memref<18x25x128xbf16, #tpu.memory_space<vmem>>, vector<16x16x128xbf16>
    %37 = vector.shape_cast %35 : vector<256x128xf32> to vector<16x16x128xf32>
    %38 = arith.truncf %37 : vector<16x16x128xf32> to vector<16x16x128xbf16>
    %39 = arith.addf %36, %38 : vector<16x16x128xbf16>
    %c1_35 = arith.constant 1 : index
    %c8_36 = arith.constant 8 : index
    %c0_37 = arith.constant 0 : index
    %40 = vector.load %arg5[%c1_35, %c8_36, %c0_37] : memref<18x25x128xbf16, #tpu.memory_space<vmem>>, vector<16x16x128xbf16>
    tpu.vector_store %arg5[%c1_35, %c8_36, %c0_37], %39 {strides = array<i32>} : memref<18x25x128xbf16, #tpu.memory_space<vmem>>, vector<16x16x128xbf16>,
    %c0_38 = arith.constant 0 : index
    %c7_39 = arith.constant 7 : index
    %c0_40 = arith.constant 0 : index
    %41 = vector.load %arg5[%c0_38, %c7_39, %c0_40] : memref<18x25x128xbf16, #tpu.memory_space<vmem>>, vector<18x16x128xbf16>
    %c0_41 = arith.constant 0 : index
    %c8_42 = arith.constant 8 : index
    %c0_43 = arith.constant 0 : index
    %42 = vector.load %arg5[%c0_41, %c8_42, %c0_43] : memref<18x25x128xbf16, #tpu.memory_space<vmem>>, vector<18x16x128xbf16>
    %c0_44 = arith.constant 0 : index
    %c9_45 = arith.constant 9 : index
    %c0_46 = arith.constant 0 : index
    %43 = vector.load %arg5[%c0_44, %c9_45, %c0_46] : memref<18x25x128xbf16, #tpu.memory_space<vmem>>, vector<18x16x128xbf16>
    %44 = tpu.concatenate %41, %42, %43 in 2 : vector<18x16x128xbf16>, vector<18x16x128xbf16>, vector<18x16x128xbf16> -> vector<18x16x384xbf16>
    %45 = vector.extract_strided_slice %44 {offsets = [0, 0, 0], sizes = [16, 16, 384], strides = [1, 1, 1]} : vector<18x16x384xbf16> to vector<16x16x384xbf16>
    %46 = vector.shape_cast %45 : vector<16x16x384xbf16> to vector<256x384xbf16>
    %c1_47 = arith.constant 1 : index
    %c0_48 = arith.constant 0 : index
    %c0_49 = arith.constant 0 : index
    %c0_50 = arith.constant 0 : index
    %47 = vector.load %arg2[%c1_47, %c0_48, %c0_49, %c0_50] : memref<2x3x384x128xbf16, #tpu.memory_space<vmem>>, vector<1x1x384x128xbf16>
    %48 = vector.shape_cast %47 : vector<1x1x384x128xbf16> to vector<384x128xbf16>
    %cst_51 = arith.constant dense<0.000000e+00> : vector<256x128xf32>
    %49 = tpu.matmul %46, %48, %cst_51 {dimension_numbers = #tpu.dot_dimension_numbers<[1], [0], [0], [1], [0, 0, 1, 1], [], []>} : vector<256x384xbf16>, vector<384x128xbf16>, vector<256x128xf32> -> vector<256x128xf32>
    %50 = vector.extract_strided_slice %44 {offsets = [1, 0, 0], sizes = [16, 16, 384], strides = [1, 1, 1]} : vector<18x16x384xbf16> to vector<16x16x384xbf16>
    %51 = vector.shape_cast %50 : vector<16x16x384xbf16> to vector<256x384xbf16>
    %c1_52 = arith.constant 1 : index
    %c1_53 = arith.constant 1 : index
    %c0_54 = arith.constant 0 : index
    %c0_55 = arith.constant 0 : index
    %52 = vector.load %arg2[%c1_52, %c1_53, %c0_54, %c0_55] : memref<2x3x384x128xbf16, #tpu.memory_space<vmem>>, vector<1x1x384x128xbf16>
    %53 = vector.shape_cast %52 : vector<1x1x384x128xbf16> to vector<384x128xbf16>
    %cst_56 = arith.constant dense<0.000000e+00> : vector<256x128xf32>
    %54 = tpu.matmul %51, %53, %cst_56 {dimension_numbers = #tpu.dot_dimension_numbers<[1], [0], [0], [1], [0, 0, 1, 1], [], []>} : vector<256x384xbf16>, vector<384x128xbf16>, vector<256x128xf32> -> vector<256x128xf32>
    %55 = arith.addf %49, %54 : vector<256x128xf32>
    %56 = vector.extract_strided_slice %44 {offsets = [2, 0, 0], sizes = [16, 16, 384], strides = [1, 1, 1]} : vector<18x16x384xbf16> to vector<16x16x384xbf16>
    %57 = vector.shape_cast %56 : vector<16x16x384xbf16> to vector<256x384xbf16>
    %c1_57 = arith.constant 1 : index
    %c2_58 = arith.constant 2 : index
    %c0_59 = arith.constant 0 : index
    %c0_60 = arith.constant 0 : index
    %58 = vector.load %arg2[%c1_57, %c2_58, %c0_59, %c0_60] : memref<2x3x384x128xbf16, #tpu.memory_space<vmem>>, vector<1x1x384x128xbf16>
    %59 = vector.shape_cast %58 : vector<1x1x384x128xbf16> to vector<384x128xbf16>
    %cst_61 = arith.constant dense<0.000000e+00> : vector<256x128xf32>
    %60 = tpu.matmul %57, %59, %cst_61 {dimension_numbers = #tpu.dot_dimension_numbers<[1], [0], [0], [1], [0, 0, 1, 1], [], []>} : vector<256x384xbf16>, vector<384x128xbf16>, vector<256x128xf32> -> vector<256x128xf32>
    %61 = arith.addf %55, %60 : vector<256x128xf32>
    %c1_62 = arith.constant 1 : index
    %c0_63 = arith.constant 0 : index
    %c0_64 = arith.constant 0 : index
    %62 = vector.load %arg3[%c1_62, %c0_63, %c0_64] : memref<2x1x128xf32, #tpu.memory_space<vmem>>, vector<1x1x128xf32>
    %63 = vector.shape_cast %62 : vector<1x1x128xf32> to vector<1x128xf32>
    %64 = vector.broadcast %63 : vector<1x128xf32> to vector<256x128xf32>
    %65 = arith.addf %61, %64 : vector<256x128xf32>
    %66 = arith.negf %65 : vector<256x128xf32>
    %67 = math.exp %66 : vector<256x128xf32>
    %cst_65 = arith.constant 1.000000e+00 : f32
    %68 = vector.broadcast %cst_65 : f32 to vector<256x128xf32>
    %69 = arith.addf %68, %67 : vector<256x128xf32>
    %70 = arith.divf %68, %69 : vector<256x128xf32>
    %71 = arith.mulf %65, %70 : vector<256x128xf32>
    %c1_66 = arith.constant 1 : index
    %c8_67 = arith.constant 8 : index
    %c0_68 = arith.constant 0 : index
    %72 = vector.load %arg5[%c1_66, %c8_67, %c0_68] : memref<18x25x128xbf16, #tpu.memory_space<vmem>>, vector<16x16x128xbf16>
    %73 = vector.shape_cast %71 : vector<256x128xf32> to vector<16x16x128xf32>
    %74 = arith.truncf %73 : vector<16x16x128xf32> to vector<16x16x128xbf16>
    %75 = arith.addf %72, %74 : vector<16x16x128xbf16>
    %c1_69 = arith.constant 1 : index
    %c8_70 = arith.constant 8 : index
    %c0_71 = arith.constant 0 : index
    %76 = vector.load %arg5[%c1_69, %c8_70, %c0_71] : memref<18x25x128xbf16, #tpu.memory_space<vmem>>, vector<16x16x128xbf16>
    tpu.vector_store %arg5[%c1_69, %c8_70, %c0_71], %75 {strides = array<i32>} : memref<18x25x128xbf16, #tpu.memory_space<vmem>>, vector<16x16x128xbf16>,
    %c1_72 = arith.constant 1 : index
    %c8_73 = arith.constant 8 : index
    %c0_74 = arith.constant 0 : index
    %77 = vector.load %arg5[%c1_72, %c8_73, %c0_74] : memref<18x25x128xbf16, #tpu.memory_space<vmem>>, vector<16x16x128xbf16>
    %c0_75 = arith.constant 0 : index
    %c0_76 = arith.constant 0 : index
    %c0_77 = arith.constant 0 : index
    %c0_78 = arith.constant 0 : index
    %78 = vector.load %arg4[%c0_75, %c0_76, %c0_77, %c0_78] : memref<1x16x16x128xbf16, #tpu.memory_space<vmem>>, vector<1x16x16x128xbf16>
    %79 = vector.shape_cast %78 : vector<1x16x16x128xbf16> to vector<16x16x128xbf16>
    %80 = vector.shape_cast %77 : vector<16x16x128xbf16> to vector<1x16x16x128xbf16>
    tpu.vector_store %arg4[%c0_75, %c0_76, %c0_77, %c0_78], %80 {strides = array<i32>} : memref<1x16x16x128xbf16, #tpu.memory_space<vmem>>, vector<1x16x16x128xbf16>,
    return
  }
  func.func @transform_0(%arg0: i32) -> (i32, i32, i32, i32) {
    %c0_i32 = arith.constant 0 : i32
    %c0_i32_0 = arith.constant 0 : i32
    %c0_i32_1 = arith.constant 0 : i32
    %c0_i32_2 = arith.constant 0 : i32
    return %arg0, %c0_i32, %c0_i32_0, %c0_i32_1 : i32, i32, i32, i32
  }
  func.func @transform_1(%arg0: i32) -> (i32, i32, i32, i32) {
    %c0_i32 = arith.constant 0 : i32
    %c0_i32_0 = arith.constant 0 : i32
    %c0_i32_1 = arith.constant 0 : i32
    %c0_i32_2 = arith.constant 0 : i32
    %c0_i32_3 = arith.constant 0 : i32
    return %c0_i32, %c0_i32_0, %c0_i32_1, %c0_i32_2 : i32, i32, i32, i32
  }
  func.func @transform_2(%arg0: i32) -> (i32, i32, i32) {
    %c0_i32 = arith.constant 0 : i32
    %c0_i32_0 = arith.constant 0 : i32
    %c0_i32_1 = arith.constant 0 : i32
    %c0_i32_2 = arith.constant 0 : i32
    return %c0_i32, %c0_i32_0, %c0_i32_1 : i32, i32, i32
  }
  func.func @transform_3(%arg0: i32) -> (i32, i32, i32, i32) {
    %c0_i32 = arith.constant 0 : i32
    %c0_i32_0 = arith.constant 0 : i32
    %c0_i32_1 = arith.constant 0 : i32
    %c0_i32_2 = arith.constant 0 : i32
    return %arg0, %c0_i32, %c0_i32_0, %c0_i32_1 : i32, i32, i32, i32
  }
}

module attributes {stable_mosaic.version = 11 : i64} {
  func.func @kernel(%arg0: i32, %arg1: memref<2x8x2x8x256xbf16, #tpu.memory_space<vmem>>, %arg2: memref<128x128xbf16, #tpu.memory_space<vmem>>, %arg3: memref<1x128xf32, #tpu.memory_space<vmem>>, %arg4: memref<1x128xf32, #tpu.memory_space<vmem>>, %arg5: memref<2x8x8x128xbf16, #tpu.memory_space<vmem>>) attributes {dimension_semantics = [#tpu.dimension_semantics<parallel>], iteration_bounds = array<i64: 1>, scalar_prefetch = 0 : i64, scratch_operands = 0 : i64, tpu.core_type = #tpu.core_type<tc>, window_params = [{transform_indices = @transform_0, window_bounds = array<i64: 2, 8, 2, 8, 256>}, {pipeline_mode = #tpu.pipeline_mode<synchronous>, transform_indices = @transform_1, window_bounds = array<i64: 128, 128>}, {pipeline_mode = #tpu.pipeline_mode<synchronous>, transform_indices = @transform_2, window_bounds = array<i64: 1, 128>}, {pipeline_mode = #tpu.pipeline_mode<synchronous>, transform_indices = @transform_3, window_bounds = array<i64: 1, 128>}, {transform_indices = @transform_4, window_bounds = array<i64: 2, 8, 8, 128>}]} {
    %c0 = arith.constant 0 : index
    %c0_0 = arith.constant 0 : index
    %0 = vector.load %arg2[%c0, %c0_0] : memref<128x128xbf16, #tpu.memory_space<vmem>>, vector<128x128xbf16>
    %c0_1 = arith.constant 0 : index
    %c0_2 = arith.constant 0 : index
    %c0_3 = arith.constant 0 : index
    %c0_4 = arith.constant 0 : index
    %c0_5 = arith.constant 0 : index
    %1 = vector.load %arg1[%c0_1, %c0_2, %c0_3, %c0_4, %c0_5] : memref<2x8x2x8x256xbf16, #tpu.memory_space<vmem>>, vector<2x8x1x8x128xbf16>
    %2 = vector.shape_cast %1 : vector<2x8x1x8x128xbf16> to vector<2x8x8x128xbf16>
    %3 = vector.shape_cast %2 : vector<2x8x8x128xbf16> to vector<128x128xbf16>
    %c0_6 = arith.constant 0 : index
    %c0_7 = arith.constant 0 : index
    %c0_8 = arith.constant 0 : index
    %c0_9 = arith.constant 0 : index
    %c128 = arith.constant 128 : index
    %4 = vector.load %arg1[%c0_6, %c0_7, %c0_8, %c0_9, %c128] : memref<2x8x2x8x256xbf16, #tpu.memory_space<vmem>>, vector<2x8x1x8x128xbf16>
    %5 = vector.shape_cast %4 : vector<2x8x1x8x128xbf16> to vector<2x8x8x128xbf16>
    %6 = vector.shape_cast %5 : vector<2x8x8x128xbf16> to vector<128x128xbf16>
    %c0_10 = arith.constant 0 : index
    %c0_11 = arith.constant 0 : index
    %c1 = arith.constant 1 : index
    %c0_12 = arith.constant 0 : index
    %c0_13 = arith.constant 0 : index
    %7 = vector.load %arg1[%c0_10, %c0_11, %c1, %c0_12, %c0_13] : memref<2x8x2x8x256xbf16, #tpu.memory_space<vmem>>, vector<2x8x1x8x128xbf16>
    %8 = vector.shape_cast %7 : vector<2x8x1x8x128xbf16> to vector<2x8x8x128xbf16>
    %9 = vector.shape_cast %8 : vector<2x8x8x128xbf16> to vector<128x128xbf16>
    %c0_14 = arith.constant 0 : index
    %c0_15 = arith.constant 0 : index
    %c1_16 = arith.constant 1 : index
    %c0_17 = arith.constant 0 : index
    %c128_18 = arith.constant 128 : index
    %10 = vector.load %arg1[%c0_14, %c0_15, %c1_16, %c0_17, %c128_18] : memref<2x8x2x8x256xbf16, #tpu.memory_space<vmem>>, vector<2x8x1x8x128xbf16>
    %11 = vector.shape_cast %10 : vector<2x8x1x8x128xbf16> to vector<2x8x8x128xbf16>
    %12 = vector.shape_cast %11 : vector<2x8x8x128xbf16> to vector<128x128xbf16>
    %13 = tpu.concatenate %3, %6, %9, %12 in 0 : vector<128x128xbf16>, vector<128x128xbf16>, vector<128x128xbf16>, vector<128x128xbf16> -> vector<512x128xbf16>
    %cst = arith.constant dense<0.000000e+00> : vector<512x128xf32>
    %14 = tpu.matmul %13, %0, %cst {dimension_numbers = #tpu.dot_dimension_numbers<[1], [0], [0], [1], [0, 0, 1, 1], [], []>} : vector<512x128xbf16>, vector<128x128xbf16>, vector<512x128xf32> -> vector<512x128xf32>
    %15 = vector.shape_cast %14 : vector<512x128xf32> to vector<4x128x128xf32>
    %cst_19 = arith.constant dense<0xFF800000> : vector<128x128xf32>
    %16 = vector.multi_reduction <maximumf>, %15, %cst_19 [0] : vector<4x128x128xf32> to vector<128x128xf32>
    %c0_20 = arith.constant 0 : index
    %c0_21 = arith.constant 0 : index
    %17 = vector.load %arg3[%c0_20, %c0_21] : memref<1x128xf32, #tpu.memory_space<vmem>>, vector<1x128xf32>
    %18 = vector.broadcast %17 : vector<1x128xf32> to vector<128x128xf32>
    %19 = arith.mulf %16, %18 : vector<128x128xf32>
    %c0_22 = arith.constant 0 : index
    %c0_23 = arith.constant 0 : index
    %20 = vector.load %arg4[%c0_22, %c0_23] : memref<1x128xf32, #tpu.memory_space<vmem>>, vector<1x128xf32>
    %21 = vector.broadcast %20 : vector<1x128xf32> to vector<128x128xf32>
    %22 = arith.addf %19, %21 : vector<128x128xf32>
    %23 = arith.negf %22 : vector<128x128xf32>
    %24 = math.exp %23 : vector<128x128xf32>
    %cst_24 = arith.constant 1.000000e+00 : f32
    %25 = vector.broadcast %cst_24 : f32 to vector<128x128xf32>
    %26 = arith.addf %25, %24 : vector<128x128xf32>
    %27 = arith.divf %25, %26 : vector<128x128xf32>
    %28 = arith.mulf %22, %27 : vector<128x128xf32>
    %29 = vector.shape_cast %28 : vector<128x128xf32> to vector<2x8x8x128xf32>
    %30 = arith.truncf %29 : vector<2x8x8x128xf32> to vector<2x8x8x128xbf16>
    %c0_25 = arith.constant 0 : index
    %c0_26 = arith.constant 0 : index
    %c0_27 = arith.constant 0 : index
    %c0_28 = arith.constant 0 : index
    %31 = vector.load %arg5[%c0_25, %c0_26, %c0_27, %c0_28] : memref<2x8x8x128xbf16, #tpu.memory_space<vmem>>, vector<2x8x8x128xbf16>
    tpu.vector_store %arg5[%c0_25, %c0_26, %c0_27, %c0_28], %30 {strides = array<i32>} : memref<2x8x8x128xbf16, #tpu.memory_space<vmem>>, vector<2x8x8x128xbf16>,
    return
  }
  func.func @transform_0(%arg0: i32) -> (i32, i32, i32, i32, i32) {
    %c0_i32 = arith.constant 0 : i32
    %c0_i32_0 = arith.constant 0 : i32
    %c0_i32_1 = arith.constant 0 : i32
    %c0_i32_2 = arith.constant 0 : i32
    %c0_i32_3 = arith.constant 0 : i32
    return %arg0, %c0_i32, %c0_i32_0, %c0_i32_1, %c0_i32_2 : i32, i32, i32, i32, i32
  }
  func.func @transform_1(%arg0: i32) -> (i32, i32) {
    %c0_i32 = arith.constant 0 : i32
    %c0_i32_0 = arith.constant 0 : i32
    %c0_i32_1 = arith.constant 0 : i32
    return %c0_i32, %c0_i32_0 : i32, i32
  }
  func.func @transform_2(%arg0: i32) -> (i32, i32) {
    %c0_i32 = arith.constant 0 : i32
    %c0_i32_0 = arith.constant 0 : i32
    %c0_i32_1 = arith.constant 0 : i32
    return %c0_i32, %c0_i32_0 : i32, i32
  }
  func.func @transform_3(%arg0: i32) -> (i32, i32) {
    %c0_i32 = arith.constant 0 : i32
    %c0_i32_0 = arith.constant 0 : i32
    %c0_i32_1 = arith.constant 0 : i32
    return %c0_i32, %c0_i32_0 : i32, i32
  }
  func.func @transform_4(%arg0: i32) -> (i32, i32, i32, i32) {
    %c0_i32 = arith.constant 0 : i32
    %c0_i32_0 = arith.constant 0 : i32
    %c0_i32_1 = arith.constant 0 : i32
    %c0_i32_2 = arith.constant 0 : i32
    return %arg0, %c0_i32, %c0_i32_0, %c0_i32_1 : i32, i32, i32, i32
  }
}

module attributes {stable_mosaic.version = 11 : i64} {
  func.func @kernel(%arg0: i32, %arg1: memref<1x8x8x128xbf16, #tpu.memory_space<vmem>>, %arg2: memref<2x3x384x128xbf16, #tpu.memory_space<vmem>>, %arg3: memref<2x1x128xf32, #tpu.memory_space<vmem>>, %arg4: memref<1x8x8x128xbf16, #tpu.memory_space<vmem>>, %arg5: memref<10x17x128xbf16, #tpu.memory_space<vmem>>) attributes {dimension_semantics = [#tpu.dimension_semantics<parallel>], iteration_bounds = array<i64: 2>, scalar_prefetch = 0 : i64, scratch_operands = 1 : i64, tpu.core_type = #tpu.core_type<tc>, window_params = [{transform_indices = @transform_0, window_bounds = array<i64: 1, 8, 8, 128>}, {pipeline_mode = #tpu.pipeline_mode<synchronous>, transform_indices = @transform_1, window_bounds = array<i64: 2, 3, 384, 128>}, {pipeline_mode = #tpu.pipeline_mode<synchronous>, transform_indices = @transform_2, window_bounds = array<i64: 2, 1, 128>}, {transform_indices = @transform_3, window_bounds = array<i64: 1, 8, 8, 128>}]} {
    %cst = arith.constant 0.000000e+00 : bf16
    %0 = vector.broadcast %cst : bf16 to vector<10x17x128xbf16>
    %c0 = arith.constant 0 : index
    %c0_0 = arith.constant 0 : index
    %c0_1 = arith.constant 0 : index
    %1 = vector.load %arg5[%c0, %c0_0, %c0_1] : memref<10x17x128xbf16, #tpu.memory_space<vmem>>, vector<10x17x128xbf16>
    tpu.vector_store %arg5[%c0, %c0_0, %c0_1], %0 {strides = array<i32>} : memref<10x17x128xbf16, #tpu.memory_space<vmem>>, vector<10x17x128xbf16>,
    %c0_2 = arith.constant 0 : index
    %c0_3 = arith.constant 0 : index
    %c0_4 = arith.constant 0 : index
    %c0_5 = arith.constant 0 : index
    %2 = vector.load %arg1[%c0_2, %c0_3, %c0_4, %c0_5] : memref<1x8x8x128xbf16, #tpu.memory_space<vmem>>, vector<1x8x8x128xbf16>
    %3 = vector.shape_cast %2 : vector<1x8x8x128xbf16> to vector<8x8x128xbf16>
    %c1 = arith.constant 1 : index
    %c8 = arith.constant 8 : index
    %c0_6 = arith.constant 0 : index
    %4 = vector.load %arg5[%c1, %c8, %c0_6] : memref<10x17x128xbf16, #tpu.memory_space<vmem>>, vector<8x8x128xbf16>
    tpu.vector_store %arg5[%c1, %c8, %c0_6], %3 {strides = array<i32>} : memref<10x17x128xbf16, #tpu.memory_space<vmem>>, vector<8x8x128xbf16>,
    %c0_7 = arith.constant 0 : index
    %c7 = arith.constant 7 : index
    %c0_8 = arith.constant 0 : index
    %5 = vector.load %arg5[%c0_7, %c7, %c0_8] : memref<10x17x128xbf16, #tpu.memory_space<vmem>>, vector<10x8x128xbf16>
    %c0_9 = arith.constant 0 : index
    %c8_10 = arith.constant 8 : index
    %c0_11 = arith.constant 0 : index
    %6 = vector.load %arg5[%c0_9, %c8_10, %c0_11] : memref<10x17x128xbf16, #tpu.memory_space<vmem>>, vector<10x8x128xbf16>
    %c0_12 = arith.constant 0 : index
    %c9 = arith.constant 9 : index
    %c0_13 = arith.constant 0 : index
    %7 = vector.load %arg5[%c0_12, %c9, %c0_13] : memref<10x17x128xbf16, #tpu.memory_space<vmem>>, vector<10x8x128xbf16>
    %8 = tpu.concatenate %5, %6, %7 in 2 : vector<10x8x128xbf16>, vector<10x8x128xbf16>, vector<10x8x128xbf16> -> vector<10x8x384xbf16>
    %9 = vector.extract_strided_slice %8 {offsets = [0, 0, 0], sizes = [8, 8, 384], strides = [1, 1, 1]} : vector<10x8x384xbf16> to vector<8x8x384xbf16>
    %10 = vector.shape_cast %9 : vector<8x8x384xbf16> to vector<64x384xbf16>
    %c0_14 = arith.constant 0 : index
    %c0_15 = arith.constant 0 : index
    %c0_16 = arith.constant 0 : index
    %c0_17 = arith.constant 0 : index
    %11 = vector.load %arg2[%c0_14, %c0_15, %c0_16, %c0_17] : memref<2x3x384x128xbf16, #tpu.memory_space<vmem>>, vector<1x1x384x128xbf16>
    %12 = vector.shape_cast %11 : vector<1x1x384x128xbf16> to vector<384x128xbf16>
    %cst_18 = arith.constant dense<0.000000e+00> : vector<64x128xf32>
    %13 = tpu.matmul %10, %12, %cst_18 {dimension_numbers = #tpu.dot_dimension_numbers<[1], [0], [0], [1], [0, 0, 1, 1], [], []>} : vector<64x384xbf16>, vector<384x128xbf16>, vector<64x128xf32> -> vector<64x128xf32>
    %14 = vector.extract_strided_slice %8 {offsets = [1, 0, 0], sizes = [8, 8, 384], strides = [1, 1, 1]} : vector<10x8x384xbf16> to vector<8x8x384xbf16>
    %15 = vector.shape_cast %14 : vector<8x8x384xbf16> to vector<64x384xbf16>
    %c0_19 = arith.constant 0 : index
    %c1_20 = arith.constant 1 : index
    %c0_21 = arith.constant 0 : index
    %c0_22 = arith.constant 0 : index
    %16 = vector.load %arg2[%c0_19, %c1_20, %c0_21, %c0_22] : memref<2x3x384x128xbf16, #tpu.memory_space<vmem>>, vector<1x1x384x128xbf16>
    %17 = vector.shape_cast %16 : vector<1x1x384x128xbf16> to vector<384x128xbf16>
    %cst_23 = arith.constant dense<0.000000e+00> : vector<64x128xf32>
    %18 = tpu.matmul %15, %17, %cst_23 {dimension_numbers = #tpu.dot_dimension_numbers<[1], [0], [0], [1], [0, 0, 1, 1], [], []>} : vector<64x384xbf16>, vector<384x128xbf16>, vector<64x128xf32> -> vector<64x128xf32>
    %19 = arith.addf %13, %18 : vector<64x128xf32>
    %20 = vector.extract_strided_slice %8 {offsets = [2, 0, 0], sizes = [8, 8, 384], strides = [1, 1, 1]} : vector<10x8x384xbf16> to vector<8x8x384xbf16>
    %21 = vector.shape_cast %20 : vector<8x8x384xbf16> to vector<64x384xbf16>
    %c0_24 = arith.constant 0 : index
    %c2 = arith.constant 2 : index
    %c0_25 = arith.constant 0 : index
    %c0_26 = arith.constant 0 : index
    %22 = vector.load %arg2[%c0_24, %c2, %c0_25, %c0_26] : memref<2x3x384x128xbf16, #tpu.memory_space<vmem>>, vector<1x1x384x128xbf16>
    %23 = vector.shape_cast %22 : vector<1x1x384x128xbf16> to vector<384x128xbf16>
    %cst_27 = arith.constant dense<0.000000e+00> : vector<64x128xf32>
    %24 = tpu.matmul %21, %23, %cst_27 {dimension_numbers = #tpu.dot_dimension_numbers<[1], [0], [0], [1], [0, 0, 1, 1], [], []>} : vector<64x384xbf16>, vector<384x128xbf16>, vector<64x128xf32> -> vector<64x128xf32>
    %25 = arith.addf %19, %24 : vector<64x128xf32>
    %c0_28 = arith.constant 0 : index
    %c0_29 = arith.constant 0 : index
    %c0_30 = arith.constant 0 : index
    %26 = vector.load %arg3[%c0_28, %c0_29, %c0_30] : memref<2x1x128xf32, #tpu.memory_space<vmem>>, vector<1x1x128xf32>
    %27 = vector.shape_cast %26 : vector<1x1x128xf32> to vector<1x128xf32>
    %28 = vector.broadcast %27 : vector<1x128xf32> to vector<64x128xf32>
    %29 = arith.addf %25, %28 : vector<64x128xf32>
    %30 = arith.negf %29 : vector<64x128xf32>
    %31 = math.exp %30 : vector<64x128xf32>
    %cst_31 = arith.constant 1.000000e+00 : f32
    %32 = vector.broadcast %cst_31 : f32 to vector<64x128xf32>
    %33 = arith.addf %32, %31 : vector<64x128xf32>
    %34 = arith.divf %32, %33 : vector<64x128xf32>
    %35 = arith.mulf %29, %34 : vector<64x128xf32>
    %c1_32 = arith.constant 1 : index
    %c8_33 = arith.constant 8 : index
    %c0_34 = arith.constant 0 : index
    %36 = vector.load %arg5[%c1_32, %c8_33, %c0_34] : memref<10x17x128xbf16, #tpu.memory_space<vmem>>, vector<8x8x128xbf16>
    %37 = vector.shape_cast %35 : vector<64x128xf32> to vector<8x8x128xf32>
    %38 = arith.truncf %37 : vector<8x8x128xf32> to vector<8x8x128xbf16>
    %39 = arith.addf %36, %38 : vector<8x8x128xbf16>
    %c1_35 = arith.constant 1 : index
    %c8_36 = arith.constant 8 : index
    %c0_37 = arith.constant 0 : index
    %40 = vector.load %arg5[%c1_35, %c8_36, %c0_37] : memref<10x17x128xbf16, #tpu.memory_space<vmem>>, vector<8x8x128xbf16>
    tpu.vector_store %arg5[%c1_35, %c8_36, %c0_37], %39 {strides = array<i32>} : memref<10x17x128xbf16, #tpu.memory_space<vmem>>, vector<8x8x128xbf16>,
    %c0_38 = arith.constant 0 : index
    %c7_39 = arith.constant 7 : index
    %c0_40 = arith.constant 0 : index
    %41 = vector.load %arg5[%c0_38, %c7_39, %c0_40] : memref<10x17x128xbf16, #tpu.memory_space<vmem>>, vector<10x8x128xbf16>
    %c0_41 = arith.constant 0 : index
    %c8_42 = arith.constant 8 : index
    %c0_43 = arith.constant 0 : index
    %42 = vector.load %arg5[%c0_41, %c8_42, %c0_43] : memref<10x17x128xbf16, #tpu.memory_space<vmem>>, vector<10x8x128xbf16>
    %c0_44 = arith.constant 0 : index
    %c9_45 = arith.constant 9 : index
    %c0_46 = arith.constant 0 : index
    %43 = vector.load %arg5[%c0_44, %c9_45, %c0_46] : memref<10x17x128xbf16, #tpu.memory_space<vmem>>, vector<10x8x128xbf16>
    %44 = tpu.concatenate %41, %42, %43 in 2 : vector<10x8x128xbf16>, vector<10x8x128xbf16>, vector<10x8x128xbf16> -> vector<10x8x384xbf16>
    %45 = vector.extract_strided_slice %44 {offsets = [0, 0, 0], sizes = [8, 8, 384], strides = [1, 1, 1]} : vector<10x8x384xbf16> to vector<8x8x384xbf16>
    %46 = vector.shape_cast %45 : vector<8x8x384xbf16> to vector<64x384xbf16>
    %c1_47 = arith.constant 1 : index
    %c0_48 = arith.constant 0 : index
    %c0_49 = arith.constant 0 : index
    %c0_50 = arith.constant 0 : index
    %47 = vector.load %arg2[%c1_47, %c0_48, %c0_49, %c0_50] : memref<2x3x384x128xbf16, #tpu.memory_space<vmem>>, vector<1x1x384x128xbf16>
    %48 = vector.shape_cast %47 : vector<1x1x384x128xbf16> to vector<384x128xbf16>
    %cst_51 = arith.constant dense<0.000000e+00> : vector<64x128xf32>
    %49 = tpu.matmul %46, %48, %cst_51 {dimension_numbers = #tpu.dot_dimension_numbers<[1], [0], [0], [1], [0, 0, 1, 1], [], []>} : vector<64x384xbf16>, vector<384x128xbf16>, vector<64x128xf32> -> vector<64x128xf32>
    %50 = vector.extract_strided_slice %44 {offsets = [1, 0, 0], sizes = [8, 8, 384], strides = [1, 1, 1]} : vector<10x8x384xbf16> to vector<8x8x384xbf16>
    %51 = vector.shape_cast %50 : vector<8x8x384xbf16> to vector<64x384xbf16>
    %c1_52 = arith.constant 1 : index
    %c1_53 = arith.constant 1 : index
    %c0_54 = arith.constant 0 : index
    %c0_55 = arith.constant 0 : index
    %52 = vector.load %arg2[%c1_52, %c1_53, %c0_54, %c0_55] : memref<2x3x384x128xbf16, #tpu.memory_space<vmem>>, vector<1x1x384x128xbf16>
    %53 = vector.shape_cast %52 : vector<1x1x384x128xbf16> to vector<384x128xbf16>
    %cst_56 = arith.constant dense<0.000000e+00> : vector<64x128xf32>
    %54 = tpu.matmul %51, %53, %cst_56 {dimension_numbers = #tpu.dot_dimension_numbers<[1], [0], [0], [1], [0, 0, 1, 1], [], []>} : vector<64x384xbf16>, vector<384x128xbf16>, vector<64x128xf32> -> vector<64x128xf32>
    %55 = arith.addf %49, %54 : vector<64x128xf32>
    %56 = vector.extract_strided_slice %44 {offsets = [2, 0, 0], sizes = [8, 8, 384], strides = [1, 1, 1]} : vector<10x8x384xbf16> to vector<8x8x384xbf16>
    %57 = vector.shape_cast %56 : vector<8x8x384xbf16> to vector<64x384xbf16>
    %c1_57 = arith.constant 1 : index
    %c2_58 = arith.constant 2 : index
    %c0_59 = arith.constant 0 : index
    %c0_60 = arith.constant 0 : index
    %58 = vector.load %arg2[%c1_57, %c2_58, %c0_59, %c0_60] : memref<2x3x384x128xbf16, #tpu.memory_space<vmem>>, vector<1x1x384x128xbf16>
    %59 = vector.shape_cast %58 : vector<1x1x384x128xbf16> to vector<384x128xbf16>
    %cst_61 = arith.constant dense<0.000000e+00> : vector<64x128xf32>
    %60 = tpu.matmul %57, %59, %cst_61 {dimension_numbers = #tpu.dot_dimension_numbers<[1], [0], [0], [1], [0, 0, 1, 1], [], []>} : vector<64x384xbf16>, vector<384x128xbf16>, vector<64x128xf32> -> vector<64x128xf32>
    %61 = arith.addf %55, %60 : vector<64x128xf32>
    %c1_62 = arith.constant 1 : index
    %c0_63 = arith.constant 0 : index
    %c0_64 = arith.constant 0 : index
    %62 = vector.load %arg3[%c1_62, %c0_63, %c0_64] : memref<2x1x128xf32, #tpu.memory_space<vmem>>, vector<1x1x128xf32>
    %63 = vector.shape_cast %62 : vector<1x1x128xf32> to vector<1x128xf32>
    %64 = vector.broadcast %63 : vector<1x128xf32> to vector<64x128xf32>
    %65 = arith.addf %61, %64 : vector<64x128xf32>
    %66 = arith.negf %65 : vector<64x128xf32>
    %67 = math.exp %66 : vector<64x128xf32>
    %cst_65 = arith.constant 1.000000e+00 : f32
    %68 = vector.broadcast %cst_65 : f32 to vector<64x128xf32>
    %69 = arith.addf %68, %67 : vector<64x128xf32>
    %70 = arith.divf %68, %69 : vector<64x128xf32>
    %71 = arith.mulf %65, %70 : vector<64x128xf32>
    %c1_66 = arith.constant 1 : index
    %c8_67 = arith.constant 8 : index
    %c0_68 = arith.constant 0 : index
    %72 = vector.load %arg5[%c1_66, %c8_67, %c0_68] : memref<10x17x128xbf16, #tpu.memory_space<vmem>>, vector<8x8x128xbf16>
    %73 = vector.shape_cast %71 : vector<64x128xf32> to vector<8x8x128xf32>
    %74 = arith.truncf %73 : vector<8x8x128xf32> to vector<8x8x128xbf16>
    %75 = arith.addf %72, %74 : vector<8x8x128xbf16>
    %c1_69 = arith.constant 1 : index
    %c8_70 = arith.constant 8 : index
    %c0_71 = arith.constant 0 : index
    %76 = vector.load %arg5[%c1_69, %c8_70, %c0_71] : memref<10x17x128xbf16, #tpu.memory_space<vmem>>, vector<8x8x128xbf16>
    tpu.vector_store %arg5[%c1_69, %c8_70, %c0_71], %75 {strides = array<i32>} : memref<10x17x128xbf16, #tpu.memory_space<vmem>>, vector<8x8x128xbf16>,
    %c1_72 = arith.constant 1 : index
    %c8_73 = arith.constant 8 : index
    %c0_74 = arith.constant 0 : index
    %77 = vector.load %arg5[%c1_72, %c8_73, %c0_74] : memref<10x17x128xbf16, #tpu.memory_space<vmem>>, vector<8x8x128xbf16>
    %c0_75 = arith.constant 0 : index
    %c0_76 = arith.constant 0 : index
    %c0_77 = arith.constant 0 : index
    %c0_78 = arith.constant 0 : index
    %78 = vector.load %arg4[%c0_75, %c0_76, %c0_77, %c0_78] : memref<1x8x8x128xbf16, #tpu.memory_space<vmem>>, vector<1x8x8x128xbf16>
    %79 = vector.shape_cast %78 : vector<1x8x8x128xbf16> to vector<8x8x128xbf16>
    %80 = vector.shape_cast %77 : vector<8x8x128xbf16> to vector<1x8x8x128xbf16>
    tpu.vector_store %arg4[%c0_75, %c0_76, %c0_77, %c0_78], %80 {strides = array<i32>} : memref<1x8x8x128xbf16, #tpu.memory_space<vmem>>, vector<1x8x8x128xbf16>,
    return
  }
  func.func @transform_0(%arg0: i32) -> (i32, i32, i32, i32) {
    %c0_i32 = arith.constant 0 : i32
    %c0_i32_0 = arith.constant 0 : i32
    %c0_i32_1 = arith.constant 0 : i32
    %c0_i32_2 = arith.constant 0 : i32
    return %arg0, %c0_i32, %c0_i32_0, %c0_i32_1 : i32, i32, i32, i32
  }
  func.func @transform_1(%arg0: i32) -> (i32, i32, i32, i32) {
    %c0_i32 = arith.constant 0 : i32
    %c0_i32_0 = arith.constant 0 : i32
    %c0_i32_1 = arith.constant 0 : i32
    %c0_i32_2 = arith.constant 0 : i32
    %c0_i32_3 = arith.constant 0 : i32
    return %c0_i32, %c0_i32_0, %c0_i32_1, %c0_i32_2 : i32, i32, i32, i32
  }
  func.func @transform_2(%arg0: i32) -> (i32, i32, i32) {
    %c0_i32 = arith.constant 0 : i32
    %c0_i32_0 = arith.constant 0 : i32
    %c0_i32_1 = arith.constant 0 : i32
    %c0_i32_2 = arith.constant 0 : i32
    return %c0_i32, %c0_i32_0, %c0_i32_1 : i32, i32, i32
  }
  func.func @transform_3(%arg0: i32) -> (i32, i32, i32, i32) {
    %c0_i32 = arith.constant 0 : i32
    %c0_i32_0 = arith.constant 0 : i32
    %c0_i32_1 = arith.constant 0 : i32
    %c0_i32_2 = arith.constant 0 : i32
    return %arg0, %c0_i32, %c0_i32_0, %c0_i32_1 : i32, i32, i32, i32
  }
}

</mosaic_0001>

<bundles_post_ra>
// kernel: _lambda_.4
= control target key start
LH: loop header
LB: loop body
LE: loop exit
PB: predicated region body
PF: predicated region fallthrough
CT: control target
= control target key end

     0   :  { %s1588_s1 = inlined_call_operand.vmem [shape: bf16[128,128], index: 1, kind: input, shape index: {}]   ;;  %s1589_s0 = inlined_call_operand.vmem [shape: bf16[2,8,2,8,256], index: 0, kind: input, shape index: {}]   ;;  %s1590_s2 = inlined_call_operand.vmem [shape: f32[1,128], index: 2, kind: input, shape index: {}]   ;;  %s1591_s3 = inlined_call_operand.vmem [shape: f32[1,128], index: 3, kind: input, shape index: {}]   ;;  %s1592_s4 = inlined_call_operand.vmem [shape: bf16[2,8,8,128], index: 4, kind: output, shape index: {}]  }
   0x1   :  { %v1143_v0 = vld [vmem:[%s1588_s1 + $0x38] sm:$0xff]   ;;  %v1144_v1 = vld [vmem:[%s1588_s1 + $0x30] sm:$0xff]   ;;  %v1145_v2 = vld [vmem:[%s1588_s1 + $0x28] sm:$0xff]  }
   0x2   :  { %1047 = vmatprep.subr.bf16.mxu0 %v1143_v0  ;;  %1127 = vmatprep.subr.bf16.mxu1 %v1143_v0  ;;  %v1146_v3 = vld [vmem:[%s1588_s1 + $0x20] sm:$0xff]   ;;  %v1152_v5 = vld [vmem:[%s1589_s0 + $0x8] ss:$16 sps:$4 sm:$0xff]   ;;  %v1148_v7 = vld [vmem:[%s1588_s1 + $0x10] sm:$0xff]  }
   0x3   :  { %1048 = vmatpush3.bf16.msra.mxu0 %v1143_v0  ;;  %1135 = vmatpush3.bf16.msra.mxu1 %v1143_v0  ;;  %v1151_v4 = vld [vmem:[%s1589_s0] ss:$16 sps:$4 sm:$0xff]   ;;  %v1147_v6 = vld [vmem:[%s1588_s1 + $0x18] sm:$0xff]   ;;  %v1149_v8 = vld [vmem:[%s1588_s1 + $0x8] sm:$0xff]  }
   0x4   :  { %1049 = vmatprep.subr.bf16.mxu0 %v1144_v1  ;;  %1128 = vmatprep.subr.bf16.mxu1 %v1144_v1  ;;  %v1150_v9 = vld [vmem:[%s1588_s1] sm:$0xff]   ;;  %v1154_v11 = vld [vmem:[%s1589_s0 + $0x28] ss:$16 sps:$4 sm:$0xff]   ;;  %v1168_v25 = vld [vmem:[%s1589_s0 + $0xc] ss:$16 sps:$4 sm:$0xff]  }
   0x5   :  { %1063 = vmatprep.mubr.bf16.mxu0 %v1151_v4  ;;  %1095 = vmatprep.mubr.bf16.mxu1 %v1152_v5  ;;  %v1153_v10 = vld [vmem:[%s1589_s0 + $0x20] ss:$16 sps:$4 sm:$0xff]   ;;  %v1156_v13 = vld [vmem:[%s1589_s0 + $0x48] ss:$16 sps:$4 sm:$0xff]   ;;  %v1167_v24 = vld [vmem:[%s1589_s0 + $0x4] ss:$16 sps:$4 sm:$0xff]  }
   0x6   :  { %v1155_v12 = vld [vmem:[%s1589_s0 + $0x40] ss:$16 sps:$4 sm:$0xff]   ;;  %v1158_v15 = vld [vmem:[%s1589_s0 + $0x68] ss:$16 sps:$4 sm:$0xff]   ;;  %v1169_v26 = vld [vmem:[%s1589_s0 + $0x24] ss:$16 sps:$4 sm:$0xff]  }
   0x7   :  { %1050 = vmatpush3.bf16.msra.mxu0 %v1144_v1  ;;  %1136 = vmatpush3.bf16.msra.mxu1 %v1144_v1  ;;  %v1157_v14 = vld [vmem:[%s1589_s0 + $0x60] ss:$16 sps:$4 sm:$0xff]   ;;  %v1160_v17 = vld [vmem:[%s1589_s0 + $0x88] ss:$16 sps:$4 sm:$0xff]   ;;  %v1170_v27 = vld [vmem:[%s1589_s0 + $0x2c] ss:$16 sps:$4 sm:$0xff]  }
   0x8   :  { %1051 = vmatprep.subr.bf16.mxu0 %v1145_v2  ;;  %1129 = vmatprep.subr.bf16.mxu1 %v1145_v2  ;;  %v1159_v16 = vld [vmem:[%s1589_s0 + $0x80] ss:$16 sps:$4 sm:$0xff]   ;;  %v1162_v19 = vld [vmem:[%s1589_s0 + $0xa8] ss:$16 sps:$4 sm:$0xff]   ;;  %v1171_v28 = vld [vmem:[%s1589_s0 + $0x44] ss:$16 sps:$4 sm:$0xff]  }
   0x9   :  { %v1161_v18 = vld [vmem:[%s1589_s0 + $0xa0] ss:$16 sps:$4 sm:$0xff]   ;;  %v1164_v21 = vld [vmem:[%s1589_s0 + $0xc8] ss:$16 sps:$4 sm:$0xff]   ;;  %v1172_v29 = vld [vmem:[%s1589_s0 + $0x4c] ss:$16 sps:$4 sm:$0xff]  }
   0xa   :  { %v1163_v20 = vld [vmem:[%s1589_s0 + $0xc0] ss:$16 sps:$4 sm:$0xff]   ;;  %v1166_v23 = vld [vmem:[%s1589_s0 + $0xe8] ss:$16 sps:$4 sm:$0xff]   ;;  %v1173_v30 = vld [vmem:[%s1589_s0 + $0x64] ss:$16 sps:$4 sm:$0xff]  }
   0xb   :  { %1052 = vmatpush3.bf16.msra.mxu0 %v1145_v2  ;;  %1137 = vmatpush3.bf16.msra.mxu1 %v1145_v2  ;;  %v1165_v22 = vld [vmem:[%s1589_s0 + $0xe0] ss:$16 sps:$4 sm:$0xff]   ;;  %v1174_v31 = vld [vmem:[%s1589_s0 + $0x6c] ss:$16 sps:$4 sm:$0xff]   ;;  %v1175_v32 = vld [vmem:[%s1589_s0 + $0x84] ss:$16 sps:$4 sm:$0xff]  }
   0xc   :  { %1053 = vmatprep.subr.bf16.mxu0 %v1146_v3  ;;  %1130 = vmatprep.subr.bf16.mxu1 %v1146_v3  ;;  %v1176_v33 = vld [vmem:[%s1589_s0 + $0x8c] ss:$16 sps:$4 sm:$0xff]   ;;  %v1177_v34 = vld [vmem:[%s1589_s0 + $0xa4] ss:$16 sps:$4 sm:$0xff]  }
   0xd   :  { %v1178_v35 = vld [vmem:[%s1589_s0 + $0xac] ss:$16 sps:$4 sm:$0xff]   ;;  %v1179_v36 = vld [vmem:[%s1589_s0 + $0xc4] ss:$16 sps:$4 sm:$0xff]  }
   0xe   :  { %v1180_v37 = vld [vmem:[%s1589_s0 + $0xcc] ss:$16 sps:$4 sm:$0xff]   ;;  %v1181_v38 = vld [vmem:[%s1589_s0 + $0xe4] ss:$16 sps:$4 sm:$0xff]  }
   0xf   :  { %1054 = vmatpush3.bf16.msra.mxu0 %v1146_v3  ;;  %1138 = vmatpush3.bf16.msra.mxu1 %v1146_v3  ;;  %v1182_v39 = vld [vmem:[%s1589_s0 + $0xec] ss:$16 sps:$4 sm:$0xff]  }
  0x10   :  { %1055 = vmatprep.subr.bf16.mxu0 %v1147_v6  ;;  %1131 = vmatprep.subr.bf16.mxu1 %v1147_v6 }
  0x13   :  { %1056 = vmatpush3.bf16.msra.mxu0 %v1147_v6  ;;  %1139 = vmatpush3.bf16.msra.mxu1 %v1147_v6 }
  0x14   :  { %1057 = vmatprep.subr.bf16.mxu0 %v1148_v7  ;;  %1132 = vmatprep.subr.bf16.mxu1 %v1148_v7 }
  0x17   :  { %1058 = vmatpush3.bf16.msra.mxu0 %v1148_v7  ;;  %1140 = vmatpush3.bf16.msra.mxu1 %v1148_v7 }
  0x18   :  { %1059 = vmatprep.subr.bf16.mxu0 %v1149_v8  ;;  %1133 = vmatprep.subr.bf16.mxu1 %v1149_v8 }
  0x1b   :  { %1060 = vmatpush3.bf16.msra.mxu0 %v1149_v8  ;;  %1141 = vmatpush3.bf16.msra.mxu1 %v1149_v8 }
  0x1c   :  { %1061 = vmatprep.subr.bf16.mxu0 %v1150_v9  ;;  %1134 = vmatprep.subr.bf16.mxu1 %v1150_v9 }
  0x1f   :  { %1062 = vmatpush3.bf16.msra.mxu0 %v1150_v9  ;;  %1142 = vmatpush3.bf16.msra.mxu1 %v1150_v9 }
  0x22   :  { %1064 = vmatmul.mubr.bf16.vlgmr.msra.gmra.mxu0 %v1153_v10  ;;  %1096 = vmatmul.mubr.bf16.vlgmr.msra.gmra.mxu1 %v1154_v11 }
  0x23   :  { %1067 = vmatprep.mubr.bf16.mxu0 %v1155_v12  ;;  %1099 = vmatprep.mubr.bf16.mxu1 %v1156_v13 }
  0x2a   :  { %1068 = vmatmul.mubr.bf16.gmra.mxu0 %v1157_v14  ;;  %1100 = vmatmul.mubr.bf16.gmra.mxu1 %v1158_v15  ;;  %v1439_v15 = vld [vmem:[%s1590_s2] ss:$0 sm:$0xff] }
  0x2b   :  { %1071 = vmatprep.mubr.bf16.mxu0 %v1159_v16  ;;  %1103 = vmatprep.mubr.bf16.mxu1 %v1160_v17 }
  0x32   :  { %1072 = vmatmul.mubr.bf16.gmra.mxu0 %v1161_v18  ;;  %1104 = vmatmul.mubr.bf16.gmra.mxu1 %v1162_v19 }
  0x33   :  { %1075 = vmatprep.mubr.bf16.mxu0 %v1163_v20  ;;  %1107 = vmatprep.mubr.bf16.mxu1 %v1164_v21  ;;  %v1444_v21 = vld [vmem:[%s1591_s3] ss:$0 sm:$0xff] }
  0x3a   :  { %1076 = vmatmul.mubr.bf16.gmra.mxu0 %v1165_v22  ;;  %1108 = vmatmul.mubr.bf16.gmra.mxu1 %v1166_v23 }
  0x3b   :  { %1079 = vmatprep.mubr.bf16.mxu0 %v1167_v24  ;;  %1111 = vmatprep.mubr.bf16.mxu1 %v1168_v25 }
  0x42   :  { %1080 = vmatmul.mubr.bf16.gmra.mxu0 %v1169_v26  ;;  %1112 = vmatmul.mubr.bf16.gmra.mxu1 %v1170_v27 }
  0x43   :  { %1083 = vmatprep.mubr.bf16.mxu0 %v1171_v28  ;;  %1115 = vmatprep.mubr.bf16.mxu1 %v1172_v29 }
  0x4a   :  { %1084 = vmatmul.mubr.bf16.gmra.mxu0 %v1173_v30  ;;  %1116 = vmatmul.mubr.bf16.gmra.mxu1 %v1174_v31 }
  0x4b   :  { %1087 = vmatprep.mubr.bf16.mxu0 %v1175_v32  ;;  %1119 = vmatprep.mubr.bf16.mxu1 %v1176_v33 }
  0x52   :  { %1088 = vmatmul.mubr.bf16.gmra.mxu0 %v1177_v34  ;;  %1120 = vmatmul.mubr.bf16.gmra.mxu1 %v1178_v35 }
  0x53   :  { %1091 = vmatprep.mubr.bf16.mxu0 %v1179_v36  ;;  %1123 = vmatprep.mubr.bf16.mxu1 %v1180_v37 }
  0x5a   :  { %1092 = vmatmul.mubr.bf16.gmra.mxu0 %v1181_v38  ;;  %1124 = vmatmul.mubr.bf16.gmra.mxu1 %v1182_v39 }
  0xe2   :  { %v1065_v40 = vpop.f32.mrf.mxu0  ;;  %v1097_v41 = vpop.f32.mrf.mxu1 }
  0xe4   :  { %v373_v42 = vpop.f32.mrf.mxu0  ;;  %v501_v43 = vpop.f32.mrf.mxu1 }
  0xe6   :  { %v1066_v44 = vpop.f32.mrf.mxu0  ;;  %v1098_v45 = vpop.f32.mrf.mxu1 }
  0xe8   :  { %v376_v46 = vpop.f32.mrf.mxu0  ;;  %v504_v47 = vpop.f32.mrf.mxu1 }
  0xea   :  { %v1069_v48 = vpop.f32.mrf.mxu0  ;;  %v1101_v49 = vpop.f32.mrf.mxu1 }
  0xec   :  { %v1392_v50 = vpop.f32.mrf.mxu0  ;;  %v1394_v51 = vpop.f32.mrf.mxu1 }
  0xee   :  { %v1396_v52 = vpop.f32.mrf.mxu0  ;;  %v1398_v53 = vpop.f32.mrf.mxu1 }
  0xf0   :  { %v1400_v54 = vpop.f32.mrf.mxu0  ;;  %v1402_v55 = vpop.f32.mrf.mxu1 }
  0xf2   :  { %v1404_v56 = vpop.f32.mrf.mxu0  ;;  %v1406_v57 = vpop.f32.mrf.mxu1 }
  0xf4   :  { %v1408_v58 = vpop.f32.mrf.mxu0  ;;  %v1410_v59 = vpop.f32.mrf.mxu1 }
  0xf6   :  { %v1412_v60 = vpop.f32.mrf.mxu0  ;;  %v1414_v61 = vpop.f32.mrf.mxu1 }
  0xf8   :  { %v1416_v62 = vpop.f32.mrf.mxu0  ;;  %v1418_v63 = vpop.f32.mrf.mxu1 }
  0xfa   :  { %v1420_v0 = vpop.f32.mrf.mxu0  ;;  %v1422_v1 = vpop.f32.mrf.mxu1 }
  0xfc   :  { %v1424_v2 = vpop.f32.mrf.mxu0  ;;  %v1426_v3 = vpop.f32.mrf.mxu1 }
  0xfe   :  { %v1428_v4 = vpop.f32.mrf.mxu0  ;;  %v1430_v5 = vpop.f32.mrf.mxu1 }
 0x100   :  { %v1432_v6 = vpop.f32.mrf.mxu0  ;;  %v1434_v7 = vpop.f32.mrf.mxu1 }
 0x102   :  { %v1081_v8 = vpop.f32.mrf.mxu0  ;;  %v1113_v9 = vpop.f32.mrf.mxu1 }
 0x103   :  { %v634_v10 = vmax.f32 %v1065_v40, %v1081_v8 }
 0x104   :  { %v437_v11 = vpop.f32.mrf.mxu0  ;;  %v565_v12 = vpop.f32.mrf.mxu1 }
 0x105   :  { %v635_v13 = vmax.f32 %v634_v10, %v1097_v41  ;;  %v628_v14 = vmax.f32 %v373_v42, %v437_v11 }
 0x106   :  { %v1082_v16 = vpop.f32.mrf.mxu0  ;;  %v1114_v17 = vpop.f32.mrf.mxu1 }
 0x107   :  { %v636_v18 = vmax.f32 %v635_v13, %v1113_v9  ;;  %v629_v19 = vmax.f32 %v628_v14, %v501_v43  ;;  %v637_v20 = vmax.f32 %v1066_v44, %v1082_v16 }
 0x108   :  { %v440_v22 = vpop.f32.mrf.mxu0  ;;  %v568_v23 = vpop.f32.mrf.mxu1 }
 0x109   :  { %v685_v24 = vmul.f32 %v1439_v15, %v636_v18  ;;  %v630_v25 = vmax.f32 %v629_v19, %v565_v12  ;;  %v638_v26 = vmax.f32 %v637_v20, %v1098_v45  ;;  %v631_v27 = vmax.f32 %v376_v46, %v440_v22 }
 0x10a   :  { %v1085_v28 = vpop.f32.mrf.mxu0  ;;  %v1117_v29 = vpop.f32.mrf.mxu1 }
 0x10b   :  { %v1448_v30 = vadd.f32 %v1444_v21, %v685_v24  ;;  %v683_v31 = vmul.f32 %v1439_v15, %v630_v25  ;;  %v639_v32 = vmax.f32 %v638_v26, %v1114_v17  ;;  %v632_v33 = vmax.f32 %v631_v27, %v504_v47 }
 0x10c   :  { %v646_v34 = vmax.f32 %v1069_v48, %v1085_v28  ;;  %v453_v35 = vpop.f32.mrf.mxu0  ;;  %v581_v36 = vpop.f32.mrf.mxu1 }
 0x10d   :  { %v946_v37 = vmul.f32 -1.442695, %v1448_v30  ;;  %v1453_v38 = vadd.f32 %v1444_v21, %v683_v31  ;;  %v686_v39 = vmul.f32 %v1439_v15, %v639_v32  ;;  %v633_v40 = vmax.f32 %v632_v33, %v568_v23 }
 0x10e   :  { %v647_v41 = vmax.f32 %v646_v34, %v1101_v49  ;;  %v640_v42 = vmax.f32 %v1392_v50, %v453_v35  ;;  %v1086_v43 = vpop.f32.mrf.mxu0  ;;  %v1118_v44 = vpop.f32.mrf.mxu1 }
 0x10f   :  { %1183 = vpow2.f32 %v946_v37  ;;  %v944_v45 = vmul.f32 -1.442695, %v1453_v38  ;;  %v1459_v46 = vadd.f32 %v1444_v21, %v686_v39  ;;  %v684_v47 = vmul.f32 %v1439_v15, %v633_v40 }
 0x110   :  { %v648_v48 = vmax.f32 %v647_v41, %v1117_v29  ;;  %v641_v8 = vmax.f32 %v640_v42, %v1394_v51  ;;  %v649_v9 = vmax.f32 %v1396_v52, %v1086_v43  ;;  %v456_v10 = vpop.f32.mrf.mxu0  ;;  %v584_v11 = vpop.f32.mrf.mxu1 }
 0x111   :  { %1185 = vpow2.f32 %v944_v45  ;;  %v947_v49 = vmul.f32 -1.442695, %v1459_v46  ;;  %v1466_v50 = vadd.f32 %v1444_v21, %v684_v47  ;;  %v643_v12 = vmax.f32 %v1400_v54, %v456_v10 }
 0x112   :  { %v689_v13 = vmul.f32 %v1439_v15, %v648_v48  ;;  %v642_v14 = vmax.f32 %v641_v8, %v581_v36  ;;  %v650_v16 = vmax.f32 %v649_v9, %v1398_v53  ;;  %v1089_v17 = vpop.f32.mrf.mxu0  ;;  %v1121_v18 = vpop.f32.mrf.mxu1 }
 0x113   :  { %1187 = vpow2.f32 %v947_v49  ;;  %v945_v51 = vmul.f32 -1.442695, %v1466_v50  ;;  %v644_v52 = vmax.f32 %v643_v12, %v1402_v55  ;;  %v658_v19 = vmax.f32 %v1404_v56, %v1089_v17 }
 0x114   :  { %v1475_v20 = vadd.f32 %v1444_v21, %v689_v13  ;;  %v687_v22 = vmul.f32 %v1439_v15, %v642_v14  ;;  %v651_v54 = vmax.f32 %v650_v16, %v1118_v44  ;;  %v469_v23 = vpop.f32.mrf.mxu0  ;;  %v597_v24 = vpop.f32.mrf.mxu1 }
 0x115   :  { %1189 = vpow2.f32 %v945_v51  ;;  %v645_v25 = vmax.f32 %v644_v52, %v584_v11  ;;  %v659_v53 = vmax.f32 %v658_v19, %v1406_v57  ;;  %v652_v26 = vmax.f32 %v1408_v58, %v469_v23 }
 0x116   :  { %v950_v27 = vmul.f32 -1.442695, %v1475_v20  ;;  %v1482_v55 = vadd.f32 %v1444_v21, %v687_v22  ;;  %v690_v56 = vmul.f32 %v1439_v15, %v651_v54  ;;  %v1090_v28 = vpop.f32.mrf.mxu0  ;;  %v1122_v29 = vpop.f32.mrf.mxu1 }
 0x117   :  { %v688_v31 = vmul.f32 %v1439_v15, %v645_v25  ;;  %v660_v32 = vmax.f32 %v659_v53, %v1121_v18  ;;  %v653_v33 = vmax.f32 %v652_v26, %v1410_v59  ;;  %v661_v34 = vmax.f32 %v1412_v60, %v1090_v28 }
 0x118   :  { %1191 = vpow2.f32 %v950_v27  ;;  %v948_v57 = vmul.f32 -1.442695, %v1482_v55  ;;  %v1490_v58 = vadd.f32 %v1444_v21, %v690_v56  ;;  %v472_v35 = vpop.f32.mrf.mxu0  ;;  %v600_v36 = vpop.f32.mrf.mxu1 }
 0x119   :  { %v1493_v37 = vadd.f32 %v1444_v21, %v688_v31  ;;  %v693_v39 = vmul.f32 %v1439_v15, %v660_v32  ;;  %v654_v40 = vmax.f32 %v653_v33, %v597_v24  ;;  %v662_v41 = vmax.f32 %v661_v34, %v1414_v61 }
 0x11a   :  { %1193 = vpow2.f32 %v948_v57  ;;  %v951_v59 = vmul.f32 -1.442695, %v1490_v58  ;;  %v655_v60 = vmax.f32 %v1416_v62, %v472_v35  ;;  %v1093_v42 = vpop.f32.mrf.mxu0  ;;  %v1125_v43 = vpop.f32.mrf.mxu1 }
 0x11b   :  { %v949_v44 = vmul.f32 -1.442695, %v1493_v37  ;;  %v1501_v45 = vadd.f32 %v1444_v21, %v693_v39  ;;  %v691_v47 = vmul.f32 %v1439_v15, %v654_v40  ;;  %v663_v48 = vmax.f32 %v662_v41, %v1122_v29 }
 0x11c   :  { %v1184_v8 = vpop.eup %1183  ;;  %1195 = vpow2.f32 %v951_v59  ;;  %v656_v9 = vmax.f32 %v655_v60, %v1418_v63  ;;  %v670_v61 = vmax.f32 %v1420_v0, %v1093_v42  ;;  %v485_v10 = vpop.f32.mrf.mxu0 }
 0x11d   :  { %v772_v11 = vadd.f32 1.0, %v1184_v8  ;;  %1197 = vpow2.f32 %v949_v44  ;;  %v954_v62 = vmul.f32 -1.442695, %v1501_v45  ;;  %v1508_v49 = vadd.f32 %v1444_v21, %v691_v47  ;;  %v613_v18 = vpop.f32.mrf.mxu1 }
 0x11e   :  { %v1186_v12 = vpop.eup %1185  ;;  %v694_v13 = vmul.f32 %v1439_v15, %v663_v48  ;;  %v657_v14 = vmax.f32 %v656_v9, %v600_v36  ;;  %v671_v16 = vmax.f32 %v670_v61, %v1422_v1  ;;  %v664_v17 = vmax.f32 %v1424_v2, %v485_v10  ;;  %v1094_v63 = vpop.f32.mrf.mxu0 }
 0x11f   :  { %1199 = vrcp.f32 %v772_v11  ;;  %v770_v0 = vadd.f32 1.0, %v1186_v12  ;;  %v952_v51 = vmul.f32 -1.442695, %v1508_v49  ;;  %v673_v52 = vmax.f32 %v1428_v4, %v1094_v63  ;;  %v1126_v56 = vpop.f32.mrf.mxu1 }
 0x120   :  { %v1188_v19 = vpop.eup %1187  ;;  %1201 = vpow2.f32 %v954_v62  ;;  %v1516_v22 = vadd.f32 %v1444_v21, %v694_v13  ;;  %v692_v54 = vmul.f32 %v1439_v15, %v657_v14  ;;  %v672_v23 = vmax.f32 %v671_v16, %v1125_v43  ;;  %v488_v25 = vpop.f32.mrf.mxu0 }
 0x121   :  { %1203 = vrcp.f32 %v770_v0  ;;  %v773_v1 = vadd.f32 1.0, %v1188_v19  ;;  %v665_v2 = vmax.f32 %v664_v17, %v1426_v3  ;;  %v674_v24 = vmax.f32 %v673_v52, %v1430_v5 }
 0x122   :  { %v1190_v53 = vpop.eup %1189  ;;  %1205 = vpow2.f32 %v952_v51  ;;  %v955_v26 = vmul.f32 -1.442695, %v1516_v22  ;;  %v1523_v4 = vadd.f32 %v1444_v21, %v692_v54  ;;  %v697_v27 = vmul.f32 %v1439_v15, %v672_v23 }
 0x123   :  { %1207 = vrcp.f32 %v773_v1  ;;  %v771_v28 = vadd.f32 1.0, %v1190_v53  ;;  %v666_v29 = vmax.f32 %v665_v2, %v613_v18  ;;  %v675_v31 = vmax.f32 %v674_v24, %v1126_v56 }
 0x124   :  { %1209 = vpow2.f32 %v955_v26  ;;  %v953_v3 = vmul.f32 -1.442695, %v1523_v4  ;;  %v1528_v5 = vadd.f32 %v1444_v21, %v697_v27  ;;  %v667_v32 = vmax.f32 %v1432_v6, %v488_v25  ;;  %v616_v6 = vpop.f32.mrf.mxu1 }
 0x125   :  { %v1192_v33 = vpop.eup %1191  ;;  %1211 = vrcp.f32 %v771_v28  ;;  %v695_v34 = vmul.f32 %v1439_v15, %v666_v29  ;;  %v698_v57 = vmul.f32 %v1439_v15, %v675_v31 }
 0x126   :  { %v776_v35 = vadd.f32 1.0, %v1192_v33  ;;  %1213 = vpow2.f32 %v953_v3  ;;  %v958_v36 = vmul.f32 -1.442695, %v1528_v5  ;;  %v668_v39 = vmax.f32 %v667_v32, %v1434_v7 }
 0x127   :  { %v1194_v40 = vpop.eup %1193  ;;  %v1536_v41 = vadd.f32 %v1444_v21, %v695_v34  ;;  %v1539_v59 = vadd.f32 %v1444_v21, %v698_v57 }
 0x128   :  { %1215 = vrcp.f32 %v776_v35  ;;  %v774_v60 = vadd.f32 1.0, %v1194_v40  ;;  %v669_v42 = vmax.f32 %v668_v39, %v616_v6 }
 0x129   :  { %v1196_v43 = vpop.eup %1195  ;;  %1217 = vpow2.f32 %v958_v36  ;;  %v956_v44 = vmul.f32 -1.442695, %v1536_v41  ;;  %v959_v7 = vmul.f32 -1.442695, %v1539_v59 }
 0x12a   :  { %v1198_v47 = vpop.eup %1197  ;;  %1219 = vrcp.f32 %v774_v60  ;;  %v777_v48 = vadd.f32 1.0, %v1196_v43  ;;  %v696_v8 = vmul.f32 %v1439_v15, %v669_v42 }
 0x12b   :  { %v775_v9 = vadd.f32 1.0, %v1198_v47  ;;  %1221 = vpow2.f32 %v956_v44 }
 0x12c   :  { %v1200_v61 = vpop.eup %1199  ;;  %1223 = vrcp.f32 %v777_v48  ;;  %v1545_v10 = vadd.f32 %v1444_v21, %v696_v8 }
 0x12d   :  { %v1202_v11 = vpop.eup %1201  ;;  %1225 = vrcp.f32 %v775_v9  ;;  %v820_v15 = vmul.f32 %v1200_v61, %v1448_v30 }
 0x12e   :  { %v1204_v62 = vpop.eup %1203  ;;  %v780_v12 = vadd.f32 1.0, %v1202_v11  ;;  %1227 = vpow2.f32 %v959_v7  ;;  %v957_v13 = vmul.f32 -1.442695, %v1545_v10 }
 0x12f   :  { %v1206_v14 = vpop.eup %1205  ;;  %v818_v52 = vmul.f32 %v1204_v62, %v1453_v38 }
 0x130   :  { %v1208_v16 = vpop.eup %1207  ;;  %v778_v17 = vadd.f32 1.0, %v1206_v14  ;;  %1229 = vpow2.f32 %v957_v13 }
 0x131   :  { %v1210_v18 = vpop.eup %1209  ;;  %v821_v63 = vmul.f32 %v1208_v16, %v1459_v46  ;;  %1231 = vrcp.f32 %v780_v12 }
 0x132   :  { %v1212_v0 = vpop.eup %1211  ;;  %v781_v21 = vadd.f32 1.0, %v1210_v18  ;;  %1233 = vrcp.f32 %v778_v17 }
 0x133   :  { %v1214_v51 = vpop.eup %1213  ;;  %v968_v19 = vpack.c.bf16 %v821_v63, %v820_v15  ;;  %v819_v54 = vmul.f32 %v1212_v0, %v1466_v50 }
 0x134   :  { %1235 = vrcp.f32 %v781_v21  ;;  %v779_v23 = vadd.f32 1.0, %v1214_v51 }
 0x135   :  { %v1216_v1 = vpop.eup %1215  ;;  %1000 = vst [vmem:[%s1592_s4 + $0x8] sm:$0xff] %v968_v19   ;;  %v963_v30 = vpack.c.bf16 %v819_v54, %v818_v52 }
 0x136   :  { %v1218_v46 = vpop.eup %1217  ;;  %1237 = vrcp.f32 %v779_v23  ;;  %v824_v53 = vmul.f32 %v1216_v1, %v1475_v20 }
 0x137   :  { %v1220_v2 = vpop.eup %1219  ;;  %964 = vst [vmem:[%s1592_s4] sm:$0xff] %v963_v30   ;;  %v784_v24 = vadd.f32 1.0, %v1218_v46 }
 0x138   :  { %v1222_v38 = vpop.eup %1221  ;;  %v822_v56 = vmul.f32 %v1220_v2, %v1482_v55 }
 0x139   :  { %v1224_v25 = vpop.eup %1223  ;;  %v782_v29 = vadd.f32 1.0, %v1222_v38  ;;  %1239 = vrcp.f32 %v784_v24 }
 0x13a   :  { %v1226_v50 = vpop.eup %1225  ;;  %v825_v26 = vmul.f32 %v1224_v25, %v1490_v58 }
 0x13b   :  { %v1228_v27 = vpop.eup %1227  ;;  %v823_v28 = vmul.f32 %v1226_v50, %v1493_v37 }
 0x13c   :  { %v978_v31 = vpack.c.bf16 %v825_v26, %v824_v53  ;;  %v785_v3 = vadd.f32 1.0, %v1228_v27 }
 0x13d   :  { %v973_v32 = vpack.c.bf16 %v823_v28, %v822_v56  ;;  %v1230_v33 = vpop.eup %1229 }
 0x13e   :  { %1002 = vst [vmem:[%s1592_s4 + $0x18] sm:$0xff] %v978_v31   ;;  %1241 = vrcp.f32 %v785_v3  ;;  %v1232_v34 = vpop.eup %1231  ;;  %v783_v20 = vadd.f32 1.0, %v1230_v33 }
 0x13f   :  { %1001 = vst [vmem:[%s1592_s4 + $0x10] sm:$0xff] %v973_v32   ;;  %1243 = vrcp.f32 %v782_v29  ;;  %v1234_v55 = vpop.eup %1233  ;;  %v828_v37 = vmul.f32 %v1232_v34, %v1501_v45 }
 0x140   :  { %1245 = vrcp.f32 %v783_v20  ;;  %v826_v36 = vmul.f32 %v1234_v55, %v1508_v49 }
 0x141   :  { %v1236_v58 = vpop.eup %1235 }
 0x142   :  { %v829_v57 = vmul.f32 %v1236_v58, %v1516_v22 }
 0x143   :  { %v1238_v35 = vpop.eup %1237 }
 0x144   :  { %v988_v39 = vpack.c.bf16 %v829_v57, %v828_v37  ;;  %v827_v40 = vmul.f32 %v1238_v35, %v1523_v4 }
 0x146   :  { %1004 = vst [vmem:[%s1592_s4 + $0x28] sm:$0xff] %v988_v39   ;;  %v983_v6 = vpack.c.bf16 %v827_v40, %v826_v36  ;;  %v1240_v60 = vpop.eup %1239 }
 0x147   :  { %v832_v22 = vmul.f32 %v1240_v60, %v1528_v5 }
 0x148   :  { %1003 = vst [vmem:[%s1592_s4 + $0x20] sm:$0xff] %v983_v6  }
 0x14b   :  { %v1242_v42 = vpop.eup %1241 }
 0x14c   :  { %v1244_v45 = vpop.eup %1243  ;;  %v833_v43 = vmul.f32 %v1242_v42, %v1539_v59 }
 0x14d   :  { %v1246_v49 = vpop.eup %1245  ;;  %v830_v4 = vmul.f32 %v1244_v45, %v1536_v41 }
 0x14e   :  { %v998_v44 = vpack.c.bf16 %v833_v43, %v832_v22  ;;  %v831_v47 = vmul.f32 %v1246_v49, %v1545_v10 }
 0x150   :  { %1006 = vst [vmem:[%s1592_s4 + $0x38] sm:$0xff] %v998_v44   ;;  %v993_v48 = vpack.c.bf16 %v831_v47, %v830_v4 }
 0x152   :  { %1005 = vst [vmem:[%s1592_s4 + $0x30] sm:$0xff] %v993_v48  }

// kernel: _lambda_.5
= control target key start
LH: loop header
LB: loop body
LE: loop exit
PB: predicated region body
PF: predicated region fallthrough
CT: control target
= control target key end

     0   :  { %s5111_s12 = smov 0   ;;  %s6346_s0 = inlined_call_operand.vmem [shape: bf16[2,8,8,128], index: 0, kind: input, shape index: {}]   ;;  %s6347_s1 = inlined_call_operand.vmem [shape: bf16[2,3,384,128], index: 1, kind: input, shape index: {}]   ;;  %s6348_s2 = inlined_call_operand.vmem [shape: f32[2,1,128], index: 2, kind: input, shape index: {}]   ;;  %s6349_s3 = inlined_call_operand.vmem [shape: bf16[2,8,8,128], index: 3, kind: output, shape index: {}]  }
   0x1 LB: > { %s3723_s13 = sadd.s32 4294967295, %s5088_s12   ;;  %p3727_p0 = scmp.ge.s32.totalorder %s5088_s12, 1  ;;  %s5088_s12 = sphi %s5111_s12, %s13_s12  }
   0x2   : > { %p137_p1 = scmp.lt.s32.totalorder %s5088_s12, 3 }
   0x4   : > { %p138_p2 = pnand %p3727_p0, %p137_p1 }
   0x6   : > { %141 = sbr.rel (%p138_p2) target bundleno = 781 (0x30d), region = 32 }
   0xb   : > { %v4838_v0 = vld [vmem:[%s6347_s1 + $0x138] sm:$0xff]   ;;  %v5090_v3 = vmov 0   ;;  %v4841_v4 = vld [vmem:[%s6347_s1 + $0x130] sm:$0xff]   ;;  %v4844_v7 = vld [vmem:[%s6347_s1 + $0x128] sm:$0xff]   ;;  %p161_p3 = scmp.lt.s32.totalorder %s3723_s13, 1  ;;  %vm174_vm0 = vcmask 1040384  }
   0xc   : > { %v4839_v1 = vld [vmem:[%s6347_s1 + $0x178] sm:$0xff]   ;;  %4373 = vmatprep.subr.bf16.mxu0 %v4838_v0  ;;  %180 = vst [vmem:[#allocation2 + $0xc] sm:$0xf] %v5090_v3  ;;  %181 = vst [vmem:[#allocation2 + $0x10] sm:$0xf] %v5090_v3  ;;  %v4842_v5 = vld [vmem:[%s6347_s1 + $0x170] sm:$0xff]  }
   0xd   : > { %v4840_v2 = vld [vmem:[%s6347_s1 + $0xf8] sm:$0xff]   ;;  %185 = vst [vmem:[#allocation2 + $0x18] sm:$0xf] %v5090_v3  ;;  %186 = vst [vmem:[#allocation2 + $0x1c] sm:$0xf] %v5090_v3  ;;  %4685 = vmatprep.subr.bf16.mxu1 %v4839_v1  ;;  %v4843_v6 = vld [vmem:[%s6347_s1 + $0xf0] sm:$0xff]  }
   0xe   : > { %172 = vst [vmem:[#allocation2] sm:$0xf] %v5090_v3  ;;  %173 = vst [vmem:[#allocation2 + $0x4] sm:$0xf] %v5090_v3  ;;  %4374 = vmatpush3.bf16.msra.mxu0 %v4840_v2  ;;  %4686 = vmatpush3.bf16.msra.mxu1 %v4839_v1  ;;  %v4845_v8 = vld [vmem:[%s6347_s1 + $0x168] sm:$0xff]   ;;  %v4847_v10 = vld [vmem:[%s6347_s1 + $0x120] sm:$0xff]  }
   0xf   : > { %190 = vst [vmem:[#allocation2 + $0x24] sm:$0xf] %v5090_v3  ;;  %191 = vst [vmem:[#allocation2 + $0x28] sm:$0xf] %v5090_v3  ;;  %4375 = vmatprep.subr.bf16.mxu0 %v4841_v4  ;;  %4687 = vmatprep.subr.bf16.mxu1 %v4842_v5  ;;  %v4846_v9 = vld [vmem:[%s6347_s1 + $0xe8] sm:$0xff]   ;;  %v4848_v11 = vld [vmem:[%s6347_s1 + $0x160] sm:$0xff]  }
  0x10   : > { %195 = vst [vmem:[#allocation2 + $0x30] sm:$0xf] %v5090_v3  ;;  %196 = vst [vmem:[#allocation2 + $0x34] sm:$0xf] %v5090_v3  ;;  %v4849_v12 = vld [vmem:[%s6347_s1 + $0xe0] sm:$0xff]   ;;  %v4850_v13 = vld [vmem:[%s6347_s1 + $0x118] sm:$0xff]  }
  0x11   : > { %200 = vst [vmem:[#allocation2 + $0x3c] sm:$0xf] %v5090_v3  ;;  %201 = vst [vmem:[#allocation2 + $0x40] sm:$0xf] %v5090_v3  ;;  %v4851_v14 = vld [vmem:[%s6347_s1 + $0x158] sm:$0xff]   ;;  %s6364_s13 = smov (!%p161_p3, %s3723_s13), 1 }
  0x12   : > { %205 = vst [vmem:[#allocation2 + $0x48] sm:$0xf] %v5090_v3  ;;  %206 = vst [vmem:[#allocation2 + $0x4c] sm:$0xf] %v5090_v3  ;;  %4376 = vmatpush3.bf16.msra.mxu0 %v4843_v6  ;;  %4688 = vmatpush3.bf16.msra.mxu1 %v4842_v5  ;;  %v4852_v15 = vld [vmem:[%s6347_s1 + $0xd8] sm:$0xff]   ;;  %v4853_v16 = vld [vmem:[%s6347_s1 + $0x110] sm:$0xff]  }
  0x13   : > { %210 = vst [vmem:[#allocation2 + $0x54] sm:$0xf] %v5090_v3  ;;  %211 = vst [vmem:[#allocation2 + $0x58] sm:$0xf] %v5090_v3  ;;  %4377 = vmatprep.subr.bf16.mxu0 %v4844_v7  ;;  %4689 = vmatprep.subr.bf16.mxu1 %v4845_v8  ;;  %v4854_v17 = vld [vmem:[%s6347_s1 + $0x150] sm:$0xff]   ;;  %s4371_s23 = sshll.u32 %s6364_s13, 5 }
  0x14   : > { %215 = vst [vmem:[#allocation2 + $0x60] sm:$0xf] %v5090_v3  ;;  %216 = vst [vmem:[#allocation2 + $0x64] sm:$0xf] %v5090_v3  ;;  %v4855_v18 = vld [vmem:[%s6347_s1 + $0xd0] sm:$0xff]   ;;  %v4856_v19 = vld [vmem:[%s6347_s1 + $0x108] sm:$0xff]   ;;  %s5191_s5 = scalar_lea.vmem %s6346_s0, %s4371_s23  ;;  %s6328_s22 = scalar_lea.vmem %s6349_s3, %s4371_s23 }
  0x15   : > { %220 = vst [vmem:[#allocation2 + $0x6c] sm:$0xf] %v5090_v3  ;;  %221 = vst [vmem:[#allocation2 + $0x70] sm:$0xf] %v5090_v3  ;;  %v4857_v20 = vld [vmem:[%s6347_s1 + $0x148] sm:$0xff]   ;;  %v4859_v24 = vld [vmem:[%s6347_s1 + $0x100] sm:$0xff]  }
  0x16   : > { %4378 = vmatpush3.bf16.msra.mxu0 %v4846_v9  ;;  %4690 = vmatpush3.bf16.msra.mxu1 %v4845_v8  ;;  %v4858_v21 = vld [vmem:[%s6347_s1 + $0xc8] sm:$0xff]   ;;  %vm175_vm1 = vsmask.f32 256  ;;  %v225_v22 = vld [vmem:[%s5191_s5] sm:$0xf]  ;;  %v4868_v42 = vld [vmem:[%s6347_s1 + $0x78] sm:$0xff]  }
  0x17   : > { %4379 = vmatprep.subr.bf16.mxu0 %v4847_v10  ;;  %4691 = vmatprep.subr.bf16.mxu1 %v4848_v11  ;;  %v226_v23 = vld [vmem:[%s5191_s5 + $0x4] sm:$0xf]  ;;  %234 = vst [vmem:[#allocation2 + $0x10] sm:$0xf] %v225_v22  ;;  %vm5205_vm2 = vmand %vm174_vm0, %vm175_vm1  ;;  %v177_v28 = vld [vmem:[#allocation2 + $0x8] sm:$0x1] }
  0x18   : > { %v4860_v25 = vld [vmem:[%s6347_s1 + $0x140] sm:$0xff]   ;;  %235 = vst [vmem:[#allocation2 + $0x1c] sm:$0xf] %v226_v23  ;;  %v182_v29 = vld [vmem:[#allocation2 + $0x14] sm:$0x1]  ;;  %v178_v30 = vsel %vm5205_vm2, 0, %v177_v28 }
  0x19   : > { %v4861_v27 = vld [vmem:[%s6347_s1 + $0xc0] sm:$0xff]   ;;  %v183_v31 = vsel %vm5205_vm2, 0, %v182_v29  ;;  %v192_v33 = vld [vmem:[#allocation2 + $0x2c] sm:$0x1]  ;;  %179 = vst [vmem:[#allocation2 + $0x8] sm:$0x1] %v178_v30 }
  0x1a   : > { %4380 = vmatpush3.bf16.msra.mxu0 %v4849_v12  ;;  %4692 = vmatpush3.bf16.msra.mxu1 %v4848_v11  ;;  %v187_v32 = vld [vmem:[#allocation2 + $0x20] sm:$0x1]  ;;  %184 = vst [vmem:[#allocation2 + $0x14] sm:$0x1] %v183_v31  ;;  %v193_v35 = vsel %vm5205_vm2, 0, %v192_v33  ;;  %v5236_v43 = vld [vmem:[%s6347_s1 + $0xb8] sm:$0xff]  }
  0x1b   : > { %4381 = vmatprep.subr.bf16.mxu0 %v4850_v13  ;;  %4693 = vmatprep.subr.bf16.mxu1 %v4851_v14  ;;  %v188_v34 = vsel %vm5205_vm2, 0, %v187_v32  ;;  %v227_v36 = vld [vmem:[%s5191_s5 + $0x8] sm:$0xf]  ;;  %v5221_v37 = vld [vmem:[#allocation2 + $0x4] sm:$0xf]  ;;  %vm3754_vm3 = vcmask 1043456 }
  0x1c   : > { %189 = vst [vmem:[#allocation2 + $0x20] sm:$0x1] %v188_v34  ;;  %194 = vst [vmem:[#allocation2 + $0x2c] sm:$0x1] %v193_v35  ;;  %v5225_v38 = vcombine.low %v5221_v37, %v5221_v37  ;;  %v197_v39 = vld [vmem:[#allocation2 + $0x38] sm:$0x1] }
  0x1d   : > { %236 = vst [vmem:[#allocation2 + $0x28] sm:$0xf] %v227_v36  ;;  %v228_v40 = vld [vmem:[%s5191_s5 + $0xc] sm:$0xf]  ;;  %v198_v41 = vsel %vm5205_vm2, 0, %v197_v39 }
  0x1e   : > { %4382 = vmatpush3.bf16.msra.mxu0 %v4852_v15  ;;  %4694 = vmatpush3.bf16.msra.mxu1 %v4851_v14  ;;  %237 = vst [vmem:[#allocation2 + $0x34] sm:$0xf] %v228_v40  ;;  %199 = vst [vmem:[#allocation2 + $0x38] sm:$0x1] %v198_v41  ;;  %v323_v44 = vshrl.u32 %v5225_v38, 16  ;;  %v326_v11 = vshll.u32 %v5225_v38, 16 }
  0x1f   : > { %4383 = vmatprep.subr.bf16.mxu0 %v4853_v16  ;;  %4695 = vmatprep.subr.bf16.mxu1 %v4854_v17  ;;  %v245_v45 = vld [vmem:[#allocation2 + $0x10] sm:$0xf]  ;;  %v247_v46 = vld [vmem:[#allocation2 + $0x1c] sm:$0xf]  ;;  %vm506_vm4 = vsmask.f32 4368 }
  0x20   : > { %v3733_v47 = vcombine.low %v245_v45, %v245_v45  ;;  %v3734_v48 = vcombine.low %v247_v46, %v247_v46  ;;  %v5240_v49 = vrot.slane %v323_v44, 4  ;;  %v262_v54 = vld [vmem:[#allocation2 + $0x8] sm:$0x1]  ;;  %v244_v55 = vld [vmem:[#allocation2 + $0xc] sm:$0x8]  ;;  %vm5261_vm5 = vmor %vm175_vm1, %vm506_vm4 }
  0x21   : > { %v246_v56 = vld [vmem:[#allocation2 + $0x18] sm:$0x8]  ;;  %v263_v58 = vld [vmem:[#allocation2 + $0x14] sm:$0x1]  ;;  %v3742_v60 = vcombine.low %v5221_v37, %v262_v54  ;;  %v260_v26 = vld [vmem:[#allocation2 + $0x6c] sm:$0x8] }
  0x22   : > { %4384 = vmatpush3.bf16.msra.mxu0 %v4855_v18  ;;  %4696 = vmatpush3.bf16.msra.mxu1 %v4854_v17  ;;  %v331_v50 = vshrl.u32 %v3733_v47, 16  ;;  %v334_v51 = vshll.u32 %v3733_v47, 16  ;;  %v339_v52 = vshrl.u32 %v3734_v48, 16  ;;  %v342_v53 = vshll.u32 %v3734_v48, 16 }
  0x23   : > { %4385 = vmatprep.subr.bf16.mxu0 %v4856_v19  ;;  %4697 = vmatprep.subr.bf16.mxu1 %v4857_v20  ;;  %v264_v59 = vld [vmem:[#allocation2 + $0x20] sm:$0x1]  ;;  %v265_v1 = vld [vmem:[#allocation2 + $0x2c] sm:$0x1]  ;;  %v3743_v2 = vcombine.low %v245_v45, %v263_v58  ;;  %v432_v5 = vrot.slane %v3742_v60, 5 }
  0x24   : > { %v5242_v57 = vld [vmem:[#allocation2 + $0x28] sm:$0xf]  ;;  %v333_v61 = vrot.slane %v331_v50, 4  ;;  %v336_v62 = vrot.slane %v334_v51, 5  ;;  %v341_v63 = vrot.slane %v339_v52, 4  ;;  %v344_v0 = vrot.slane %v342_v53, 5 }
  0x25   : > { %v3744_v3 = vcombine.low %v247_v46, %v264_v59  ;;  %v3745_v4 = vcombine.low %v5242_v57, %v265_v1  ;;  %v5246_v6 = vld [vmem:[#allocation2 + $0x34] sm:$0xf]  ;;  %v5248_v7 = vld [vmem:[#allocation2 + $0x38] sm:$0x1]  ;;  %v433_v12 = vrot.slane %v3743_v2, 5  ;;  %v3753_v15 = vcombine.low %v432_v5, %v432_v5 }
  0x26   : > { %4386 = vmatpush3.bf16.msra.mxu0 %v4858_v21  ;;  %4698 = vmatpush3.bf16.msra.mxu1 %v4857_v20  ;;  %v337_v8 = vor.u32 %v336_v62, %v333_v61  ;;  %v345_v9 = vor.u32 %v344_v0, %v341_v63  ;;  %v3746_v10 = vcombine.low %v5246_v6, %v5248_v7  ;;  %v229_v59 = vld [vmem:[%s5191_s5 + $0x10] sm:$0xf]  ;;  %v230_v0 = vld [vmem:[%s5191_s5 + $0x14] sm:$0xf] }
  0x27   : > { %4387 = vmatprep.subr.bf16.mxu0 %v4859_v24  ;;  %4699 = vmatprep.subr.bf16.mxu1 %v4860_v25  ;;  %v434_v13 = vrot.slane %v3744_v3, 5  ;;  %v435_v14 = vrot.slane %v3745_v4, 5  ;;  %v3758_v28 = vcombine.low %v433_v12, %v433_v12  ;;  %v3761_v31 = vcombine.high %v433_v12, %v433_v12  ;;  %238 = vst [vmem:[#allocation2 + $0x40] sm:$0xf] %v229_v59  ;;  %v4873_v7 = vld [vmem:[%s6347_s1 + $0x30] sm:$0xff]  }
  0x28   : > { %v3757_v16 = vcombine.low %v244_v55, %v337_v8  ;;  %v3760_v17 = vsel %vm3754_vm3, %v245_v45, %v337_v8  ;;  %v3762_v18 = vcombine.low %v246_v56, %v345_v9  ;;  %v3765_v19 = vsel %vm3754_vm3, %v247_v46, %v345_v9  ;;  %239 = vst [vmem:[#allocation2 + $0x4c] sm:$0xf] %v230_v0  ;;  %v232_v0 = vld [vmem:[%s5191_s5 + $0x1c] sm:$0xf] }
  0x29   : > { %v540_v20 = vshrl.u32 %v3760_v17, 16  ;;  %v543_v21 = vshll.u32 %v3760_v17, 16  ;;  %v566_v22 = vshrl.u32 %v3765_v19, 16  ;;  %v569_v23 = vshll.u32 %v3765_v19, 16  ;;  %241 = vst [vmem:[#allocation2 + $0x64] sm:$0xf] %v232_v0 }
  0x2a   : > { %4388 = vmatpush3.bf16.msra.mxu0 %v4861_v27  ;;  %4700 = vmatpush3.bf16.msra.mxu1 %v4860_v25  ;;  %v535_v24 = vshrl.u32 %v3757_v16, 16  ;;  %v561_v25 = vshrl.u32 %v3762_v18, 16  ;;  %v3756_v27 = vcombine.high %v432_v5, %v432_v5  ;;  %v5257_v32 = vcombine.low %v5242_v57, %v5242_v57  ;;  %v4870_v5 = vld [vmem:[%s6347_s1 + $0x38] sm:$0xff]  }
  0x2b   : > { %4425 = vmatprep.subr.bf16.mxu0 %v4868_v42  ;;  %4709 = vmatprep.subr.bf16.mxu1 %v5236_v43  ;;  %v542_v29 = vrot.slane %v540_v20, 7  ;;  %v568_v30 = vrot.slane %v566_v22, 7  ;;  %v3763_v36 = vcombine.low %v434_v13, %v434_v13  ;;  %v3766_v39 = vcombine.high %v434_v13, %v434_v13 }
  0x2c   : > { %v3794_v34 = vrot.slane %v535_v24, 11  ;;  %v3796_v35 = vrot.slane %v561_v25, 11  ;;  %v3768_v42 = vcombine.low %v435_v14, %v435_v14  ;;  %v3771_v44 = vcombine.high %v435_v14, %v435_v14  ;;  %v4871_v14 = vld [vmem:[%s6347_s1 + $0x70] sm:$0xff]   ;;  %v202_v25 = vld [vmem:[#allocation2 + $0x44] sm:$0x1] }
  0x2d   : > { %v545_v40 = vor.u32 %v543_v21, %v542_v29  ;;  %v571_v41 = vor.u32 %v569_v23, %v568_v30  ;;  %v522_v45 = vshrl.u32 %v3753_v15, 16  ;;  %v527_v46 = vshrl.u32 %v3756_v27, 16 }
  0x2e   : > { %v548_v47 = vshrl.u32 %v3758_v28, 16  ;;  %v553_v48 = vshrl.u32 %v3761_v31, 16  ;;  %v530_v52 = vshll.u32 %v3756_v27, 16  ;;  %v556_v53 = vshll.u32 %v3761_v31, 16  ;;  %v4876_v31 = vld [vmem:[%s6347_s1 + $0x68] sm:$0xff]  }
  0x2f   : > { %v5267_v50 = vsel %vm5261_vm5, %v3794_v34, %v545_v40  ;;  %v5271_v51 = vsel %vm5261_vm5, %v3796_v35, %v571_v41  ;;  %v529_v55 = vrot.slane %v527_v46, 7  ;;  %v574_v60 = vshrl.u32 %v3763_v36, 16  ;;  %v5312_v40 = vld [vmem:[#allocation2 + $0x40] sm:$0xf]  ;;  %v207_v41 = vld [vmem:[#allocation2 + $0x50] sm:$0x1] }
  0x30   : > { %v3864_v54 = vcombine.high %v5267_v50, %v5271_v51  ;;  %v3795_v56 = vrot.slane %v548_v47, 11  ;;  %v555_v58 = vrot.slane %v553_v48, 7  ;;  %v579_v61 = vshrl.u32 %v3766_v39, 16  ;;  %v5318_v48 = vld [vmem:[#allocation2 + $0x4c] sm:$0xf] }
  0x31   : > { %v582_v62 = vshll.u32 %v3766_v39, 16  ;;  %v600_v63 = vshrl.u32 %v3768_v42, 16  ;;  %v3793_v1 = vrot.slane %v522_v45, 11  ;;  %v605_v3 = vshrl.u32 %v3771_v44, 16  ;;  %v248_v39 = vld [vmem:[#allocation2 + $0x24] sm:$0x8] }
  0x32   : > { %1071 = vmatprep.mubr.bf16.mxu0 %v3864_v54  ;;  %v558_v2 = vor.u32 %v556_v53, %v555_v58  ;;  %v608_v4 = vshll.u32 %v3771_v44, 16  ;;  %v3797_v8 = vrot.slane %v574_v60, 11  ;;  %v581_v9 = vrot.slane %v579_v61, 7  ;;  %v250_v45 = vld [vmem:[#allocation2 + $0x30] sm:$0x8] }
  0x33   : > { %v3799_v12 = vrot.slane %v600_v63, 11  ;;  %v3863_v13 = vcombine.low %v5267_v50, %v5271_v51  ;;  %v532_v15 = vor.u32 %v530_v52, %v529_v55  ;;  %v607_v16 = vrot.slane %v605_v3, 7  ;;  %v4878_v55 = vld [vmem:[%s6347_s1 + $0x28] sm:$0xff]   ;;  %v231_v63 = vld [vmem:[%s5191_s5 + $0x18] sm:$0xf] }
  0x34   : > { %v436_v17 = vrot.slane %v3746_v10, 5  ;;  %v5290_v18 = vsel %vm5261_vm5, %v3795_v56, %v558_v2  ;;  %v584_v19 = vor.u32 %v582_v62, %v581_v9  ;;  %v3736_v20 = vcombine.low %v5246_v6, %v5246_v6  ;;  %v4879_v56 = vld [vmem:[%s6347_s1 + $0x60] sm:$0xff]   ;;  %240 = vst [vmem:[#allocation2 + $0x58] sm:$0xf] %v231_v63  ;;  %v4889_v63 = vld [vmem:[%s6347_s1 + $0x50] sm:$0xff]  }
  0x35   : > { %1072 = vmatmul.mubr.bf16.vlgmr.msra.gmra.mxu0 %v3863_v13  ;;  %v347_v21 = vshrl.u32 %v5257_v32, 16  ;;  %v610_v22 = vor.u32 %v608_v4, %v607_v16  ;;  %v350_v10 = vshll.u32 %v5257_v32, 16  ;;  %v5308_v34 = vsel %vm5261_vm5, %v3793_v1, %v532_v15 }
  0x36   : > { %v3773_v23 = vcombine.low %v436_v17, %v436_v17  ;;  %v3776_v24 = vcombine.high %v436_v17, %v436_v17  ;;  %4426 = vmatpush3.bf16.msra.mxu0 %v4870_v5  ;;  %v5301_v27 = vsel %vm5261_vm5, %v3797_v8, %v584_v19  ;;  %v355_v29 = vshrl.u32 %v3736_v20, 16  ;;  %v4872_v5 = vld [vmem:[%s6347_s1 + $0xb0] sm:$0xff]   ;;  %v4881_v19 = vld [vmem:[%s6347_s1 + $0x20] sm:$0xff]  }
  0x37   : > { %4427 = vmatprep.subr.bf16.mxu0 %v4871_v14  ;;  %v349_v28 = vrot.slane %v347_v21, 4  ;;  %v358_v30 = vshll.u32 %v3736_v20, 16  ;;  %v3865_v32 = vcombine.low %v5290_v18, %v5301_v27  ;;  %v5316_v42 = vsel %vm5261_vm5, %v3799_v12, %v610_v22 }
  0x38   : > { %v626_v35 = vshrl.u32 %v3773_v23, 16  ;;  %v631_v36 = vshrl.u32 %v3776_v24, 16  ;;  %v634_v44 = vshll.u32 %v3776_v24, 16  ;;  %v352_v46 = vrot.slane %v350_v10, 5  ;;  %v4884_v23 = vld [vmem:[%s6347_s1 + $0x58] sm:$0xff]  }
  0x39   : > { %v357_v47 = vrot.slane %v355_v29, 4  ;;  %4701 = vmatprep.mubr.bf16.mxu1 %v3865_v32  ;;  %v360_v54 = vrot.slane %v358_v30, 5  ;;  %v3737_v58 = vcombine.low %v5312_v40, %v5312_v40  ;;  %v3738_v60 = vcombine.low %v5318_v48, %v5318_v48  ;;  %v212_v24 = vld [vmem:[#allocation2 + $0x5c] sm:$0x1]  ;;  %v217_v29 = vld [vmem:[#allocation2 + $0x68] sm:$0x1] }
  0x3a   : > { %v3801_v52 = vrot.slane %v626_v35, 11  ;;  %v633_v53 = vrot.slane %v631_v36, 7  ;;  %4428 = vmatpush3.bf16.msra.mxu0 %v4873_v7  ;;  %v353_v59 = vor.u32 %v352_v46, %v349_v28  ;;  %v203_v61 = vsel %vm5205_vm2, 0, %v202_v25  ;;  %v252_v25 = vld [vmem:[#allocation2 + $0x3c] sm:$0x8] }
  0x3b   : > { %4429 = vmatprep.subr.bf16.mxu0 %v4876_v31  ;;  %v208_v62 = vsel %vm5205_vm2, 0, %v207_v41  ;;  %v361_v2 = vor.u32 %v360_v54, %v357_v47  ;;  %v363_v3 = vshrl.u32 %v3737_v58, 16  ;;  %v366_v4 = vshll.u32 %v3737_v58, 16  ;;  %204 = vst [vmem:[#allocation2 + $0x44] sm:$0x1] %v203_v61 }
  0x3c   : > { %v636_v1 = vor.u32 %v634_v44, %v633_v53  ;;  %209 = vst [vmem:[#allocation2 + $0x50] sm:$0x1] %v208_v62  ;;  %v3767_v8 = vcombine.low %v248_v39, %v353_v59  ;;  %v3770_v9 = vsel %vm3754_vm3, %v5242_v57, %v353_v59  ;;  %v371_v12 = vshrl.u32 %v3738_v60, 16  ;;  %v254_v32 = vld [vmem:[#allocation2 + $0x48] sm:$0x8] }
  0x3d   : > { %v374_v13 = vshll.u32 %v3738_v60, 16  ;;  %v3772_v15 = vcombine.low %v250_v45, %v361_v2  ;;  %v3775_v16 = vsel %vm3754_vm3, %v5246_v6, %v361_v2  ;;  %v592_v17 = vshrl.u32 %v3770_v9, 16  ;;  %v4877_v44 = vld [vmem:[%s6347_s1 + $0xa8] sm:$0xff]   ;;  %v5374_v62 = vld [vmem:[#allocation2 + $0x58] sm:$0xf] }
  0x3e   : > { %v5343_v14 = vsel %vm5261_vm5, %v3801_v52, %v636_v1  ;;  %4430 = vmatpush3.bf16.msra.mxu0 %v4878_v55  ;;  %v587_v57 = vshrl.u32 %v3767_v8, 16  ;;  %v595_v21 = vshll.u32 %v3770_v9, 16  ;;  %v618_v22 = vshrl.u32 %v3775_v16, 16  ;;  %v4886_v55 = vld [vmem:[%s6347_s1 + $0x18] sm:$0xff]   ;;  %v4880_v1 = vld [vmem:[%s6347_s1 + $0xa0] sm:$0xff]  }
  0x3f   : > { %v3868_v20 = vcombine.low %v5316_v42, %v5343_v14  ;;  %4431 = vmatprep.subr.bf16.mxu0 %v4879_v56  ;;  %v594_v7 = vrot.slane %v592_v17, 7  ;;  %v613_v6 = vshrl.u32 %v3772_v15, 16  ;;  %v621_v10 = vshll.u32 %v3775_v16, 16  ;;  %v5398_v15 = vld [vmem:[#allocation2 + $0x64] sm:$0xf] }
  0x40   : > { %v365_v28 = vrot.slane %v363_v3, 4  ;;  %v3798_v30 = vrot.slane %v587_v57, 11  ;;  %v620_v31 = vrot.slane %v618_v22, 7  ;;  %v368_v35 = vrot.slane %v366_v4, 5 }
  0x41   : > { %4702 = vmatmul.mubr.bf16.vlgmr.msra.gmra.mxu1 %v3868_v20  ;;  %v373_v36 = vrot.slane %v371_v12, 4  ;;  %v597_v39 = vor.u32 %v595_v21, %v594_v7  ;;  %v3800_v41 = vrot.slane %v613_v6, 11  ;;  %v376_v45 = vrot.slane %v374_v13, 5  ;;  %v4894_v6 = vld [vmem:[%s6347_s1 + $0x48] sm:$0xff]  }
  0x42   : > { %4710 = vmatpush3.bf16.msra.mxu1 %v5236_v43  ;;  %4432 = vmatpush3.bf16.msra.mxu0 %v4881_v19  ;;  %v213_v46 = vsel %vm5205_vm2, 0, %v212_v24  ;;  %v3901_v47 = vcombine.low %v5308_v34, %v5290_v18  ;;  %v623_v52 = vor.u32 %v621_v10, %v620_v31  ;;  %v369_v53 = vor.u32 %v368_v35, %v365_v28  ;;  %v267_v54 = vld [vmem:[#allocation2 + $0x44] sm:$0x1]  ;;  %v4904_v34 = vld [vmem:[%s6347_s1 + $0x230] sm:$0xff]  }
  0x43   : > { %4711 = vmatprep.subr.bf16.mxu1 %v4872_v5  ;;  %4433 = vmatprep.subr.bf16.mxu0 %v4884_v23  ;;  %v268_v43 = vld [vmem:[#allocation2 + $0x50] sm:$0x1]  ;;  %214 = vst [vmem:[#allocation2 + $0x5c] sm:$0x1] %v213_v46  ;;  %v218_v56 = vsel %vm5205_vm2, 0, %v217_v29  ;;  %v5370_v58 = vsel %vm5261_vm5, %v3798_v30, %v597_v39  ;;  %v377_v59 = vor.u32 %v376_v45, %v373_v36 }
  0x44   : > { %v3747_v60 = vcombine.low %v5312_v40, %v267_v54  ;;  %v3748_v61 = vcombine.low %v5318_v48, %v268_v43  ;;  %219 = vst [vmem:[#allocation2 + $0x68] sm:$0x1] %v218_v56  ;;  %v5381_v0 = vsel %vm5261_vm5, %v3800_v41, %v623_v52  ;;  %v3777_v2 = vcombine.low %v252_v25, %v369_v53  ;;  %v4885_v25 = vld [vmem:[%s6347_s1 + $0x98] sm:$0xff]  }
  0x45   : > { %v3780_v3 = vsel %vm3754_vm3, %v5312_v40, %v369_v53  ;;  %v5390_v4 = vcombine.low %v5374_v62, %v5374_v62  ;;  %v3867_v8 = vcombine.high %v5370_v58, %v5381_v0  ;;  %v3866_v9 = vcombine.low %v5370_v58, %v5381_v0  ;;  %v4891_v40 = vld [vmem:[%s6347_s1 + $0x10] sm:$0xff]  }
  0x46   : > { %4712 = vmatpush3.bf16.msra.mxu1 %v4872_v5  ;;  %v3782_v12 = vcombine.low %v254_v32, %v377_v59  ;;  %v3785_v13 = vsel %vm3754_vm3, %v5318_v48, %v377_v59  ;;  %v639_v16 = vshrl.u32 %v3777_v2, 16  ;;  %v644_v17 = vshrl.u32 %v3780_v3, 16  ;;  %4434 = vmatpush3.bf16.msra.mxu0 %v4886_v55  ;;  %v4896_v32 = vld [vmem:[%s6347_s1 + $0x8] sm:$0xff]   ;;  %v4897_v59 = vld [vmem:[%s6347_s1 + $0x40] sm:$0xff]  }
  0x47   : > { %4713 = vmatprep.subr.bf16.mxu1 %v4877_v44  ;;  %v647_v5 = vshll.u32 %v3780_v3, 16  ;;  %v670_v19 = vshrl.u32 %v3785_v13, 16  ;;  %1079 = vmatprep.mubr.bf16.mxu0 %v3867_v8  ;;  %v673_v57 = vshll.u32 %v3785_v13, 16  ;;  %v437_v21 = vrot.slane %v3747_v60, 5  ;;  %v4890_v13 = vld [vmem:[%s6347_s1 + $0x90] sm:$0xff]  }
  0x48   : > { %v665_v20 = vshrl.u32 %v3782_v12, 16  ;;  %v438_v22 = vrot.slane %v3748_v61, 5  ;;  %4435 = vmatprep.subr.bf16.mxu0 %v4889_v63  ;;  %1080 = vmatmul.mubr.bf16.gmra.mxu0 %v3866_v9  ;;  %v3802_v48 = vrot.slane %v639_v16, 11  ;;  %v646_v23 = vrot.slane %v644_v17, 7 }
  0x49   : > { %v672_v24 = vrot.slane %v670_v19, 7  ;;  %v5405_v7 = vcombine.low %v5398_v15, %v5398_v15  ;;  %v3778_v28 = vcombine.low %v437_v21, %v437_v21  ;;  %v3781_v29 = vcombine.high %v437_v21, %v437_v21 }
  0x4a   : > { %4714 = vmatpush3.bf16.msra.mxu1 %v4877_v44  ;;  %v3804_v10 = vrot.slane %v665_v20, 11  ;;  %v3783_v30 = vcombine.low %v438_v22, %v438_v22  ;;  %v269_v31 = vld [vmem:[#allocation2 + $0x5c] sm:$0x1]  ;;  %v649_v35 = vor.u32 %v647_v5, %v646_v23  ;;  %v3786_v39 = vcombine.high %v438_v22, %v438_v22  ;;  %4436 = vmatpush3.bf16.msra.mxu0 %v4891_v40  ;;  %v4899_v5 = vld [vmem:[%s6347_s1] sm:$0xff]   ;;  %v256_v22 = vld [vmem:[#allocation2 + $0x54] sm:$0x8] }
  0x4b   : > { %4715 = vmatprep.subr.bf16.mxu1 %v4880_v1  ;;  %v675_v36 = vor.u32 %v673_v57, %v672_v24  ;;  %v270_v41 = vld [vmem:[#allocation2 + $0x68] sm:$0x1]  ;;  %v3749_v44 = vcombine.low %v5374_v62, %v269_v31  ;;  %v652_v45 = vshrl.u32 %v3778_v28, 16  ;;  %v657_v46 = vshrl.u32 %v3781_v29, 16  ;;  %4437 = vmatprep.subr.bf16.mxu0 %v4894_v6 }
  0x4c   : > { %v660_v52 = vshll.u32 %v3781_v29, 16  ;;  %v678_v53 = vshrl.u32 %v3783_v30, 16  ;;  %v5419_v54 = vsel %vm5261_vm5, %v3802_v48, %v649_v35  ;;  %v683_v55 = vshrl.u32 %v3786_v39, 16  ;;  %v4900_v48 = vld [vmem:[%s6347_s1 + $0x1f8] sm:$0xff]   ;;  %v4895_v31 = vld [vmem:[%s6347_s1 + $0x88] sm:$0xff]  }
  0x4d   : > { %v5423_v43 = vsel %vm5261_vm5, %v3804_v10, %v675_v36  ;;  %v686_v56 = vshll.u32 %v3786_v39, 16  ;;  %v3803_v63 = vrot.slane %v652_v45, 11  ;;  %v659_v2 = vrot.slane %v657_v46, 7  ;;  %v242_v39 = vld [vmem:[#allocation2] sm:$0x8] }
  0x4e   : > { %4716 = vmatpush3.bf16.msra.mxu1 %v4880_v1  ;;  %v3870_v60 = vcombine.high %v5419_v54, %v5423_v43  ;;  %v3869_v61 = vcombine.low %v5419_v54, %v5423_v43  ;;  %v3805_v3 = vrot.slane %v678_v53, 11  ;;  %v685_v8 = vrot.slane %v683_v55, 7  ;;  %4438 = vmatpush3.bf16.msra.mxu0 %v4896_v32 }
  0x4f   : > { %4717 = vmatprep.subr.bf16.mxu1 %v4885_v25  ;;  %v3750_v9 = vcombine.low %v5398_v15, %v270_v41  ;;  %v439_v12 = vrot.slane %v3749_v44, 5  ;;  %v662_v1 = vor.u32 %v660_v52, %v659_v2  ;;  %v379_v40 = vshrl.u32 %v5390_v4, 16  ;;  %4439 = vmatprep.subr.bf16.mxu0 %v4897_v59 }
  0x50   : > { %1087 = vmatprep.mubr.bf16.mxu0 %v3870_v60  ;;  %v382_v16 = vshll.u32 %v5390_v4, 16  ;;  %v387_v17 = vshrl.u32 %v5405_v7, 16  ;;  %v688_v19 = vor.u32 %v686_v56, %v685_v8  ;;  %v390_v45 = vshll.u32 %v5405_v7, 16  ;;  %v258_v56 = vld [vmem:[#allocation2 + $0x60] sm:$0x8] }
  0x51   : > { %1088 = vmatmul.mubr.bf16.gmra.mxu0 %v3869_v61  ;;  %v440_v20 = vrot.slane %v3750_v9, 5  ;;  %v3788_v57 = vcombine.low %v439_v12, %v439_v12  ;;  %v3791_v21 = vcombine.high %v439_v12, %v439_v12  ;;  %v5447_v4 = vsel %vm5261_vm5, %v3803_v63, %v662_v1  ;;  %v4898_v7 = vld [vmem:[%s6347_s1 + $0x80] sm:$0xff]  }
  0x52   : > { %4718 = vmatpush3.bf16.msra.mxu1 %v4885_v25  ;;  %v381_v23 = vrot.slane %v379_v40, 4  ;;  %v384_v24 = vrot.slane %v382_v16, 5  ;;  %v389_v6 = vrot.slane %v387_v17, 4  ;;  %v5451_v10 = vsel %vm5261_vm5, %v3805_v3, %v688_v19  ;;  %4440 = vmatpush3.bf16.msra.mxu0 %v4899_v5 }
  0x53   : > { %v704_v28 = vshrl.u32 %v3788_v57, 16  ;;  %v709_v29 = vshrl.u32 %v3791_v21, 16  ;;  %v712_v30 = vshll.u32 %v3791_v21, 16  ;;  %4719 = vmatprep.subr.bf16.mxu1 %v4890_v13  ;;  %v3871_v32 = vcombine.low %v5447_v4, %v5451_v10  ;;  %4477 = vmatprep.subr.bf16.mxu0 %v4900_v48  ;;  %v4901_v57 = vld [vmem:[%s6347_s1 + $0x238] sm:$0xff]  }
  0x54   : > { %v3809_v35 = vcombine.low %v440_v20, %v440_v20  ;;  %v3812_v25 = vcombine.high %v440_v20, %v440_v20  ;;  %v385_v36 = vor.u32 %v384_v24, %v381_v23  ;;  %v328_v46 = vrot.slane %v326_v11, 5 }
  0x55   : > { %v3807_v41 = vrot.slane %v704_v28, 11  ;;  %v711_v44 = vrot.slane %v709_v29, 7  ;;  %4705 = vmatprep.mubr.bf16.mxu1 %v3871_v32  ;;  %v392_v61 = vrot.slane %v390_v45, 5  ;;  %v5506_v18 = vcombine.low %v5343_v14, %v5447_v4  ;;  %v4907_v14 = vld [vmem:[%s6347_s1 + $0x228] sm:$0xff]  }
  0x56   : > { %v786_v52 = vshrl.u32 %v3809_v35, 16  ;;  %v791_v53 = vshrl.u32 %v3812_v25, 16  ;;  %v794_v55 = vshll.u32 %v3812_v25, 16  ;;  %4720 = vmatpush3.bf16.msra.mxu1 %v4890_v13  ;;  %v3787_v59 = vcombine.low %v256_v22, %v385_v36 }
  0x57   : > { %v714_v60 = vor.u32 %v712_v30, %v711_v44  ;;  %v3790_v63 = vsel %vm3754_vm3, %v5374_v62, %v385_v36  ;;  %4721 = vmatprep.subr.bf16.mxu1 %v4895_v31  ;;  %v329_v38 = vor.u32 %v328_v46, %v5240_v49  ;;  %v393_v12 = vor.u32 %v392_v61, %v389_v6 }
  0x58   : > { %v3814_v11 = vrot.slane %v786_v52, 11  ;;  %v793_v2 = vrot.slane %v791_v53, 7  ;;  %v691_v3 = vshrl.u32 %v3787_v59, 16  ;;  %v696_v8 = vshrl.u32 %v3790_v63, 16  ;;  %v4903_v53 = vld [vmem:[%s6347_s1 + $0x1f0] sm:$0xff]  }
  0x59   : > { %v5469_v9 = vsel %vm5261_vm5, %v3807_v41, %v714_v60  ;;  %v699_v13 = vshll.u32 %v3790_v63, 16  ;;  %v3752_v1 = vcombine.low %v242_v39, %v329_v38  ;;  %v3755_v17 = vsel %vm3754_vm3, %v5221_v37, %v329_v38  ;;  %v4906_v38 = vld [vmem:[%s6347_s1 + $0x1e8] sm:$0xff]  }
  0x5a   : > { %v796_v40 = vor.u32 %v794_v55, %v793_v2  ;;  %v3806_v62 = vrot.slane %v691_v3, 11  ;;  %v698_v16 = vrot.slane %v696_v8, 7  ;;  %4722 = vmatpush3.bf16.msra.mxu1 %v4895_v31  ;;  %v3808_v5 = vcombine.low %v258_v56, %v393_v12  ;;  %v4910_v56 = vld [vmem:[%s6347_s1 + $0x220] sm:$0xff]  }
  0x5b   : > { %v3811_v49 = vsel %vm3754_vm3, %v5398_v15, %v393_v12  ;;  %4723 = vmatprep.subr.bf16.mxu1 %v4898_v7  ;;  %v509_v19 = vshrl.u32 %v3752_v1, 16  ;;  %v514_v20 = vshrl.u32 %v3755_v17, 16  ;;  %v517_v29 = vshll.u32 %v3755_v17, 16  ;;  %v4911_v17 = vld [vmem:[%s6347_s1 + $0x1a0] sm:$0xff]  }
  0x5c   : > { %v5480_v21 = vsel %vm5261_vm5, %v3814_v11, %v796_v40  ;;  %v701_v22 = vor.u32 %v699_v13, %v698_v16  ;;  %v778_v48 = vshrl.u32 %v3811_v49, 16  ;;  %v781_v23 = vshll.u32 %v3811_v49, 16  ;;  %v4913_v11 = vld [vmem:[%s6347_s1 + $0x218] sm:$0xff]   ;;  %v4909_v13 = vld [vmem:[%s6347_s1 + $0x1e0] sm:$0xff]   ;;  %v4916_v16 = vld [vmem:[%s6347_s1 + $0x210] sm:$0xff]  }
  0x5d   : > { %v3874_v37 = vcombine.low %v5469_v9, %v5480_v21  ;;  %v773_v24 = vshrl.u32 %v3808_v5, 16  ;;  %v3792_v6 = vrot.slane %v509_v19, 11  ;;  %v516_v15 = vrot.slane %v514_v20, 7  ;;  %v4912_v19 = vld [vmem:[%s6347_s1 + $0x1d8] sm:$0xff]  }
  0x5e   : > { %v780_v28 = vrot.slane %v778_v48, 7  ;;  %4724 = vmatpush3.bf16.msra.mxu1 %v4898_v7  ;;  %v5486_v31 = vsel %vm5261_vm5, %v3806_v62, %v701_v22  ;;  %v3904_v39 = vcombine.low %v5301_v27, %v5316_v42  ;;  %v222_v27 = vld [vmem:[#allocation2 + $0x74] sm:$0x1]  ;;  %v261_v42 = vld [vmem:[#allocation2 + $0x70] sm:$0xf]  ;;  %v5526_v55 = vcombine.high %v5271_v51, %v5370_v58  ;;  %v4919_v22 = vld [vmem:[%s6347_s1 + $0x208] sm:$0xff]  }
  0x5f   : > { %4706 = vmatmul.mubr.bf16.gmra.mxu1 %v3874_v37  ;;  %v3813_v30 = vrot.slane %v773_v24, 11  ;;  %4733 = vmatprep.subr.bf16.mxu1 %v4901_v57  ;;  %v519_v35 = vor.u32 %v517_v29, %v516_v15  ;;  %v223_v4 = vsel %vm5205_vm2, 0, %v222_v27  ;;  %v3741_v46 = vcombine.low %v261_v42, %v261_v42 }
  0x60   : > { %v783_v32 = vor.u32 %v781_v23, %v780_v28  ;;  %4725 = vmatprep.mubr.bf16.mxu1 %v3901_v47  ;;  %v4902_v47 = vld [vmem:[%s6347_s1 + $0x1b8] sm:$0xff]   ;;  %224 = vst [vmem:[#allocation2 + $0x74] sm:$0x1] %v223_v4  ;;  %v5536_v61 = vcombine.low %v5451_v10, %v5469_v9  ;;  %v4908_v10 = vld [vmem:[%s6347_s1 + $0x1a8] sm:$0xff]   ;;  %v5554_v12 = vcombine.low %v5271_v51, %v5370_v58  ;;  %v4915_v28 = vld [vmem:[%s6347_s1 + $0x1d0] sm:$0xff]  }
  0x61   : > { %v520_v36 = vsel %vm5261_vm5, %v3792_v6, %v519_v35  ;;  %v395_v59 = vshrl.u32 %v3741_v46, 16  ;;  %v398_v60 = vshll.u32 %v3741_v46, 16  ;;  %v3906_v62 = vcombine.high %v5381_v0, %v5419_v54  ;;  %v4914_v6 = vld [vmem:[%s6347_s1 + $0x198] sm:$0xff]   ;;  %v4922_v35 = vld [vmem:[%s6347_s1 + $0x200] sm:$0xff]  }
  0x62   : > { %v5493_v25 = vsel %vm5261_vm5, %v3813_v30, %v783_v32  ;;  %v3900_v45 = vcombine.high %v520_v36, %v5267_v50  ;;  %v3899_v52 = vcombine.low %v520_v36, %v5267_v50  ;;  %v4905_v50 = vld [vmem:[%s6347_s1 + $0x1b0] sm:$0xff]   ;;  %v3905_v15 = vcombine.low %v5381_v0, %v5419_v54  ;;  %v4918_v54 = vld [vmem:[%s6347_s1 + $0x1c8] sm:$0xff]   ;;  %v4927_v4 = vld [vmem:[%s6347_s1 + $0x338] sm:$0xff]  }
  0x63   : > { %v3873_v41 = vcombine.high %v5486_v31, %v5493_v25  ;;  %v3872_v44 = vcombine.low %v5486_v31, %v5493_v25  ;;  %v397_v63 = vrot.slane %v395_v59, 4  ;;  %v400_v7 = vrot.slane %v398_v60, 5  ;;  %v4917_v0 = vld [vmem:[%s6347_s1 + $0x190] sm:$0xff]   ;;  %v4920_v36 = vld [vmem:[%s6347_s1 + $0x188] sm:$0xff]   ;;  %v4928_v46 = vld [vmem:[%s6347_s1 + $0x3b8] sm:$0xff]  }
  0x64   : > { %v3909_v32 = vcombine.high %v5423_v43, %v5486_v31  ;;  %v4932_v59 = vld [vmem:[%s6347_s1 + $0x368] sm:$0xff]  }
  0x65   : > { %1095 = vmatprep.mubr.bf16.mxu0 %v3873_v41  ;;  %v401_v2 = vor.u32 %v400_v7, %v397_v63  ;;  %v4921_v41 = vld [vmem:[%s6347_s1 + $0x1c0] sm:$0xff]   ;;  %v4933_v60 = vld [vmem:[%s6347_s1 + $0x328] sm:$0xff]  }
  0x66   : > { %1096 = vmatmul.mubr.bf16.gmra.mxu0 %v3872_v44  ;;  %v4923_v44 = vld [vmem:[%s6347_s1 + $0x180] sm:$0xff]  }
  0x67   : > { %1372 = vmatprep.mubr.bf16.mxu0 %v3900_v45  ;;  %4726 = vmatmul.mubr.bf16.vlgmr.msra.gmra.mxu1 %v3904_v39  ;;  %v271_v3 = vld [vmem:[#allocation2 + $0x74] sm:$0x1]  ;;  %v3935_v8 = vcombine.low %v260_v26, %v401_v2  ;;  %v5550_v9 = vsel %vm3754_vm3, %v261_v42, %v401_v2  ;;  %v4934_v26 = vld [vmem:[%s6347_s1 + $0x3a8] sm:$0xff]   ;;  %v4936_v63 = vld [vmem:[%s6347_s1 + $0x320] sm:$0xff]  }
  0x68   : > { %4734 = vmatpush3.bf16.msra.mxu1 %v4901_v57  ;;  %4729 = vmatprep.mubr.bf16.mxu1 %v5506_v18  ;;  %v3751_v1 = vcombine.low %v261_v42, %v271_v3  ;;  %v1484_v40 = vshrl.u32 %v5550_v9, 16  ;;  %v1487_v49 = vshll.u32 %v5550_v9, 16  ;;  %v4940_v3 = vld [vmem:[%s6347_s1 + $0x398] sm:$0xff]  }
  0x69   : > { %4735 = vmatprep.subr.bf16.mxu1 %v4904_v34  ;;  %v5565_v58 = vshrl.u32 %v3935_v8, 16  ;;  %v4941_v8 = vld [vmem:[%s6347_s1 + $0x350] sm:$0xff]  }
  0x6a   : > { %v441_v51 = vrot.slane %v3751_v1, 5  ;;  %v1486_v5 = vrot.slane %v1484_v40, 7  ;;  %v4943_v1 = vld [vmem:[%s6347_s1 + $0x390] sm:$0xff]   ;;  %v4944_v40 = vld [vmem:[%s6347_s1 + $0x348] sm:$0xff]  }
  0x6b   : > { %v3940_v24 = vrot.slane %v5565_v58, 11  ;;  %v4946_v58 = vld [vmem:[%s6347_s1 + $0x388] sm:$0xff]  }
  0x6c   : > { %4736 = vmatpush3.bf16.msra.mxu1 %v4904_v34  ;;  %v3936_v20 = vcombine.low %v441_v51, %v441_v51  ;;  %v3939_v57 = vcombine.high %v441_v51, %v441_v51  ;;  %v1489_v34 = vor.u32 %v1487_v49, %v1486_v5  ;;  %v4945_v51 = vld [vmem:[%s6347_s1 + $0x308] sm:$0xff]  }
  0x6d   : > { %4737 = vmatprep.subr.bf16.mxu1 %v4907_v14 }
  0x6e   : > { %1373 = vmatmul.mubr.bf16.vlgmr.msra.gmra.mxu0 %v3899_v52  ;;  %v1492_v48 = vshrl.u32 %v3936_v20, 16  ;;  %v1497_v23 = vshrl.u32 %v3939_v57, 16  ;;  %v1500_v37 = vshll.u32 %v3939_v57, 16  ;;  %v1490_v27 = vsel %vm5261_vm5, %v3940_v24, %v1489_v34  ;;  %v4929_v52 = vld [vmem:[%s6347_s1 + $0x370] sm:$0xff]   ;;  %v4955_v24 = vld [vmem:[%s6347_s1 + $0x380] sm:$0xff]  }
  0x6f   : > { %4478 = vmatpush3.bf16.msra.mxu0 %v4902_v47  ;;  %1380 = vmatprep.mubr.bf16.mxu0 %v5526_v55  ;;  %v3990_v42 = vcombine.low %v5493_v25, %v1490_v27 }
  0x70   : > { %4479 = vmatprep.subr.bf16.mxu0 %v4903_v53  ;;  %4738 = vmatpush3.bf16.msra.mxu1 %v4907_v14  ;;  %v3941_v29 = vrot.slane %v1492_v48, 11  ;;  %v1499_v30 = vrot.slane %v1497_v23, 7  ;;  %v4926_v14 = vld [vmem:[%s6347_s1 + $0x378] sm:$0xff]   ;;  %v4930_v53 = vld [vmem:[%s6347_s1 + $0x330] sm:$0xff]  }
  0x71   : > { %4739 = vmatprep.subr.bf16.mxu1 %v4910_v56  ;;  %4730 = vmatmul.mubr.bf16.gmra.mxu1 %v5536_v61 }
  0x72   : > { %4749 = vmatprep.mubr.bf16.mxu1 %v3904_v39  ;;  %v3908_v39 = vcombine.low %v5423_v43, %v5486_v31  ;;  %v1502_v45 = vor.u32 %v1500_v37, %v1499_v30 }
  0x73   : > { %4480 = vmatpush3.bf16.msra.mxu0 %v4905_v50 }
  0x74   : > { %4481 = vmatprep.subr.bf16.mxu0 %v4906_v38  ;;  %4740 = vmatpush3.bf16.msra.mxu1 %v4910_v56  ;;  %v1503_v43 = vsel %vm5261_vm5, %v3941_v29, %v1502_v45  ;;  %v4937_v38 = vld [vmem:[%s6347_s1 + $0x3a0] sm:$0xff]   ;;  %v5736_v29 = vld [vmem:[%s6347_s1 + $0x2f8] sm:$0xff]  }
  0x75   : > { %4741 = vmatprep.subr.bf16.mxu1 %v4913_v11  ;;  %v3992_v31 = vcombine.low %v5480_v21, %v1503_v43  ;;  %6355 = vst [vmem:[#allocation3_spill] sm:$0xff] %v5736_v29 }
  0x76   : > { %1381 = vmatmul.mubr.bf16.gmra.mxu0 %v5554_v12 }
  0x77   : > { %4482 = vmatpush3.bf16.msra.mxu0 %v4908_v10  ;;  %1388 = vmatprep.mubr.bf16.mxu0 %v3906_v62  ;;  %v4939_v10 = vld [vmem:[%s6347_s1 + $0x318] sm:$0xff]  }
  0x78   : > { %4483 = vmatprep.subr.bf16.mxu0 %v4909_v13  ;;  %4742 = vmatpush3.bf16.msra.mxu1 %v4913_v11  ;;  %v4938_v11 = vld [vmem:[%s6347_s1 + $0x358] sm:$0xff]   ;;  %v4942_v13 = vld [vmem:[%s6347_s1 + $0x310] sm:$0xff]  }
  0x79   : > { %4743 = vmatprep.subr.bf16.mxu1 %v4916_v16 }
  0x7b   : > { %4484 = vmatpush3.bf16.msra.mxu0 %v4911_v17  ;;  %v4947_v17 = vld [vmem:[%s6347_s1 + $0x340] sm:$0xff]  }
  0x7c   : > { %4485 = vmatprep.subr.bf16.mxu0 %v4912_v19  ;;  %4744 = vmatpush3.bf16.msra.mxu1 %v4916_v16  ;;  %v4952_v19 = vld [vmem:[%s6347_s1 + $0x300] sm:$0xff]  }
  0x7d   : > { %4745 = vmatprep.subr.bf16.mxu1 %v4919_v22 }
  0x7e   : > { %1389 = vmatmul.mubr.bf16.gmra.mxu0 %v3905_v15 }
  0x7f   : > { %4486 = vmatpush3.bf16.msra.mxu0 %v4914_v6  ;;  %1396 = vmatprep.mubr.bf16.mxu0 %v3909_v32  ;;  %v4956_v6 = vld [vmem:[%s6347_s1 + $0x2b8] sm:$0xff]  }
  0x80   : > { %4487 = vmatprep.subr.bf16.mxu0 %v4915_v28  ;;  %4746 = vmatpush3.bf16.msra.mxu1 %v4919_v22 }
  0x81   : > { %4747 = vmatprep.subr.bf16.mxu1 %v4922_v35 }
  0x83   : > { %4488 = vmatpush3.bf16.msra.mxu0 %v4917_v0 }
  0x84   : > { %4489 = vmatprep.subr.bf16.mxu0 %v4918_v54  ;;  %4748 = vmatpush3.bf16.msra.mxu1 %v4922_v35 }
  0x85   : > { %4757 = vmatprep.subr.bf16.mxu1 %v4928_v46 }
  0x86   : > { %1397 = vmatmul.mubr.bf16.gmra.mxu0 %v3908_v39 }
  0x87   : > { %4490 = vmatpush3.bf16.msra.mxu0 %v4920_v36  ;;  %1738 = vmatprep.mubr.bf16.mxu0 %v5526_v55  ;;  %v4931_v55 = vld [vmem:[%s6347_s1 + $0x3b0] sm:$0xff]  }
  0x88   : > { %4491 = vmatprep.subr.bf16.mxu0 %v4921_v41  ;;  %4750 = vmatmul.mubr.bf16.vlgmr.msra.gmra.mxu1 %v5506_v18  ;;  %v3991_v18 = vcombine.high %v5493_v25, %v1490_v27 }
  0x89   : > { %4753 = vmatprep.mubr.bf16.mxu1 %v5536_v61  ;;  %4758 = vmatpush3.bf16.msra.mxu1 %v4928_v46  ;;  %v4935_v61 = vld [vmem:[%s6347_s1 + $0x360] sm:$0xff]  }
  0x8a   : > { %4759 = vmatprep.subr.bf16.mxu1 %v4931_v55 }
  0x8b   : > { %4492 = vmatpush3.bf16.msra.mxu0 %v4923_v44 }
  0x8c   : > { %4529 = vmatprep.subr.bf16.mxu0 %v4926_v14 }
  0x8d   : > { %4760 = vmatpush3.bf16.msra.mxu1 %v4931_v55 }
  0x8e   : > { %1739 = vmatmul.mubr.bf16.vlgmr.msra.gmra.mxu0 %v5554_v12  ;;  %4761 = vmatprep.subr.bf16.mxu1 %v4934_v26 }
  0x8f   : > { %1746 = vmatprep.mubr.bf16.mxu0 %v3906_v62  ;;  %4530 = vmatpush3.bf16.msra.mxu0 %v4927_v4 }
  0x90   : > { %4754 = vmatmul.mubr.bf16.gmra.mxu1 %v3992_v31  ;;  %4531 = vmatprep.subr.bf16.mxu0 %v4929_v52 }
  0x91   : > { %4762 = vmatpush3.bf16.msra.mxu1 %v4934_v26 }
  0x92   : > { %4763 = vmatprep.subr.bf16.mxu1 %v4937_v38 }
  0x93   : > { %4532 = vmatpush3.bf16.msra.mxu0 %v4930_v53 }
  0x94   : > { %4533 = vmatprep.subr.bf16.mxu0 %v4932_v59 }
  0x95   : > { %4764 = vmatpush3.bf16.msra.mxu1 %v4937_v38 }
  0x96   : > { %1747 = vmatmul.mubr.bf16.gmra.mxu0 %v3905_v15  ;;  %4765 = vmatprep.subr.bf16.mxu1 %v4940_v3 }
  0x97   : > { %1754 = vmatprep.mubr.bf16.mxu0 %v3909_v32  ;;  %4534 = vmatpush3.bf16.msra.mxu0 %v4933_v60 }
  0x98   : > { %4535 = vmatprep.subr.bf16.mxu0 %v4935_v61 }
  0x99   : > { %4766 = vmatpush3.bf16.msra.mxu1 %v4940_v3 }
  0x9a   : > { %4767 = vmatprep.subr.bf16.mxu1 %v4943_v1 }
  0x9b   : > { %4536 = vmatpush3.bf16.msra.mxu0 %v4936_v63 }
  0x9c   : > { %4537 = vmatprep.subr.bf16.mxu0 %v4938_v11 }
  0x9d   : > { %4768 = vmatpush3.bf16.msra.mxu1 %v4943_v1 }
  0x9e   : > { %1755 = vmatmul.mubr.bf16.gmra.mxu0 %v3908_v39  ;;  %4769 = vmatprep.subr.bf16.mxu1 %v4946_v58 }
  0x9f   : > { %1762 = vmatprep.mubr.bf16.mxu0 %v3991_v18  ;;  %4538 = vmatpush3.bf16.msra.mxu0 %v4939_v10 }
  0xa0   : > { %4539 = vmatprep.subr.bf16.mxu0 %v4941_v8 }
  0xa1   : > { %4770 = vmatpush3.bf16.msra.mxu1 %v4946_v58 }
  0xa2   : > { %4771 = vmatprep.subr.bf16.mxu1 %v4955_v24 }
  0xa3   : > { %4540 = vmatpush3.bf16.msra.mxu0 %v4942_v13 }
  0xa4   : > { %4541 = vmatprep.subr.bf16.mxu0 %v4944_v40 }
  0xa5   : > { %4772 = vmatpush3.bf16.msra.mxu1 %v4955_v24 }
  0xa6   : > { %1763 = vmatmul.mubr.bf16.gmra.mxu0 %v3990_v42  ;;  %4781 = vmatprep.subr.bf16.mxu1 %v5736_v29 }
  0xa7   : > { %4542 = vmatpush3.bf16.msra.mxu0 %v4945_v51 }
  0xa8   : > { %4543 = vmatprep.subr.bf16.mxu0 %v4947_v17 }
  0xab   : > { %4544 = vmatpush3.bf16.msra.mxu0 %v4952_v19 }
  0xac   : > { %4581 = vmatprep.subr.bf16.mxu0 %v4956_v6 }
  0xf5   : > { %v5620_v47 = vpop.f32.mrf.mxu0 }
  0xf7   : > { %v5622_v21 = vpop.f32.mrf.mxu0 }
  0xf8   : > { %v4391_v61 = vadd.f32 %v5622_v21, %v5620_v47 }
  0xf9   : > { %v5633_v25 = vpop.f32.mrf.mxu0 }
  0xfb   : > { %v5644_v56 = vpop.f32.mrf.mxu0 }
  0xfc   : > { %v4394_v8 = vadd.f32 %v5644_v56, %v5633_v25  ;;  %v5775_v56 = vld [vmem:[%s6348_s2] ss:$0 sm:$0xff] }
 0x101   : > { %v5682_v9 = vpop.f32.mrf.mxu1 }
 0x103   : > { %v1138_v62 = vpop.f32.mrf.mxu1 }
 0x104   : > { %v1139_v3 = vadd.f32 %v4391_v61, %v1138_v62 }
 0x105   : > { %v5706_v5 = vpop.f32.mrf.mxu1 }
 0x107   : > { %v1141_v20 = vpop.f32.mrf.mxu1 }
 0x108   : > { %v5655_v50 = vpop.f32.mrf.mxu0  ;;  %v1142_v19 = vadd.f32 %v4394_v8, %v1141_v20 }
 0x10a   : > { %v5663_v7 = vpop.f32.mrf.mxu0 }
 0x10b   : > { %v4397_v58 = vadd.f32 %v5663_v7, %v5655_v50 }
 0x10c   : > { %v5671_v2 = vpop.f32.mrf.mxu0 }
 0x10d   : > { %v1147_v62 = vadd.f32 %v5682_v9, %v4397_v58 }
 0x10e   : > { %v5684_v12 = vpop.f32.mrf.mxu0 }
 0x10f   : > { %v4400_v25 = vadd.f32 %v5684_v12, %v5671_v2 }
 0x111   : > { %v5695_v16 = vpop.f32.mrf.mxu0 }
 0x113   : > { %v5708_v49 = vpop.f32.mrf.mxu0 }
 0x114   : > { %v4403_v12 = vadd.f32 %v5708_v49, %v5695_v16 }
 0x115   : > { %v5713_v57 = vpop.f32.mrf.mxu0 }
 0x117   : > { %v5717_v48 = vpop.f32.mrf.mxu0 }
 0x11f   : > { %v5715_v22 = vpop.f32.mrf.mxu1 }
 0x121   : > { %v5719_v23 = vpop.f32.mrf.mxu1 }
 0x122   : > { %v1155_v16 = vadd.f32 %v4403_v12, %v5719_v23 }
 0x123   : > { %v5729_v15 = vpop.f32.mrf.mxu1 }
 0x125   : > { %v5741_v32 = vpop.f32.mrf.mxu1 }
 0x126   : > { %v5721_v37 = vpop.f32.mrf.mxu0 }
 0x127   : > { %v4727_v54 = vpop.f32.mrf.mxu1 }
 0x128   : > { %v5731_v28 = vpop.f32.mrf.mxu0 }
 0x129   : > { %v1439_v39 = vpop.f32.mrf.mxu1 }
 0x12a   : > { %v5738_v30 = vpop.f32.mrf.mxu0 }
 0x12b   : > { %v5745_v45 = vpop.f32.mrf.mxu1 }
 0x12c   : > { %v5743_v35 = vpop.f32.mrf.mxu0 }
 0x12d   : > { %v1442_v34 = vpop.f32.mrf.mxu1 }
 0x12e   : > { %v4441_v0 = vpop.f32.mrf.mxu0 }
 0x130   : > { %v4442_v36 = vpop.f32.mrf.mxu0 }
 0x131   : > { %v5747_v42 = vpop.f32.mrf.mxu1  ;;  %v4443_v11 = vadd.f32 %v4442_v36, %v4441_v0 }
 0x132   : > { %v4444_v41 = vpop.f32.mrf.mxu0 }
 0x133   : > { %v5749_v46 = vpop.f32.mrf.mxu1  ;;  %v1375_v40 = vadd.f32 %v4443_v11, %v1139_v3  ;;  %v1150_v11 = vadd.f32 %v5706_v5, %v4400_v25  ;;  %v4406_v5 = vadd.f32 %v5717_v48, %v5713_v57  ;;  %v4409_v48 = vadd.f32 %v5731_v28, %v5721_v37 }
 0x134   : > { %v4445_v44 = vpop.f32.mrf.mxu0  ;;  %v4412_v28 = vadd.f32 %v5743_v35, %v5738_v30 }
 0x135   : > { %v5751_v55 = vpop.f32.mrf.mxu1  ;;  %v4446_v51 = vadd.f32 %v4445_v44, %v4444_v41  ;;  %v1440_v0 = vadd.f32 %v1439_v39, %v1375_v40  ;;  %v1158_v57 = vadd.f32 %v4406_v5, %v5741_v32  ;;  %v1163_v37 = vadd.f32 %v5715_v22, %v4409_v48  ;;  %v1915_v48 = vld [vmem:[#allocation2 + $0x10] sm:$0xf] }
 0x136   : > { %v4447_v43 = vpop.f32.mrf.mxu0  ;;  %v1166_v30 = vadd.f32 %v5729_v15, %v4412_v28 }
 0x137   : > { %v5757_v26 = vpop.f32.mrf.mxu1  ;;  %v1378_v36 = vadd.f32 %v4446_v51, %v1142_v19 }
 0x138   : > { %v4448_v31 = vpop.f32.mrf.mxu0 }
 0x139   : > { %v4449_v21 = vadd.f32 %v4448_v31, %v4447_v43  ;;  %v1443_v39 = vadd.f32 %v1442_v34, %v1378_v36 }
 0x13a   : > { %v4450_v27 = vpop.f32.mrf.mxu0 }
 0x13b   : > { %v1383_v41 = vadd.f32 %v4449_v21, %v1147_v62 }
 0x13c   : > { %v4451_v18 = vpop.f32.mrf.mxu0 }
 0x13d   : > { %v4452_v44 = vadd.f32 %v4451_v18, %v4450_v27 }
 0x13e   : > { %v4453_v14 = vpop.f32.mrf.mxu0 }
 0x140   : > { %v4454_v4 = vpop.f32.mrf.mxu0 }
 0x141   : > { %v4455_v40 = vadd.f32 %v4454_v4, %v4453_v14 }
 0x142   : > { %v4456_v52 = vpop.f32.mrf.mxu0 }
 0x143   : > { %v1391_v4 = vadd.f32 %v4455_v40, %v1155_v16 }
 0x144   : > { %v4457_v53 = vpop.f32.mrf.mxu0 }
 0x146   : > { %v5753_v59 = vpop.f32.mrf.mxu0 }
 0x148   : > { %v5755_v60 = vpop.f32.mrf.mxu0  ;;  %v4751_v38 = vpop.f32.mrf.mxu1 }
 0x14a   : > { %v5761_v63 = vpop.f32.mrf.mxu0  ;;  %v1805_v1 = vpop.f32.mrf.mxu1 }
 0x14c   : > { %v5763_v10 = vpop.f32.mrf.mxu0  ;;  %v4752_v6 = vpop.f32.mrf.mxu1 }
 0x14e   : > { %v4493_v13 = vpop.f32.mrf.mxu0  ;;  %v1808_v43 = vpop.f32.mrf.mxu1 }
 0x150   : > { %v4494_v17 = vpop.f32.mrf.mxu0  ;;  %v4755_v18 = vpop.f32.mrf.mxu1 }
 0x151   : > { %v4495_v47 = vadd.f32 %v4494_v17, %v4493_v13  ;;  %v1448_v13 = vadd.f32 %v4727_v54, %v1383_v41 }
 0x152   : > { %v4496_v24 = vpop.f32.mrf.mxu0  ;;  %v1821_v21 = vpop.f32.mrf.mxu1 }
 0x153   : > { %v1806_v29 = vadd.f32 %v4495_v47, %v1805_v1  ;;  %v1386_v1 = vadd.f32 %v4452_v44, %v1150_v11  ;;  %v4458_v47 = vadd.f32 %v4457_v53, %v4456_v52 }
 0x154   : > { %v4497_v50 = vpop.f32.mrf.mxu0  ;;  %v4756_v53 = vpop.f32.mrf.mxu1 }
 0x155   : > { %v1836_v7 = vadd.f32 %v1806_v29, %v1440_v0  ;;  %v4498_v20 = vadd.f32 %v4497_v50, %v4496_v24  ;;  %v1451_v54 = vadd.f32 %v5745_v45, %v1386_v1  ;;  %v4461_v45 = vadd.f32 %v5755_v60, %v5753_v59 }
 0x156   : > { %v4499_v31 = vpop.f32.mrf.mxu0  ;;  %v1394_v52 = vadd.f32 %v4458_v47, %v1158_v57  ;;  %v1456_v50 = vadd.f32 %v5749_v46, %v1391_v4 }
 0x157   : > { %v5778_v61 = vadd.f32 %v5775_v56, %v1836_v7  ;;  %v1809_v9 = vadd.f32 %v4498_v20, %v1808_v43  ;;  %v1399_v60 = vadd.f32 %v4461_v45, %v1163_v37  ;;  %v1824_v43 = vpop.f32.mrf.mxu1 }
 0x158   : > { %v4500_v2 = vpop.f32.mrf.mxu0  ;;  %v1459_v44 = vadd.f32 %v5757_v26, %v1394_v52 }
 0x159   : > { %v4018_v3 = vmul.f32 -1.442695, %v5778_v61  ;;  %v1837_v8 = vadd.f32 %v1809_v9, %v1443_v39  ;;  %v4501_v29 = vadd.f32 %v4500_v2, %v4499_v31  ;;  %v4464_v31 = vadd.f32 %v5763_v10, %v5761_v63 }
 0x15a   : > { %v4502_v27 = vpop.f32.mrf.mxu0  ;;  %v1464_v26 = vadd.f32 %v5747_v42, %v1399_v60 }
 0x15b   : > { %5018 = vpow2.f32 %v4018_v3  ;;  %v5785_v34 = vadd.f32 %v5775_v56, %v1837_v8  ;;  %v1814_v51 = vadd.f32 %v4751_v38, %v4501_v29  ;;  %v1402_v29 = vadd.f32 %v4464_v31, %v1166_v30 }
 0x15c   : > { %v4503_v58 = vpop.f32.mrf.mxu0 }
 0x15d   : > { %v4019_v49 = vmul.f32 -1.442695, %v5785_v34  ;;  %v1838_v17 = vadd.f32 %v1814_v51, %v1448_v13  ;;  %v4504_v19 = vadd.f32 %v4503_v58, %v4502_v27  ;;  %v1467_v5 = vadd.f32 %v5751_v55, %v1402_v29  ;;  %v1969_v29 = vld [vmem:[#allocation2 + $0x20] sm:$0x1] }
 0x15e   : > { %v4505_v14 = vpop.f32.mrf.mxu0 }
 0x15f   : > { %5020 = vpow2.f32 %v4019_v49  ;;  %v5793_v24 = vadd.f32 %v5775_v56, %v1838_v17  ;;  %v1817_v38 = vadd.f32 %v4752_v6, %v4504_v19 }
 0x160   : > { %v4506_v23 = vpop.f32.mrf.mxu0 }
 0x161   : > { %v4020_v0 = vmul.f32 -1.442695, %v5793_v24  ;;  %v1839_v36 = vadd.f32 %v1817_v38, %v1451_v54  ;;  %v4507_v62 = vadd.f32 %v4506_v23, %v4505_v14  ;;  %v1967_v14 = vld [vmem:[#allocation2 + $0x8] sm:$0x1] }
 0x162   : > { %v4508_v25 = vpop.f32.mrf.mxu0 }
 0x163   : > { %5022 = vpow2.f32 %v4020_v0  ;;  %v5803_v6 = vadd.f32 %v5775_v56, %v1839_v36  ;;  %v1822_v32 = vadd.f32 %v4507_v62, %v1821_v21  ;;  %v5831_v21 = vld [vmem:[#allocation2 + $0x4] sm:$0xf] }
 0x164   : > { %v4509_v7 = vpop.f32.mrf.mxu0  ;;  %v4036_v0 = vcombine.low %v5831_v21, %v1967_v14  ;;  %v1970_v14 = vld [vmem:[#allocation2 + $0x2c] sm:$0x1] }
 0x165   : > { %v4021_v20 = vmul.f32 -1.442695, %v5803_v6  ;;  %v1840_v41 = vadd.f32 %v1822_v32, %v1456_v50  ;;  %v4510_v59 = vadd.f32 %v4509_v7, %v4508_v25 }
 0x166   : > { %v4511_v46 = vpop.f32.mrf.mxu0  ;;  %v2137_v50 = vrot.slane %v4036_v0, 5 }
 0x167   : > { %5024 = vpow2.f32 %v4021_v20  ;;  %v5813_v39 = vadd.f32 %v5775_v56, %v1840_v41  ;;  %v1825_v22 = vadd.f32 %v4510_v59, %v1824_v43  ;;  %v1917_v41 = vld [vmem:[#allocation2 + $0x28] sm:$0xf]  ;;  %v1968_v43 = vld [vmem:[#allocation2 + $0x14] sm:$0x1] }
 0x168   : > { %v5019_v9 = vpop.eup %5018  ;;  %v4512_v35 = vpop.f32.mrf.mxu0  ;;  %v5839_v60 = vcombine.high %v2137_v50, %v2137_v50 }
 0x169   : > { %v1883_v11 = vadd.f32 1.0, %v5019_v9  ;;  %v4022_v2 = vmul.f32 -1.442695, %v5813_v39  ;;  %v1841_v12 = vadd.f32 %v1825_v22, %v1459_v44  ;;  %v4513_v3 = vadd.f32 %v4512_v35, %v4511_v46  ;;  %v1918_v35 = vld [vmem:[#allocation2 + $0x34] sm:$0xf] }
 0x16a   : > { %v4514_v8 = vpop.f32.mrf.mxu0 }
 0x16b   : > { %5026 = vrcp.f32 %v1883_v11  ;;  %v5819_v63 = vadd.f32 %v5775_v56, %v1841_v12  ;;  %v1830_v10 = vadd.f32 %v4755_v18, %v4513_v3  ;;  %v2230_v12 = vshrl.u32 %v5839_v60, 16 }
 0x16c   : > { %v5021_v13 = vpop.eup %5020  ;;  %5028 = vpow2.f32 %v4022_v2  ;;  %v4515_v1 = vpop.f32.mrf.mxu0 }
 0x16d   : > { %v1884_v27 = vadd.f32 1.0, %v5021_v13  ;;  %v4023_v15 = vmul.f32 -1.442695, %v5819_v63  ;;  %v1842_v40 = vadd.f32 %v1830_v10, %v1464_v26  ;;  %v4516_v51 = vadd.f32 %v4515_v1, %v4514_v8 }
 0x16f   : > { %5030 = vrcp.f32 %v1884_v27  ;;  %v5824_v42 = vadd.f32 %v5775_v56, %v1842_v40  ;;  %v1833_v58 = vadd.f32 %v4756_v53, %v4516_v51  ;;  %v1916_v53 = vld [vmem:[#allocation2 + $0x1c] sm:$0xf] }
 0x170   : > { %v5023_v16 = vpop.eup %5022  ;;  %5032 = vpow2.f32 %v4023_v15 }
 0x171   : > { %v1885_v49 = vadd.f32 1.0, %v5023_v16  ;;  %v4024_v18 = vmul.f32 -1.442695, %v5824_v42  ;;  %v1843_v17 = vadd.f32 %v1833_v58, %v1467_v5  ;;  %v5853_v16 = vrot.slane %v2230_v12, 7 }
 0x173   : > { %5034 = vrcp.f32 %v1885_v49  ;;  %v5828_v19 = vadd.f32 %v5775_v56, %v1843_v17  ;;  %v1919_v49 = vld [vmem:[#allocation2 + $0x40] sm:$0xf] }
 0x174   : > { %v5025_v54 = vpop.eup %5024  ;;  %5036 = vpow2.f32 %v4024_v18 }
 0x175   : > { %v1886_v47 = vadd.f32 1.0, %v5025_v54  ;;  %v4025_v55 = vmul.f32 -1.442695, %v5828_v19 }
 0x177   : > { %5038 = vrcp.f32 %v1886_v47 }
 0x178   : > { %v5027_v4 = vpop.eup %5026  ;;  %5040 = vpow2.f32 %v4025_v55 }
 0x179   : > { %v5029_v38 = vpop.eup %5028  ;;  %v1907_v57 = vmul.f32 %v5027_v4, %v5778_v61  ;;  %v4026_v61 = vcombine.low %v5831_v21, %v5831_v21 }
 0x17a   : > { %v1887_v23 = vadd.f32 1.0, %v5029_v38 }
 0x17b   : > { %v1923_v56 = vpack.c.bf16 %v1907_v57, %v1907_v57  ;;  %v2028_v46 = vshrl.u32 %v4026_v61, 16  ;;  %v2031_v31 = vshll.u32 %v4026_v61, 16 }
 0x17c   : > { %v5031_v36 = vpop.eup %5030  ;;  %5042 = vrcp.f32 %v1887_v23 }
 0x17d   : > { %v5033_v62 = vpop.eup %5032  ;;  %v1931_v45 = vadd.bf16 %v1923_v56, %v1915_v48  ;;  %v1908_v52 = vmul.f32 %v5031_v36, %v5785_v34  ;;  %v2030_v10 = vrot.slane %v2028_v46, 4  ;;  %v2033_v13 = vrot.slane %v2031_v31, 5 }
 0x17e   : > { %v1888_v25 = vadd.f32 1.0, %v5033_v62 }
 0x17f   : > { %1939 = vst [vmem:[#allocation2 + $0x10] sm:$0xf] %v1931_v45  ;;  %v1924_v32 = vpack.c.bf16 %v1908_v52, %v1908_v52  ;;  %v5859_v56 = vor.u32 %v2033_v13, %v2030_v10 }
 0x180   : > { %v5035_v37 = vpop.eup %5034  ;;  %5044 = vrcp.f32 %v1888_v25  ;;  %v1920_v25 = vld [vmem:[#allocation2 + $0x4c] sm:$0xf] }
 0x181   : > { %v5037_v28 = vpop.eup %5036  ;;  %v1932_v7 = vadd.bf16 %v1924_v32, %v1916_v53  ;;  %v1909_v20 = vmul.f32 %v5035_v37, %v5793_v24  ;;  %v4047_v24 = vcombine.low %v2137_v50, %v2137_v50 }
 0x182   : > { %v1889_v59 = vadd.f32 1.0, %v5037_v28 }
 0x183   : > { %1940 = vst [vmem:[#allocation2 + $0x1c] sm:$0xf] %v1932_v7  ;;  %v1925_v34 = vpack.c.bf16 %v1909_v20, %v1909_v20  ;;  %v5851_v58 = vshrl.u32 %v4047_v24, 16  ;;  %v1971_v7 = vld [vmem:[#allocation2 + $0x38] sm:$0x1] }
 0x184   : > { %v5039_v44 = vpop.eup %5038  ;;  %5046 = vrcp.f32 %v1889_v59 }
 0x185   : > { %v5041_v22 = vpop.eup %5040  ;;  %v1933_v9 = vadd.bf16 %v1925_v34, %v1917_v41  ;;  %v1910_v30 = vmul.f32 %v5039_v44, %v5803_v6 }
 0x186   : > { %v1890_v11 = vadd.f32 1.0, %v5041_v22  ;;  %v5842_v2 = vld [vmem:[#allocation2 + $0x10] sm:$0xf] }
 0x187   : > { %1941 = vst [vmem:[#allocation2 + $0x28] sm:$0xf] %v1933_v9  ;;  %v1926_v3 = vpack.c.bf16 %v1910_v30, %v1910_v30  ;;  %v4037_v26 = vcombine.low %v5842_v2, %v1968_v43  ;;  %v4027_v8 = vcombine.low %v5842_v2, %v5842_v2 }
 0x188   : > { %5048 = vrcp.f32 %v1890_v11  ;;  %v1921_v11 = vld [vmem:[#allocation2 + $0x58] sm:$0xf] }
 0x189   : > { %v5043_v1 = vpop.eup %5042  ;;  %v1934_v6 = vadd.bf16 %v1926_v3, %v1918_v35  ;;  %v2138_v27 = vrot.slane %v4037_v26, 5  ;;  %v2036_v15 = vshrl.u32 %v4027_v8, 16  ;;  %v2039_v40 = vshll.u32 %v4027_v8, 16  ;;  %v1949_v8 = vld [vmem:[#allocation2 + $0xc] sm:$0x8] }
 0x18a   : > { %v1911_v51 = vmul.f32 %v5043_v1, %v5813_v39  ;;  %v5849_v5 = vld [vmem:[#allocation2 + $0x1c] sm:$0xf]  ;;  %v2233_v39 = vshll.u32 %v5839_v60, 16 }
 0x18b   : > { %1942 = vst [vmem:[#allocation2 + $0x34] sm:$0xf] %v1934_v6  ;;  %v4038_v18 = vcombine.low %v5849_v5, %v1969_v29  ;;  %v4052_v17 = vcombine.low %v2138_v27, %v2138_v27  ;;  %v4055_v54 = vcombine.high %v2138_v27, %v2138_v27  ;;  %v4028_v47 = vcombine.low %v5849_v5, %v5849_v5 }
 0x18c   : > { %v1927_v55 = vpack.c.bf16 %v1911_v51, %v1911_v51  ;;  %v2038_v4 = vrot.slane %v2036_v15, 4  ;;  %v2041_v38 = vrot.slane %v2039_v40, 5  ;;  %v1951_v51 = vld [vmem:[#allocation2 + $0x18] sm:$0x8] }
 0x18d   : > { %v5045_v57 = vpop.eup %5044  ;;  %v2139_v48 = vrot.slane %v4038_v18, 5  ;;  %v2251_v23 = vshrl.u32 %v4052_v17, 16  ;;  %v2256_v0 = vshrl.u32 %v4055_v54, 16  ;;  %v2259_v52 = vshll.u32 %v4055_v54, 16 }
 0x18e   : > { %v1935_v36 = vadd.bf16 %v1927_v55, %v1919_v49  ;;  %v1912_v62 = vmul.f32 %v5045_v57, %v5819_v63  ;;  %v5862_v45 = vld [vmem:[#allocation2 + $0x28] sm:$0xf]  ;;  %v2044_v53 = vshrl.u32 %v4028_v47, 16  ;;  %v2042_v61 = vor.u32 %v2041_v38, %v2038_v4 }
 0x18f   : > { %v4039_v50 = vcombine.low %v5862_v45, %v1970_v14  ;;  %v4057_v32 = vcombine.low %v2139_v48, %v2139_v48  ;;  %v4060_v37 = vcombine.high %v2139_v48, %v2139_v48  ;;  %v2258_v20 = vrot.slane %v2256_v0, 7 }
 0x190   : > { %1943 = vst [vmem:[#allocation2 + $0x40] sm:$0xf] %v1935_v36  ;;  %v1928_v28 = vpack.c.bf16 %v1912_v62, %v1912_v62  ;;  %v2046_v41 = vrot.slane %v2044_v53, 4  ;;  %v2047_v59 = vshll.u32 %v4028_v47, 16  ;;  %v4089_v43 = vrot.slane %v2251_v23, 11 }
 0x191   : > { %v5047_v34 = vpop.eup %5046  ;;  %v2140_v44 = vrot.slane %v4039_v50, 5  ;;  %v2277_v63 = vshrl.u32 %v4057_v32, 16  ;;  %v2282_v46 = vshrl.u32 %v4060_v37, 16  ;;  %v2261_v30 = vor.u32 %v2259_v52, %v2258_v20  ;;  %v1922_v47 = vld [vmem:[#allocation2 + $0x64] sm:$0xf] }
 0x192   : > { %v1936_v31 = vadd.bf16 %v1928_v28, %v1920_v25  ;;  %v1913_v22 = vmul.f32 %v5047_v34, %v5824_v42  ;;  %v5866_v9 = vld [vmem:[#allocation2 + $0x34] sm:$0xf]  ;;  %v2049_v35 = vrot.slane %v2047_v59, 5  ;;  %v2285_v26 = vshll.u32 %v4060_v37, 16  ;;  %v1972_v37 = vld [vmem:[#allocation2 + $0x44] sm:$0x1] }
 0x193   : > { %v4040_v24 = vcombine.low %v5866_v9, %v1971_v7  ;;  %v4062_v12 = vcombine.low %v2140_v44, %v2140_v44  ;;  %v4065_v3 = vcombine.high %v2140_v44, %v2140_v44  ;;  %v4091_v10 = vrot.slane %v2277_v63, 11  ;;  %v1973_v28 = vld [vmem:[#allocation2 + $0x50] sm:$0x1] }
 0x194   : > { %1944 = vst [vmem:[#allocation2 + $0x4c] sm:$0xf] %v1936_v31  ;;  %v1929_v29 = vpack.c.bf16 %v1913_v22, %v1913_v22  ;;  %v2284_v13 = vrot.slane %v2282_v46, 7  ;;  %v2050_v1 = vor.u32 %v2049_v35, %v2046_v41  ;;  %v5871_v42 = vsel %vm5261_vm5, %v4089_v43, %v2261_v30 }
 0x195   : > { %v5049_v6 = vpop.eup %5048  ;;  %v2141_v27 = vrot.slane %v4040_v24, 5  ;;  %v2303_v15 = vshrl.u32 %v4062_v12, 16  ;;  %v2308_v40 = vshrl.u32 %v4065_v3, 16  ;;  %v4051_v54 = vcombine.low %v1949_v8, %v2042_v61 }
 0x196   : > { %v1937_v49 = vadd.bf16 %v1929_v29, %v1921_v11  ;;  %v1914_v18 = vmul.f32 %v5049_v6, %v5828_v19  ;;  %v2287_v17 = vor.u32 %v2285_v26, %v2284_v13  ;;  %v2311_v38 = vshll.u32 %v4065_v3, 16  ;;  %v4963_v6 = vld [vmem:[%s6347_s1 + $0x2f0] sm:$0xff]  }
 0x197   : > { %v4067_v55 = vcombine.low %v2141_v27, %v2141_v27  ;;  %v4070_v14 = vcombine.high %v2141_v27, %v2141_v27  ;;  %v2310_v4 = vrot.slane %v2308_v40, 7  ;;  %v4054_v23 = vsel %vm3754_vm3, %v5842_v2, %v2042_v61  ;;  %v5888_v41 = vld [vmem:[#allocation2 + $0x40] sm:$0xf] }
 0x198   : > { %1945 = vst [vmem:[#allocation2 + $0x58] sm:$0xf] %v1937_v49  ;;  %v1930_v57 = vpack.c.bf16 %v1914_v18, %v1914_v18  ;;  %v5876_v48 = vsel %vm5261_vm5, %v4091_v10, %v2287_v17  ;;  %v4056_v0 = vcombine.low %v1951_v51, %v2050_v1  ;;  %v4093_v36 = vrot.slane %v2303_v15, 11 }
 0x199   : > { %v2313_v62 = vor.u32 %v2311_v38, %v2310_v4  ;;  %v2329_v19 = vshrl.u32 %v4067_v55, 16  ;;  %v2334_v52 = vshrl.u32 %v4070_v14, 16  ;;  %v4207_v25 = vcombine.low %v5871_v42, %v5876_v48  ;;  %v6356_v55 = vld [vmem:[#allocation3_spill] sm:$0xff] }
 0x19a   : > { %v1938_v53 = vadd.bf16 %v1930_v57, %v1922_v47  ;;  %v4059_v50 = vsel %vm3754_vm3, %v5849_v5, %v2050_v1  ;;  %v2238_v32 = vshrl.u32 %v4051_v54, 16  ;;  %v2337_v61 = vshll.u32 %v4070_v14, 16  ;;  %v1953_v14 = vld [vmem:[#allocation2 + $0x24] sm:$0x8] }
 0x19b   : > { %v5886_v7 = vsel %vm5261_vm5, %v4093_v36, %v2313_v62  ;;  %v2336_v2 = vrot.slane %v2334_v52, 7  ;;  %v2243_v20 = vshrl.u32 %v4054_v23, 16  ;;  %v4095_v59 = vrot.slane %v2329_v19, 11  ;;  %4773 = vmatprep.mubr.bf16.mxu1 %v4207_v25  ;;  %v5890_v63 = vld [vmem:[#allocation2 + $0x4c] sm:$0xf]  ;;  %v4957_v36 = vld [vmem:[%s6347_s1 + $0x278] sm:$0xff]  }
 0x19c   : > { %1946 = vst [vmem:[#allocation2 + $0x64] sm:$0xf] %v1938_v53  ;;  %v4088_v34 = vrot.slane %v2238_v32, 11  ;;  %v2246_v44 = vshll.u32 %v4054_v23, 16  ;;  %v2264_v43 = vshrl.u32 %v4056_v0, 16  ;;  %v2269_v31 = vshrl.u32 %v4059_v50, 16 }
 0x19d   : > { %v2339_v5 = vor.u32 %v2337_v61, %v2336_v2  ;;  %v2245_v46 = vrot.slane %v2243_v20, 7  ;;  %v2272_v22 = vshll.u32 %v4059_v50, 16  ;;  %v4029_v35 = vcombine.low %v5862_v45, %v5862_v45  ;;  %v1955_v62 = vld [vmem:[#allocation2 + $0x30] sm:$0x8]  ;;  %v4966_v52 = vld [vmem:[%s6347_s1 + $0x2e8] sm:$0xff]  }
 0x19e   : > { %v4090_v30 = vrot.slane %v2264_v43, 11  ;;  %v4030_v11 = vcombine.low %v5866_v9, %v5866_v9  ;;  %v4041_v24 = vcombine.low %v5888_v41, %v1972_v37  ;;  %v2271_v26 = vrot.slane %v2269_v31, 7  ;;  %v4959_v25 = vld [vmem:[%s6347_s1 + $0x2b0] sm:$0xff]   ;;  %v5936_v31 = vld [vmem:[#allocation2 + $0x5c] sm:$0x1] }
 0x19f   : > { %v5899_v12 = vsel %vm5261_vm5, %v4095_v59, %v2339_v5  ;;  %v2248_v3 = vor.u32 %v2246_v44, %v2245_v46  ;;  %v4042_v8 = vcombine.low %v5890_v63, %v1973_v28  ;;  %v2052_v10 = vshrl.u32 %v4029_v35, 16 }
 0x1a0   : > { %v4210_v29 = vcombine.low %v5886_v7, %v5899_v12  ;;  %v2055_v13 = vshll.u32 %v4029_v35, 16  ;;  %v2060_v1 = vshrl.u32 %v4030_v11, 16  ;;  %v2274_v15 = vor.u32 %v2272_v22, %v2271_v26  ;;  %v4964_v35 = vld [vmem:[%s6347_s1 + $0x2a8] sm:$0xff]  }
 0x1a1   : > { %v5909_v27 = vsel %vm5261_vm5, %v4088_v34, %v2248_v3  ;;  %v2063_v40 = vshll.u32 %v4030_v11, 16  ;;  %v2142_v51 = vrot.slane %v4041_v24, 5  ;;  %v2054_v49 = vrot.slane %v2052_v10, 4  ;;  %v4960_v34 = vld [vmem:[%s6347_s1 + $0x270] sm:$0xff]   ;;  %v4973_v24 = vld [vmem:[%s6347_s1 + $0x2e0] sm:$0xff]  }
 0x1a2   : > { %4774 = vmatmul.mubr.bf16.vlgmr.msra.gmra.mxu1 %v4210_v29  ;;  %v2057_v18 = vrot.slane %v2055_v13, 5  ;;  %v2062_v17 = vrot.slane %v2060_v1, 4  ;;  %v2143_v54 = vrot.slane %v4042_v8, 5  ;;  %v5913_v47 = vsel %vm5261_vm5, %v4090_v30, %v2274_v15  ;;  %v5944_v29 = vld [vmem:[#allocation2 + $0x58] sm:$0xf] }
 0x1a3   : > { %4782 = vmatpush3.bf16.msra.mxu1 %v6356_v55  ;;  %v2065_v4 = vrot.slane %v2063_v40, 5  ;;  %v4072_v38 = vcombine.low %v2142_v51, %v2142_v51  ;;  %v4075_v57 = vcombine.high %v2142_v51, %v2142_v51  ;;  %v4206_v23 = vcombine.high %v5909_v27, %v5913_v47  ;;  %v4969_v55 = vld [vmem:[%s6347_s1 + $0x2a0] sm:$0xff]  }
 0x1a4   : > { %v4205_v0 = vcombine.low %v5909_v27, %v5913_v47  ;;  %v2058_v19 = vor.u32 %v2057_v18, %v2054_v49  ;;  %4783 = vmatprep.subr.bf16.mxu1 %v4963_v6  ;;  %v4077_v53 = vcombine.low %v2143_v54, %v2143_v54  ;;  %v4080_v32 = vcombine.high %v2143_v54, %v2143_v54 }
 0x1a5   : > { %v2066_v50 = vor.u32 %v2065_v4, %v2062_v17  ;;  %v2355_v37 = vshrl.u32 %v4072_v38, 16  ;;  %v2360_v28 = vshrl.u32 %v4075_v57, 16  ;;  %2775 = vmatprep.mubr.bf16.mxu0 %v4206_v23  ;;  %v2363_v20 = vshll.u32 %v4075_v57, 16  ;;  %v4965_v17 = vld [vmem:[%s6347_s1 + $0x268] sm:$0xff]   ;;  %v4976_v4 = vld [vmem:[%s6347_s1 + $0x2d8] sm:$0xff]  }
 0x1a6   : > { %v4061_v2 = vcombine.low %v1953_v14, %v2058_v19  ;;  %v4064_v61 = vsel %vm3754_vm3, %v5862_v45, %v2058_v19  ;;  %v2381_v59 = vshrl.u32 %v4077_v53, 16  ;;  %2776 = vmatmul.mubr.bf16.vlgmr.msra.gmra.mxu0 %v4205_v0  ;;  %v2386_v1 = vshrl.u32 %v4080_v32, 16  ;;  %v1975_v19 = vld [vmem:[#allocation2 + $0x68] sm:$0x1] }
 0x1a7   : > { %v4066_v44 = vcombine.low %v1955_v62, %v2066_v50  ;;  %v4069_v43 = vsel %vm3754_vm3, %v5866_v9, %v2066_v50  ;;  %v2295_v5 = vshrl.u32 %v4064_v61, 16  ;;  %v2298_v46 = vshll.u32 %v4064_v61, 16  ;;  %4784 = vmatpush3.bf16.msra.mxu1 %v4963_v6  ;;  %4582 = vmatpush3.bf16.msra.mxu0 %v4957_v36  ;;  %v5969_v62 = vld [vmem:[#allocation2 + $0x64] sm:$0xf]  ;;  %v5979_v61 = vld [vmem:[#allocation2] sm:$0x8] }
 0x1a8   : > { %v2290_v22 = vshrl.u32 %v4061_v2, 16  ;;  %v2321_v30 = vshrl.u32 %v4069_v43, 16  ;;  %v2324_v45 = vshll.u32 %v4069_v43, 16  ;;  %4785 = vmatprep.subr.bf16.mxu1 %v4966_v52  ;;  %v4097_v11 = vrot.slane %v2355_v37, 11  ;;  %4583 = vmatprep.subr.bf16.mxu0 %v4959_v25 }
 0x1a9   : > { %v2297_v9 = vrot.slane %v2295_v5, 7  ;;  %v2316_v3 = vshrl.u32 %v4066_v44, 16  ;;  %v2362_v26 = vrot.slane %v2360_v28, 7  ;;  %v4099_v8 = vrot.slane %v2381_v59, 11  ;;  %v4970_v59 = vld [vmem:[%s6347_s1 + $0x260] sm:$0xff]  }
 0x1aa   : > { %v4092_v10 = vrot.slane %v2290_v22, 11  ;;  %v2323_v13 = vrot.slane %v2321_v30, 7  ;;  %v2389_v6 = vshll.u32 %v4080_v32, 16  ;;  %v4031_v49 = vcombine.low %v5888_v41, %v5888_v41  ;;  %v4974_v30 = vld [vmem:[%s6347_s1 + $0x298] sm:$0xff]  }
 0x1ab   : > { %v2300_v15 = vor.u32 %v2298_v46, %v2297_v9  ;;  %v4094_v40 = vrot.slane %v2316_v3, 11  ;;  %v2365_v51 = vor.u32 %v2363_v20, %v2362_v26  ;;  %4786 = vmatpush3.bf16.msra.mxu1 %v4966_v52  ;;  %4584 = vmatpush3.bf16.msra.mxu0 %v4960_v34  ;;  %v2388_v54 = vrot.slane %v2386_v1, 7  ;;  %v1957_v34 = vld [vmem:[#allocation2 + $0x3c] sm:$0x8] }
 0x1ac   : > { %v2326_v18 = vor.u32 %v2324_v45, %v2323_v13  ;;  %v4032_v14 = vcombine.low %v5890_v63, %v5890_v63  ;;  %4787 = vmatprep.subr.bf16.mxu1 %v4973_v24  ;;  %v4043_v38 = vcombine.low %v5944_v29, %v5936_v31  ;;  %4585 = vmatprep.subr.bf16.mxu0 %v4964_v35  ;;  %v2068_v0 = vshrl.u32 %v4031_v49, 16  ;;  %v1959_v31 = vld [vmem:[#allocation2 + $0x48] sm:$0x8] }
 0x1ad   : > { %v5963_v57 = vsel %vm5261_vm5, %v4092_v10, %v2300_v15  ;;  %v5967_v23 = vsel %vm5261_vm5, %v4097_v11, %v2365_v51  ;;  %v2071_v36 = vshll.u32 %v4031_v49, 16  ;;  %v2391_v53 = vor.u32 %v2389_v6, %v2388_v54  ;;  %v4984_v11 = vld [vmem:[%s6347_s1 + $0x2d0] sm:$0xff]   ;;  %v4988_v49 = vld [vmem:[%s6347_s1 + $0x2c8] sm:$0xff]  }
 0x1ae   : > { %v5973_v52 = vsel %vm5261_vm5, %v4094_v40, %v2326_v18  ;;  %v2076_v25 = vshrl.u32 %v4032_v14, 16  ;;  %v2079_v50 = vshll.u32 %v4032_v14, 16  ;;  %v2070_v28 = vrot.slane %v2068_v0, 4  ;;  %v4979_v51 = vld [vmem:[%s6347_s1 + $0x290] sm:$0xff]  }
 0x1af   : > { %v4209_v32 = vcombine.high %v5963_v57, %v5973_v52  ;;  %v4208_v37 = vcombine.low %v5963_v57, %v5973_v52  ;;  %v2073_v2 = vrot.slane %v2071_v36, 5  ;;  %4788 = vmatpush3.bf16.msra.mxu1 %v4973_v24  ;;  %4586 = vmatpush3.bf16.msra.mxu0 %v4965_v17  ;;  %v5983_v20 = vsel %vm5261_vm5, %v4099_v8, %v2391_v53 }
 0x1b0   : > { %v2078_v44 = vrot.slane %v2076_v25, 4  ;;  %v2081_v43 = vrot.slane %v2079_v50, 5  ;;  %4789 = vmatprep.subr.bf16.mxu1 %v4976_v4  ;;  %v4044_v5 = vcombine.low %v5969_v62, %v1975_v19  ;;  %v4213_v46 = vcombine.low %v5967_v23, %v5983_v20  ;;  %4587 = vmatprep.subr.bf16.mxu0 %v4969_v55  ;;  %v4980_v50 = vld [vmem:[%s6347_s1 + $0x250] sm:$0xff]  }
 0x1b1   : > { %2783 = vmatprep.mubr.bf16.mxu0 %v4209_v32  ;;  %v2074_v22 = vor.u32 %v2073_v2, %v2070_v28  ;;  %v2144_v45 = vrot.slane %v4043_v38, 5  ;;  %v4087_v35 = vrot.slane %v5851_v58, 11  ;;  %v6001_v9 = vor.u32 %v2233_v39, %v5853_v16  ;;  %v4975_v39 = vld [vmem:[%s6347_s1 + $0x258] sm:$0xff]  }
 0x1b2   : > { %2784 = vmatmul.mubr.bf16.gmra.mxu0 %v4208_v37  ;;  %v2082_v24 = vor.u32 %v2081_v43, %v2078_v44  ;;  %v4046_v3 = vcombine.low %v5979_v61, %v5859_v56  ;;  %v6008_v26 = vsel %vm3754_vm3, %v5831_v21, %v5859_v56  ;;  %4777 = vmatprep.mubr.bf16.mxu1 %v4213_v46  ;;  %v2145_v13 = vrot.slane %v4044_v5, 5 }
 0x1b3   : > { %v4071_v8 = vcombine.low %v1957_v34, %v2074_v22  ;;  %v4074_v10 = vsel %vm3754_vm3, %v5888_v41, %v2074_v22  ;;  %v4085_v1 = vcombine.high %v2144_v45, %v2144_v45  ;;  %4588 = vmatpush3.bf16.msra.mxu0 %v4970_v59  ;;  %4790 = vmatpush3.bf16.msra.mxu1 %v4976_v4  ;;  %v4985_v59 = vld [vmem:[%s6347_s1 + $0x288] sm:$0xff]   ;;  %v4991_v34 = vld [vmem:[%s6347_s1 + $0x2c0] sm:$0xff]  }
 0x1b4   : > { %v4076_v6 = vcombine.low %v1959_v31, %v2082_v24  ;;  %v4079_v60 = vsel %vm3754_vm3, %v5890_v63, %v2082_v24  ;;  %v2347_v16 = vshrl.u32 %v4074_v10, 16  ;;  %v4033_v21 = vcombine.low %v5944_v29, %v5944_v29  ;;  %4589 = vmatprep.subr.bf16.mxu0 %v4974_v30  ;;  %4791 = vmatprep.subr.bf16.mxu1 %v4984_v11 }
 0x1b5   : > { %v2342_v15 = vshrl.u32 %v4071_v8, 16  ;;  %v2373_v40 = vshrl.u32 %v4079_v60, 16  ;;  %v4082_v41 = vcombine.low %v2144_v45, %v2144_v45  ;;  %v4034_v63 = vcombine.low %v5969_v62, %v5969_v62 }
 0x1b6   : > { %v2349_v18 = vrot.slane %v2347_v16, 7  ;;  %v2350_v17 = vshll.u32 %v4074_v10, 16  ;;  %v2368_v54 = vshrl.u32 %v4076_v6, 16  ;;  %v2412_v55 = vshrl.u32 %v4085_v1, 16 }
 0x1b7   : > { %v4096_v14 = vrot.slane %v2342_v15, 11  ;;  %v2375_v4 = vrot.slane %v2373_v40, 7  ;;  %v2376_v38 = vshll.u32 %v4079_v60, 16  ;;  %v4151_v0 = vcombine.low %v2145_v13, %v2145_v13  ;;  %4590 = vmatpush3.bf16.msra.mxu0 %v4975_v39  ;;  %4792 = vmatpush3.bf16.msra.mxu1 %v4984_v11  ;;  %v4994_v15 = vld [vmem:[%s6347_s1 + $0x478] sm:$0xff]  }
 0x1b8   : > { %v2352_v36 = vor.u32 %v2350_v17, %v2349_v18  ;;  %v4098_v19 = vrot.slane %v2368_v54, 11  ;;  %v2414_v53 = vrot.slane %v2412_v55, 7  ;;  %v4154_v25 = vcombine.high %v2145_v13, %v2145_v13  ;;  %4591 = vmatprep.subr.bf16.mxu0 %v4979_v51  ;;  %4793 = vmatprep.subr.bf16.mxu1 %v4988_v49  ;;  %v1961_v13 = vld [vmem:[#allocation2 + $0x54] sm:$0x8] }
 0x1b9   : > { %v2378_v32 = vor.u32 %v2376_v38, %v2375_v4  ;;  %v2415_v37 = vshll.u32 %v4085_v1, 16  ;;  %v2084_v28 = vshrl.u32 %v4033_v21, 16  ;;  %v2087_v2 = vshll.u32 %v4033_v21, 16  ;;  %v4986_v1 = vld [vmem:[%s6347_s1 + $0x248] sm:$0xff]   ;;  %v4989_v21 = vld [vmem:[%s6347_s1 + $0x280] sm:$0xff]  }
 0x1ba   : > { %v6038_v44 = vsel %vm5261_vm5, %v4096_v14, %v2352_v36  ;;  %v2407_v43 = vshrl.u32 %v4082_v41, 16  ;;  %v2490_v5 = vshrl.u32 %v4151_v0, 16  ;;  %v2495_v46 = vshrl.u32 %v4154_v25, 16  ;;  %v1963_v4 = vld [vmem:[#allocation2 + $0x60] sm:$0x8] }
 0x1bb   : > { %v6042_v31 = vsel %vm5261_vm5, %v4098_v19, %v2378_v32  ;;  %v2417_v22 = vor.u32 %v2415_v37, %v2414_v53  ;;  %v2086_v30 = vrot.slane %v2084_v28, 4  ;;  %v2089_v45 = vrot.slane %v2087_v2, 5  ;;  %4592 = vmatpush3.bf16.msra.mxu0 %v4980_v50  ;;  %4794 = vmatpush3.bf16.msra.mxu1 %v4988_v49  ;;  %v4992_v19 = vld [vmem:[%s6347_s1 + $0x438] sm:$0xff]  }
 0x1bc   : > { %v4212_v11 = vcombine.high %v6038_v44, %v6042_v31  ;;  %v4211_v24 = vcombine.low %v6038_v44, %v6042_v31  ;;  %v2497_v8 = vrot.slane %v2495_v46, 7  ;;  %v2498_v10 = vshll.u32 %v4154_v25, 16  ;;  %4593 = vmatprep.subr.bf16.mxu0 %v4985_v59  ;;  %4795 = vmatprep.subr.bf16.mxu1 %v4991_v34 }
 0x1bd   : > { %v2090_v6 = vor.u32 %v2089_v45, %v2086_v30  ;;  %v2092_v60 = vshrl.u32 %v4034_v63, 16  ;;  %v2095_v16 = vshll.u32 %v4034_v63, 16  ;;  %v2217_v39 = vshrl.u32 %v6008_v26, 16 }
 0x1be   : > { %2791 = vmatprep.mubr.bf16.mxu0 %v4212_v11  ;;  %v4101_v40 = vrot.slane %v2407_v43, 11  ;;  %v4156_v41 = vrot.slane %v2490_v5, 11  ;;  %v2500_v51 = vor.u32 %v2498_v10, %v2497_v8  ;;  %v2236_v63 = vsel %vm5261_vm5, %v4087_v35, %v6001_v9  ;;  %v4990_v35 = vld [vmem:[%s6347_s1 + $0x240] sm:$0xff]   ;;  %v5000_v8 = vld [vmem:[%s6347_s1 + $0x468] sm:$0xff]   ;;  %v4993_v10 = vld [vmem:[%s6347_s1 + $0x3f8] sm:$0xff]  }
 0x1bf   : > { %2792 = vmatmul.mubr.bf16.gmra.mxu0 %v4211_v24  ;;  %v2094_v49 = vrot.slane %v2092_v60, 4  ;;  %v2097_v18 = vrot.slane %v2095_v16, 5  ;;  %v4081_v17 = vcombine.low %v1961_v13, %v2090_v6  ;;  %v4084_v54 = vsel %vm3754_vm3, %v5944_v29, %v2090_v6  ;;  %4796 = vmatpush3.bf16.msra.mxu1 %v4991_v34  ;;  %v6123_v13 = vld [vmem:[#allocation2 + $0x70] sm:$0xf]  ;;  %v5006_v16 = vld [vmem:[%s6347_s1 + $0x458] sm:$0xff]  }
 0x1c0   : > { %v2418_v55 = vsel %vm5261_vm5, %v4101_v40, %v2417_v22  ;;  %v6069_v14 = vsel %vm5261_vm5, %v4156_v41, %v2500_v51  ;;  %v2399_v38 = vshrl.u32 %v4084_v54, 16  ;;  %4594 = vmatpush3.bf16.msra.mxu0 %v4986_v1  ;;  %v2212_v58 = vshrl.u32 %v4046_v3, 16  ;;  %4805 = vmatprep.subr.bf16.mxu1 %v4994_v15  ;;  %v1976_v1 = vld [vmem:[#allocation2 + $0x74] sm:$0x1]  ;;  %v4999_v41 = vld [vmem:[%s6347_s1 + $0x3e8] sm:$0xff]  }
 0x1c1   : > { %v4216_v29 = vcombine.low %v2418_v55, %v6069_v14  ;;  %v2098_v9 = vor.u32 %v2097_v18, %v2094_v49  ;;  %v2219_v0 = vrot.slane %v2217_v39, 7  ;;  %v2220_v36 = vshll.u32 %v6008_v26, 16  ;;  %4595 = vmatprep.subr.bf16.mxu0 %v4989_v21  ;;  %v4998_v21 = vld [vmem:[%s6347_s1 + $0x428] sm:$0xff]  }
 0x1c2   : > { %v4243_v56 = vcombine.low %v2236_v63, %v5871_v42  ;;  %v2394_v61 = vshrl.u32 %v4081_v17, 16  ;;  %v2401_v3 = vrot.slane %v2399_v38, 7  ;;  %v2402_v50 = vshll.u32 %v4084_v54, 16  ;;  %v5001_v63 = vld [vmem:[%s6347_s1 + $0x420] sm:$0xff]   ;;  %v5012_v18 = vld [vmem:[%s6347_s1 + $0x448] sm:$0xff]   ;;  %v5005_v38 = vld [vmem:[%s6347_s1 + $0x3d8] sm:$0xff]  }
 0x1c3   : > { %4778 = vmatmul.mubr.bf16.gmra.mxu1 %v4216_v29  ;;  %v4150_v53 = vcombine.low %v1963_v4, %v2098_v9  ;;  %v4153_v25 = vsel %vm3754_vm3, %v5969_v62, %v2098_v9  ;;  %v4086_v37 = vrot.slane %v2212_v58, 11  ;;  %v2222_v28 = vor.u32 %v2220_v36, %v2219_v0  ;;  %v4997_v62 = vld [vmem:[%s6347_s1 + $0x470] sm:$0xff]   ;;  %v5015_v54 = vld [vmem:[%s6347_s1 + $0x440] sm:$0xff]  }
 0x1c4   : > { %4797 = vmatprep.mubr.bf16.mxu1 %v4243_v56  ;;  %v2482_v32 = vshrl.u32 %v4153_v25, 16  ;;  %4596 = vmatpush3.bf16.msra.mxu0 %v4990_v35  ;;  %v4100_v2 = vrot.slane %v2394_v61, 11  ;;  %v2404_v59 = vor.u32 %v2402_v50, %v2401_v3  ;;  %v2485_v43 = vshll.u32 %v4153_v25, 16  ;;  %v5007_v29 = vld [vmem:[%s6347_s1 + $0x410] sm:$0xff]   ;;  %v5010_v61 = vld [vmem:[%s6347_s1 + $0x408] sm:$0xff]  }
 0x1c5   : > { %v2477_v26 = vshrl.u32 %v4150_v53, 16  ;;  %4633 = vmatprep.subr.bf16.mxu0 %v4992_v19  ;;  %v4246_v46 = vcombine.low %v5876_v48, %v5886_v7  ;;  %v2223_v45 = vsel %vm5261_vm5, %v4086_v37, %v2222_v28  ;;  %v6102_v11 = vcombine.low %v5899_v12, %v5967_v23  ;;  %v5003_v23 = vld [vmem:[%s6347_s1 + $0x460] sm:$0xff]   ;;  %v5011_v25 = vld [vmem:[%s6347_s1 + $0x3c8] sm:$0xff]  }
 0x1c6   : > { %v2484_v34 = vrot.slane %v2482_v32, 7  ;;  %v6092_v22 = vsel %vm5261_vm5, %v4100_v2, %v2404_v59  ;;  %v4242_v24 = vcombine.high %v2223_v45, %v5909_v27  ;;  %v6114_v12 = vcombine.low %v5983_v20, %v2418_v55  ;;  %v4995_v20 = vld [vmem:[%s6347_s1 + $0x430] sm:$0xff]   ;;  %v5013_v37 = vld [vmem:[%s6347_s1 + $0x400] sm:$0xff]  }
 0x1c7   : > { %v4155_v42 = vrot.slane %v2477_v26, 11  ;;  %v4241_v6 = vcombine.low %v2223_v45, %v5909_v27  ;;  %v6131_v60 = vcombine.high %v5913_v47, %v5963_v57  ;;  %v4045_v39 = vcombine.low %v6123_v13, %v1976_v1  ;;  %v4996_v27 = vld [vmem:[%s6347_s1 + $0x3f0] sm:$0xff]   ;;  %v5014_v2 = vld [vmem:[%s6347_s1 + $0x3c0] sm:$0xff]  }
 0x1c8   : > { %v2487_v5 = vor.u32 %v2485_v43, %v2484_v34  ;;  %v6152_v51 = vcombine.low %v5913_v47, %v5963_v57  ;;  %v4248_v49 = vcombine.high %v5973_v52, %v6038_v44  ;;  %v5002_v47 = vld [vmem:[%s6347_s1 + $0x3e0] sm:$0xff]   ;;  %v5004_v57 = vld [vmem:[%s6347_s1 + $0x418] sm:$0xff]   ;;  %v4035_v58 = vcombine.low %v6123_v13, %v6123_v13  ;;  %v1965_v34 = vld [vmem:[#allocation2 + $0x6c] sm:$0x8] }
 0x1c9   : > { %v2146_v40 = vrot.slane %v4045_v39, 5  ;;  %v4247_v35 = vcombine.low %v5973_v52, %v6038_v44  ;;  %v4251_v9 = vcombine.high %v6042_v31, %v6092_v22  ;;  %v5008_v52 = vld [vmem:[%s6347_s1 + $0x3d0] sm:$0xff]   ;;  %v4250_v26 = vcombine.low %v6042_v31, %v6092_v22 }
 0x1ca   : > { %v6096_v30 = vsel %vm5261_vm5, %v4155_v42, %v2487_v5  ;;  %v2100_v44 = vshrl.u32 %v4035_v58, 16  ;;  %v2103_v56 = vshll.u32 %v4035_v58, 16 }
 0x1cb   : > { %v4215_v48 = vcombine.high %v6092_v22, %v6096_v30  ;;  %v4214_v7 = vcombine.low %v6092_v22, %v6096_v30  ;;  %4798 = vmatmul.mubr.bf16.vlgmr.msra.gmra.mxu1 %v4246_v46  ;;  %v4281_v17 = vcombine.high %v2146_v40, %v2146_v40  ;;  %v4278_v55 = vcombine.low %v2146_v40, %v2146_v40 }
 0x1cc   : > { %4801 = vmatprep.mubr.bf16.mxu1 %v6102_v11  ;;  %4806 = vmatpush3.bf16.msra.mxu1 %v4994_v15  ;;  %v5009_v15 = vld [vmem:[%s6347_s1 + $0x450] sm:$0xff]   ;;  %v2102_v50 = vrot.slane %v2100_v44, 4  ;;  %v2105_v32 = vrot.slane %v2103_v56, 5 }
 0x1cd   : > { %2799 = vmatprep.mubr.bf16.mxu0 %v4215_v48  ;;  %4807 = vmatprep.subr.bf16.mxu1 %v4997_v62  ;;  %v3201_v4 = vshrl.u32 %v4281_v17, 16  ;;  %v3196_v0 = vshrl.u32 %v4278_v55, 16  ;;  %v3204_v19 = vshll.u32 %v4281_v17, 16 }
 0x1ce   : > { %2800 = vmatmul.mubr.bf16.gmra.mxu0 %v4214_v7  ;;  %v2106_v59 = vor.u32 %v2105_v32, %v2102_v50 }
 0x1cf   : > { %3076 = vmatprep.mubr.bf16.mxu0 %v4242_v24  ;;  %v3203_v36 = vrot.slane %v3201_v4, 7  ;;  %v4283_v3 = vrot.slane %v3196_v0, 11 }
 0x1d0   : > { %4808 = vmatpush3.bf16.msra.mxu1 %v4997_v62  ;;  %v4280_v43 = vsel %vm3754_vm3, %v6123_v13, %v2106_v59  ;;  %v4277_v42 = vcombine.low %v1965_v34, %v2106_v59 }
 0x1d1   : > { %4809 = vmatprep.subr.bf16.mxu1 %v5000_v8  ;;  %v3206_v53 = vor.u32 %v3204_v19, %v3203_v36  ;;  %v3188_v5 = vshrl.u32 %v4280_v43, 16  ;;  %v3191_v22 = vshll.u32 %v4280_v43, 16 }
 0x1d3   : > { %4802 = vmatmul.mubr.bf16.gmra.mxu1 %v6114_v12  ;;  %v3207_v28 = vsel %vm5261_vm5, %v4283_v3, %v3206_v53  ;;  %v3190_v62 = vrot.slane %v3188_v5, 7 }
 0x1d4   : > { %4810 = vmatpush3.bf16.msra.mxu1 %v5000_v8  ;;  %4821 = vmatprep.mubr.bf16.mxu1 %v4246_v46  ;;  %v4334_v31 = vcombine.low %v6069_v14, %v3207_v28  ;;  %v3183_v46 = vshrl.u32 %v4277_v42, 16 }
 0x1d5   : > { %4811 = vmatprep.subr.bf16.mxu1 %v5003_v23 }
 0x1d6   : > { %3077 = vmatmul.mubr.bf16.vlgmr.msra.gmra.mxu0 %v4241_v6  ;;  %v4282_v45 = vrot.slane %v3183_v46, 11 }
 0x1d7   : > { %3084 = vmatprep.mubr.bf16.mxu0 %v6131_v60  ;;  %4634 = vmatpush3.bf16.msra.mxu0 %v4993_v10 }
 0x1d8   : > { %4635 = vmatprep.subr.bf16.mxu0 %v4995_v20  ;;  %4812 = vmatpush3.bf16.msra.mxu1 %v5003_v23 }
 0x1d9   : > { %4813 = vmatprep.subr.bf16.mxu1 %v5006_v16 }
 0x1db   : > { %4636 = vmatpush3.bf16.msra.mxu0 %v4996_v27 }
 0x1dc   : > { %4637 = vmatprep.subr.bf16.mxu0 %v4998_v21  ;;  %4814 = vmatpush3.bf16.msra.mxu1 %v5006_v16 }
 0x1dd   : > { %4815 = vmatprep.subr.bf16.mxu1 %v5009_v15 }
 0x1de   : > { %3085 = vmatmul.mubr.bf16.gmra.mxu0 %v6152_v51 }
 0x1df   : > { %3092 = vmatprep.mubr.bf16.mxu0 %v4248_v49  ;;  %4638 = vmatpush3.bf16.msra.mxu0 %v4999_v41 }
 0x1e0   : > { %4639 = vmatprep.subr.bf16.mxu0 %v5001_v63  ;;  %4816 = vmatpush3.bf16.msra.mxu1 %v5009_v15 }
 0x1e1   : > { %4817 = vmatprep.subr.bf16.mxu1 %v5012_v18 }
 0x1e3   : > { %4640 = vmatpush3.bf16.msra.mxu0 %v5002_v47 }
 0x1e4   : > { %4641 = vmatprep.subr.bf16.mxu0 %v5004_v57  ;;  %4818 = vmatpush3.bf16.msra.mxu1 %v5012_v18 }
 0x1e5   : > { %4819 = vmatprep.subr.bf16.mxu1 %v5015_v54 }
 0x1e6   : > { %3093 = vmatmul.mubr.bf16.gmra.mxu0 %v4247_v35 }
 0x1e7   : > { %3100 = vmatprep.mubr.bf16.mxu0 %v4251_v9  ;;  %4642 = vmatpush3.bf16.msra.mxu0 %v5005_v38 }
 0x1e8   : > { %4643 = vmatprep.subr.bf16.mxu0 %v5007_v29  ;;  %4820 = vmatpush3.bf16.msra.mxu1 %v5015_v54 }
 0x1eb   : > { %4644 = vmatpush3.bf16.msra.mxu0 %v5008_v52  ;;  %4822 = vmatmul.mubr.bf16.vlgmr.msra.gmra.mxu1 %v6102_v11  ;;  %v3193_v11 = vor.u32 %v3191_v22, %v3190_v62 }
 0x1ec   : > { %4645 = vmatprep.subr.bf16.mxu0 %v5010_v61  ;;  %4825 = vmatprep.mubr.bf16.mxu1 %v6114_v12 }
 0x1ed   : > { %v3194_v14 = vsel %vm5261_vm5, %v4282_v45, %v3193_v11 }
 0x1ee   : > { %3101 = vmatmul.mubr.bf16.gmra.mxu0 %v4250_v26  ;;  %v4333_v48 = vcombine.high %v6096_v30, %v3194_v14  ;;  %v4332_v7 = vcombine.low %v6096_v30, %v3194_v14 }
 0x1ef   : > { %4646 = vmatpush3.bf16.msra.mxu0 %v5011_v25  ;;  %3442 = vmatprep.mubr.bf16.mxu0 %v6131_v60 }
 0x1f0   : > { %4647 = vmatprep.subr.bf16.mxu0 %v5013_v37 }
 0x1f3   : > { %4648 = vmatpush3.bf16.msra.mxu0 %v5014_v2  ;;  %4826 = vmatmul.mubr.bf16.gmra.mxu1 %v4334_v31 }
 0x1f6   : > { %3443 = vmatmul.mubr.bf16.vlgmr.msra.gmra.mxu0 %v6152_v51 }
 0x1f7   : > { %3450 = vmatprep.mubr.bf16.mxu0 %v4248_v49 }
 0x1fe   : > { %3451 = vmatmul.mubr.bf16.gmra.mxu0 %v4247_v35 }
 0x1ff   : > { %3458 = vmatprep.mubr.bf16.mxu0 %v4251_v9 }
 0x206   : > { %3459 = vmatmul.mubr.bf16.gmra.mxu0 %v4250_v26 }
 0x207   : > { %3466 = vmatprep.mubr.bf16.mxu0 %v4333_v48 }
 0x20e   : > { %3467 = vmatmul.mubr.bf16.gmra.mxu0 %v4332_v7 }
 0x262   : > { %v4775_v1 = vpop.f32.mrf.mxu1 }
 0x264   : > { %v2842_v20 = vpop.f32.mrf.mxu1 }
 0x266   : > { %v4545_v24 = vpop.f32.mrf.mxu0  ;;  %v6214_v16 = vpop.f32.mrf.mxu1 }
 0x268   : > { %v4546_v8 = vpop.f32.mrf.mxu0  ;;  %v2845_v39 = vpop.f32.mrf.mxu1 }
 0x269   : > { %v4547_v28 = vadd.f32 %v4546_v8, %v4545_v24 }
 0x26a   : > { %v4548_v12 = vpop.f32.mrf.mxu0 }
 0x26b   : > { %v2843_v34 = vadd.f32 %v4547_v28, %v2842_v20  ;;  %v6263_v20 = vld [vmem:[%s6348_s2 + $0x1] ss:$0 sm:$0xff] }
 0x26c   : > { %v4549_v23 = vpop.f32.mrf.mxu0 }
 0x26d   : > { %v4550_v42 = vadd.f32 %v4549_v23, %v4548_v12 }
 0x26f   : > { %v2846_v11 = vadd.f32 %v4550_v42, %v2845_v39 }
 0x272   : > { %v4551_v10 = vpop.f32.mrf.mxu0 }
 0x274   : > { %v4552_v13 = vpop.f32.mrf.mxu0 }
 0x275   : > { %v4553_v62 = vadd.f32 %v4552_v13, %v4551_v10 }
 0x276   : > { %v4554_v6 = vpop.f32.mrf.mxu0 }
 0x277   : > { %v2851_v24 = vadd.f32 %v4775_v1, %v4553_v62 }
 0x278   : > { %v4555_v60 = vpop.f32.mrf.mxu0 }
 0x279   : > { %v4556_v8 = vadd.f32 %v4555_v60, %v4554_v6 }
 0x27b   : > { %v2854_v1 = vadd.f32 %v6214_v16, %v4556_v8 }
 0x27f   : > { %v6216_v33 = vpop.f32.mrf.mxu0 }
 0x281   : > { %v6218_v27 = vpop.f32.mrf.mxu0 }
 0x282   : > { %v4559_v28 = vadd.f32 %v6218_v27, %v6216_v33 }
 0x283   : > { %v6220_v21 = vpop.f32.mrf.mxu1  ;;  %v6222_v30 = vpop.f32.mrf.mxu0 }
 0x285   : > { %v6224_v15 = vpop.f32.mrf.mxu1  ;;  %v6226_v40 = vpop.f32.mrf.mxu0 }
 0x286   : > { %v4562_v33 = vadd.f32 %v6226_v40, %v6222_v30 }
 0x287   : > { %v6228_v41 = vpop.f32.mrf.mxu1 }
 0x288   : > { %6357 = vst [vmem:[#allocation3_spill] sm:$0xff] %v6228_v41 }
 0x289   : > { %v6234_v49 = vpop.f32.mrf.mxu1 }
 0x28a   : > { %v2862_v62 = vadd.f32 %v4562_v33, %v6234_v49 }
 0x28b   : > { %v6238_v17 = vpop.f32.mrf.mxu1 }
 0x28d   : > { %v3143_v54 = vpop.f32.mrf.mxu1 }
 0x28e   : > { %v6230_v51 = vpop.f32.mrf.mxu0 }
 0x28f   : > { %v6242_v38 = vpop.f32.mrf.mxu1 }
 0x290   : > { %v6232_v63 = vpop.f32.mrf.mxu0 }
 0x291   : > { %v3146_v29 = vpop.f32.mrf.mxu1 }
 0x292   : > { %v6236_v18 = vpop.f32.mrf.mxu0 }
 0x293   : > { %v6244_v0 = vpop.f32.mrf.mxu1 }
 0x294   : > { %v6240_v47 = vpop.f32.mrf.mxu0  ;;  %6358 = vst [vmem:[#allocation4_spill] sm:$0xff] %v6244_v0 }
 0x295   : > { %v6246_v52 = vpop.f32.mrf.mxu1  ;;  %v4568_v49 = vadd.f32 %v6240_v47, %v6236_v18  ;;  %v6360_v18 = vld [vmem:[#allocation3_spill] sm:$0xff] }
 0x296   : > { %v4597_v57 = vpop.f32.mrf.mxu0 }
 0x297   : > { %v6248_v61 = vpop.f32.mrf.mxu1  ;;  %v2870_v47 = vadd.f32 %v6360_v18, %v4568_v49 }
 0x298   : > { %v4598_v55 = vpop.f32.mrf.mxu0  ;;  %6359 = vst [vmem:[#allocation5_spill] sm:$0xff] %v6248_v61 }
 0x299   : > { %v6250_v25 = vpop.f32.mrf.mxu1  ;;  %v4599_v2 = vadd.f32 %v4598_v55, %v4597_v57 }
 0x29a   : > { %v4600_v4 = vpop.f32.mrf.mxu0 }
 0x29b   : > { %v3079_v5 = vadd.f32 %v4599_v2, %v2843_v34 }
 0x29c   : > { %v4601_v58 = vpop.f32.mrf.mxu0 }
 0x29d   : > { %v4602_v46 = vadd.f32 %v4601_v58, %v4600_v4  ;;  %v3144_v61 = vadd.f32 %v3143_v54, %v3079_v5 }
 0x29e   : > { %v4603_v35 = vpop.f32.mrf.mxu0 }
 0x29f   : > { %v3082_v0 = vadd.f32 %v4602_v46, %v2846_v11 }
 0x2a0   : > { %v4604_v9 = vpop.f32.mrf.mxu0 }
 0x2a1   : > { %v4605_v48 = vadd.f32 %v4604_v9, %v4603_v35  ;;  %v3147_v4 = vadd.f32 %v3146_v29, %v3082_v0 }
 0x2a2   : > { %v4606_v36 = vpop.f32.mrf.mxu0 }
 0x2a3   : > { %v3087_v13 = vadd.f32 %v4605_v48, %v2851_v24 }
 0x2a4   : > { %v4607_v19 = vpop.f32.mrf.mxu0 }
 0x2a5   : > { %v4608_v55 = vadd.f32 %v4607_v19, %v4606_v36 }
 0x2a6   : > { %v4609_v44 = vpop.f32.mrf.mxu0 }
 0x2a8   : > { %v4610_v56 = vpop.f32.mrf.mxu0 }
 0x2a9   : > { %v4611_v29 = vadd.f32 %v4610_v56, %v4609_v44 }
 0x2aa   : > { %v4612_v3 = vpop.f32.mrf.mxu0 }
 0x2ab   : > { %v4823_v26 = vpop.f32.mrf.mxu1 }
 0x2ac   : > { %v4613_v53 = vpop.f32.mrf.mxu0 }
 0x2ad   : > { %v3509_v31 = vpop.f32.mrf.mxu1 }
 0x2ae   : > { %v6252_v50 = vpop.f32.mrf.mxu0 }
 0x2af   : > { %v4824_v45 = vpop.f32.mrf.mxu1 }
 0x2b0   : > { %v6254_v32 = vpop.f32.mrf.mxu0 }
 0x2b1   : > { %v3512_v23 = vpop.f32.mrf.mxu1 }
 0x2b2   : > { %v6256_v37 = vpop.f32.mrf.mxu0 }
 0x2b3   : > { %v4827_v36 = vpop.f32.mrf.mxu1 }
 0x2b4   : > { %v6258_v59 = vpop.f32.mrf.mxu0 }
 0x2b5   : > { %v3525_v5 = vpop.f32.mrf.mxu1 }
 0x2b6   : > { %v4649_v43 = vpop.f32.mrf.mxu0 }
 0x2b8   : > { %v4650_v22 = vpop.f32.mrf.mxu0 }
 0x2b9   : > { %v4651_v14 = vadd.f32 %v4650_v22, %v4649_v43 }
 0x2ba   : > { %v4652_v7 = vpop.f32.mrf.mxu0 }
 0x2bb   : > { %v3510_v41 = vadd.f32 %v4651_v14, %v3509_v31  ;;  %v2859_v31 = vadd.f32 %v4559_v28, %v6224_v15  ;;  %v4565_v15 = vadd.f32 %v6232_v63, %v6230_v51 }
 0x2bc   : > { %v4653_v12 = vpop.f32.mrf.mxu0 }
 0x2bd   : > { %v3540_v57 = vadd.f32 %v3510_v41, %v3144_v61  ;;  %v4654_v10 = vadd.f32 %v4653_v12, %v4652_v7  ;;  %v3152_v41 = vadd.f32 %v6238_v17, %v3087_v13  ;;  %v3090_v61 = vadd.f32 %v4608_v55, %v2854_v1  ;;  %v6361_v1 = vld [vmem:[#allocation4_spill] sm:$0xff] }
 0x2be   : > { %v4655_v39 = vpop.f32.mrf.mxu0  ;;  %v4614_v17 = vadd.f32 %v4613_v53, %v4612_v3  ;;  %v3095_v56 = vadd.f32 %v4611_v29, %v2859_v31  ;;  %v4617_v3 = vadd.f32 %v6254_v32, %v6252_v50  ;;  %v4828_v53 = vpop.f32.mrf.mxu1  ;;  %v2867_v63 = vadd.f32 %v6220_v21, %v4565_v15 }
 0x2bf   : > { %v6266_v58 = vadd.f32 %v6263_v20, %v3540_v57  ;;  %v3513_v54 = vadd.f32 %v4654_v10, %v3512_v23  ;;  %v3155_v27 = vadd.f32 %v6242_v38, %v3090_v61  ;;  %v4620_v57 = vadd.f32 %v6258_v59, %v6256_v37 }
 0x2c0   : > { %v4656_v6 = vpop.f32.mrf.mxu0  ;;  %v3098_v38 = vadd.f32 %v4614_v17, %v2862_v62  ;;  %v3160_v48 = vadd.f32 %v6246_v52, %v3095_v56  ;;  %v3103_v32 = vadd.f32 %v4617_v3, %v2867_v63  ;;  %v3528_v23 = vpop.f32.mrf.mxu1 }
 0x2c1   : > { %v4361_v60 = vmul.f32 -1.442695, %v6266_v58  ;;  %v3541_v35 = vadd.f32 %v3513_v54, %v3147_v4  ;;  %v4657_v9 = vadd.f32 %v4656_v6, %v4655_v39 }
 0x2c2   : > { %v4658_v19 = vpop.f32.mrf.mxu0  ;;  %v3163_v50 = vadd.f32 %v6250_v25, %v3098_v38  ;;  %v3168_v6 = vadd.f32 %v6361_v1, %v3103_v32 }
 0x2c3   : > { %5050 = vpow2.f32 %v4361_v60  ;;  %v6274_v0 = vadd.f32 %v6263_v20, %v3541_v35  ;;  %v3518_v2 = vadd.f32 %v4823_v26, %v4657_v9  ;;  %v3106_v35 = vadd.f32 %v4620_v57, %v2870_v47 }
 0x2c4   : > { %v4659_v16 = vpop.f32.mrf.mxu0 }
 0x2c5   : > { %v4362_v34 = vmul.f32 -1.442695, %v6274_v0  ;;  %v3542_v43 = vadd.f32 %v3518_v2, %v3152_v41  ;;  %v4660_v42 = vadd.f32 %v4659_v16, %v4658_v19  ;;  %v6362_v2 = vld [vmem:[#allocation5_spill] sm:$0xff] }
 0x2c6   : > { %v4661_v44 = vpop.f32.mrf.mxu0  ;;  %v3171_v16 = vadd.f32 %v6362_v2, %v3106_v35 }
 0x2c7   : > { %5052 = vpow2.f32 %v4362_v34  ;;  %v6282_v46 = vadd.f32 %v6263_v20, %v3542_v43  ;;  %v3521_v26 = vadd.f32 %v4824_v45, %v4660_v42 }
 0x2c8   : > { %v4662_v22 = vpop.f32.mrf.mxu0 }
 0x2c9   : > { %v4363_v11 = vmul.f32 -1.442695, %v6282_v46  ;;  %v3543_v30 = vadd.f32 %v3521_v26, %v3155_v27  ;;  %v4663_v40 = vadd.f32 %v4662_v22, %v4661_v44 }
 0x2ca   : > { %v4664_v14 = vpop.f32.mrf.mxu0 }
 0x2cb   : > { %5054 = vpow2.f32 %v4363_v11  ;;  %v6292_v45 = vadd.f32 %v6263_v20, %v3543_v30  ;;  %v3526_v51 = vadd.f32 %v4663_v40, %v3525_v5  ;;  %v3620_v30 = vld [vmem:[#allocation2 + $0x10] sm:$0xf] }
 0x2cc   : > { %v4665_v7 = vpop.f32.mrf.mxu0 }
 0x2cd   : > { %v4364_v24 = vmul.f32 -1.442695, %v6292_v45  ;;  %v3544_v8 = vadd.f32 %v3526_v51, %v3160_v48  ;;  %v4666_v12 = vadd.f32 %v4665_v7, %v4664_v14  ;;  %v3621_v48 = vld [vmem:[#allocation2 + $0x1c] sm:$0xf] }
 0x2ce   : > { %v4667_v52 = vpop.f32.mrf.mxu0 }
 0x2cf   : > { %5056 = vpow2.f32 %v4364_v24  ;;  %v6302_v10 = vadd.f32 %v6263_v20, %v3544_v8  ;;  %v3529_v21 = vadd.f32 %v4666_v12, %v3528_v23 }
 0x2d0   : > { %v5051_v13 = vpop.eup %5050  ;;  %v4668_v55 = vpop.f32.mrf.mxu0 }
 0x2d1   : > { %v3588_v39 = vadd.f32 1.0, %v5051_v13  ;;  %v4365_v4 = vmul.f32 -1.442695, %v6302_v10  ;;  %v3545_v54 = vadd.f32 %v3529_v21, %v3163_v50  ;;  %v4669_v25 = vadd.f32 %v4668_v55, %v4667_v52  ;;  %v3623_v52 = vld [vmem:[#allocation2 + $0x34] sm:$0xf] }
 0x2d2   : > { %v4670_v60 = vpop.f32.mrf.mxu0 }
 0x2d3   : > { %5058 = vrcp.f32 %v3588_v39  ;;  %v6308_v37 = vadd.f32 %v6263_v20, %v3545_v54  ;;  %v3534_v59 = vadd.f32 %v4827_v36, %v4669_v25  ;;  %v3624_v39 = vld [vmem:[#allocation2 + $0x40] sm:$0xf] }
 0x2d4   : > { %v5053_v9 = vpop.eup %5052  ;;  %5060 = vpow2.f32 %v4365_v4  ;;  %v4671_v28 = vpop.f32.mrf.mxu0 }
 0x2d5   : > { %v3589_v41 = vadd.f32 1.0, %v5053_v9  ;;  %v4366_v61 = vmul.f32 -1.442695, %v6308_v37  ;;  %v3546_v19 = vadd.f32 %v3534_v59, %v3168_v6  ;;  %v4672_v29 = vadd.f32 %v4671_v28, %v4670_v60  ;;  %v3625_v6 = vld [vmem:[#allocation2 + $0x4c] sm:$0xf] }
 0x2d6   : > { %v3626_v28 = vld [vmem:[#allocation2 + $0x58] sm:$0xf] }
 0x2d7   : > { %5062 = vrcp.f32 %v3589_v41  ;;  %v6313_v31 = vadd.f32 %v6263_v20, %v3546_v19  ;;  %v3537_v34 = vadd.f32 %v4828_v53, %v4672_v29  ;;  %v3627_v29 = vld [vmem:[#allocation2 + $0x64] sm:$0xf] }
 0x2d8   : > { %v5055_v43 = vpop.eup %5054  ;;  %5064 = vpow2.f32 %v4366_v61 }
 0x2d9   : > { %v3590_v42 = vadd.f32 1.0, %v5055_v43  ;;  %v4367_v36 = vmul.f32 -1.442695, %v6313_v31  ;;  %v3547_v33 = vadd.f32 %v3537_v34, %v3171_v16 }
 0x2db   : > { %5066 = vrcp.f32 %v3590_v42  ;;  %v6317_v27 = vadd.f32 %v6263_v20, %v3547_v33 }
 0x2dc   : > { %v5057_v17 = vpop.eup %5056  ;;  %5068 = vpow2.f32 %v4367_v36 }
 0x2dd   : > { %v3591_v5 = vadd.f32 1.0, %v5057_v17  ;;  %v4368_v44 = vmul.f32 -1.442695, %v6317_v27 }
 0x2df   : > { %5070 = vrcp.f32 %v3591_v5 }
 0x2e0   : > { %v5059_v56 = vpop.eup %5058  ;;  %5072 = vpow2.f32 %v4368_v44 }
 0x2e1   : > { %v5061_v26 = vpop.eup %5060  ;;  %v3612_v15 = vmul.f32 %v5059_v56, %v6266_v58 }
 0x2e2   : > { %v3592_v62 = vadd.f32 1.0, %v5061_v26 }
 0x2e3   : > { %v3628_v22 = vpack.c.bf16 %v3612_v15, %v3612_v15 }
 0x2e4   : > { %v5063_v11 = vpop.eup %5062  ;;  %5074 = vrcp.f32 %v3592_v62 }
 0x2e5   : > { %v5065_v40 = vpop.eup %5064  ;;  %v3636_v20 = vadd.bf16 %v3628_v22, %v3620_v30  ;;  %v3613_v38 = vmul.f32 %v5063_v11, %v6274_v0  ;;  %v3622_v0 = vld [vmem:[#allocation2 + $0x28] sm:$0xf] }
 0x2e6   : > { %v3593_v3 = vadd.f32 1.0, %v5065_v40 }
 0x2e7   : > { %3644 = vst [vmem:[#allocation2 + $0x10] sm:$0xf] %v3636_v20  ;;  %v3629_v53 = vpack.c.bf16 %v3613_v38, %v3613_v38 }
 0x2e8   : > { %v5067_v14 = vpop.eup %5066  ;;  %5076 = vrcp.f32 %v3593_v3 }
 0x2e9   : > { %v5069_v51 = vpop.eup %5068  ;;  %v3637_v63 = vadd.bf16 %v3629_v53, %v3621_v48  ;;  %v3614_v58 = vmul.f32 %v5067_v14, %v6282_v46 }
 0x2ea   : > { %v3594_v49 = vadd.f32 1.0, %v5069_v51 }
 0x2eb   : > { %3645 = vst [vmem:[#allocation2 + $0x1c] sm:$0xf] %v3637_v63  ;;  %v3630_v7 = vpack.c.bf16 %v3614_v58, %v3614_v58 }
 0x2ec   : > { %v5071_v24 = vpop.eup %5070  ;;  %5078 = vrcp.f32 %v3594_v49 }
 0x2ed   : > { %v5073_v8 = vpop.eup %5072  ;;  %v3638_v12 = vadd.bf16 %v3630_v7, %v3622_v0  ;;  %v3615_v50 = vmul.f32 %v5071_v24, %v6292_v45 }
 0x2ee   : > { %v3652_v32 = vld [vmem:[#allocation2 + $0x10] sm:$0xf]  ;;  %v3595_v46 = vadd.f32 1.0, %v5073_v8 }
 0x2ef   : > { %3660 = vst [vmem:[%s6328_s22] sm:$0xf] %v3652_v32  ;;  %3646 = vst [vmem:[#allocation2 + $0x28] sm:$0xf] %v3638_v12  ;;  %v3631_v23 = vpack.c.bf16 %v3615_v50, %v3615_v50 }
 0x2f0   : > { %5080 = vrcp.f32 %v3595_v46 }
 0x2f1   : > { %v5075_v57 = vpop.eup %5074  ;;  %v3639_v21 = vadd.bf16 %v3631_v23, %v3623_v52 }
 0x2f2   : > { %v3653_v13 = vld [vmem:[#allocation2 + $0x1c] sm:$0xf]  ;;  %v3616_v18 = vmul.f32 %v5075_v57, %v6302_v10 }
 0x2f3   : > { %3661 = vst [vmem:[%s6328_s22 + $0x4] sm:$0xf] %v3653_v13  ;;  %3647 = vst [vmem:[#allocation2 + $0x34] sm:$0xf] %v3639_v21 }
 0x2f4   : > { %v3632_v47 = vpack.c.bf16 %v3616_v18, %v3616_v18 }
 0x2f5   : > { %v5077_v55 = vpop.eup %5076 }
 0x2f6   : > { %v3654_v45 = vld [vmem:[#allocation2 + $0x28] sm:$0xf]  ;;  %v3640_v4 = vadd.bf16 %v3632_v47, %v3624_v39  ;;  %v3617_v54 = vmul.f32 %v5077_v55, %v6308_v37 }
 0x2f7   : > { %3662 = vst [vmem:[%s6328_s22 + $0x8] sm:$0xf] %v3654_v45 }
 0x2f8   : > { %3648 = vst [vmem:[#allocation2 + $0x40] sm:$0xf] %v3640_v4  ;;  %v3633_v25 = vpack.c.bf16 %v3617_v54, %v3617_v54 }
 0x2f9   : > { %v5079_v1 = vpop.eup %5078 }
 0x2fa   : > { %v3655_v60 = vld [vmem:[#allocation2 + $0x34] sm:$0xf]  ;;  %v3641_v35 = vadd.bf16 %v3633_v25, %v3625_v6  ;;  %v3618_v10 = vmul.f32 %v5079_v1, %v6313_v31 }
 0x2fb   : > { %3663 = vst [vmem:[%s6328_s22 + $0xc] sm:$0xf] %v3655_v60 }
 0x2fc   : > { %3649 = vst [vmem:[#allocation2 + $0x4c] sm:$0xf] %v3641_v35  ;;  %v3634_v59 = vpack.c.bf16 %v3618_v10, %v3618_v10 }
 0x2fd   : > { %v5081_v9 = vpop.eup %5080 }
 0x2fe   : > { %v3642_v41 = vadd.bf16 %v3634_v59, %v3626_v28  ;;  %v3619_v37 = vmul.f32 %v5081_v9, %v6317_v27 }
 0x2ff   : > { %v3656_v61 = vld [vmem:[#allocation2 + $0x40] sm:$0xf] }
 0x300   : > { %3664 = vst [vmem:[%s6328_s22 + $0x10] sm:$0xf] %v3656_v61  ;;  %3650 = vst [vmem:[#allocation2 + $0x58] sm:$0xf] %v3642_v41  ;;  %v3635_v19 = vpack.c.bf16 %v3619_v37, %v3619_v37 }
 0x302   : > { %v3643_v2 = vadd.bf16 %v3635_v19, %v3627_v29 }
 0x303   : > { %v3657_v16 = vld [vmem:[#allocation2 + $0x4c] sm:$0xf] }
 0x304   : > { %3665 = vst [vmem:[%s6328_s22 + $0x14] sm:$0xf] %v3657_v16  ;;  %3651 = vst [vmem:[#allocation2 + $0x64] sm:$0xf] %v3643_v2 }
 0x307   : > { %v3658_v31 = vld [vmem:[#allocation2 + $0x58] sm:$0xf] }
 0x308   : > { %3666 = vst [vmem:[%s6328_s22 + $0x18] sm:$0xf] %v3658_v31 }
 0x30b   : > { %v3659_v34 = vld [vmem:[#allocation2 + $0x64] sm:$0xf] }
 0x30c   : > { %3667 = vst [vmem:[%s6328_s22 + $0x1c] sm:$0xf] %v3659_v34 }
 0x30d PF: > { %s13_s12 = sadd.s32 1, %s5088_s12  }
 0x30e   : > { %p10_p4 = scmp.ge.s32.totalorder %s13_s12, 4  }
 0x310   :  { %12 = sbr.rel (!%p10_p4) target bundleno = 1 (0x1), region = 69 }

// kernel: _lambda_.3
= control target key start
LH: loop header
LB: loop body
LE: loop exit
PB: predicated region body
PF: predicated region fallthrough
CT: control target
= control target key end

     0   :  { %8 = vsyncpa [#allocation4], 0  ;;  %s9482_s12 = smov 0   ;;  %s11784_s0 = inlined_call_operand.vmem [shape: bf16[2,16,16,128], index: 0, kind: input, shape index: {}]   ;;  %s11785_s1 = inlined_call_operand.hbm [shape: bf16[2,3,384,128], index: 1, kind: input, shape index: {}]   ;;  %s11786_s2 = inlined_call_operand.vmem [shape: f32[2,1,128], index: 2, kind: input, shape index: {}]   ;;  %s11787_s3 = inlined_call_operand.vmem [shape: bf16[2,16,16,128], index: 3, kind: output, shape index: {}]  }
   0x1 LB: > { %s9488_s13 = sadd.s32 4294967295, %s9456_s12   ;;  %p7254_p0 = scmp.ge.s32.totalorder %s9456_s12, 1  ;;  %s9456_s12 = sphi %s9482_s12, %s14_s12  }
   0x2   : > { %p113_p1 = scmp.lt.s32.totalorder %s9456_s12, 3  ;;  %s9458_s14 = smov [#allocation3]  }
   0x3   : > { %s125_s15 = sshll.u32 %s9458_s14, 4  ;;  %p8862_p3 = scmp.eq.s32.totalorder %s9488_s13, 0  ;;  %s126_s15 = int_to_ptr.vmem [resolvable:$true] %s125_s15 }
   0x4   : > { %p9492_p2 = pnand %p7254_p0, %p113_p1  ;;  %s9431_s17 = scalar_lea.vmem %s126_s15, 18432 }
   0x5   : > { %p9432_p7 = scmp.ne.s32.totalorder %s126_s15, %s9431_s17  ;;  %p9439_p10 = scmp.lt.s32.totalorder %s126_s15, %s126_s15 }
   0x6   : > { %p8858_p4 = pneg %p9492_p2  ;;  %p9440_p11 = scmp.lt.s32.totalorder %s9431_s17, %s9431_s17 }
   0x8   : > { %p8859_p5 = pnand %p8862_p3, %p8858_p4  ;;  %p9441_p12 = por %p9440_p11, %p9439_p10 }
   0xa   : > { %p9422_p6 = pneg %p8859_p5 }
   0xc   : > { %p9434_p8 = pnand %p9432_p7, %p9422_p6 }
   0xe   : > { %p9435_p9 = pneg %p9434_p8 }
  0x10   : > { %p9442_p13 = pnand %p9441_p12, %p9435_p9 }
  0x12   : > { %9445 = shalt.err (!%p9442_p13)
}
  0x13   : > { %s9459_s18 = smov 64   ;;  %s9460_s19 = smov 4  }
  0x14   : > { %8861 = dma.hbm_to_vmem [thread:$0]  (!%p8859_p5), %s11785_s1, 18432, %s126_s15, [#allocation4], %s9459_s18, %s9459_s18, %s9460_s19  }
  0x15   : > { %152 = sbr.rel (%p9492_p2) target bundleno = 1245 (0x4dd), region = 32 }
  0x1a   : > { %9451 = dma.done.wait (%p8862_p3), [#allocation4], 18432  }
  0x1b   : > { %9453 = vsyncadd (%p8862_p3), [#allocation4], 4294948864  ;;  %v9461_v0 = vmov 0   ;;  %v8876_v1 = vld [vmem:[#allocation3 + $0x138] sm:$0xff]   ;;  %v8879_v4 = vld [vmem:[#allocation3 + $0x130] sm:$0xff]   ;;  %p176_p0 = scmp.lt.s32.totalorder %s9488_s13, 1 }
  0x1c   : > { %197 = vst [vmem:[#allocation2 + $0x14] sm:$0xf] %v9461_v0  ;;  %198 = vst [vmem:[#allocation2 + $0x18] sm:$0xf] %v9461_v0  ;;  %v8877_v2 = vld [vmem:[#allocation3 + $0x178] sm:$0xff]   ;;  %7750 = vmatprep.subr.bf16.mxu0 %v8876_v1  ;;  %v8880_v5 = vld [vmem:[#allocation3 + $0x170] sm:$0xff]  }
  0x1d   : > { %187 = vst [vmem:[#allocation2] sm:$0xf] %v9461_v0  ;;  %188 = vst [vmem:[#allocation2 + $0x4] sm:$0xf] %v9461_v0  ;;  %v8878_v3 = vld [vmem:[#allocation3 + $0xf8] sm:$0xff]   ;;  %8566 = vmatprep.subr.bf16.mxu1 %v8877_v2  ;;  %v8881_v6 = vld [vmem:[#allocation3 + $0xf0] sm:$0xff]  }
  0x1e   : > { %189 = vst [vmem:[#allocation2 + $0x8] sm:$0xf] %v9461_v0  ;;  %196 = vst [vmem:[#allocation2 + $0x10] sm:$0xf] %v9461_v0  ;;  %7751 = vmatpush3.bf16.msra.mxu0 %v8878_v3  ;;  %8567 = vmatpush3.bf16.msra.mxu1 %v8877_v2  ;;  %v8882_v7 = vld [vmem:[#allocation3 + $0x128] sm:$0xff]   ;;  %v8885_v10 = vld [vmem:[#allocation3 + $0x120] sm:$0xff]  }
  0x1f   : > { %202 = vst [vmem:[#allocation2 + $0x20] sm:$0xf] %v9461_v0  ;;  %203 = vst [vmem:[#allocation2 + $0x24] sm:$0xf] %v9461_v0  ;;  %7752 = vmatprep.subr.bf16.mxu0 %v8879_v4  ;;  %8568 = vmatprep.subr.bf16.mxu1 %v8880_v5  ;;  %v8883_v8 = vld [vmem:[#allocation3 + $0x168] sm:$0xff]   ;;  %v8886_v11 = vld [vmem:[#allocation3 + $0x160] sm:$0xff]  }
  0x20   : > { %204 = vst [vmem:[#allocation2 + $0x28] sm:$0xf] %v9461_v0  ;;  %208 = vst [vmem:[#allocation2 + $0x30] sm:$0xf] %v9461_v0  ;;  %vm191_vm0 = vsmask.f32 256 }
  0x21   : > { %209 = vst [vmem:[#allocation2 + $0x34] sm:$0xf] %v9461_v0  ;;  %210 = vst [vmem:[#allocation2 + $0x38] sm:$0xf] %v9461_v0  ;;  %v8884_v9 = vld [vmem:[#allocation3 + $0xe8] sm:$0xff]   ;;  %v8887_v12 = vld [vmem:[#allocation3 + $0xe0] sm:$0xff]  }
  0x22   : > { %214 = vst [vmem:[#allocation2 + $0x40] sm:$0xf] %v9461_v0  ;;  %215 = vst [vmem:[#allocation2 + $0x44] sm:$0xf] %v9461_v0  ;;  %7753 = vmatpush3.bf16.msra.mxu0 %v8881_v6  ;;  %8569 = vmatpush3.bf16.msra.mxu1 %v8880_v5  ;;  %v8888_v13 = vld [vmem:[#allocation3 + $0x118] sm:$0xff]   ;;  %s11988_s13 = smov (!%p176_p0, %s9488_s13), 1 }
  0x23   : > { %216 = vst [vmem:[#allocation2 + $0x48] sm:$0xf] %v9461_v0  ;;  %220 = vst [vmem:[#allocation2 + $0x50] sm:$0xf] %v9461_v0  ;;  %7754 = vmatprep.subr.bf16.mxu0 %v8882_v7  ;;  %8570 = vmatprep.subr.bf16.mxu1 %v8883_v8  ;;  %v8889_v14 = vld [vmem:[#allocation3 + $0x158] sm:$0xff]   ;;  %vm190_vm1 = vcmask 1040384  }
  0x24   : > { %221 = vst [vmem:[#allocation2 + $0x54] sm:$0xf] %v9461_v0  ;;  %222 = vst [vmem:[#allocation2 + $0x58] sm:$0xf] %v9461_v0  ;;  %v8890_v15 = vld [vmem:[#allocation3 + $0xd8] sm:$0xff]   ;;  %v8891_v16 = vld [vmem:[#allocation3 + $0x110] sm:$0xff]  }
  0x25   : > { %226 = vst [vmem:[#allocation2 + $0x60] sm:$0xf] %v9461_v0  ;;  %227 = vst [vmem:[#allocation2 + $0x64] sm:$0xf] %v9461_v0  ;;  %v8892_v17 = vld [vmem:[#allocation3 + $0x150] sm:$0xff]   ;;  %s7684_s22 = sshll.u32 %s11988_s13, 7 }
  0x26   : > { %228 = vst [vmem:[#allocation2 + $0x68] sm:$0xf] %v9461_v0  ;;  %232 = vst [vmem:[#allocation2 + $0x70] sm:$0xf] %v9461_v0  ;;  %7755 = vmatpush3.bf16.msra.mxu0 %v8884_v9  ;;  %8571 = vmatpush3.bf16.msra.mxu1 %v8883_v8  ;;  %v8893_v19 = vld [vmem:[#allocation3 + $0xd0] sm:$0xff]   ;;  %v8894_v20 = vld [vmem:[#allocation3 + $0x108] sm:$0xff]   ;;  %s9525_s25 = scalar_lea.vmem %s11784_s0, %s7684_s22  ;;  %s11624_s7 = scalar_lea.vmem %s11787_s3, %s7684_s22 }
  0x27   : > { %233 = vst [vmem:[#allocation2 + $0x74] sm:$0xf] %v9461_v0  ;;  %234 = vst [vmem:[#allocation2 + $0x78] sm:$0xf] %v9461_v0  ;;  %7756 = vmatprep.subr.bf16.mxu0 %v8885_v10  ;;  %8572 = vmatprep.subr.bf16.mxu1 %v8886_v11  ;;  %v8895_v21 = vld [vmem:[#allocation3 + $0x148] sm:$0xff]   ;;  %v8897_v23 = vld [vmem:[#allocation3 + $0x100] sm:$0xff]  }
  0x28   : > { %238 = vst [vmem:[#allocation2 + $0x80] sm:$0xf] %v9461_v0  ;;  %239 = vst [vmem:[#allocation2 + $0x84] sm:$0xf] %v9461_v0  ;;  %v8896_v22 = vld [vmem:[#allocation3 + $0xc8] sm:$0xff]   ;;  %v8898_v24 = vld [vmem:[#allocation3 + $0x140] sm:$0xff]  }
  0x29   : > { %240 = vst [vmem:[#allocation2 + $0x88] sm:$0xf] %v9461_v0  ;;  %244 = vst [vmem:[#allocation2 + $0x90] sm:$0xf] %v9461_v0  ;;  %v298_v25 = vld [vmem:[%s9525_s25] sm:$0xff]   ;;  %v300_v29 = vld [vmem:[%s9525_s25 + $0x8] sm:$0xff]  }
  0x2a   : > { %245 = vst [vmem:[#allocation2 + $0x94] sm:$0xf] %v9461_v0  ;;  %246 = vst [vmem:[#allocation2 + $0x98] sm:$0xf] %v9461_v0  ;;  %7757 = vmatpush3.bf16.msra.mxu0 %v8887_v12  ;;  %8573 = vmatpush3.bf16.msra.mxu1 %v8886_v11  ;;  %v199_v26 = vld [vmem:[#allocation2 + $0x1c] sm:$0x1] }
  0x2b   : > { %250 = vst [vmem:[#allocation2 + $0xa0] sm:$0xf] %v9461_v0  ;;  %251 = vst [vmem:[#allocation2 + $0xa4] sm:$0xf] %v9461_v0  ;;  %7758 = vmatprep.subr.bf16.mxu0 %v8888_v13  ;;  %8574 = vmatprep.subr.bf16.mxu1 %v8889_v14  ;;  %v205_v28 = vld [vmem:[#allocation2 + $0x2c] sm:$0x1] }
  0x2c   : > { %252 = vst [vmem:[#allocation2 + $0xa8] sm:$0xf] %v9461_v0  ;;  %256 = vst [vmem:[#allocation2 + $0xb0] sm:$0xf] %v9461_v0  ;;  %v8899_v31 = vld [vmem:[#allocation3 + $0xc0] sm:$0xff]   ;;  %v9533_v33 = vld [vmem:[#allocation3 + $0xb8] sm:$0xff]  }
  0x2d   : > { %257 = vst [vmem:[#allocation2 + $0xb4] sm:$0xf] %v9461_v0  ;;  %258 = vst [vmem:[#allocation2 + $0xb8] sm:$0xf] %v9461_v0  ;;  %v366_v32 = vld [vmem:[#allocation2 + $0x10] sm:$0x8] }
  0x2e   : > { %262 = vst [vmem:[#allocation2 + $0xc0] sm:$0xf] %v9461_v0  ;;  %263 = vst [vmem:[#allocation2 + $0xc4] sm:$0xf] %v9461_v0  ;;  %7759 = vmatpush3.bf16.msra.mxu0 %v8890_v15  ;;  %8575 = vmatpush3.bf16.msra.mxu1 %v8889_v14  ;;  %v211_v34 = vld [vmem:[#allocation2 + $0x3c] sm:$0x1] }
  0x2f   : > { %264 = vst [vmem:[#allocation2 + $0xc8] sm:$0xf] %v9461_v0  ;;  %268 = vst [vmem:[#allocation2 + $0xd0] sm:$0xf] %v9461_v0  ;;  %7760 = vmatprep.subr.bf16.mxu0 %v8891_v16  ;;  %8576 = vmatprep.subr.bf16.mxu1 %v8892_v17  ;;  %v8905_v35 = vld [vmem:[#allocation3 + $0x78] sm:$0xff]   ;;  %v302_v37 = vld [vmem:[%s9525_s25 + $0x10] sm:$0xff]  }
  0x30   : > { %269 = vst [vmem:[#allocation2 + $0xd4] sm:$0xf] %v9461_v0  ;;  %270 = vst [vmem:[#allocation2 + $0xd8] sm:$0xf] %v9461_v0  ;;  %v217_v38 = vld [vmem:[#allocation2 + $0x4c] sm:$0x1] }
  0x31   : > { %274 = vst [vmem:[#allocation2 + $0xe0] sm:$0xf] %v9461_v0  ;;  %275 = vst [vmem:[#allocation2 + $0xe4] sm:$0xf] %v9461_v0  ;;  %v304_v40 = vld [vmem:[%s9525_s25 + $0x18] sm:$0xff]   ;;  %v306_v47 = vld [vmem:[%s9525_s25 + $0x20] sm:$0xff]  }
  0x32   : > { %276 = vst [vmem:[#allocation2 + $0xe8] sm:$0xf] %v9461_v0  ;;  %280 = vst [vmem:[#allocation2 + $0xf0] sm:$0xf] %v9461_v0  ;;  %7761 = vmatpush3.bf16.msra.mxu0 %v8893_v19  ;;  %8577 = vmatpush3.bf16.msra.mxu1 %v8892_v17  ;;  %vm795_vm3 = vcmask 1042432   ;;  %v308_v7 = vld [vmem:[%s9525_s25 + $0x28] sm:$0xff]  }
  0x33   : > { %281 = vst [vmem:[#allocation2 + $0xf4] sm:$0xf] %v9461_v0  ;;  %282 = vst [vmem:[#allocation2 + $0xf8] sm:$0xf] %v9461_v0  ;;  %7762 = vmatprep.subr.bf16.mxu0 %v8894_v20  ;;  %8578 = vmatprep.subr.bf16.mxu1 %v8895_v21  ;;  %vm850_vm4 = vsmask.f32 4352 }
  0x34   : > { %286 = vst [vmem:[#allocation2 + $0x100] sm:$0xf] %v9461_v0  ;;  %287 = vst [vmem:[#allocation2 + $0x104] sm:$0xf] %v9461_v0 }
  0x35   : > { %288 = vst [vmem:[#allocation2 + $0x108] sm:$0xf] %v9461_v0  ;;  %292 = vst [vmem:[#allocation2 + $0x110] sm:$0xf] %v9461_v0 }
  0x36   : > { %293 = vst [vmem:[#allocation2 + $0x114] sm:$0xf] %v9461_v0  ;;  %294 = vst [vmem:[#allocation2 + $0x118] sm:$0xf] %v9461_v0  ;;  %7763 = vmatpush3.bf16.msra.mxu0 %v8896_v22  ;;  %8579 = vmatpush3.bf16.msra.mxu1 %v8895_v21 }
  0x37   : > { %vm9516_vm2 = vmand %vm190_vm1, %vm191_vm0  ;;  %331 = vst [vmem:[#allocation2 + $0x14] sm:$0xff] %v298_v25   ;;  %7764 = vmatprep.subr.bf16.mxu0 %v8897_v23  ;;  %8580 = vmatprep.subr.bf16.mxu1 %v8898_v24 }
  0x38   : > { %v200_v27 = vsel %vm9516_vm2, 0, %v199_v26  ;;  %v206_v30 = vsel %vm9516_vm2, 0, %v205_v28  ;;  %333 = vst [vmem:[#allocation2 + $0x24] sm:$0xff] %v300_v29   ;;  %v212_v36 = vsel %vm9516_vm2, 0, %v211_v34  ;;  %335 = vst [vmem:[#allocation2 + $0x34] sm:$0xff] %v302_v37   ;;  %v218_v39 = vsel %vm9516_vm2, 0, %v217_v38 }
  0x39   : > { %201 = vst [vmem:[#allocation2 + $0x1c] sm:$0x1] %v200_v27  ;;  %207 = vst [vmem:[#allocation2 + $0x2c] sm:$0x1] %v206_v30  ;;  %v369_v37 = vld [vmem:[#allocation2 + $0x20] sm:$0x8] }
  0x3a   : > { %213 = vst [vmem:[#allocation2 + $0x3c] sm:$0x1] %v212_v36  ;;  %219 = vst [vmem:[#allocation2 + $0x4c] sm:$0x1] %v218_v39  ;;  %7765 = vmatpush3.bf16.msra.mxu0 %v8899_v31  ;;  %8581 = vmatpush3.bf16.msra.mxu1 %v8898_v24  ;;  %v8921_v38 = vld [vmem:[#allocation3 + $0xb0] sm:$0xff]  }
  0x3b   : > { %337 = vst [vmem:[#allocation2 + $0x44] sm:$0xff] %v304_v40   ;;  %8614 = vmatprep.subr.bf16.mxu0 %v9533_v33  ;;  %7886 = vmatprep.subr.bf16.mxu1 %v8905_v35  ;;  %339 = vst [vmem:[#allocation2 + $0x54] sm:$0xff] %v306_v47  }
  0x3c   : > { %341 = vst [vmem:[#allocation2 + $0x64] sm:$0xff] %v308_v7  }
  0x3e   : > { %v367_v41 = vld [vmem:[#allocation2 + $0x14] sm:$0xf]  ;;  %v368_v42 = vld [vmem:[#allocation2 + $0x18] sm:$0xf] }
  0x3f   : > { %v7300_v43 = vcombine.low %v367_v41, %v368_v42  ;;  %v7265_v45 = vcombine.low %v366_v32, %v367_v41  ;;  %v7266_v46 = vcombine.low %v368_v42, %v368_v42  ;;  %v370_v56 = vld [vmem:[#allocation2 + $0x24] sm:$0xf]  ;;  %v9544_v2 = vld [vmem:[#allocation2 + $0x28] sm:$0xf]  ;;  %v9548_v16 = vld [vmem:[#allocation2 + $0x34] sm:$0xf] }
  0x40   : > { %v8901_v44 = vld [vmem:[#allocation2 + $0x1c] ss:$0 sps:$4 sm:$0x11]   ;;  %v8903_v61 = vld [vmem:[#allocation2 + $0x2c] ss:$0 sps:$4 sm:$0x11]   ;;  %v7301_v15 = vcombine.low %v370_v56, %v9544_v2 }
  0x41   : > { %v606_v48 = vshrl.u32 %v7300_v43, 16  ;;  %v609_v49 = vshll.u32 %v7300_v43, 16  ;;  %v799_v50 = vrot.slane %v7300_v43, 5  ;;  %v800_v51 = vrot.slane %v8901_v44, 5  ;;  %v9550_v17 = vld [vmem:[#allocation2 + $0x38] sm:$0xf] }
  0x42   : > { %v895_v52 = vshrl.u32 %v7265_v45, 16  ;;  %v898_v53 = vshll.u32 %v7265_v45, 16  ;;  %v903_v54 = vshrl.u32 %v7266_v46, 16  ;;  %v906_v55 = vshll.u32 %v7266_v46, 16 }
  0x43   : > { %v608_v57 = vrot.slane %v606_v48, 4  ;;  %v611_v58 = vrot.slane %v609_v49, 5  ;;  %v801_v59 = vsel %vm795_vm3, %v799_v50, %v800_v51  ;;  %v921_v60 = vshrl.u32 %v799_v50, 16  ;;  %v8908_v23 = vld [vmem:[#allocation2 + $0x3c] ss:$0 sps:$4 sm:$0x11]  }
  0x44   : > { %v924_v62 = vshll.u32 %v799_v50, 16  ;;  %v929_v63 = vshrl.u32 %v801_v59, 16  ;;  %v932_v0 = vshll.u32 %v801_v59, 16  ;;  %v897_v1 = vrot.slane %v895_v52, 3  ;;  %v8906_v49 = vld [vmem:[#allocation3 + $0x38] sm:$0xff]  }
  0x45   : > { %v612_v3 = vor.u32 %v611_v58, %v608_v57  ;;  %v923_v4 = vrot.slane %v921_v60, 3  ;;  %v900_v5 = vrot.slane %v898_v53, 4  ;;  %v905_v6 = vrot.slane %v903_v54, 3  ;;  %v9571_v57 = vld [vmem:[#allocation2 + $0x44] sm:$0xf] }
  0x46   : > { %v926_v8 = vrot.slane %v924_v62, 4  ;;  %v931_v9 = vrot.slane %v929_v63, 3  ;;  %v934_v10 = vrot.slane %v932_v0, 4  ;;  %v908_v11 = vrot.slane %v906_v55, 4  ;;  %v9573_v58 = vld [vmem:[#allocation2 + $0x48] sm:$0xf] }
  0x47   : > { %v912_v12 = vshrl.u32 %v612_v3, 16  ;;  %v915_v13 = vshll.u32 %v612_v3, 16  ;;  %v901_v14 = vor.u32 %v900_v5, %v897_v1  ;;  %v803_v22 = vrot.slane %v8903_v61, 5  ;;  %v8912_v59 = vld [vmem:[#allocation2 + $0x4c] ss:$0 sps:$4 sm:$0x11]  }
  0x48   : > { %v927_v19 = vor.u32 %v926_v8, %v923_v4  ;;  %v935_v20 = vor.u32 %v934_v10, %v931_v9  ;;  %v909_v21 = vor.u32 %v908_v11, %v905_v6  ;;  %v802_v26 = vrot.slane %v7301_v15, 5  ;;  %v8913_v0 = vld [vmem:[#allocation3 + $0x70] sm:$0xff]   ;;  %v312_v9 = vld [vmem:[%s9525_s25 + $0x38] sm:$0xff]  }
  0x49   : > { %v914_v24 = vrot.slane %v912_v12, 3  ;;  %v917_v25 = vrot.slane %v915_v13, 4  ;;  %v614_v27 = vshrl.u32 %v7301_v15, 16  ;;  %v617_v30 = vshll.u32 %v7301_v15, 16  ;;  %v310_v4 = vld [vmem:[%s9525_s25 + $0x30] sm:$0xff]   ;;  %345 = vst [vmem:[#allocation2 + $0x84] sm:$0xff] %v312_v9  }
  0x4a   : > { %v9553_v28 = vsel %vm850_vm4, %v927_v19, %v935_v20  ;;  %v9556_v29 = vsel %vm850_vm4, %v901_v14, %v909_v21  ;;  %v9560_v31 = vcombine.low %v9548_v16, %v9550_v17  ;;  %v804_v34 = vsel %vm795_vm3, %v802_v26, %v803_v22  ;;  %343 = vst [vmem:[#allocation2 + $0x74] sm:$0xff] %v310_v4   ;;  %v8914_v14 = vld [vmem:[#allocation3 + $0x30] sm:$0xff]   ;;  %v223_v21 = vld [vmem:[#allocation2 + $0x5c] sm:$0x1] }
  0x4b   : > { %11863 = vst [vmem:[#allocation6_spill] sm:$0xff] %v9553_v28  ;;  %v9562_v32 = vor.u32 %v917_v25, %v914_v24  ;;  %8582 = vmatprep.mubr.bf16.mxu1 %v9553_v28  ;;  %v964_v35 = vshrl.u32 %v802_v26, 16  ;;  %v967_v36 = vshll.u32 %v802_v26, 16  ;;  %v972_v39 = vshrl.u32 %v804_v34, 16  ;;  %v9589_v26 = vld [vmem:[#allocation2 + $0x54] sm:$0xf] }
  0x4c   : > { %v975_v40 = vshll.u32 %v804_v34, 16  ;;  %v616_v41 = vrot.slane %v614_v27, 4  ;;  %v619_v42 = vrot.slane %v617_v30, 5  ;;  %v805_v45 = vrot.slane %v9560_v31, 5  ;;  %v9591_v27 = vld [vmem:[#allocation2 + $0x58] sm:$0xf] }
  0x4d   : > { %1906 = vmatprep.mubr.bf16.mxu0 %v9562_v32  ;;  %v966_v43 = vrot.slane %v964_v35, 3  ;;  %v969_v44 = vrot.slane %v967_v36, 4  ;;  %v806_v46 = vrot.slane %v8908_v23, 5  ;;  %v974_v47 = vrot.slane %v972_v39, 3  ;;  %v8922_v30 = vld [vmem:[#allocation3 + $0x68] sm:$0xff]  }
  0x4e   : > { %1907 = vmatmul.mubr.bf16.vlgmr.msra.gmra.mxu0 %v9556_v29  ;;  %v977_v48 = vrot.slane %v975_v40, 4  ;;  %v620_v50 = vor.u32 %v619_v42, %v616_v41  ;;  %v7267_v51 = vcombine.low %v369_v37, %v370_v56  ;;  %v1007_v54 = vshrl.u32 %v805_v45, 16 }
  0x4f   : > { %v970_v52 = vor.u32 %v969_v44, %v966_v43  ;;  %8615 = vmatpush3.bf16.msra.mxu0 %v9533_v33  ;;  %v807_v53 = vsel %vm795_vm3, %v805_v45, %v806_v46  ;;  %v1010_v55 = vshll.u32 %v805_v45, 16  ;;  %v7268_v3 = vcombine.low %v9544_v2, %v9544_v2  ;;  %v229_v43 = vld [vmem:[#allocation2 + $0x6c] sm:$0x1] }
  0x50   : > { %v978_v60 = vor.u32 %v977_v48, %v974_v47  ;;  %v955_v61 = vshrl.u32 %v620_v50, 16  ;;  %v958_v62 = vshll.u32 %v620_v50, 16  ;;  %v1015_v63 = vshrl.u32 %v807_v53, 16  ;;  %8616 = vmatprep.subr.bf16.mxu0 %v8921_v38  ;;  %v8923_v48 = vld [vmem:[#allocation3 + $0x28] sm:$0xff]  }
  0x51   : > { %v1009_v56 = vrot.slane %v1007_v54, 3  ;;  %v1012_v1 = vrot.slane %v1010_v55, 4  ;;  %v1018_v33 = vshll.u32 %v807_v53, 16  ;;  %v938_v12 = vshrl.u32 %v7267_v51, 16  ;;  %v316_v50 = vld [vmem:[%s9525_s25 + $0x48] sm:$0xff]   ;;  %v8930_v54 = vld [vmem:[#allocation3 + $0x60] sm:$0xff]  }
  0x52   : > { %v9579_v5 = vsel %vm850_vm4, %v970_v52, %v978_v60  ;;  %v957_v6 = vrot.slane %v955_v61, 3  ;;  %v960_v7 = vrot.slane %v958_v62, 4  ;;  %v1017_v8 = vrot.slane %v1015_v63, 3  ;;  %349 = vst [vmem:[#allocation2 + $0xa4] sm:$0xff] %v316_v50  }
  0x53   : > { %11864 = vst [vmem:[#allocation7_spill] sm:$0xff] %v9579_v5  ;;  %8583 = vmatmul.mubr.bf16.vlgmr.msra.gmra.mxu1 %v9579_v5  ;;  %v1013_v10 = vor.u32 %v1012_v1, %v1009_v56  ;;  %v1020_v11 = vrot.slane %v1018_v33, 4  ;;  %v941_v13 = vshll.u32 %v7267_v51, 16  ;;  %8617 = vmatpush3.bf16.msra.mxu0 %v8921_v38  ;;  %v946_v15 = vshrl.u32 %v7268_v3, 16  ;;  %v372_v38 = vld [vmem:[#allocation2 + $0x30] sm:$0x8] }
  0x54   : > { %7887 = vmatpush3.bf16.msra.mxu1 %v8906_v49  ;;  %v9583_v2 = vor.u32 %v960_v7, %v957_v6  ;;  %v949_v19 = vshll.u32 %v7268_v3, 16  ;;  %v9587_v20 = vcombine.low %v9571_v57, %v9573_v58  ;;  %v940_v23 = vrot.slane %v938_v12, 3  ;;  %v314_v49 = vld [vmem:[%s9525_s25 + $0x40] sm:$0xff]   ;;  %v9617_v33 = vld [vmem:[#allocation2 + $0x68] sm:$0xf] }
  0x55   : > { %v1021_v22 = vor.u32 %v1020_v11, %v1017_v8  ;;  %v943_v24 = vrot.slane %v941_v13, 4  ;;  %v809_v25 = vrot.slane %v8912_v59, 5  ;;  %7888 = vmatprep.subr.bf16.mxu1 %v8913_v0  ;;  %v948_v34 = vrot.slane %v946_v15, 3  ;;  %347 = vst [vmem:[#allocation2 + $0x94] sm:$0xff] %v314_v49   ;;  %v9615_v1 = vld [vmem:[#allocation2 + $0x64] sm:$0xf] }
  0x56   : > { %1914 = vmatprep.mubr.bf16.mxu0 %v9583_v2  ;;  %v951_v35 = vrot.slane %v949_v19, 4  ;;  %v808_v36 = vrot.slane %v9587_v20, 5  ;;  %v622_v37 = vshrl.u32 %v9560_v31, 16  ;;  %v625_v41 = vshll.u32 %v9560_v31, 16  ;;  %v8931_v3 = vld [vmem:[#allocation3 + $0x20] sm:$0xff]  }
  0x57   : > { %v9597_v39 = vsel %vm850_vm4, %v1013_v10, %v1021_v22  ;;  %v944_v40 = vor.u32 %v943_v24, %v940_v23  ;;  %v224_v42 = vsel %vm9516_vm2, 0, %v223_v21  ;;  %v9611_v61 = vcombine.low %v9589_v26, %v9591_v27  ;;  %v235_v21 = vld [vmem:[#allocation2 + $0x7c] sm:$0x1] }
  0x58   : > { %11865 = vst [vmem:[#allocation8_spill] sm:$0xff] %v9597_v39  ;;  %8586 = vmatprep.mubr.bf16.mxu1 %v9597_v39  ;;  %v952_v44 = vor.u32 %v951_v35, %v948_v34  ;;  %v810_v45 = vsel %vm795_vm3, %v808_v36, %v809_v25  ;;  %v1050_v46 = vshrl.u32 %v808_v36, 16  ;;  %v1053_v47 = vshll.u32 %v808_v36, 16  ;;  %7889 = vmatpush3.bf16.msra.mxu1 %v8914_v14  ;;  %v9627_v25 = vld [vmem:[#allocation2 + $0x74] sm:$0xf]  ;;  %v8939_v34 = vld [vmem:[#allocation3 + $0x58] sm:$0xff]  }
  0x59   : > { %225 = vst [vmem:[#allocation2 + $0x5c] sm:$0x1] %v224_v42  ;;  %v1058_v51 = vshrl.u32 %v810_v45, 16  ;;  %v1061_v52 = vshll.u32 %v810_v45, 16  ;;  %v624_v53 = vrot.slane %v622_v37, 4  ;;  %v627_v31 = vrot.slane %v625_v41, 5  ;;  %7890 = vmatprep.subr.bf16.mxu1 %v8922_v30 }
  0x5a   : > { %v9607_v55 = vsel %vm850_vm4, %v944_v40, %v952_v44  ;;  %v1052_v59 = vrot.slane %v1050_v46, 3  ;;  %v1055_v60 = vrot.slane %v1053_v47, 4  ;;  %v7269_v56 = vcombine.low %v372_v38, %v9548_v16  ;;  %v8938_v16 = vld [vmem:[#allocation3 + $0xa8] sm:$0xff]   ;;  %v375_v30 = vld [vmem:[#allocation2 + $0x40] sm:$0x8]  ;;  %v8940_v46 = vld [vmem:[#allocation3 + $0x18] sm:$0xff]  }
  0x5b   : > { %1915 = vmatmul.mubr.bf16.gmra.mxu0 %v9607_v55  ;;  %v1060_v62 = vrot.slane %v1058_v51, 3  ;;  %v1063_v63 = vrot.slane %v1061_v52, 4  ;;  %v628_v0 = vor.u32 %v627_v31, %v624_v53  ;;  %v811_v6 = vrot.slane %v9611_v61, 5  ;;  %8618 = vmatprep.subr.bf16.mxu0 %v8938_v16  ;;  %v9639_v45 = vld [vmem:[#allocation2 + $0x78] sm:$0xf] }
  0x5c   : > { %v1056_v4 = vor.u32 %v1055_v60, %v1052_v59  ;;  %v7270_v7 = vcombine.low %v9550_v17, %v9550_v17  ;;  %v230_v8 = vsel %vm9516_vm2, 0, %v229_v43  ;;  %7891 = vmatpush3.bf16.msra.mxu1 %v8923_v48  ;;  %v981_v12 = vshrl.u32 %v7269_v56, 16  ;;  %8619 = vmatpush3.bf16.msra.mxu0 %v8938_v16  ;;  %v277_v39 = vld [vmem:[#allocation2 + $0xec] sm:$0x1] }
  0x5d   : > { %v1064_v9 = vor.u32 %v1063_v63, %v1060_v62  ;;  %v998_v10 = vshrl.u32 %v628_v0, 16  ;;  %v1001_v11 = vshll.u32 %v628_v0, 16  ;;  %231 = vst [vmem:[#allocation2 + $0x6c] sm:$0x1] %v230_v8  ;;  %7892 = vmatprep.subr.bf16.mxu1 %v8930_v54  ;;  %v1093_v13 = vshrl.u32 %v811_v6, 16 }
  0x5e   : > { %v1096_v14 = vshll.u32 %v811_v6, 16  ;;  %v984_v15 = vshll.u32 %v7269_v56, 16  ;;  %v989_v19 = vshrl.u32 %v7270_v7, 16  ;;  %v983_v24 = vrot.slane %v981_v12, 3 }
  0x5f   : > { %v9625_v22 = vsel %vm850_vm4, %v1056_v4, %v1064_v9  ;;  %v1000_v17 = vrot.slane %v998_v10, 3  ;;  %v1003_v23 = vrot.slane %v1001_v11, 4  ;;  %v9630_v36 = vrot.slane %v1093_v13, 3 }
  0x60   : > { %11866 = vst [vmem:[#allocation9_spill] sm:$0xff] %v9625_v22  ;;  %8587 = vmatmul.mubr.bf16.gmra.mxu1 %v9625_v22  ;;  %v8916_v35 = vld [vmem:[#allocation2 + $0x5c] ss:$0 sps:$4 sm:$0x11]   ;;  %v1098_v37 = vrot.slane %v1096_v14, 4  ;;  %v986_v38 = vrot.slane %v984_v15, 4  ;;  %v9634_v40 = vcombine.low %v9615_v1, %v9617_v33  ;;  %v9650_v62 = vcombine.low %v9627_v25, %v9639_v45 }
  0x61   : > { %v9636_v41 = vor.u32 %v1003_v23, %v1000_v17  ;;  %v991_v42 = vrot.slane %v989_v19, 3  ;;  %v992_v43 = vshll.u32 %v7270_v7, 16  ;;  %v630_v44 = vshrl.u32 %v9587_v20, 16  ;;  %7893 = vmatpush3.bf16.msra.mxu1 %v8931_v3 }
  0x62   : > { %v812_v47 = vrot.slane %v8916_v35, 5  ;;  %v1099_v48 = vor.u32 %v1098_v37, %v9630_v36  ;;  %v987_v49 = vor.u32 %v986_v38, %v983_v24  ;;  %v814_v50 = vrot.slane %v9634_v40, 5  ;;  %7894 = vmatprep.subr.bf16.mxu1 %v8939_v34  ;;  %v8947_v38 = vld [vmem:[#allocation3 + $0x50] sm:$0xff]  }
  0x63   : > { %1922 = vmatprep.mubr.bf16.mxu0 %v9636_v41  ;;  %v994_v51 = vrot.slane %v992_v43, 4  ;;  %v632_v52 = vrot.slane %v630_v44, 4  ;;  %v633_v53 = vshll.u32 %v9587_v20, 16  ;;  %v236_v31 = vsel %vm9516_vm2, 0, %v235_v21  ;;  %v318_v20 = vld [vmem:[%s9525_s25 + $0x50] sm:$0xff]  }
  0x64   : > { %v813_v54 = vsel %vm795_vm3, %v811_v6, %v812_v47  ;;  %v8920_v59 = vld [vmem:[#allocation2 + $0x6c] ss:$0 sps:$4 sm:$0x11]   ;;  %v1136_v60 = vshrl.u32 %v814_v50, 16  ;;  %237 = vst [vmem:[#allocation2 + $0x7c] sm:$0x1] %v236_v31  ;;  %v7271_v63 = vcombine.low %v375_v30, %v9571_v57  ;;  %v7272_v47 = vcombine.low %v9573_v58, %v9573_v58 }
  0x65   : > { %v1101_v0 = vshrl.u32 %v813_v54, 16  ;;  %v1104_v56 = vshll.u32 %v813_v54, 16  ;;  %v995_v3 = vor.u32 %v994_v51, %v991_v42  ;;  %v1139_v4 = vshll.u32 %v814_v50, 16  ;;  %7895 = vmatpush3.bf16.msra.mxu1 %v8940_v46  ;;  %351 = vst [vmem:[#allocation2 + $0xb4] sm:$0xff] %v318_v20   ;;  %v320_v57 = vld [vmem:[%s9525_s25 + $0x58] sm:$0xff]   ;;  %v8948_v42 = vld [vmem:[#allocation3 + $0x10] sm:$0xff]  }
  0x66   : > { %v815_v7 = vrot.slane %v8920_v59, 5  ;;  %v1138_v8 = vrot.slane %v1136_v60, 3  ;;  %v635_v9 = vrot.slane %v633_v53, 5  ;;  %v817_v6 = vrot.slane %v9650_v62, 5  ;;  %353 = vst [vmem:[#allocation2 + $0xc4] sm:$0xff] %v320_v57   ;;  %7896 = vmatprep.subr.bf16.mxu1 %v8947_v38  ;;  %v322_v58 = vld [vmem:[%s9525_s25 + $0x60] sm:$0xff]  }
  0x67   : > { %v1103_v10 = vrot.slane %v1101_v0, 3  ;;  %v1106_v11 = vrot.slane %v1104_v56, 4  ;;  %v9656_v12 = vsel %vm850_vm4, %v987_v49, %v995_v3  ;;  %v1141_v16 = vrot.slane %v1139_v4, 4  ;;  %v241_v30 = vld [vmem:[#allocation2 + $0x8c] sm:$0x1]  ;;  %355 = vst [vmem:[#allocation2 + $0xd4] sm:$0xff] %v322_v58  }
  0x68   : > { %1923 = vmatmul.mubr.bf16.gmra.mxu0 %v9656_v12  ;;  %v816_v13 = vsel %vm795_vm3, %v814_v50, %v815_v7  ;;  %v636_v14 = vor.u32 %v635_v9, %v632_v52  ;;  %v1179_v15 = vshrl.u32 %v817_v6, 16  ;;  %v1182_v19 = vshll.u32 %v817_v6, 16  ;;  %v9670_v49 = vld [vmem:[#allocation2 + $0x84] sm:$0xf]  ;;  %v9675_v0 = vld [vmem:[#allocation2 + $0x88] sm:$0xf] }
  0x69   : > { %v1107_v21 = vor.u32 %v1106_v11, %v1103_v10  ;;  %v1142_v17 = vor.u32 %v1141_v16, %v1138_v8  ;;  %v1144_v23 = vshrl.u32 %v816_v13, 16  ;;  %v1147_v24 = vshll.u32 %v816_v13, 16  ;;  %7897 = vmatpush3.bf16.msra.mxu1 %v8948_v42  ;;  %v247_v7 = vld [vmem:[#allocation2 + $0x9c] sm:$0x1]  ;;  %v324_v8 = vld [vmem:[%s9525_s25 + $0x68] sm:$0xff]   ;;  %v8955_v13 = vld [vmem:[#allocation3 + $0xa0] sm:$0xff]  }
  0x6a   : > { %v1041_v34 = vshrl.u32 %v636_v14, 16  ;;  %v1044_v35 = vshll.u32 %v636_v14, 16  ;;  %v9661_v36 = vrot.slane %v1179_v15, 3  ;;  %v9663_v37 = vrot.slane %v1182_v19, 4  ;;  %v9686_v16 = vld [vmem:[#allocation2 + $0x94] sm:$0xf]  ;;  %8620 = vmatprep.subr.bf16.mxu0 %v8955_v13 }
  0x6b   : > { %v9666_v43 = vsel %vm850_vm4, %v1099_v48, %v1107_v21  ;;  %v1146_v44 = vrot.slane %v1144_v23, 3  ;;  %v1149_v46 = vrot.slane %v1147_v24, 4  ;;  %v8925_v52 = vld [vmem:[#allocation2 + $0x7c] ss:$0 sps:$4 sm:$0x11]   ;;  %v1024_v31 = vshrl.u32 %v7271_v63, 16  ;;  %8621 = vmatpush3.bf16.msra.mxu0 %v8955_v13 }
  0x6c   : > { %11867 = vst [vmem:[#allocation10_spill] sm:$0xff] %v9666_v43  ;;  %8590 = vmatprep.mubr.bf16.mxu1 %v9666_v43  ;;  %v1043_v50 = vrot.slane %v1041_v34, 3  ;;  %v1046_v51 = vrot.slane %v1044_v35, 4  ;;  %v1185_v53 = vor.u32 %v9663_v37, %v9661_v36  ;;  %v1027_v54 = vshll.u32 %v7271_v63, 16  ;;  %v378_v57 = vld [vmem:[#allocation2 + $0x50] sm:$0x8] }
  0x6d   : > { %v1150_v48 = vor.u32 %v1149_v46, %v1146_v44  ;;  %v1032_v59 = vshrl.u32 %v7272_v47, 16  ;;  %v1035_v60 = vshll.u32 %v7272_v47, 16  ;;  %v818_v3 = vrot.slane %v8925_v52, 5  ;;  %357 = vst [vmem:[#allocation2 + $0xe4] sm:$0xff] %v324_v8   ;;  %v253_v23 = vld [vmem:[#allocation2 + $0xac] sm:$0x1] }
  0x6e   : > { %v9678_v56 = vor.u32 %v1046_v51, %v1043_v50  ;;  %v1026_v4 = vrot.slane %v1024_v31, 3  ;;  %v242_v20 = vsel %vm9516_vm2, 0, %v241_v30  ;;  %v1029_v63 = vrot.slane %v1027_v54, 4  ;;  %v9699_v38 = vld [vmem:[#allocation2 + $0xa4] sm:$0xf] }
  0x6f   : > { %v9684_v9 = vsel %vm850_vm4, %v1142_v17, %v1150_v48  ;;  %v1034_v10 = vrot.slane %v1032_v59, 3  ;;  %v1037_v11 = vrot.slane %v1035_v60, 4  ;;  %243 = vst [vmem:[#allocation2 + $0x8c] sm:$0x1] %v242_v20  ;;  %v819_v14 = vsel %vm795_vm3, %v817_v6, %v818_v3  ;;  %v9697_v17 = vld [vmem:[#allocation2 + $0x98] sm:$0xf] }
  0x70   : > { %11868 = vst [vmem:[#allocation11_spill] sm:$0xff] %v9684_v9  ;;  %8591 = vmatmul.mubr.bf16.gmra.mxu1 %v9684_v9  ;;  %1930 = vmatprep.mubr.bf16.mxu0 %v9678_v56  ;;  %v9693_v15 = vcombine.low %v9670_v49, %v9675_v0  ;;  %v638_v19 = vshrl.u32 %v9611_v61, 16  ;;  %v641_v21 = vshll.u32 %v9611_v61, 16  ;;  %v1187_v24 = vshrl.u32 %v819_v14, 16  ;;  %v9701_v42 = vld [vmem:[#allocation2 + $0xa8] sm:$0xf] }
  0x71   : > { %v1190_v30 = vshll.u32 %v819_v14, 16  ;;  %v1030_v34 = vor.u32 %v1029_v63, %v1026_v4  ;;  %v1038_v35 = vor.u32 %v1037_v11, %v1034_v10  ;;  %v9703_v6 = vld [vmem:[#allocation2 + $0xb4] sm:$0xf]  ;;  %v381_v44 = vld [vmem:[#allocation2 + $0x60] sm:$0x8]  ;;  %v248_v61 = vsel %vm9516_vm2, 0, %v247_v7 }
  0x72   : > { %v820_v46 = vrot.slane %v9693_v15, 5  ;;  %v640_v47 = vrot.slane %v638_v19, 4  ;;  %v643_v50 = vrot.slane %v641_v21, 5  ;;  %v9708_v51 = vld [vmem:[#allocation2 + $0xb8] sm:$0xf]  ;;  %v1189_v52 = vrot.slane %v1187_v24, 3 }
  0x73   : > { %v1192_v31 = vrot.slane %v1190_v30, 4  ;;  %v9711_v48 = vsel %vm850_vm4, %v1030_v34, %v1038_v35  ;;  %249 = vst [vmem:[#allocation2 + $0x9c] sm:$0x1] %v248_v61  ;;  %v9715_v54 = vcombine.low %v9686_v16, %v9697_v17  ;;  %v7273_v3 = vcombine.low %v378_v57, %v9589_v26  ;;  %v9724_v63 = vld [vmem:[#allocation2 + $0xc4] sm:$0xf]  ;;  %v8956_v24 = vld [vmem:[#allocation3 + $0x48] sm:$0xff]  }
  0x74   : > { %11869 = vst [vmem:[#allocation12_spill] sm:$0xff] %v9711_v48  ;;  %1931 = vmatmul.mubr.bf16.gmra.mxu0 %v9711_v48  ;;  %v1222_v59 = vshrl.u32 %v820_v46, 16  ;;  %v1225_v60 = vshll.u32 %v820_v46, 16  ;;  %v644_v58 = vor.u32 %v643_v50, %v640_v47  ;;  %v7274_v7 = vcombine.low %v9591_v27, %v9591_v27  ;;  %7898 = vmatprep.subr.bf16.mxu1 %v8956_v24 }
  0x75   : > { %v1193_v4 = vor.u32 %v1192_v31, %v1189_v52  ;;  %v823_v20 = vrot.slane %v9715_v54, 5  ;;  %v254_v8 = vsel %vm9516_vm2, 0, %v253_v23  ;;  %v9730_v13 = vcombine.low %v9699_v38, %v9701_v42  ;;  %v9745_v23 = vld [vmem:[#allocation2 + $0xc8] sm:$0xf] }
  0x76   : > { %v8929_v10 = vld [vmem:[#allocation2 + $0x8c] ss:$0 sps:$4 sm:$0x11]   ;;  %v9726_v11 = vrot.slane %v1222_v59, 3  ;;  %255 = vst [vmem:[#allocation2 + $0xac] sm:$0x1] %v254_v8  ;;  %v9734_v26 = vcombine.low %v9703_v6, %v9708_v51  ;;  %v9737_v57 = vcombine.low %v381_v44, %v9615_v1  ;;  %v9752_v31 = vcombine.low %v9617_v33, %v9617_v33 }
  0x77   : > { %v9743_v27 = vsel %vm850_vm4, %v1185_v53, %v1193_v4  ;;  %v1227_v14 = vrot.slane %v1225_v60, 4  ;;  %v1084_v19 = vshrl.u32 %v644_v58, 16  ;;  %v1087_v21 = vshll.u32 %v644_v58, 16  ;;  %v8957_v53 = vld [vmem:[#allocation3 + $0x8] sm:$0xff]   ;;  %v326_v8 = vld [vmem:[%s9525_s25 + $0x70] sm:$0xff]  }
  0x78   : > { %11870 = vst [vmem:[#allocation13_spill] sm:$0xff] %v9743_v27  ;;  %8594 = vmatprep.mubr.bf16.mxu1 %v9743_v27  ;;  %v821_v30 = vrot.slane %v8929_v10, 5  ;;  %v1265_v34 = vshrl.u32 %v823_v20, 16  ;;  %v1268_v35 = vshll.u32 %v823_v20, 16  ;;  %v1067_v47 = vshrl.u32 %v7273_v3, 16  ;;  %7899 = vmatpush3.bf16.msra.mxu1 %v8957_v53  ;;  %359 = vst [vmem:[#allocation2 + $0xf4] sm:$0xff] %v326_v8  }
  0x79   : > { %v1228_v1 = vor.u32 %v1227_v14, %v9726_v11  ;;  %v1086_v44 = vrot.slane %v1084_v19, 3  ;;  %v1089_v36 = vrot.slane %v1087_v21, 4  ;;  %v1070_v37 = vshll.u32 %v7273_v3, 16  ;;  %v8964_v53 = vld [vmem:[#allocation3 + $0x40] sm:$0xff]  }
  0x7a   : > { %v822_v50 = vsel %vm795_vm3, %v820_v46, %v821_v30  ;;  %v8933_v61 = vld [vmem:[#allocation2 + $0x9c] ss:$0 sps:$4 sm:$0x11]   ;;  %v1267_v52 = vrot.slane %v1265_v34, 3  ;;  %v9756_v59 = vcombine.low %v9724_v63, %v9745_v23  ;;  %v1270_v3 = vrot.slane %v1268_v35, 4  ;;  %7900 = vmatprep.subr.bf16.mxu1 %v8964_v53 }
  0x7b   : > { %v1230_v60 = vshrl.u32 %v822_v50, 16  ;;  %v1233_v58 = vshll.u32 %v822_v50, 16  ;;  %v9758_v4 = vor.u32 %v1089_v36, %v1086_v44  ;;  %v824_v10 = vrot.slane %v8933_v61, 5  ;;  %v328_v30 = vld [vmem:[%s9525_s25 + $0x78] sm:$0xff]  }
  0x7c   : > { %v1069_v46 = vrot.slane %v1067_v47, 3  ;;  %v1072_v11 = vrot.slane %v1070_v37, 4  ;;  %v1075_v14 = vshrl.u32 %v7274_v7, 16  ;;  %v1271_v21 = vor.u32 %v1270_v3, %v1267_v52  ;;  %361 = vst [vmem:[#allocation2 + $0x104] sm:$0xff] %v328_v30   ;;  %v259_v52 = vld [vmem:[#allocation2 + $0xbc] sm:$0x1] }
  0x7d   : > { %11871 = vst [vmem:[#allocation14_spill] sm:$0xff] %v9758_v4  ;;  %v1232_v19 = vrot.slane %v1230_v60, 3  ;;  %v1235_v33 = vrot.slane %v1233_v58, 4  ;;  %1938 = vmatprep.mubr.bf16.mxu0 %v9758_v4  ;;  %v1078_v24 = vshll.u32 %v7274_v7, 16  ;;  %v825_v34 = vsel %vm795_vm3, %v823_v20, %v824_v10  ;;  %v8965_v60 = vld [vmem:[#allocation3] sm:$0xff]  }
  0x7e   : > { %v1073_v50 = vor.u32 %v1072_v11, %v1069_v46  ;;  %v1077_v44 = vrot.slane %v1075_v14, 3  ;;  %v8937_v36 = vld [vmem:[#allocation2 + $0xac] ss:$0 sps:$4 sm:$0x11]   ;;  %v826_v35 = vrot.slane %v9730_v13, 5  ;;  %v1273_v37 = vshrl.u32 %v825_v34, 16  ;;  %7901 = vmatpush3.bf16.msra.mxu1 %v8965_v60 }
  0x7f   : > { %v1236_v47 = vor.u32 %v1235_v33, %v1232_v19  ;;  %v1276_v61 = vshll.u32 %v825_v34, 16  ;;  %v1080_v8 = vrot.slane %v1078_v24, 4  ;;  %v827_v58 = vrot.slane %v8937_v36, 5  ;;  %v8971_v24 = vld [vmem:[#allocation3 + $0x98] sm:$0xff]  }
  0x80   : > { %v1308_v27 = vshrl.u32 %v826_v35, 16  ;;  %v1311_v9 = vshll.u32 %v826_v35, 16  ;;  %v646_v7 = vshrl.u32 %v9634_v40, 16  ;;  %v1275_v3 = vrot.slane %v1273_v37, 3  ;;  %8622 = vmatprep.subr.bf16.mxu0 %v8971_v24 }
  0x81   : > { %v9767_v20 = vsel %vm850_vm4, %v1228_v1, %v1236_v47  ;;  %v1278_v10 = vrot.slane %v1276_v61, 4  ;;  %v1081_v46 = vor.u32 %v1080_v8, %v1077_v44  ;;  %v828_v11 = vsel %vm795_vm3, %v826_v35, %v827_v58  ;;  %8623 = vmatpush3.bf16.msra.mxu0 %v8971_v24  ;;  %v8977_v8 = vld [vmem:[#allocation3 + $0x90] sm:$0xff]  }
  0x82   : > { %11872 = vst [vmem:[#allocation15_spill] sm:$0xff] %v9767_v20  ;;  %8595 = vmatmul.mubr.bf16.gmra.mxu1 %v9767_v20  ;;  %v1310_v14 = vrot.slane %v1308_v27, 3  ;;  %v1313_v19 = vrot.slane %v1311_v9, 4  ;;  %v648_v33 = vrot.slane %v646_v7, 4  ;;  %v1316_v36 = vshrl.u32 %v828_v11, 16  ;;  %v9781_v9 = vld [vmem:[#allocation3 + $0x238] sm:$0xff]   ;;  %8624 = vmatprep.subr.bf16.mxu0 %v8977_v8 }
  0x83   : > { %v1279_v30 = vor.u32 %v1278_v10, %v1275_v3  ;;  %v9772_v34 = vsel %vm850_vm4, %v1073_v50, %v1081_v46  ;;  %v1319_v53 = vshll.u32 %v828_v11, 16  ;;  %v649_v44 = vshll.u32 %v9634_v40, 16  ;;  %8662 = vmatprep.subr.bf16.mxu1 %v9781_v9  ;;  %v271_v11 = vld [vmem:[#allocation2 + $0xdc] sm:$0x1] }
  0x84   : > { %11873 = vst [vmem:[#allocation16_spill] sm:$0xff] %v9772_v34  ;;  %1939 = vmatmul.mubr.bf16.gmra.mxu0 %v9772_v34  ;;  %v1314_v1 = vor.u32 %v1313_v19, %v1310_v14  ;;  %v260_v47 = vsel %vm9516_vm2, 0, %v259_v52  ;;  %v9779_v35 = vrot.slane %v9734_v26, 5  ;;  %v1318_v50 = vrot.slane %v1316_v36, 3  ;;  %v265_v52 = vld [vmem:[#allocation2 + $0xcc] sm:$0x1] }
  0x85   : > { %v9784_v27 = vsel %vm850_vm4, %v1271_v21, %v1279_v30  ;;  %v1321_v37 = vrot.slane %v1319_v53, 4  ;;  %261 = vst [vmem:[#allocation2 + $0xbc] sm:$0x1] %v260_v47  ;;  %v1110_v61 = vshrl.u32 %v9737_v57, 16  ;;  %v651_v40 = vrot.slane %v649_v44, 5  ;;  %8625 = vmatpush3.bf16.msra.mxu0 %v8977_v8 }
  0x86   : > { %11874 = vst [vmem:[#allocation17_spill] sm:$0xff] %v9784_v27  ;;  %8598 = vmatprep.mubr.bf16.mxu1 %v9784_v27  ;;  %v1351_v60 = vshrl.u32 %v9779_v35, 16  ;;  %v1354_v58 = vshll.u32 %v9779_v35, 16  ;;  %v1113_v7 = vshll.u32 %v9737_v57, 16  ;;  %v1118_v10 = vshrl.u32 %v9752_v31, 16  ;;  %v8983_v57 = vld [vmem:[#allocation3 + $0x88] sm:$0xff]  }
  0x87   : > { %v1322_v21 = vor.u32 %v1321_v37, %v1318_v50  ;;  %v1112_v3 = vrot.slane %v1110_v61, 3  ;;  %v1121_v46 = vshll.u32 %v9752_v31, 16  ;;  %v652_v14 = vor.u32 %v651_v40, %v648_v33  ;;  %v9798_v36 = vld [vmem:[#allocation2 + $0xd4] sm:$0xf]  ;;  %v9805_v31 = vld [vmem:[#allocation2 + $0xd8] sm:$0xf]  ;;  %8626 = vmatprep.subr.bf16.mxu0 %v8983_v57 }
  0x88   : > { %v9794_v19 = vrot.slane %v1351_v60, 3  ;;  %v9796_v24 = vrot.slane %v1354_v58, 4  ;;  %v1115_v30 = vrot.slane %v1113_v7, 4  ;;  %v1120_v44 = vrot.slane %v1118_v10, 3  ;;  %v384_v60 = vld [vmem:[#allocation2 + $0x70] sm:$0x8] }
  0x89   : > { %v9801_v53 = vsel %vm850_vm4, %v1314_v1, %v1322_v21  ;;  %v1123_v47 = vrot.slane %v1121_v46, 4  ;;  %v266_v50 = vsel %vm9516_vm2, 0, %v265_v52  ;;  %v1127_v33 = vshrl.u32 %v652_v14, 16  ;;  %v8989_v21 = vld [vmem:[#allocation3 + $0x80] sm:$0xff]   ;;  %8627 = vmatpush3.bf16.msra.mxu0 %v8983_v57 }
  0x8a   : > { %11875 = vst [vmem:[#allocation18_spill] sm:$0xff] %v9801_v53  ;;  %8599 = vmatmul.mubr.bf16.gmra.mxu1 %v9801_v53  ;;  %v1130_v37 = vshll.u32 %v652_v14, 16  ;;  %v1116_v40 = vor.u32 %v1115_v30, %v1112_v3  ;;  %267 = vst [vmem:[#allocation2 + $0xcc] sm:$0x1] %v266_v50  ;;  %v832_v58 = vrot.slane %v9756_v59, 5  ;;  %v654_v7 = vshrl.u32 %v9650_v62, 16  ;;  %8628 = vmatprep.subr.bf16.mxu0 %v8989_v21 }
  0x8b   : > { %v1124_v1 = vor.u32 %v1123_v47, %v1120_v44  ;;  %v657_v52 = vshll.u32 %v9650_v62, 16  ;;  %v1129_v8 = vrot.slane %v1127_v33, 3  ;;  %v272_v46 = vsel %vm9516_vm2, 0, %v271_v11  ;;  %v9819_v3 = vld [vmem:[#allocation2 + $0xe4] sm:$0xf] }
  0x8c   : > { %v1132_v10 = vrot.slane %v1130_v37, 4  ;;  %v9817_v14 = vcombine.low %v9798_v36, %v9805_v31  ;;  %v9821_v30 = vld [vmem:[#allocation2 + $0xe8] sm:$0xf]  ;;  %v8942_v44 = vld [vmem:[#allocation2 + $0xbc] ss:$0 sps:$4 sm:$0x11]   ;;  %v7277_v53 = vcombine.low %v384_v60, %v9627_v25 }
  0x8d   : > { %v9824_v47 = vsel %vm850_vm4, %v1116_v40, %v1124_v1  ;;  %v1394_v50 = vshrl.u32 %v832_v58, 16  ;;  %v1397_v62 = vshll.u32 %v832_v58, 16  ;;  %v656_v61 = vrot.slane %v654_v7, 4  ;;  %273 = vst [vmem:[#allocation2 + $0xdc] sm:$0x1] %v272_v46  ;;  %v8994_v1 = vld [vmem:[#allocation3 + $0x1f8] sm:$0xff]   ;;  %8629 = vmatpush3.bf16.msra.mxu0 %v8989_v21 }
  0x8e   : > { %11876 = vst [vmem:[#allocation19_spill] sm:$0xff] %v9824_v47  ;;  %v9826_v33 = vor.u32 %v1132_v10, %v1129_v8  ;;  %v659_v11 = vrot.slane %v657_v52, 5  ;;  %v835_v37 = vrot.slane %v9817_v14, 5  ;;  %v830_v27 = vrot.slane %v8942_v44, 5  ;;  %8022 = vmatprep.subr.bf16.mxu0 %v8994_v1 }
  0x8f   : > { %v9830_v20 = vrot.slane %v1394_v50, 3  ;;  %v9832_v43 = vrot.slane %v1397_v62, 4  ;;  %v7278_v40 = vcombine.low %v9639_v45, %v9639_v45  ;;  %v1153_v52 = vshrl.u32 %v7277_v53, 16 }
  0x90   : > { %11877 = vst [vmem:[#allocation20_spill] sm:$0xff] %v9826_v33  ;;  %1946 = vmatprep.mubr.bf16.mxu0 %v9826_v33  ;;  %v660_v57 = vor.u32 %v659_v11, %v656_v61  ;;  %v1437_v7 = vshrl.u32 %v835_v37, 16  ;;  %v1440_v8 = vshll.u32 %v835_v37, 16  ;;  %v831_v10 = vsel %vm795_vm3, %v9779_v35, %v830_v27 }
  0x91   : > { %1947 = vmatmul.mubr.bf16.gmra.mxu0 %v9824_v47  ;;  %v8946_v25 = vld [vmem:[#allocation2 + $0xcc] ss:$0 sps:$4 sm:$0x11]   ;;  %v1400_v60 = vor.u32 %v9832_v43, %v9830_v20  ;;  %v1156_v46 = vshll.u32 %v7277_v53, 16  ;;  %v9844_v45 = vcombine.low %v9819_v3, %v9821_v30  ;;  %v1359_v44 = vshrl.u32 %v831_v10, 16 }
  0x92   : > { %v1362_v50 = vshll.u32 %v831_v10, 16  ;;  %v1170_v61 = vshrl.u32 %v660_v57, 16  ;;  %v1173_v62 = vshll.u32 %v660_v57, 16  ;;  %v833_v11 = vrot.slane %v8946_v25, 5 }
  0x93   : > { %v9846_v22 = vrot.slane %v1437_v7, 3  ;;  %v9848_v35 = vrot.slane %v1440_v8, 4  ;;  %v1155_v27 = vrot.slane %v1153_v52, 3  ;;  %v1361_v5 = vrot.slane %v1359_v44, 3 }
  0x94   : > { %v1364_v43 = vrot.slane %v1362_v50, 4  ;;  %v1172_v20 = vrot.slane %v1170_v61, 3  ;;  %v1175_v53 = vrot.slane %v1173_v62, 4  ;;  %v834_v28 = vsel %vm795_vm3, %v832_v58, %v833_v11  ;;  %v8950_v47 = vld [vmem:[#allocation2 + $0xdc] ss:$0 sps:$4 sm:$0x11]  }
  0x95   : > { %v1443_v10 = vor.u32 %v9848_v35, %v9846_v22  ;;  %v1158_v57 = vrot.slane %v1156_v46, 4  ;;  %v1161_v21 = vshrl.u32 %v7278_v40, 16  ;;  %v1402_v7 = vshrl.u32 %v834_v28, 16  ;;  %v9870_v46 = vld [vmem:[#allocation2 + $0xf8] sm:$0xf] }
  0x96   : > { %v1365_v25 = vor.u32 %v1364_v43, %v1361_v5  ;;  %v1405_v33 = vshll.u32 %v834_v28, 16  ;;  %v9853_v8 = vor.u32 %v1175_v53, %v1172_v20  ;;  %v836_v52 = vrot.slane %v8950_v47, 5  ;;  %v283_v28 = vld [vmem:[#allocation2 + $0xfc] sm:$0x1]  ;;  %v289_v43 = vld [vmem:[#allocation2 + $0x10c] sm:$0x1] }
  0x97   : > { %v1159_v34 = vor.u32 %v1158_v57, %v1155_v27  ;;  %v1163_v1 = vrot.slane %v1161_v21, 3  ;;  %v1164_v44 = vshll.u32 %v7278_v40, 16  ;;  %v11879_v50 = vor.u32 %v9796_v24, %v9794_v19  ;;  %v9868_v24 = vld [vmem:[#allocation2 + $0xf4] sm:$0xf]  ;;  %v9873_v20 = vld [vmem:[#allocation2 + $0x104] sm:$0xf] }
  0x98   : > { %11878 = vst [vmem:[#allocation21_spill] sm:$0xff] %v9853_v8  ;;  %v1404_v61 = vrot.slane %v1402_v7, 3  ;;  %v1407_v62 = vrot.slane %v1405_v33, 4  ;;  %1954 = vmatprep.mubr.bf16.mxu0 %v9853_v8  ;;  %v278_v5 = vsel %vm9516_vm2, 0, %v277_v39  ;;  %v837_v22 = vsel %vm795_vm3, %v835_v37, %v836_v52  ;;  %v387_v33 = vld [vmem:[#allocation2 + $0x80] sm:$0x8] }
  0x99   : > { %v9859_v58 = vsel %vm850_vm4, %v11879_v50, %v1365_v25  ;;  %v1166_v47 = vrot.slane %v1164_v44, 4  ;;  %279 = vst [vmem:[#allocation2 + $0xec] sm:$0x1] %v278_v5  ;;  %v838_v40 = vrot.slane %v9844_v45, 5  ;;  %v662_v19 = vshrl.u32 %v9693_v15, 16 }
  0x9a   : > { %11880 = vst [vmem:[#allocation22_spill] sm:$0xff] %v9859_v58  ;;  %8602 = vmatprep.mubr.bf16.mxu1 %v9859_v58  ;;  %v1408_v11 = vor.u32 %v1407_v62, %v1404_v61  ;;  %v1445_v35 = vshrl.u32 %v837_v22, 16  ;;  %v1448_v27 = vshll.u32 %v837_v22, 16  ;;  %v665_v39 = vshll.u32 %v9693_v15, 16  ;;  %v9875_v37 = vld [vmem:[#allocation2 + $0x108] sm:$0xf] }
  0x9b   : > { %v1167_v53 = vor.u32 %v1166_v47, %v1163_v1  ;;  %v1480_v57 = vshrl.u32 %v838_v40, 16  ;;  %v1483_v21 = vshll.u32 %v838_v40, 16  ;;  %v664_v25 = vrot.slane %v662_v19, 4  ;;  %v9877_v7 = vld [vmem:[#allocation2 + $0x4] sm:$0xf] }
  0x9c   : > { %v9879_v52 = vld [vmem:[#allocation2 + $0x8] sm:$0xf]  ;;  %v9882_v44 = vsel %vm850_vm4, %v1400_v60, %v1408_v11  ;;  %v1447_v50 = vrot.slane %v1445_v35, 3  ;;  %v1450_v61 = vrot.slane %v1448_v27, 4  ;;  %v667_v62 = vrot.slane %v665_v39, 5 }
  0x9d   : > { %11881 = vst [vmem:[#allocation23_spill] sm:$0xff] %v9882_v44  ;;  %8603 = vmatmul.mubr.bf16.gmra.mxu1 %v9882_v44  ;;  %v9886_v15 = vsel %vm850_vm4, %v1159_v34, %v1167_v53  ;;  %v9888_v5 = vrot.slane %v1480_v57, 3  ;;  %v9890_v1 = vrot.slane %v1483_v21, 4  ;;  %v284_v22 = vsel %vm9516_vm2, 0, %v283_v28  ;;  %v390_v47 = vld [vmem:[#allocation2 + $0x90] sm:$0x8] }
  0x9e   : > { %11882 = vst [vmem:[#allocation24_spill] sm:$0xff] %v9886_v15  ;;  %v1451_v19 = vor.u32 %v1450_v61, %v1447_v50  ;;  %1955 = vmatmul.mubr.bf16.gmra.mxu0 %v9886_v15  ;;  %v668_v60 = vor.u32 %v667_v62, %v664_v25  ;;  %285 = vst [vmem:[#allocation2 + $0xfc] sm:$0x1] %v284_v22  ;;  %v9897_v11 = vcombine.low %v9868_v24, %v9870_v46 }
  0x9f   : > { %v7279_v34 = vcombine.low %v387_v33, %v9670_v49  ;;  %v1486_v35 = vor.u32 %v9890_v1, %v9888_v5  ;;  %v7280_v27 = vcombine.low %v9675_v0, %v9675_v0  ;;  %v290_v28 = vsel %vm9516_vm2, 0, %v289_v43 }
  0xa0   : > { %v9908_v39 = vcombine.low %v9873_v20, %v9875_v37  ;;  %v9911_v53 = vsel %vm850_vm4, %v1443_v10, %v1451_v19  ;;  %v8954_v57 = vld [vmem:[#allocation2 + $0xec] ss:$0 sps:$4 sm:$0x11]   ;;  %v1213_v21 = vshrl.u32 %v668_v60, 16  ;;  %291 = vst [vmem:[#allocation2 + $0x10c] sm:$0x1] %v290_v28  ;;  %v9915_v49 = vcombine.low %v9877_v7, %v9879_v52 }
  0xa1   : > { %11883 = vst [vmem:[#allocation25_spill] sm:$0xff] %v9911_v53  ;;  %v9918_v33 = vcombine.low %v390_v47, %v9686_v16  ;;  %8606 = vmatprep.mubr.bf16.mxu1 %v9911_v53  ;;  %v1216_v0 = vshll.u32 %v668_v60, 16  ;;  %v841_v43 = vrot.slane %v9897_v11, 5  ;;  %v1196_v25 = vshrl.u32 %v7279_v34, 16 }
  0xa2   : > { %v1199_v50 = vshll.u32 %v7279_v34, 16  ;;  %v839_v61 = vrot.slane %v8954_v57, 5  ;;  %v1215_v10 = vrot.slane %v1213_v21, 3  ;;  %v1204_v62 = vshrl.u32 %v7280_v27, 16 }
  0xa3   : > { %v1207_v5 = vshll.u32 %v7280_v27, 16  ;;  %v1218_v1 = vrot.slane %v1216_v0, 4  ;;  %v1523_v22 = vshrl.u32 %v841_v43, 16  ;;  %v1526_v19 = vshll.u32 %v841_v43, 16 }
  0xa4   : > { %v1198_v28 = vrot.slane %v1196_v25, 3  ;;  %v840_v44 = vsel %vm795_vm3, %v838_v40, %v839_v61  ;;  %v1201_v58 = vrot.slane %v1199_v50, 4  ;;  %v1206_v16 = vrot.slane %v1204_v62, 3 }
  0xa5   : > { %v1209_v47 = vrot.slane %v1207_v5, 4  ;;  %v1488_v15 = vshrl.u32 %v840_v44, 16  ;;  %v1491_v53 = vshll.u32 %v840_v44, 16  ;;  %v9923_v60 = vor.u32 %v1218_v1, %v1215_v10  ;;  %v8959_v4 = vld [vmem:[#allocation2 + $0xfc] ss:$0 sps:$4 sm:$0x11]  }
  0xa6   : > { %v1525_v8 = vrot.slane %v1523_v22, 3  ;;  %v1528_v34 = vrot.slane %v1526_v19, 4  ;;  %v1202_v57 = vor.u32 %v1201_v58, %v1198_v28  ;;  %v844_v27 = vrot.slane %v9908_v39, 5 }
  0xa7   : > { %v1210_v21 = vor.u32 %v1209_v47, %v1206_v16  ;;  %v1490_v0 = vrot.slane %v1488_v15, 3  ;;  %v1493_v48 = vrot.slane %v1491_v53, 4  ;;  %1962 = vmatprep.mubr.bf16.mxu0 %v9923_v60  ;;  %v670_v40 = vshrl.u32 %v9715_v54, 16  ;;  %v8963_v10 = vld [vmem:[#allocation2 + $0x10c] ss:$0 sps:$4 sm:$0x11]  }
  0xa8   : > { %v673_v25 = vshll.u32 %v9715_v54, 16  ;;  %v842_v50 = vrot.slane %v8959_v4, 5  ;;  %v1529_v61 = vor.u32 %v1528_v34, %v1525_v8  ;;  %v1662_v62 = vshrl.u32 %v844_v27, 16 }
  0xa9   : > { %v9930_v44 = vsel %vm850_vm4, %v1202_v57, %v1210_v21  ;;  %v1494_v5 = vor.u32 %v1493_v48, %v1490_v0  ;;  %v1665_v58 = vshll.u32 %v844_v27, 16  ;;  %v672_v1 = vrot.slane %v670_v40, 4 }
  0xaa   : > { %1963 = vmatmul.mubr.bf16.gmra.mxu0 %v9930_v44  ;;  %v675_v15 = vrot.slane %v673_v25, 5  ;;  %v843_v53 = vsel %vm795_vm3, %v841_v43, %v842_v50  ;;  %v845_v22 = vrot.slane %v8963_v10, 5  ;;  %v1664_v19 = vrot.slane %v1662_v62, 3  ;;  %v363_v62 = vld [vmem:[#allocation2] sm:$0x8] }
  0xab   : > { %v598_v28 = vshrl.u32 %v9915_v49, 16  ;;  %v9936_v54 = vsel %vm850_vm4, %v1486_v35, %v1494_v5  ;;  %v1531_v4 = vshrl.u32 %v843_v53, 16  ;;  %v1534_v8 = vshll.u32 %v843_v53, 16 }
  0xac   : > { %v1667_v16 = vrot.slane %v1665_v58, 4  ;;  %8607 = vmatmul.mubr.bf16.gmra.mxu1 %v9936_v54  ;;  %v846_v48 = vsel %vm795_vm3, %v844_v27, %v845_v22  ;;  %v676_v47 = vor.u32 %v675_v15, %v672_v1  ;;  %v601_v57 = vshll.u32 %v9915_v49, 16 }
  0xad   : > { %v600_v34 = vrot.slane %v598_v28, 4  ;;  %v1533_v21 = vrot.slane %v1531_v4, 3  ;;  %v1536_v43 = vrot.slane %v1534_v8, 4  ;;  %v1670_v40 = vshrl.u32 %v846_v48, 16 }
  0xae   : > { %v1668_v0 = vor.u32 %v1667_v16, %v1664_v19  ;;  %v1673_v25 = vshll.u32 %v846_v48, 16  ;;  %v1256_v50 = vshrl.u32 %v676_v47, 16  ;;  %v1259_v10 = vshll.u32 %v676_v47, 16 }
  0xaf   : > { %v603_v35 = vrot.slane %v601_v57, 5  ;;  %v1537_v5 = vor.u32 %v1536_v43, %v1533_v21  ;;  %v1672_v53 = vrot.slane %v1670_v40, 3  ;;  %v7282_v58 = vcombine.low %v9697_v17, %v9697_v17 }
  0xb0   : > { %v1239_v27 = vshrl.u32 %v9918_v33, 16  ;;  %v1675_v1 = vrot.slane %v1673_v25, 4  ;;  %v1258_v15 = vrot.slane %v1256_v50, 3  ;;  %v1261_v22 = vrot.slane %v1259_v10, 4 }
  0xb1   : > { %v604_v28 = vor.u32 %v603_v35, %v600_v34  ;;  %v9945_v4 = vsel %vm850_vm4, %v1529_v61, %v1537_v5  ;;  %v1242_v8 = vshll.u32 %v9918_v33, 16  ;;  %v1247_v16 = vshrl.u32 %v7282_v58, 16  ;;  %v393_v34 = vld [vmem:[#allocation2 + $0xa0] sm:$0x8] }
  0xb2   : > { %v1241_v19 = vrot.slane %v1239_v27, 3  ;;  %8610 = vmatprep.mubr.bf16.mxu1 %v9945_v4  ;;  %v1676_v48 = vor.u32 %v1675_v1, %v1672_v53  ;;  %v9949_v47 = vor.u32 %v1261_v22, %v1258_v15  ;;  %v1250_v40 = vshll.u32 %v7282_v58, 16 }
  0xb3   : > { %v869_v57 = vshrl.u32 %v604_v28, 16  ;;  %v872_v17 = vshll.u32 %v604_v28, 16  ;;  %v1244_v21 = vrot.slane %v1242_v8, 4  ;;  %v1249_v43 = vrot.slane %v1247_v16, 3 }
  0xb4   : > { %v7263_v25 = vcombine.low %v363_v62, %v9877_v7  ;;  %v9953_v61 = vsel %vm850_vm4, %v1668_v0, %v1676_v48  ;;  %1970 = vmatprep.mubr.bf16.mxu0 %v9949_v47  ;;  %v7264_v10 = vcombine.low %v9879_v52, %v9879_v52  ;;  %v1252_v5 = vrot.slane %v1250_v40, 4  ;;  %v396_v40 = vld [vmem:[#allocation2 + $0xb0] sm:$0x8] }
  0xb5   : > { %v871_v33 = vrot.slane %v869_v57, 3  ;;  %v874_v50 = vrot.slane %v872_v17, 4  ;;  %8611 = vmatmul.mubr.bf16.gmra.mxu1 %v9953_v61  ;;  %v1245_v35 = vor.u32 %v1244_v21, %v1241_v19  ;;  %v678_v62 = vshrl.u32 %v9730_v13, 16 }
  0xb6   : > { %v852_v53 = vshrl.u32 %v7263_v25, 16  ;;  %v855_v27 = vshll.u32 %v7263_v25, 16  ;;  %v860_v1 = vshrl.u32 %v7264_v10, 16  ;;  %v863_v7 = vshll.u32 %v7264_v10, 16 }
  0xb7   : > { %v875_v58 = vor.u32 %v874_v50, %v871_v33  ;;  %v1253_v0 = vor.u32 %v1252_v5, %v1249_v43  ;;  %v681_v28 = vshll.u32 %v9730_v13, 16  ;;  %v680_v52 = vrot.slane %v678_v62, 4 }
  0xb8   : > { %v854_v15 = vrot.slane %v852_v53, 3  ;;  %v857_v22 = vrot.slane %v855_v27, 4  ;;  %v862_v8 = vrot.slane %v860_v1, 3  ;;  %v865_v16 = vrot.slane %v863_v7, 4 }
  0xb9   : > { %2372 = vmatprep.mubr.bf16.mxu1 %v875_v58  ;;  %v7283_v48 = vcombine.low %v393_v34, %v9699_v38  ;;  %v9963_v19 = vsel %vm850_vm4, %v1245_v35, %v1253_v0  ;;  %v683_v17 = vrot.slane %v681_v28, 5  ;;  %v7284_v21 = vcombine.low %v9701_v42, %v9701_v42  ;;  %v8978_v34 = vld [vmem:[#allocation3 + $0x230] sm:$0xff]   ;;  %v399_v28 = vld [vmem:[#allocation2 + $0xc0] sm:$0x8] }
  0xba   : > { %v858_v57 = vor.u32 %v857_v22, %v854_v15  ;;  %1971 = vmatmul.mubr.bf16.gmra.mxu0 %v9963_v19  ;;  %v866_v43 = vor.u32 %v865_v16, %v862_v8  ;;  %v686_v33 = vshrl.u32 %v9734_v26, 16  ;;  %v689_v38 = vshll.u32 %v9734_v26, 16 }
  0xbb   : > { %v1282_v25 = vshrl.u32 %v7283_v48, 16  ;;  %v1285_v13 = vshll.u32 %v7283_v48, 16  ;;  %v684_v50 = vor.u32 %v683_v17, %v680_v52  ;;  %v1290_v10 = vshrl.u32 %v7284_v21, 16 }
  0xbc   : > { %v1293_v5 = vshll.u32 %v7284_v21, 16  ;;  %v867_v35 = vsel %vm850_vm4, %v858_v57, %v866_v43  ;;  %v688_v58 = vrot.slane %v686_v33, 4  ;;  %v691_v15 = vrot.slane %v689_v38, 5  ;;  %v8984_v57 = vld [vmem:[#allocation3 + $0x228] sm:$0xff]  }
  0xbd   : > { %v1284_v53 = vrot.slane %v1282_v25, 3  ;;  %v1287_v27 = vrot.slane %v1285_v13, 4  ;;  %2373 = vmatmul.mubr.bf16.vlgmr.msra.gmra.mxu1 %v867_v35  ;;  %v1299_v42 = vshrl.u32 %v684_v50, 16  ;;  %v1302_v1 = vshll.u32 %v684_v50, 16 }
  0xbe   : > { %v1292_v7 = vrot.slane %v1290_v10, 3  ;;  %v1295_v62 = vrot.slane %v1293_v5, 4  ;;  %8663 = vmatpush3.bf16.msra.mxu1 %v9781_v9  ;;  %2380 = vmatprep.mubr.bf16.mxu1 %v9562_v32  ;;  %v7285_v22 = vcombine.low %v396_v40, %v9703_v6  ;;  %v7286_v26 = vcombine.low %v9708_v51, %v9708_v51 }
  0xbf   : > { %v1288_v0 = vor.u32 %v1287_v27, %v1284_v53  ;;  %v1301_v8 = vrot.slane %v1299_v42, 3  ;;  %v1304_v16 = vrot.slane %v1302_v1, 4  ;;  %8664 = vmatprep.subr.bf16.mxu1 %v8978_v34  ;;  %v694_v48 = vshrl.u32 %v9756_v59, 16  ;;  %v8990_v53 = vld [vmem:[#allocation3 + $0x220] sm:$0xff]  }
  0xc0   : > { %v1296_v52 = vor.u32 %v1295_v62, %v1292_v7  ;;  %v692_v17 = vor.u32 %v691_v15, %v688_v58  ;;  %v1325_v21 = vshrl.u32 %v7285_v22, 16  ;;  %v1328_v9 = vshll.u32 %v7285_v22, 16  ;;  %v402_v7 = vld [vmem:[#allocation2 + $0xd0] sm:$0x8] }
  0xc1   : > { %v1333_v43 = vshrl.u32 %v7286_v26, 16  ;;  %v9977_v32 = vor.u32 %v1304_v16, %v1301_v8  ;;  %v1336_v6 = vshll.u32 %v7286_v26, 16  ;;  %v696_v40 = vrot.slane %v694_v48, 4 }
  0xc2   : > { %v9980_v25 = vsel %vm850_vm4, %v1288_v0, %v1296_v52  ;;  %v1342_v51 = vshrl.u32 %v692_v17, 16  ;;  %v1345_v13 = vshll.u32 %v692_v17, 16  ;;  %v1327_v33 = vrot.slane %v1325_v21, 3  ;;  %8665 = vmatpush3.bf16.msra.mxu1 %v8978_v34 }
  0xc3   : > { %v1330_v50 = vrot.slane %v1328_v9, 4  ;;  %1978 = vmatprep.mubr.bf16.mxu0 %v9977_v32  ;;  %v1335_v10 = vrot.slane %v1333_v43, 3  ;;  %v1338_v5 = vrot.slane %v1336_v6, 4  ;;  %v697_v38 = vshll.u32 %v9756_v59, 16  ;;  %8666 = vmatprep.subr.bf16.mxu1 %v8984_v57 }
  0xc4   : > { %v7287_v35 = vcombine.low %v399_v28, %v9724_v63  ;;  %1979 = vmatmul.mubr.bf16.gmra.mxu0 %v9980_v25  ;;  %v1344_v27 = vrot.slane %v1342_v51, 3  ;;  %v1347_v58 = vrot.slane %v1345_v13, 4  ;;  %v7288_v1 = vcombine.low %v9745_v23, %v9745_v23  ;;  %v8996_v28 = vld [vmem:[#allocation3 + $0x218] sm:$0xff]   ;;  %v9001_v51 = vld [vmem:[#allocation3 + $0x210] sm:$0xff]  }
  0xc5   : > { %v1331_v42 = vor.u32 %v1330_v50, %v1327_v33  ;;  %2381 = vmatmul.mubr.bf16.gmra.mxu1 %v9556_v29  ;;  %v1339_v34 = vor.u32 %v1338_v5, %v1335_v10  ;;  %v699_v62 = vrot.slane %v697_v38, 5  ;;  %v702_v26 = vshrl.u32 %v9817_v14, 16  ;;  %v405_v10 = vld [vmem:[#allocation2 + $0xe0] sm:$0x8] }
  0xc6   : > { %v1368_v0 = vshrl.u32 %v7287_v35, 16  ;;  %v1371_v15 = vshll.u32 %v7287_v35, 16  ;;  %v9989_v59 = vor.u32 %v1347_v58, %v1344_v27  ;;  %2388 = vmatprep.mubr.bf16.mxu1 %v9583_v2  ;;  %v1376_v63 = vshrl.u32 %v7288_v1, 16  ;;  %8667 = vmatpush3.bf16.msra.mxu1 %v8984_v57 }
  0xc7   : > { %v1379_v22 = vshll.u32 %v7288_v1, 16  ;;  %v9994_v8 = vsel %vm850_vm4, %v1331_v42, %v1339_v34  ;;  %v700_v23 = vor.u32 %v699_v62, %v696_v40  ;;  %8668 = vmatprep.subr.bf16.mxu1 %v8990_v53  ;;  %v704_v17 = vrot.slane %v702_v26, 4 }
  0xc8   : > { %11884 = vst [vmem:[#allocation26_spill] sm:$0xff] %v9994_v8  ;;  %v1370_v16 = vrot.slane %v1368_v0, 3  ;;  %v1373_v29 = vrot.slane %v1371_v15, 4  ;;  %1986 = vmatprep.mubr.bf16.mxu0 %v9989_v59  ;;  %v1378_v52 = vrot.slane %v1376_v63, 3  ;;  %v705_v21 = vshll.u32 %v9817_v14, 16 }
  0xc9   : > { %v1381_v48 = vrot.slane %v1379_v22, 4  ;;  %v1385_v9 = vshrl.u32 %v700_v23, 16  ;;  %v1388_v43 = vshll.u32 %v700_v23, 16  ;;  %v7289_v57 = vcombine.low %v402_v7, %v9798_v36  ;;  %v9006_v7 = vld [vmem:[#allocation3 + $0x208] sm:$0xff]   ;;  %v408_v23 = vld [vmem:[#allocation2 + $0xf0] sm:$0x8] }
  0xca   : > { %v1374_v6 = vor.u32 %v1373_v29, %v1370_v16  ;;  %v707_v33 = vrot.slane %v705_v21, 5  ;;  %v7290_v40 = vcombine.low %v9805_v31, %v9805_v31  ;;  %v710_v50 = vshrl.u32 %v9844_v45, 16  ;;  %8669 = vmatpush3.bf16.msra.mxu1 %v8990_v53 }
  0xcb   : > { %v1382_v13 = vor.u32 %v1381_v48, %v1378_v52  ;;  %v1387_v5 = vrot.slane %v1385_v9, 3  ;;  %v1390_v38 = vrot.slane %v1388_v43, 4  ;;  %v1411_v35 = vshrl.u32 %v7289_v57, 16  ;;  %8670 = vmatprep.subr.bf16.mxu1 %v8996_v28 }
  0xcc   : > { %v1414_v27 = vshll.u32 %v7289_v57, 16  ;;  %1987 = vmatmul.mubr.bf16.gmra.mxu0 %v9994_v8  ;;  %v708_v14 = vor.u32 %v707_v33, %v704_v17  ;;  %v1419_v58 = vshrl.u32 %v7290_v40, 16  ;;  %v1422_v36 = vshll.u32 %v7290_v40, 16  ;;  %v9011_v33 = vld [vmem:[#allocation3 + $0x200] sm:$0xff]  }
  0xcd   : > { %2389 = vmatmul.mubr.bf16.gmra.mxu1 %v9607_v55  ;;  %v10004_v42 = vor.u32 %v1390_v38, %v1387_v5  ;;  %v10007_v31 = vsel %vm850_vm4, %v1374_v6, %v1382_v13  ;;  %v1413_v1 = vrot.slane %v1411_v35, 3  ;;  %v712_v0 = vrot.slane %v710_v50, 4 }
  0xce   : > { %11886 = vst [vmem:[#allocation28_spill] sm:$0xff] %v10007_v31  ;;  %2396 = vmatprep.mubr.bf16.mxu1 %v9636_v41  ;;  %v1428_v53 = vshrl.u32 %v708_v14, 16  ;;  %v1431_v34 = vshll.u32 %v708_v14, 16  ;;  %v1416_v62 = vrot.slane %v1414_v27, 4  ;;  %8671 = vmatpush3.bf16.msra.mxu1 %v8996_v28  ;;  %v1421_v15 = vrot.slane %v1419_v58, 3 }
  0xcf   : > { %11885 = vst [vmem:[#allocation27_spill] sm:$0xff] %v10004_v42  ;;  %1994 = vmatprep.mubr.bf16.mxu0 %v10004_v42  ;;  %v713_v63 = vshll.u32 %v9844_v45, 16  ;;  %v7291_v22 = vcombine.low %v405_v10, %v9819_v3  ;;  %v7292_v26 = vcombine.low %v9821_v30, %v9821_v30  ;;  %8672 = vmatprep.subr.bf16.mxu1 %v9001_v51  ;;  %v1424_v52 = vrot.slane %v1422_v36, 4  ;;  %v411_v36 = vld [vmem:[#allocation2 + $0x100] sm:$0x8] }
  0xd0   : > { %v1430_v16 = vrot.slane %v1428_v53, 3  ;;  %v1433_v29 = vrot.slane %v1431_v34, 4  ;;  %v718_v48 = vshrl.u32 %v9897_v11, 16  ;;  %v1417_v6 = vor.u32 %v1416_v62, %v1413_v1 }
  0xd1   : > { %v715_v17 = vrot.slane %v713_v63, 5  ;;  %v1454_v21 = vshrl.u32 %v7291_v22, 16  ;;  %v1457_v28 = vshll.u32 %v7291_v22, 16  ;;  %v1462_v9 = vshrl.u32 %v7292_v26, 16 }
  0xd2   : > { %v10016_v43 = vor.u32 %v1433_v29, %v1430_v16  ;;  %v1465_v45 = vshll.u32 %v7292_v26, 16  ;;  %8673 = vmatpush3.bf16.msra.mxu1 %v9001_v51  ;;  %v720_v13 = vrot.slane %v718_v48, 4  ;;  %v1425_v40 = vor.u32 %v1424_v52, %v1421_v15 }
  0xd3   : > { %v716_v3 = vor.u32 %v715_v17, %v712_v0  ;;  %v10018_v57 = vrot.slane %v1454_v21, 3  ;;  %v10020_v30 = vrot.slane %v1457_v28, 4  ;;  %8674 = vmatprep.subr.bf16.mxu1 %v9006_v7  ;;  %v1464_v50 = vrot.slane %v1462_v9, 3 }
  0xd4   : > { %11887 = vst [vmem:[#allocation29_spill] sm:$0xff] %v10016_v43  ;;  %1995 = vmatmul.mubr.bf16.gmra.mxu0 %v10007_v31  ;;  %v721_v10 = vshll.u32 %v9897_v11, 16  ;;  %v7293_v5 = vcombine.low %v408_v23, %v9868_v24  ;;  %v1467_v35 = vrot.slane %v1465_v45, 4  ;;  %v7294_v27 = vcombine.low %v9870_v46, %v9870_v46  ;;  %v193_v24 = vld [vmem:[#allocation2 + $0xc] sm:$0x1]  ;;  %v11890_v45 = vld [vmem:[#allocation12_spill] sm:$0xff] }
  0xd5   : > { %2397 = vmatmul.mubr.bf16.gmra.mxu1 %v9656_v12  ;;  %2002 = vmatprep.mubr.bf16.mxu0 %v10016_v43  ;;  %v1471_v51 = vshrl.u32 %v716_v3, 16  ;;  %v1474_v38 = vshll.u32 %v716_v3, 16  ;;  %v726_v58 = vshrl.u32 %v9908_v39, 16  ;;  %v10032_v53 = vsel %vm850_vm4, %v1417_v6, %v1425_v40 }
  0xd6   : > { %2404 = vmatprep.mubr.bf16.mxu1 %v9678_v56  ;;  %v723_v14 = vrot.slane %v721_v10, 5  ;;  %8675 = vmatpush3.bf16.msra.mxu1 %v9006_v7  ;;  %11888 = vst [vmem:[#allocation30_spill] sm:$0xff] %v10032_v53  ;;  %v1460_v34 = vor.u32 %v10020_v30, %v10018_v57  ;;  %v1497_v0 = vshrl.u32 %v7293_v5, 16  ;;  %v1468_v15 = vor.u32 %v1467_v35, %v1464_v50 }
  0xd7   : > { %v1473_v11 = vrot.slane %v1471_v51, 3  ;;  %v1476_v1 = vrot.slane %v1474_v38, 4  ;;  %8676 = vmatprep.subr.bf16.mxu1 %v9011_v33  ;;  %v1500_v63 = vshll.u32 %v7293_v5, 16  ;;  %v1505_v22 = vshrl.u32 %v7294_v27, 16 }
  0xd8   : > { %v724_v62 = vor.u32 %v723_v14, %v720_v13  ;;  %v728_v7 = vrot.slane %v726_v58, 4  ;;  %v729_v16 = vshll.u32 %v9908_v39, 16  ;;  %v1508_v29 = vshll.u32 %v7294_v27, 16 }
  0xd9   : > { %v10036_v46 = vor.u32 %v1476_v1, %v1473_v11  ;;  %v7295_v52 = vcombine.low %v411_v36, %v9873_v20  ;;  %v7296_v48 = vcombine.low %v9875_v37, %v9875_v37  ;;  %v194_v17 = vsel %vm9516_vm2, 0, %v193_v24  ;;  %v11891_v37 = vld [vmem:[#allocation14_spill] sm:$0xff] }
  0xda   : > { %v1514_v26 = vshrl.u32 %v724_v62, 16  ;;  %v1517_v23 = vshll.u32 %v724_v62, 16  ;;  %8677 = vmatpush3.bf16.msra.mxu1 %v9011_v33  ;;  %v1499_v28 = vrot.slane %v1497_v0, 3  ;;  %v731_v9 = vrot.slane %v729_v16, 5  ;;  %195 = vst [vmem:[#allocation2 + $0xc] sm:$0x1] %v194_v17 }
  0xdb   : > { %11889 = vst [vmem:[#allocation31_spill] sm:$0xff] %v10036_v46  ;;  %v796_v6 = vrot.slane %v9915_v49, 5  ;;  %v1636_v20 = vshrl.u32 %v7295_v52, 16  ;;  %v1639_v3 = vshll.u32 %v7295_v52, 16  ;;  %v1644_v57 = vshrl.u32 %v7296_v48, 16  ;;  %v11893_v0 = vld [vmem:[#allocation16_spill] sm:$0xff] }
  0xdc   : > { %2003 = vmatmul.mubr.bf16.gmra.mxu0 %v10032_v53  ;;  %v1516_v21 = vrot.slane %v1514_v26, 3  ;;  %v1519_v39 = vrot.slane %v1517_v23, 4  ;;  %v732_v30 = vor.u32 %v731_v9, %v728_v7  ;;  %v1647_v13 = vshll.u32 %v7296_v48, 16 }
  0xdd   : > { %2405 = vmatmul.mubr.bf16.gmra.mxu1 %v11890_v45  ;;  %2010 = vmatprep.mubr.bf16.mxu0 %v10036_v46  ;;  %v878_v33 = vshrl.u32 %v796_v6, 16  ;;  %v1502_v40 = vrot.slane %v1500_v63, 4  ;;  %v1507_v50 = vrot.slane %v1505_v22, 3  ;;  %v1510_v10 = vrot.slane %v1508_v29, 4 }
  0xde   : > { %2412 = vmatprep.mubr.bf16.mxu1 %v11891_v37  ;;  %v881_v5 = vshll.u32 %v796_v6, 16  ;;  %v1653_v51 = vshrl.u32 %v732_v30, 16  ;;  %v1638_v38 = vrot.slane %v1636_v20, 3  ;;  %v1641_v49 = vrot.slane %v1639_v3, 4 }
  0xdf   : > { %v1646_v35 = vrot.slane %v1644_v57, 3  ;;  %v10050_v27 = vsel %vm850_vm4, %v1460_v34, %v1468_v15  ;;  %v10052_v14 = vor.u32 %v1519_v39, %v1516_v21  ;;  %v1656_v58 = vshll.u32 %v732_v30, 16  ;;  %v11894_v34 = vld [vmem:[#allocation20_spill] sm:$0xff]  ;;  %v11896_v21 = vld [vmem:[#allocation19_spill] sm:$0xff]  ;;  %v11897_v39 = vld [vmem:[#allocation21_spill] sm:$0xff] }
  0xe0   : > { %11892 = vst [vmem:[#allocation12_spill] sm:$0xff] %v10050_v27  ;;  %v1649_v36 = vrot.slane %v1647_v13, 4  ;;  %v880_v11 = vrot.slane %v878_v33, 3  ;;  %v883_v1 = vrot.slane %v881_v5, 4  ;;  %v1655_v24 = vrot.slane %v1653_v51, 3  ;;  %v11899_v30 = vld [vmem:[#allocation24_spill] sm:$0xff] }
  0xe1   : > { %v8993_v62 = vld [vmem:[#allocation2 + $0xc] ss:$0 sps:$4 sm:$0x11]   ;;  %v1503_v63 = vor.u32 %v1502_v40, %v1499_v28  ;;  %v1511_v22 = vor.u32 %v1510_v10, %v1507_v50  ;;  %v1658_v26 = vrot.slane %v1656_v58, 4  ;;  %v1642_v28 = vor.u32 %v1641_v49, %v1638_v38  ;;  %v8995_v13 = vld [vmem:[#allocation3 + $0x1b8] sm:$0xff]   ;;  %v8997_v33 = vld [vmem:[#allocation3 + $0x1f0] sm:$0xff]  }
  0xe2   : > { %v797_v23 = vrot.slane %v8993_v62, 5  ;;  %v1650_v9 = vor.u32 %v1649_v36, %v1646_v35  ;;  %v8998_v40 = vld [vmem:[#allocation3 + $0x1b0] sm:$0xff]   ;;  %v11900_v50 = vld [vmem:[#allocation6_spill] sm:$0xff]  ;;  %v8999_v10 = vld [vmem:[#allocation3 + $0x1e8] sm:$0xff]  }
  0xe3   : > { %v10060_v29 = vsel %vm850_vm4, %v1503_v63, %v1511_v22  ;;  %v10062_v52 = vor.u32 %v1658_v26, %v1655_v24  ;;  %v11901_v5 = vld [vmem:[#allocation7_spill] sm:$0xff]  ;;  %v9002_v38 = vld [vmem:[#allocation3 + $0x1e0] sm:$0xff]   ;;  %v11902_v49 = vld [vmem:[#allocation8_spill] sm:$0xff] }
  0xe4   : > { %2011 = vmatmul.mubr.bf16.gmra.mxu0 %v10050_v27  ;;  %v798_v15 = vsel %vm795_vm3, %v796_v6, %v797_v23  ;;  %v884_v6 = vor.u32 %v883_v1, %v880_v11  ;;  %v10069_v3 = vsel %vm850_vm4, %v1642_v28, %v1650_v9  ;;  %v9000_v51 = vld [vmem:[#allocation3 + $0x1a8] sm:$0xff]   ;;  %v9003_v35 = vld [vmem:[#allocation3 + $0x1a0] sm:$0xff]   ;;  %v11903_v58 = vld [vmem:[#allocation9_spill] sm:$0xff] }
  0xe5   : > { %2413 = vmatmul.mubr.bf16.gmra.mxu1 %v11893_v0  ;;  %2018 = vmatprep.mubr.bf16.mxu0 %v10052_v14  ;;  %v886_v7 = vshrl.u32 %v798_v15, 16  ;;  %v889_v16 = vshll.u32 %v798_v15, 16  ;;  %11895 = vst [vmem:[#allocation14_spill] sm:$0xff] %v10062_v52  ;;  %11898 = vst [vmem:[#allocation16_spill] sm:$0xff] %v10069_v3  ;;  %v9004_v36 = vld [vmem:[#allocation3 + $0x1d8] sm:$0xff]   ;;  %v9007_v1 = vld [vmem:[#allocation3 + $0x1d0] sm:$0xff]  }
  0xe6   : > { %2420 = vmatprep.mubr.bf16.mxu1 %v11894_v34  ;;  %v9005_v11 = vld [vmem:[#allocation3 + $0x198] sm:$0xff]   ;;  %v11904_v24 = vld [vmem:[#allocation10_spill] sm:$0xff]  ;;  %v11905_v62 = vld [vmem:[#allocation11_spill] sm:$0xff] }
  0xe7   : > { %v888_v48 = vrot.slane %v886_v7, 3  ;;  %v891_v17 = vrot.slane %v889_v16, 4  ;;  %v9008_v63 = vld [vmem:[#allocation3 + $0x190] sm:$0xff]   ;;  %v9009_v26 = vld [vmem:[#allocation3 + $0x1c8] sm:$0xff]   ;;  %v9012_v16 = vld [vmem:[#allocation3 + $0x1c0] sm:$0xff]  }
  0xe8   : > { %v9010_v7 = vld [vmem:[#allocation3 + $0x188] sm:$0xff]   ;;  %v11906_v28 = vld [vmem:[#allocation13_spill] sm:$0xff] }
  0xe9   : > { %v892_v20 = vor.u32 %v891_v17, %v888_v48  ;;  %v295_v9 = vld [vmem:[#allocation2 + $0x11c] sm:$0x1] }
  0xeb   : > { %v893_v57 = vsel %vm850_vm4, %v884_v6, %v892_v20  ;;  %v11907_v6 = vld [vmem:[#allocation15_spill] sm:$0xff] }
  0xec   : > { %2019 = vmatmul.mubr.bf16.gmra.mxu0 %v10060_v29 }
  0xed   : > { %2421 = vmatmul.mubr.bf16.gmra.mxu1 %v11896_v21  ;;  %2026 = vmatprep.mubr.bf16.mxu0 %v10062_v52 }
  0xee   : > { %2428 = vmatprep.mubr.bf16.mxu1 %v11897_v39 }
  0xf4   : > { %2027 = vmatmul.mubr.bf16.gmra.mxu0 %v10069_v3 }
  0xf5   : > { %2429 = vmatmul.mubr.bf16.gmra.mxu1 %v11899_v30  ;;  %8630 = vmatprep.mubr.bf16.mxu0 %v893_v57  ;;  %v296_v57 = vsel %vm9516_vm2, 0, %v295_v9 }
  0xf6   : > { %2436 = vmatprep.mubr.bf16.mxu1 %v9923_v60  ;;  %297 = vst [vmem:[#allocation2 + $0x11c] sm:$0x1] %v296_v57 }
  0xfc   : > { %8631 = vmatmul.mubr.bf16.vlgmr.msra.gmra.mxu0 %v11900_v50 }
  0xfd   : > { %2437 = vmatmul.mubr.bf16.gmra.mxu1 %v9930_v44  ;;  %8023 = vmatpush3.bf16.msra.mxu0 %v8995_v13  ;;  %v9013_v13 = vld [vmem:[#allocation3 + $0x180] sm:$0xff]  }
  0xfe   : > { %2444 = vmatprep.mubr.bf16.mxu1 %v9949_v47  ;;  %8634 = vmatprep.mubr.bf16.mxu0 %v11901_v5 }
  0xff   : > { %8024 = vmatprep.subr.bf16.mxu0 %v8997_v33 }
 0x101   : > { %8025 = vmatpush3.bf16.msra.mxu0 %v8998_v40 }
 0x102   : > { %8026 = vmatprep.subr.bf16.mxu0 %v8999_v10 }
 0x104   : > { %8635 = vmatmul.mubr.bf16.gmra.mxu0 %v11902_v49 }
 0x105   : > { %2445 = vmatmul.mubr.bf16.gmra.mxu1 %v9963_v19  ;;  %8638 = vmatprep.mubr.bf16.mxu0 %v11903_v58 }
 0x106   : > { %2452 = vmatprep.mubr.bf16.mxu1 %v9977_v32  ;;  %8027 = vmatpush3.bf16.msra.mxu0 %v9000_v51  ;;  %v11908_v51 = vld [vmem:[#allocation17_spill] sm:$0xff] }
 0x107   : > { %8028 = vmatprep.subr.bf16.mxu0 %v9002_v38  ;;  %v11909_v38 = vld [vmem:[#allocation18_spill] sm:$0xff] }
 0x10a   : > { %8029 = vmatpush3.bf16.msra.mxu0 %v9003_v35 }
 0x10b   : > { %8030 = vmatprep.subr.bf16.mxu0 %v9004_v36 }
 0x10c   : > { %8639 = vmatmul.mubr.bf16.gmra.mxu0 %v11904_v24 }
 0x10d   : > { %2453 = vmatmul.mubr.bf16.gmra.mxu1 %v9980_v25  ;;  %8642 = vmatprep.mubr.bf16.mxu0 %v11905_v62 }
 0x10e   : > { %2460 = vmatprep.mubr.bf16.mxu1 %v9989_v59  ;;  %8031 = vmatpush3.bf16.msra.mxu0 %v9005_v11  ;;  %v7766_v22 = vpop.f32.mrf.mxu0 }
 0x10f   : > { %8032 = vmatprep.subr.bf16.mxu0 %v9007_v1 }
 0x110   : > { %v7767_v23 = vpop.f32.mrf.mxu0 }
 0x111   : > { %v7768_v15 = vadd.f32 %v7767_v23, %v7766_v22  ;;  %v11912_v23 = vld [vmem:[#allocation22_spill] sm:$0xff] }
 0x112   : > { %8033 = vmatpush3.bf16.msra.mxu0 %v9008_v63  ;;  %v10087_v17 = vpop.f32.mrf.mxu0 }
 0x113   : > { %8034 = vmatprep.subr.bf16.mxu0 %v9009_v26  ;;  %v8584_v48 = vpop.f32.mrf.mxu1 }
 0x114   : > { %8643 = vmatmul.mubr.bf16.gmra.mxu0 %v11906_v28  ;;  %v10097_v40 = vpop.f32.mrf.mxu0 }
 0x115   : > { %2461 = vmatmul.mubr.bf16.gmra.mxu1 %v9994_v8  ;;  %8646 = vmatprep.mubr.bf16.mxu0 %v11907_v6  ;;  %v2069_v20 = vpop.f32.mrf.mxu1 }
 0x116   : > { %2468 = vmatprep.mubr.bf16.mxu1 %v10004_v42  ;;  %8035 = vmatpush3.bf16.msra.mxu0 %v9010_v7  ;;  %v10095_v33 = vadd.f32 %v7768_v15, %v2069_v20  ;;  %v11914_v7 = vld [vmem:[#allocation23_spill] sm:$0xff] }
 0x117   : > { %8036 = vmatprep.subr.bf16.mxu0 %v9012_v16  ;;  %v8585_v50 = vpop.f32.mrf.mxu1 }
 0x119   : > { %v10103_v35 = vpop.f32.mrf.mxu1 }
 0x11a   : > { %8037 = vmatpush3.bf16.msra.mxu0 %v9013_v13  ;;  %11910 = vst [vmem:[#allocation20_spill] sm:$0xff] %v10103_v35 }
 0x11b   : > { %v7772_v10 = vpop.f32.mrf.mxu0 }
 0x11c   : > { %8647 = vmatmul.mubr.bf16.gmra.mxu0 %v11908_v51 }
 0x11d   : > { %2469 = vmatmul.mubr.bf16.gmra.mxu1 %v10007_v31  ;;  %8650 = vmatprep.mubr.bf16.mxu0 %v11909_v38  ;;  %v7773_v18 = vpop.f32.mrf.mxu0 }
 0x11e   : > { %2476 = vmatprep.mubr.bf16.mxu1 %v10016_v43  ;;  %v7774_v36 = vadd.f32 %v7773_v18, %v7772_v10  ;;  %v10115_v10 = vld [vmem:[#allocation2 + $0x118] sm:$0xf]  ;;  %v414_v18 = vld [vmem:[#allocation2 + $0x110] sm:$0x8] }
 0x11f   : > { %v7775_v11 = vpop.f32.mrf.mxu0 }
 0x120   : > { %v10105_v1 = vadd.f32 %v8584_v48, %v7774_v36  ;;  %v8588_v22 = vpop.f32.mrf.mxu1  ;;  %v10113_v48 = vld [vmem:[#allocation2 + $0x114] sm:$0xf]  ;;  %v11915_v36 = vld [vmem:[#allocation25_spill] sm:$0xff] }
 0x121   : > { %v7776_v63 = vpop.f32.mrf.mxu0 }
 0x122   : > { %11911 = vst [vmem:[#allocation19_spill] sm:$0xff] %v10105_v1  ;;  %v7777_v26 = vadd.f32 %v7776_v63, %v7775_v11  ;;  %v2085_v16 = vpop.f32.mrf.mxu1  ;;  %v7297_v11 = vcombine.low %v414_v18, %v10113_v48  ;;  %v7298_v63 = vcombine.low %v10115_v10, %v10115_v10 }
 0x124   : > { %8651 = vmatmul.mubr.bf16.gmra.mxu0 %v11912_v23  ;;  %v10108_v15 = vadd.f32 %v8585_v50, %v7777_v26  ;;  %v8589_v20 = vpop.f32.mrf.mxu1  ;;  %v2663_v3 = vshrl.u32 %v7297_v11, 16  ;;  %v2666_v52 = vshll.u32 %v7297_v11, 16 }
 0x125   : > { %2477 = vmatmul.mubr.bf16.gmra.mxu1 %v10032_v53  ;;  %8654 = vmatprep.mubr.bf16.mxu0 %v11914_v7  ;;  %v2671_v53 = vshrl.u32 %v7298_v63, 16 }
 0x126   : > { %11913 = vst [vmem:[#allocation21_spill] sm:$0xff] %v10108_v15  ;;  %2484 = vmatprep.mubr.bf16.mxu1 %v10036_v46  ;;  %v2674_v15 = vshll.u32 %v7298_v63, 16  ;;  %v2665_v43 = vrot.slane %v2663_v3, 3  ;;  %v2668_v18 = vrot.slane %v2666_v52, 4 }
 0x127   : > { %v2673_v1 = vrot.slane %v2671_v53, 3 }
 0x128   : > { %v7778_v9 = vpop.f32.mrf.mxu0  ;;  %v2676_v42 = vrot.slane %v2674_v15, 4  ;;  %v2669_v8 = vor.u32 %v2668_v18, %v2665_v43 }
 0x12a   : > { %v7779_v57 = vpop.f32.mrf.mxu0  ;;  %v2677_v35 = vor.u32 %v2676_v42, %v2673_v1 }
 0x12b   : > { %v7780_v13 = vadd.f32 %v7779_v57, %v7778_v9  ;;  %v2088_v9 = vpop.f32.mrf.mxu1 }
 0x12c   : > { %8655 = vmatmul.mubr.bf16.gmra.mxu0 %v11915_v36  ;;  %v7781_v50 = vpop.f32.mrf.mxu0 }
 0x12d   : > { %2485 = vmatmul.mubr.bf16.gmra.mxu1 %v10050_v27  ;;  %8658 = vmatprep.mubr.bf16.mxu0 %v9936_v54  ;;  %v10123_v26 = vadd.f32 %v7780_v13, %v2085_v16  ;;  %v10132_v13 = vsel %vm850_vm4, %v2669_v8, %v2677_v35 }
 0x12e   : > { %2492 = vmatprep.mubr.bf16.mxu1 %v10052_v14  ;;  %v7782_v57 = vpop.f32.mrf.mxu0 }
 0x12f   : > { %v7783_v46 = vadd.f32 %v7782_v57, %v7781_v50 }
 0x130   : > { %v8592_v27 = vpop.f32.mrf.mxu1 }
 0x131   : > { %v10126_v31 = vadd.f32 %v7783_v46, %v2088_v9 }
 0x132   : > { %v2101_v52 = vpop.f32.mrf.mxu1 }
 0x134   : > { %8659 = vmatmul.mubr.bf16.gmra.mxu0 %v9945_v4  ;;  %v7784_v16 = vpop.f32.mrf.mxu0  ;;  %v8593_v43 = vpop.f32.mrf.mxu1 }
 0x135   : > { %2493 = vmatmul.mubr.bf16.gmra.mxu1 %v10060_v29  ;;  %2933 = vmatprep.mubr.bf16.mxu0 %v9583_v2 }
 0x136   : > { %8678 = vmatprep.mubr.bf16.mxu1 %v11901_v5  ;;  %v7785_v46 = vpop.f32.mrf.mxu0  ;;  %v2104_v8 = vpop.f32.mrf.mxu1 }
 0x137   : > { %v7786_v3 = vadd.f32 %v7785_v46, %v7784_v16 }
 0x138   : > { %v7787_v53 = vpop.f32.mrf.mxu0 }
 0x139   : > { %v10135_v15 = vadd.f32 %v8588_v22, %v7786_v3 }
 0x13a   : > { %v7788_v42 = vpop.f32.mrf.mxu0 }
 0x13b   : > { %v7789_v1 = vadd.f32 %v7788_v42, %v7787_v53 }
 0x13c   : > { %2934 = vmatmul.mubr.bf16.vlgmr.msra.gmra.mxu0 %v9607_v55 }
 0x13d   : > { %8679 = vmatmul.mubr.bf16.vlgmr.msra.gmra.mxu1 %v11902_v49  ;;  %2941 = vmatprep.mubr.bf16.mxu0 %v9636_v41  ;;  %v10140_v2 = vadd.f32 %v8589_v20, %v7789_v1 }
 0x13e   : > { %8682 = vmatprep.mubr.bf16.mxu1 %v11903_v58 }
 0x142   : > { %v10143_v5 = vpop.f32.mrf.mxu1 }
 0x144   : > { %2942 = vmatmul.mubr.bf16.gmra.mxu0 %v9656_v12  ;;  %v2117_v35 = vpop.f32.mrf.mxu1  ;;  %v7790_v22 = vpop.f32.mrf.mxu0 }
 0x145   : > { %8683 = vmatmul.mubr.bf16.gmra.mxu1 %v11904_v24  ;;  %2949 = vmatprep.mubr.bf16.mxu0 %v9678_v56 }
 0x146   : > { %v10148_v55 = vpop.f32.mrf.mxu1  ;;  %8686 = vmatprep.mubr.bf16.mxu1 %v11905_v62  ;;  %v7791_v41 = vpop.f32.mrf.mxu0 }
 0x147   : > { %v7792_v49 = vadd.f32 %v7791_v41, %v7790_v22 }
 0x148   : > { %v7793_v20 = vpop.f32.mrf.mxu0  ;;  %v2120_v50 = vpop.f32.mrf.mxu1 }
 0x149   : > { %v10151_v58 = vadd.f32 %v7792_v49, %v2101_v52 }
 0x14a   : > { %v7794_v11 = vpop.f32.mrf.mxu0  ;;  %v10156_v12 = vpop.f32.mrf.mxu1 }
 0x14b   : > { %v7795_v63 = vadd.f32 %v7794_v11, %v7793_v20 }
 0x14c   : > { %2950 = vmatmul.mubr.bf16.gmra.mxu0 %v11890_v45  ;;  %v10161_v24 = vpop.f32.mrf.mxu1 }
 0x14d   : > { %2957 = vmatprep.mubr.bf16.mxu0 %v11891_v37  ;;  %8687 = vmatmul.mubr.bf16.gmra.mxu1 %v11906_v28  ;;  %v10158_v56 = vadd.f32 %v7795_v63, %v2104_v8 }
 0x14e   : > { %8690 = vmatprep.mubr.bf16.mxu1 %v11907_v6  ;;  %v10165_v45 = vpop.f32.mrf.mxu1 }
 0x150   : > { %v10171_v16 = vpop.f32.mrf.mxu1 }
 0x151   : > { %v7796_v62 = vpop.f32.mrf.mxu0 }
 0x153   : > { %v7797_v9 = vpop.f32.mrf.mxu0 }
 0x154   : > { %2958 = vmatmul.mubr.bf16.gmra.mxu0 %v11893_v0  ;;  %v7798_v57 = vadd.f32 %v7797_v9, %v7796_v62  ;;  %v10177_v0 = vcombine.low %v10113_v48, %v10115_v10 }
 0x155   : > { %2965 = vmatprep.mubr.bf16.mxu0 %v11894_v34  ;;  %v7799_v37 = vpop.f32.mrf.mxu0  ;;  %8691 = vmatmul.mubr.bf16.gmra.mxu1 %v11908_v51  ;;  %v9015_v34 = vld [vmem:[#allocation2 + $0x11c] ss:$0 sps:$4 sm:$0x11]  }
 0x156   : > { %v10168_v28 = vadd.f32 %v8592_v27, %v7798_v57  ;;  %8694 = vmatprep.mubr.bf16.mxu1 %v11909_v38  ;;  %v847_v38 = vrot.slane %v10177_v0, 5  ;;  %v848_v46 = vrot.slane %v9015_v34, 5 }
 0x157   : > { %v7800_v18 = vpop.f32.mrf.mxu0 }
 0x158   : > { %v7801_v6 = vadd.f32 %v7800_v18, %v7799_v37  ;;  %v2689_v42 = vshrl.u32 %v847_v38, 16  ;;  %v2692_v1 = vshll.u32 %v847_v38, 16 }
 0x15a   : > { %v10173_v52 = vadd.f32 %v8593_v43, %v7801_v6  ;;  %v2694_v20 = vrot.slane %v2692_v1, 4 }
 0x15c   : > { %2966 = vmatmul.mubr.bf16.gmra.mxu0 %v11896_v21  ;;  %v849_v21 = vsel %vm795_vm3, %v847_v38, %v848_v46 }
 0x15d   : > { %2973 = vmatprep.mubr.bf16.mxu0 %v11897_v39  ;;  %v10181_v51 = vpop.f32.mrf.mxu1  ;;  %8695 = vmatmul.mubr.bf16.gmra.mxu1 %v11912_v23  ;;  %v2697_v8 = vshrl.u32 %v849_v21, 16  ;;  %v2700_v22 = vshll.u32 %v849_v21, 16  ;;  %v7771_v21 = vadd.f32 %v10097_v40, %v10087_v17 }
 0x15e   : > { %v7802_v27 = vpop.f32.mrf.mxu0  ;;  %8698 = vmatprep.mubr.bf16.mxu1 %v11914_v7 }
 0x15f   : > { %v10186_v3 = vpop.f32.mrf.mxu1  ;;  %v2699_v11 = vrot.slane %v2697_v8, 3  ;;  %v2702_v63 = vrot.slane %v2700_v22, 4  ;;  %v11916_v22 = vld [vmem:[#allocation20_spill] sm:$0xff] }
 0x160   : > { %v7803_v53 = vpop.f32.mrf.mxu0 }
 0x161   : > { %v7804_v48 = vadd.f32 %v7803_v53, %v7802_v27  ;;  %v10192_v39 = vpop.f32.mrf.mxu1  ;;  %v2703_v37 = vor.u32 %v2702_v63, %v2699_v11  ;;  %v11918_v11 = vld [vmem:[#allocation27_spill] sm:$0xff] }
 0x162   : > { %v7805_v10 = vpop.f32.mrf.mxu0 }
 0x163   : > { %v10188_v43 = vadd.f32 %v7804_v48, %v2117_v35  ;;  %v10199_v41 = vpop.f32.mrf.mxu1 }
 0x164   : > { %2974 = vmatmul.mubr.bf16.gmra.mxu0 %v11899_v30  ;;  %v7806_v23 = vpop.f32.mrf.mxu0  ;;  %v2691_v30 = vrot.slane %v2689_v42, 3 }
 0x165   : > { %2981 = vmatprep.mubr.bf16.mxu0 %v9923_v60  ;;  %v7807_v7 = vadd.f32 %v7806_v23, %v7805_v10  ;;  %8699 = vmatmul.mubr.bf16.gmra.mxu1 %v11915_v36 }
 0x166   : > { %8702 = vmatprep.mubr.bf16.mxu1 %v9936_v54  ;;  %v2695_v57 = vor.u32 %v2694_v20, %v2691_v30  ;;  %v11917_v20 = vld [vmem:[#allocation26_spill] sm:$0xff] }
 0x167   : > { %v10197_v35 = vadd.f32 %v7807_v7, %v2120_v50 }
 0x16a   : > { %v7808_v49 = vpop.f32.mrf.mxu0 }
 0x16c   : > { %v7809_v62 = vpop.f32.mrf.mxu0  ;;  %v10201_v60 = vpop.f32.mrf.mxu1  ;;  %2982 = vmatmul.mubr.bf16.gmra.mxu0 %v9930_v44 }
 0x16d   : > { %v7810_v36 = vadd.f32 %v7809_v62, %v7808_v49  ;;  %2989 = vmatprep.mubr.bf16.mxu0 %v9949_v47  ;;  %8703 = vmatmul.mubr.bf16.gmra.mxu1 %v9945_v4  ;;  %v2704_v4 = vsel %vm850_vm4, %v2695_v57, %v2703_v37  ;;  %v2073_v49 = vadd.f32 %v7771_v21, %v11916_v22  ;;  %v11921_v21 = vld [vmem:[#allocation29_spill] sm:$0xff] }
 0x16e   : > { %v7811_v54 = vpop.f32.mrf.mxu0  ;;  %v10206_v50 = vpop.f32.mrf.mxu1  ;;  %8706 = vmatprep.mubr.bf16.mxu1 %v9953_v61 }
 0x16f   : > { %v10209_v9 = vadd.f32 %v10143_v5, %v7810_v36 }
 0x170   : > { %v7812_v18 = vpop.f32.mrf.mxu0  ;;  %v10212_v6 = vpop.f32.mrf.mxu1 }
 0x171   : > { %v7813_v34 = vadd.f32 %v7812_v18, %v7811_v54  ;;  %v11919_v18 = vld [vmem:[#allocation19_spill] sm:$0xff] }
 0x172   : > { %v10214_v44 = vpop.f32.mrf.mxu1 }
 0x173   : > { %v10217_v47 = vadd.f32 %v10148_v55, %v7813_v34 }
 0x174   : > { %2990 = vmatmul.mubr.bf16.gmra.mxu0 %v9963_v19 }
 0x175   : > { %v10221_v27 = vpop.f32.mrf.mxu1  ;;  %2997 = vmatprep.mubr.bf16.mxu0 %v9977_v32  ;;  %8707 = vmatmul.mubr.bf16.gmra.mxu1 %v2704_v4 }
 0x177   : > { %v10224_v61 = vpop.f32.mrf.mxu1 }
 0x179   : > { %v10226_v5 = vpop.f32.mrf.mxu1 }
 0x17a   : > { %v7814_v38 = vpop.f32.mrf.mxu0 }
 0x17b   : > { %v10228_v46 = vpop.f32.mrf.mxu1 }
 0x17c   : > { %2998 = vmatmul.mubr.bf16.gmra.mxu0 %v9980_v25  ;;  %v7815_v55 = vpop.f32.mrf.mxu0 }
 0x17d   : > { %v7902_v53 = vpop.f32.mrf.mxu1  ;;  %v7816_v48 = vadd.f32 %v7815_v55, %v7814_v38  ;;  %3005 = vmatprep.mubr.bf16.mxu0 %v9989_v59 }
 0x17e   : > { %v7817_v19 = vpop.f32.mrf.mxu0 }
 0x17f   : > { %v10233_v10 = vadd.f32 %v7816_v48, %v10161_v24  ;;  %v7903_v32 = vpop.f32.mrf.mxu1  ;;  %v11920_v48 = vld [vmem:[#allocation28_spill] sm:$0xff] }
 0x180   : > { %v7904_v23 = vadd.f32 %v7903_v32, %v7902_v53  ;;  %v7818_v7 = vpop.f32.mrf.mxu0 }
 0x181   : > { %v7905_v42 = vpop.f32.mrf.mxu1  ;;  %v10237_v1 = vadd.f32 %v7818_v7, %v7817_v19 }
 0x182   : > { %v10240_v25 = vadd.f32 %v7904_v23, %v10095_v33 }
 0x183   : > { %v7906_v8 = vpop.f32.mrf.mxu1 }
 0x184   : > { %v7907_v59 = vadd.f32 %v7906_v8, %v7905_v42  ;;  %v7820_v30 = vpop.f32.mrf.mxu0  ;;  %3006 = vmatmul.mubr.bf16.gmra.mxu0 %v11917_v20 }
 0x185   : > { %v7908_v24 = vpop.f32.mrf.mxu1  ;;  %3013 = vmatprep.mubr.bf16.mxu0 %v11918_v11 }
 0x186   : > { %v7821_v63 = vpop.f32.mrf.mxu0  ;;  %v10245_v17 = vadd.f32 %v7907_v59, %v2073_v49 }
 0x187   : > { %v7822_v40 = vadd.f32 %v7821_v63, %v7820_v30  ;;  %v7909_v62 = vpop.f32.mrf.mxu1 }
 0x188   : > { %v7910_v36 = vadd.f32 %v7909_v62, %v7908_v24  ;;  %v7823_v54 = vpop.f32.mrf.mxu0  ;;  %v11923_v62 = vld [vmem:[#allocation30_spill] sm:$0xff] }
 0x189   : > { %v10248_v33 = vadd.f32 %v10156_v12, %v7822_v40  ;;  %v7911_v57 = vpop.f32.mrf.mxu1  ;;  %v11922_v12 = vld [vmem:[#allocation21_spill] sm:$0xff] }
 0x18a   : > { %v7824_v37 = vpop.f32.mrf.mxu0  ;;  %v10251_v34 = vadd.f32 %v7910_v36, %v11919_v18 }
 0x18b   : > { %v7825_v4 = vadd.f32 %v7824_v37, %v7823_v54  ;;  %v7912_v38 = vpop.f32.mrf.mxu1  ;;  %v11924_v54 = vld [vmem:[#allocation31_spill] sm:$0xff] }
 0x18c   : > { %v7913_v55 = vadd.f32 %v7912_v38, %v7911_v57  ;;  %v7826_v53 = vpop.f32.mrf.mxu0  ;;  %3014 = vmatmul.mubr.bf16.gmra.mxu0 %v11920_v48  ;;  %v734_v57 = vshrl.u32 %v10177_v0, 16 }
 0x18d   : > { %v10255_v19 = vadd.f32 %v10165_v45, %v7825_v4  ;;  %v7914_v32 = vpop.f32.mrf.mxu1  ;;  %3021 = vmatprep.mubr.bf16.mxu0 %v11921_v21 }
 0x18e   : > { %v7827_v23 = vpop.f32.mrf.mxu0  ;;  %v10259_v7 = vadd.f32 %v7913_v55, %v11922_v12 }
 0x18f   : > { %v7828_v42 = vadd.f32 %v7827_v23, %v7826_v53  ;;  %v7915_v8 = vpop.f32.mrf.mxu1 }
 0x190   : > { %v7916_v22 = vadd.f32 %v7915_v8, %v7914_v32  ;;  %v7829_v49 = vpop.f32.mrf.mxu0  ;;  %v736_v32 = vrot.slane %v734_v57, 4 }
 0x191   : > { %v10262_v59 = vadd.f32 %v7828_v42, %v10186_v3  ;;  %v7917_v30 = vpop.f32.mrf.mxu1  ;;  %v737_v3 = vshll.u32 %v10177_v0, 16 }
 0x192   : > { %v7830_v20 = vpop.f32.mrf.mxu0  ;;  %v10265_v24 = vadd.f32 %v7916_v22, %v10123_v26 }
 0x193   : > { %v10267_v45 = vadd.f32 %v7830_v20, %v7829_v49  ;;  %v7918_v11 = vpop.f32.mrf.mxu1  ;;  %v739_v21 = vrot.slane %v737_v3, 5 }
 0x194   : > { %v7919_v63 = vadd.f32 %v7918_v11, %v7917_v30  ;;  %v7832_v40 = vpop.f32.mrf.mxu0  ;;  %3022 = vmatmul.mubr.bf16.gmra.mxu0 %v11923_v62 }
 0x195   : > { %v7920_v36 = vpop.f32.mrf.mxu1  ;;  %3029 = vmatprep.mubr.bf16.mxu0 %v11924_v54 }
 0x196   : > { %v7833_v37 = vpop.f32.mrf.mxu0  ;;  %v10274_v18 = vadd.f32 %v7919_v63, %v10126_v31  ;;  %v11925_v31 = vld [vmem:[#allocation12_spill] sm:$0xff] }
 0x197   : > { %v7834_v26 = vadd.f32 %v7833_v37, %v7832_v40  ;;  %v7921_v4 = vpop.f32.mrf.mxu1 }
 0x198   : > { %v7922_v38 = vadd.f32 %v7921_v4, %v7920_v36  ;;  %v7835_v55 = vpop.f32.mrf.mxu0 }
 0x199   : > { %v10277_v53 = vadd.f32 %v10181_v51, %v7834_v26  ;;  %v7923_v48 = vpop.f32.mrf.mxu1  ;;  %v740_v51 = vor.u32 %v739_v21, %v736_v32 }
 0x19a   : > { %v7836_v23 = vpop.f32.mrf.mxu0  ;;  %v10280_v12 = vadd.f32 %v7922_v38, %v10135_v15  ;;  %v11926_v38 = vld [vmem:[#allocation14_spill] sm:$0xff] }
 0x19b   : > { %v7837_v42 = vadd.f32 %v7836_v23, %v7835_v55  ;;  %v7924_v0 = vpop.f32.mrf.mxu1  ;;  %v2680_v57 = vshrl.u32 %v740_v51, 16 }
 0x19c   : > { %v7925_v8 = vadd.f32 %v7924_v0, %v7923_v48  ;;  %v7838_v22 = vpop.f32.mrf.mxu0  ;;  %3030 = vmatmul.mubr.bf16.gmra.mxu0 %v11925_v31 }
 0x19d   : > { %v10284_v49 = vadd.f32 %v10192_v39, %v7837_v42  ;;  %v7926_v30 = vpop.f32.mrf.mxu1  ;;  %3037 = vmatprep.mubr.bf16.mxu0 %v10052_v14  ;;  %v2683_v39 = vshll.u32 %v740_v51, 16  ;;  %v2682_v55 = vrot.slane %v2680_v57, 3  ;;  %v9018_v42 = vld [vmem:[#allocation3 + $0x378] sm:$0xff]  }
 0x19e   : > { %v7839_v20 = vpop.f32.mrf.mxu0  ;;  %v10288_v11 = vadd.f32 %v7925_v8, %v10140_v2  ;;  %v9019_v8 = vld [vmem:[#allocation3 + $0x338] sm:$0xff]   ;;  %8158 = vmatprep.subr.bf16.mxu1 %v9018_v42 }
 0x19f   : > { %v7840_v63 = vadd.f32 %v7839_v20, %v7838_v22  ;;  %v7927_v15 = vpop.f32.mrf.mxu1  ;;  %v2685_v48 = vrot.slane %v2683_v39, 4  ;;  %8159 = vmatpush3.bf16.msra.mxu1 %v9019_v8  ;;  %v9020_v57 = vld [vmem:[#allocation3 + $0x3b8] sm:$0xff]   ;;  %v9022_v39 = vld [vmem:[#allocation3 + $0x330] sm:$0xff]  }
 0x1a0   : > { %v7928_v40 = vadd.f32 %v7927_v15, %v7926_v30  ;;  %v10290_v62 = vpop.f32.mrf.mxu0  ;;  %8710 = vmatprep.subr.bf16.mxu0 %v9020_v57 }
 0x1a1   : > { %v10293_v36 = vadd.f32 %v7840_v63, %v10206_v50  ;;  %v7929_v54 = vpop.f32.mrf.mxu1  ;;  %v9021_v63 = vld [vmem:[#allocation3 + $0x370] sm:$0xff]   ;;  %8711 = vmatpush3.bf16.msra.mxu0 %v9020_v57  ;;  %v9029_v57 = vld [vmem:[#allocation3 + $0x318] sm:$0xff]  }
 0x1a2   : > { %v10295_v3 = vpop.f32.mrf.mxu0  ;;  %v10298_v14 = vadd.f32 %v7928_v40, %v10151_v58  ;;  %8160 = vmatprep.subr.bf16.mxu1 %v9021_v63 }
 0x1a3   : > { %v7930_v37 = vpop.f32.mrf.mxu1  ;;  %8161 = vmatpush3.bf16.msra.mxu1 %v9022_v39  ;;  %v9035_v39 = vld [vmem:[#allocation3 + $0x3a0] sm:$0xff]  }
 0x1a4   : > { %v7931_v26 = vadd.f32 %v7930_v37, %v7929_v54  ;;  %v7844_v2 = vpop.f32.mrf.mxu0  ;;  %3038 = vmatmul.mubr.bf16.gmra.mxu0 %v10060_v29  ;;  %v2686_v29 = vor.u32 %v2685_v48, %v2682_v55  ;;  %v11927_v54 = vld [vmem:[#allocation16_spill] sm:$0xff] }
 0x1a5   : > { %v7932_v4 = vpop.f32.mrf.mxu1  ;;  %3045 = vmatprep.mubr.bf16.mxu0 %v11926_v38  ;;  %v9023_v38 = vld [vmem:[#allocation3 + $0x368] sm:$0xff]  }
 0x1a6   : > { %v7845_v50 = vpop.f32.mrf.mxu0  ;;  %v10303_v32 = vadd.f32 %v7931_v26, %v10158_v56  ;;  %8162 = vmatprep.subr.bf16.mxu1 %v9023_v38  ;;  %v9031_v38 = vld [vmem:[#allocation3 + $0x350] sm:$0xff]  }
 0x1a7   : > { %v7846_v21 = vadd.f32 %v7845_v50, %v7844_v2  ;;  %v7933_v23 = vpop.f32.mrf.mxu1  ;;  %v9024_v50 = vld [vmem:[#allocation3 + $0x328] sm:$0xff]  }
 0x1a8   : > { %v7934_v0 = vadd.f32 %v7933_v23, %v7932_v4  ;;  %v7847_v58 = vpop.f32.mrf.mxu0  ;;  %8163 = vmatpush3.bf16.msra.mxu1 %v9024_v50 }
 0x1a9   : > { %v10306_v22 = vadd.f32 %v10201_v60, %v7846_v21  ;;  %v7935_v31 = vpop.f32.mrf.mxu1  ;;  %v9025_v21 = vld [vmem:[#allocation3 + $0x3b0] sm:$0xff]  }
 0x1aa   : > { %v7848_v30 = vpop.f32.mrf.mxu0  ;;  %v10309_v51 = vadd.f32 %v7934_v0, %v10168_v28  ;;  %8712 = vmatprep.subr.bf16.mxu0 %v9025_v21 }
 0x1ab   : > { %v7849_v20 = vadd.f32 %v7848_v30, %v7847_v58  ;;  %v7936_v56 = vpop.f32.mrf.mxu1  ;;  %8713 = vmatpush3.bf16.msra.mxu0 %v9025_v21  ;;  %v9026_v58 = vld [vmem:[#allocation3 + $0x360] sm:$0xff]   ;;  %v9032_v21 = vld [vmem:[#allocation3 + $0x310] sm:$0xff]  }
 0x1ac   : > { %v7937_v15 = vadd.f32 %v7936_v56, %v7935_v31  ;;  %v7850_v40 = vpop.f32.mrf.mxu0  ;;  %3046 = vmatmul.mubr.bf16.gmra.mxu0 %v11927_v54  ;;  %8164 = vmatprep.subr.bf16.mxu1 %v9026_v58 }
 0x1ad   : > { %v10313_v60 = vadd.f32 %v10212_v6, %v7849_v20  ;;  %v7938_v37 = vpop.f32.mrf.mxu1  ;;  %3053 = vmatprep.mubr.bf16.mxu0 %v2686_v29  ;;  %v9027_v29 = vld [vmem:[#allocation3 + $0x320] sm:$0xff]  }
 0x1ae   : > { %v7851_v26 = vpop.f32.mrf.mxu0  ;;  %v10316_v28 = vadd.f32 %v7937_v15, %v10173_v52  ;;  %8165 = vmatpush3.bf16.msra.mxu1 %v9027_v29  ;;  %v9028_v15 = vld [vmem:[#allocation3 + $0x358] sm:$0xff]  }
 0x1af   : > { %v7852_v2 = vadd.f32 %v7851_v26, %v7850_v40  ;;  %v7939_v4 = vpop.f32.mrf.mxu1  ;;  %8166 = vmatprep.subr.bf16.mxu1 %v9028_v15 }
 0x1b0   : > { %v7940_v55 = vadd.f32 %v7939_v4, %v7938_v37  ;;  %v10318_v48 = vpop.f32.mrf.mxu0 }
 0x1b1   : > { %v10321_v6 = vadd.f32 %v7852_v2, %v10224_v61  ;;  %v7941_v23 = vpop.f32.mrf.mxu1  ;;  %v9030_v61 = vld [vmem:[#allocation3 + $0x3a8] sm:$0xff]  }
 0x1b2   : > { %v10323_v42 = vpop.f32.mrf.mxu0  ;;  %v10326_v52 = vadd.f32 %v7940_v55, %v10188_v43  ;;  %8714 = vmatprep.subr.bf16.mxu0 %v9030_v61  ;;  %8167 = vmatpush3.bf16.msra.mxu1 %v9029_v57 }
 0x1b3   : > { %v7942_v0 = vpop.f32.mrf.mxu1  ;;  %8715 = vmatpush3.bf16.msra.mxu0 %v9030_v61  ;;  %8168 = vmatprep.subr.bf16.mxu1 %v9031_v38 }
 0x1b4   : > { %v7943_v8 = vadd.f32 %v7942_v0, %v7941_v23  ;;  %v7856_v31 = vpop.f32.mrf.mxu0  ;;  %3054 = vmatmul.mubr.bf16.gmra.mxu0 %v10132_v13  ;;  %8716 = vmatprep.subr.bf16.mxu0 %v9035_v39  ;;  %v9036_v23 = vld [vmem:[#allocation3 + $0x398] sm:$0xff]  }
 0x1b5   : > { %v7944_v30 = vpop.f32.mrf.mxu1 }
 0x1b6   : > { %v7857_v20 = vpop.f32.mrf.mxu0  ;;  %v10330_v56 = vadd.f32 %v7943_v8, %v10197_v35  ;;  %8169 = vmatpush3.bf16.msra.mxu1 %v9032_v21 }
 0x1b7   : > { %v10332_v43 = vadd.f32 %v7857_v20, %v7856_v31  ;;  %v7945_v63 = vpop.f32.mrf.mxu1  ;;  %8717 = vmatpush3.bf16.msra.mxu0 %v9035_v39  ;;  %v9034_v20 = vld [vmem:[#allocation3 + $0x308] sm:$0xff]   ;;  %v9037_v39 = vld [vmem:[#allocation3 + $0x340] sm:$0xff]  }
 0x1b8   : > { %v7946_v40 = vadd.f32 %v7945_v63, %v7944_v30  ;;  %v10334_v54 = vpop.f32.mrf.mxu0  ;;  %8718 = vmatprep.subr.bf16.mxu0 %v9036_v23  ;;  %v9033_v30 = vld [vmem:[#allocation3 + $0x348] sm:$0xff]   ;;  %v9039_v63 = vld [vmem:[#allocation3 + $0x390] sm:$0xff]  }
 0x1b9   : > { %v7947_v13 = vpop.f32.mrf.mxu1  ;;  %8170 = vmatprep.subr.bf16.mxu1 %v9033_v30 }
 0x1ba   : > { %v10336_v37 = vpop.f32.mrf.mxu0  ;;  %v10339_v26 = vadd.f32 %v7946_v40, %v10209_v9  ;;  %8171 = vmatpush3.bf16.msra.mxu1 %v9034_v20  ;;  %v2137_v40 = vadd.f32 %v10237_v1, %v10171_v16 }
 0x1bb   : > { %v7948_v35 = vpop.f32.mrf.mxu1  ;;  %8719 = vmatpush3.bf16.msra.mxu0 %v9036_v23  ;;  %8172 = vmatprep.subr.bf16.mxu1 %v9037_v39 }
 0x1bc   : > { %v7949_v2 = vadd.f32 %v7948_v35, %v7947_v13  ;;  %v8632_v4 = vpop.f32.mrf.mxu0  ;;  %8720 = vmatprep.subr.bf16.mxu0 %v9039_v63 }
 0x1bd   : > { %v7950_v55 = vpop.f32.mrf.mxu1  ;;  %v10342_v50 = vadd.f32 %v8632_v4, %v10251_v34  ;;  %v9040_v4 = vld [vmem:[#allocation3 + $0x388] sm:$0xff]  }
 0x1be   : > { %v2535_v0 = vpop.f32.mrf.mxu0  ;;  %v10345_v58 = vadd.f32 %v7949_v2, %v10217_v47  ;;  %v9038_v2 = vld [vmem:[#allocation3 + $0x300] sm:$0xff]  }
 0x1bf   : > { %v7951_v9 = vpop.f32.mrf.mxu1  ;;  %v10348_v8 = vadd.f32 %v2535_v0, %v10240_v25  ;;  %8721 = vmatpush3.bf16.msra.mxu0 %v9039_v63  ;;  %8173 = vmatpush3.bf16.msra.mxu1 %v9038_v2 }
 0x1c0   : > { %v7952_v31 = vadd.f32 %v7951_v9, %v7950_v55  ;;  %v8633_v29 = vpop.f32.mrf.mxu0  ;;  %8722 = vmatprep.subr.bf16.mxu0 %v9040_v4 }
 0x1c1   : > { %v7953_v61 = vpop.f32.mrf.mxu1  ;;  %v10351_v34 = vadd.f32 %v8633_v29, %v10259_v7 }
 0x1c2   : > { %v10353_v15 = vpop.f32.mrf.mxu0  ;;  %v10356_v47 = vadd.f32 %v7952_v31, %v10233_v10 }
 0x1c3   : > { %v7954_v25 = vpop.f32.mrf.mxu1  ;;  %8723 = vmatpush3.bf16.msra.mxu0 %v9040_v4 }
 0x1c4   : > { %v7955_v57 = vadd.f32 %v7954_v25, %v7953_v61  ;;  %v8636_v13 = vpop.f32.mrf.mxu0 }
 0x1c5   : > { %v7956_v7 = vpop.f32.mrf.mxu1  ;;  %v10361_v35 = vadd.f32 %v8636_v13, %v10280_v12 }
 0x1c6   : > { %v2551_v38 = vpop.f32.mrf.mxu0  ;;  %v10363_v10 = vadd.f32 %v7955_v57, %v2137_v40 }
 0x1c7   : > { %v7957_v55 = vpop.f32.mrf.mxu1  ;;  %v10366_v21 = vadd.f32 %v2551_v38, %v10265_v24 }
 0x1c8   : > { %v7958_v16 = vadd.f32 %v7957_v55, %v7956_v7  ;;  %v8637_v1 = vpop.f32.mrf.mxu0 }
 0x1c9   : > { %v7959_v23 = vpop.f32.mrf.mxu1  ;;  %v10369_v0 = vadd.f32 %v8637_v1, %v10288_v11 }
 0x1ca   : > { %v10371_v12 = vpop.f32.mrf.mxu0  ;;  %v2447_v9 = vadd.f32 %v7958_v16, %v10248_v33 }
 0x1cb   : > { %v7960_v31 = vpop.f32.mrf.mxu1 }
 0x1cc   : > { %v7961_v29 = vadd.f32 %v7960_v31, %v7959_v23  ;;  %v8640_v30 = vpop.f32.mrf.mxu0 }
 0x1cd   : > { %v7962_v61 = vpop.f32.mrf.mxu1  ;;  %v10375_v24 = vadd.f32 %v8640_v30, %v10309_v51  ;;  %v2153_v51 = vadd.f32 %v10267_v45, %v10199_v41  ;;  %v9046_v30 = vld [vmem:[#allocation3 + $0x380] sm:$0xff]  }
 0x1ce   : > { %v2567_v20 = vpop.f32.mrf.mxu0  ;;  %v2450_v63 = vadd.f32 %v7961_v29, %v10255_v19  ;;  %8724 = vmatprep.subr.bf16.mxu0 %v9046_v30 }
 0x1cf   : > { %v7963_v25 = vpop.f32.mrf.mxu1  ;;  %v10379_v40 = vadd.f32 %v2567_v20, %v10298_v14  ;;  %8725 = vmatpush3.bf16.msra.mxu0 %v9046_v30 }
 0x1d0   : > { %v7964_v11 = vadd.f32 %v7963_v25, %v7962_v61  ;;  %v8641_v57 = vpop.f32.mrf.mxu0 }
 0x1d1   : > { %v7965_v13 = vpop.f32.mrf.mxu1  ;;  %v10382_v39 = vadd.f32 %v8641_v57, %v10316_v28 }
 0x1d2   : > { %v10384_v33 = vpop.f32.mrf.mxu0  ;;  %v2455_v7 = vadd.f32 %v7964_v11, %v10262_v59 }
 0x1d3   : > { %v7966_v2 = vpop.f32.mrf.mxu1 }
 0x1d4   : > { %v7967_v4 = vadd.f32 %v7966_v2, %v7965_v13  ;;  %v8644_v19 = vpop.f32.mrf.mxu0  ;;  %v7843_v2 = vadd.f32 %v10295_v3, %v10290_v62 }
 0x1d5   : > { %v7968_v38 = vpop.f32.mrf.mxu1  ;;  %v10390_v14 = vadd.f32 %v8644_v19, %v10339_v26 }
 0x1d6   : > { %v2583_v55 = vpop.f32.mrf.mxu0  ;;  %v10392_v16 = vadd.f32 %v7967_v4, %v2153_v51 }
 0x1d7   : > { %v7969_v1 = vpop.f32.mrf.mxu1  ;;  %v10395_v28 = vadd.f32 %v2583_v55, %v10326_v52 }
 0x1d8   : > { %v7970_v23 = vadd.f32 %v7969_v1, %v7968_v38  ;;  %v8645_v31 = vpop.f32.mrf.mxu0  ;;  %v2169_v1 = vadd.f32 %v7843_v2, %v10214_v44 }
 0x1d9   : > { %v7971_v59 = vpop.f32.mrf.mxu1  ;;  %v10398_v29 = vadd.f32 %v8645_v31, %v10345_v58 }
 0x1da   : > { %v10400_v41 = vpop.f32.mrf.mxu0  ;;  %v2463_v45 = vadd.f32 %v7970_v23, %v10277_v53 }
 0x1db   : > { %v7972_v26 = vpop.f32.mrf.mxu1 }
 0x1dc   : > { %v7973_v61 = vadd.f32 %v7972_v26, %v7971_v59  ;;  %v8648_v20 = vpop.f32.mrf.mxu0 }
 0x1dd   : > { %v7974_v25 = vpop.f32.mrf.mxu1  ;;  %v10403_v11 = vadd.f32 %v8648_v20, %v2447_v9 }
 0x1de   : > { %v2599_v52 = vpop.f32.mrf.mxu0  ;;  %v2466_v57 = vadd.f32 %v7973_v61, %v10284_v49 }
 0x1df   : > { %v7975_v13 = vpop.f32.mrf.mxu1  ;;  %v10407_v58 = vadd.f32 %v2599_v52, %v10356_v47 }
 0x1e0   : > { %v7976_v53 = vadd.f32 %v7975_v13, %v7974_v25  ;;  %v8649_v51 = vpop.f32.mrf.mxu0 }
 0x1e1   : > { %v7977_v4 = vpop.f32.mrf.mxu1  ;;  %v10411_v19 = vadd.f32 %v8649_v51, %v2450_v63 }
 0x1e2   : > { %v10413_v38 = vpop.f32.mrf.mxu0  ;;  %v2471_v9 = vadd.f32 %v7976_v53, %v10293_v36 }
 0x1e3   : > { %v7978_v55 = vpop.f32.mrf.mxu1 }
 0x1e4   : > { %v7979_v49 = vadd.f32 %v7978_v55, %v7977_v4  ;;  %v8652_v23 = vpop.f32.mrf.mxu0 }
 0x1e5   : > { %v7980_v31 = vpop.f32.mrf.mxu1  ;;  %v10417_v47 = vadd.f32 %v8652_v23, %v2463_v45 }
 0x1e6   : > { %v2615_v59 = vpop.f32.mrf.mxu0  ;;  %v10419_v30 = vadd.f32 %v7979_v49, %v2169_v1 }
 0x1e7   : > { %v7981_v62 = vpop.f32.mrf.mxu1  ;;  %v10421_v3 = vadd.f32 %v2615_v59, %v2455_v7 }
 0x1e8   : > { %v7982_v63 = vadd.f32 %v7981_v62, %v7980_v31  ;;  %v8653_v26 = vpop.f32.mrf.mxu0 }
 0x1e9   : > { %v7983_v61 = vpop.f32.mrf.mxu1  ;;  %v10423_v20 = vadd.f32 %v8653_v26, %v2466_v57  ;;  %v7855_v57 = vadd.f32 %v10323_v42, %v10318_v48  ;;  %v10445_v42 = vld [vmem:[#allocation3 + $0x2f8] sm:$0xff]  }
 0x1ea   : > { %v10425_v36 = vpop.f32.mrf.mxu0  ;;  %v2479_v44 = vadd.f32 %v7982_v63, %v10306_v22  ;;  %8758 = vmatprep.subr.bf16.mxu1 %v10445_v42 }
 0x1eb   : > { %v7984_v25 = vpop.f32.mrf.mxu1  ;;  %v2185_v62 = vadd.f32 %v7855_v57, %v10228_v46 }
 0x1ec   : > { %v7985_v52 = vadd.f32 %v7984_v25, %v7983_v61  ;;  %v8656_v13 = vpop.f32.mrf.mxu0  ;;  %v2190_v25 = vadd.f32 %v10221_v27, %v10332_v43 }
 0x1ed   : > { %v7986_v45 = vpop.f32.mrf.mxu1  ;;  %v10428_v2 = vadd.f32 %v8656_v13, %v2479_v44 }
 0x1ee   : > { %v2631_v53 = vpop.f32.mrf.mxu0  ;;  %v2482_v51 = vadd.f32 %v7985_v52, %v10313_v60 }
 0x1ef   : > { %v7987_v7 = vpop.f32.mrf.mxu1  ;;  %v10431_v4 = vadd.f32 %v2631_v53, %v2471_v9 }
 0x1f0   : > { %v7988_v55 = vadd.f32 %v7987_v7, %v7986_v45  ;;  %v8657_v1 = vpop.f32.mrf.mxu0 }
 0x1f1   : > { %v7989_v49 = vpop.f32.mrf.mxu1  ;;  %v10435_v23 = vadd.f32 %v8657_v1, %v2482_v51 }
 0x1f2   : > { %v10437_v22 = vpop.f32.mrf.mxu0  ;;  %v2487_v31 = vadd.f32 %v7988_v55, %v10321_v6  ;;  %v7861_v6 = vadd.f32 %v10336_v37, %v10334_v54 }
 0x1f3   : > { %v7990_v59 = vpop.f32.mrf.mxu1 }
 0x1f4   : > { %v7991_v63 = vadd.f32 %v7990_v59, %v7989_v49  ;;  %v8660_v60 = vpop.f32.mrf.mxu0  ;;  %v2193_v7 = vadd.f32 %v10226_v5, %v7861_v6  ;;  %v2539_v6 = vadd.f32 %v10353_v15, %v10245_v17 }
 0x1f5   : > { %v7992_v26 = vpop.f32.mrf.mxu1 }
 0x1f6   : > { %v2647_v9 = vpop.f32.mrf.mxu0  ;;  %v10441_v61 = vadd.f32 %v7991_v63, %v2185_v62 }
 0x1f7   : > { %v7993_v44 = vpop.f32.mrf.mxu1  ;;  %v10443_v48 = vadd.f32 %v2647_v9, %v2487_v31 }
 0x1f8   : > { %v7994_v52 = vadd.f32 %v7993_v44, %v7992_v26  ;;  %v8661_v13 = vpop.f32.mrf.mxu0  ;;  %v10462_v26 = vld [vmem:[%s11786_s2] ss:$0 sm:$0xff] }
 0x1f9   : > { %v7995_v46 = vpop.f32.mrf.mxu1 }
 0x1fa   : > { %v2495_v45 = vadd.f32 %v7994_v52, %v2190_v25  ;;  %v10452_v53 = vpop.f32.mrf.mxu0 }
 0x1fb   : > { %v7996_v51 = vpop.f32.mrf.mxu1 }
 0x1fc   : > { %v10455_v57 = vadd.f32 %v8660_v60, %v2495_v45  ;;  %v7997_v55 = vadd.f32 %v7996_v51, %v7995_v46  ;;  %v8038_v1 = vpop.f32.mrf.mxu0 }
 0x1fd   : > { %v8680_v49 = vpop.f32.mrf.mxu1 }
 0x1fe   : > { %v2498_v27 = vadd.f32 %v7997_v55, %v2193_v7  ;;  %v8039_v43 = vpop.f32.mrf.mxu0 }
 0x1ff   : > { %v8040_v31 = vadd.f32 %v8039_v43, %v8038_v1  ;;  %v3096_v54 = vpop.f32.mrf.mxu1 }
 0x200   : > { %v10457_v37 = vadd.f32 %v8661_v13, %v2498_v27  ;;  %v8041_v59 = vpop.f32.mrf.mxu0 }
 0x201   : > { %v3097_v62 = vadd.f32 %v8040_v31, %v3096_v54  ;;  %v8681_v63 = vpop.f32.mrf.mxu1 }
 0x202   : > { %v8042_v5 = vpop.f32.mrf.mxu0 }
 0x203   : > { %v3223_v60 = vadd.f32 %v3097_v62, %v10348_v8  ;;  %v8043_v9 = vadd.f32 %v8042_v5, %v8041_v59  ;;  %v3099_v44 = vpop.f32.mrf.mxu1 }
 0x204   : > { %v8044_v25 = vpop.f32.mrf.mxu0 }
 0x205   : > { %v10468_v52 = vadd.f32 %v10462_v26, %v3223_v60  ;;  %v3100_v13 = vadd.f32 %v8043_v9, %v3099_v44  ;;  %v8684_v1 = vpop.f32.mrf.mxu1 }
 0x206   : > { %v8045_v46 = vpop.f32.mrf.mxu0 }
 0x207   : > { %v7408_v45 = vmul.f32 -1.442695, %v10468_v52  ;;  %v3224_v51 = vadd.f32 %v3100_v13, %v2539_v6  ;;  %v8046_v7 = vadd.f32 %v8045_v46, %v8044_v25  ;;  %v3112_v54 = vpop.f32.mrf.mxu1 }
 0x208   : > { %v8047_v55 = vpop.f32.mrf.mxu0 }
 0x209   : > { %9162 = vpow2.f32 %v7408_v45  ;;  %v10472_v8 = vadd.f32 %v10462_v26, %v3224_v51  ;;  %v3105_v27 = vadd.f32 %v8680_v49, %v8046_v7  ;;  %v8685_v49 = vpop.f32.mrf.mxu1 }
 0x20a   : > { %v8048_v43 = vpop.f32.mrf.mxu0 }
 0x20b   : > { %v7409_v31 = vmul.f32 -1.442695, %v10472_v8  ;;  %v3225_v17 = vadd.f32 %v3105_v27, %v10342_v50  ;;  %v8049_v15 = vadd.f32 %v8048_v43, %v8047_v55  ;;  %v2555_v27 = vadd.f32 %v10371_v12, %v10274_v18 }
 0x20c   : > { %v8050_v59 = vpop.f32.mrf.mxu0 }
 0x20d   : > { %9164 = vpow2.f32 %v7409_v31  ;;  %v10477_v62 = vadd.f32 %v10462_v26, %v3225_v17  ;;  %v3108_v5 = vadd.f32 %v8681_v63, %v8049_v15  ;;  %v3115_v63 = vpop.f32.mrf.mxu1 }
 0x20e   : > { %v8051_v60 = vpop.f32.mrf.mxu0 }
 0x20f   : > { %v7410_v9 = vmul.f32 -1.442695, %v10477_v62  ;;  %v3226_v44 = vadd.f32 %v3108_v5, %v10351_v34  ;;  %v8052_v25 = vadd.f32 %v8051_v60, %v8050_v59 }
 0x210   : > { %v8053_v6 = vpop.f32.mrf.mxu0 }
 0x211   : > { %9166 = vpow2.f32 %v7410_v9  ;;  %v10482_v13 = vadd.f32 %v10462_v26, %v3226_v44  ;;  %v3113_v50 = vadd.f32 %v8052_v25, %v3112_v54 }
 0x212   : > { %v8054_v46 = vpop.f32.mrf.mxu0 }
 0x213   : > { %v7411_v45 = vmul.f32 -1.442695, %v10482_v13  ;;  %v3227_v51 = vadd.f32 %v3113_v50, %v10366_v21  ;;  %v8055_v7 = vadd.f32 %v8054_v46, %v8053_v6  ;;  %v8688_v21 = vpop.f32.mrf.mxu1 }
 0x214   : > { %v8056_v55 = vpop.f32.mrf.mxu0 }
 0x215   : > { %9168 = vpow2.f32 %v7411_v45  ;;  %v10489_v34 = vadd.f32 %v10462_v26, %v3227_v51  ;;  %v3116_v43 = vadd.f32 %v8055_v7, %v3115_v63  ;;  %v3128_v45 = vpop.f32.mrf.mxu1 }
 0x216   : > { %v9163_v31 = vpop.eup %9162  ;;  %v8057_v17 = vpop.f32.mrf.mxu0 }
 0x217   : > { %v3390_v15 = vadd.f32 1.0, %v9163_v31  ;;  %v7412_v54 = vmul.f32 -1.442695, %v10489_v34  ;;  %v3228_v59 = vadd.f32 %v3116_v43, %v2555_v27  ;;  %v8058_v5 = vadd.f32 %v8057_v17, %v8056_v55 }
 0x218   : > { %v8059_v60 = vpop.f32.mrf.mxu0 }
 0x219   : > { %9170 = vrcp.f32 %v3390_v15  ;;  %v10493_v9 = vadd.f32 %v10462_v26, %v3228_v59  ;;  %v3121_v44 = vadd.f32 %v8684_v1, %v8058_v5  ;;  %v8689_v15 = vpop.f32.mrf.mxu1 }
 0x21a   : > { %v9165_v18 = vpop.eup %9164  ;;  %9172 = vpow2.f32 %v7412_v54  ;;  %v8060_v12 = vpop.f32.mrf.mxu0 }
 0x21b   : > { %v3391_v25 = vadd.f32 1.0, %v9165_v18  ;;  %v7413_v6 = vmul.f32 -1.442695, %v10493_v9  ;;  %v3229_v50 = vadd.f32 %v3121_v44, %v10361_v35  ;;  %v8061_v46 = vadd.f32 %v8060_v12, %v8059_v60 }
 0x21c   : > { %v8062_v51 = vpop.f32.mrf.mxu0 }
 0x21d   : > { %9174 = vrcp.f32 %v3391_v25  ;;  %v10498_v7 = vadd.f32 %v10462_v26, %v3229_v50  ;;  %v3124_v63 = vadd.f32 %v8685_v49, %v8061_v46  ;;  %v3131_v25 = vpop.f32.mrf.mxu1 }
 0x21e   : > { %v9167_v55 = vpop.eup %9166  ;;  %9176 = vpow2.f32 %v7413_v6  ;;  %v8063_v27 = vpop.f32.mrf.mxu0 }
 0x21f   : > { %v3392_v1 = vadd.f32 1.0, %v9167_v55  ;;  %v7414_v43 = vmul.f32 -1.442695, %v10498_v7  ;;  %v3230_v31 = vadd.f32 %v3124_v63, %v10369_v0  ;;  %v8064_v17 = vadd.f32 %v8063_v27, %v8062_v51 }
 0x220   : > { %v8065_v54 = vpop.f32.mrf.mxu0  ;;  %v2571_v0 = vadd.f32 %v10384_v33, %v10303_v32 }
 0x221   : > { %9178 = vrcp.f32 %v3392_v1  ;;  %v10503_v35 = vadd.f32 %v10462_v26, %v3230_v31  ;;  %v3129_v59 = vadd.f32 %v8064_v17, %v3128_v45 }
 0x222   : > { %v9169_v5 = vpop.eup %9168  ;;  %9180 = vpow2.f32 %v7414_v43  ;;  %v8066_v60 = vpop.f32.mrf.mxu0  ;;  %v3518_v43 = vld [vmem:[#allocation2 + $0x14] sm:$0xf] }
 0x223   : > { %v3393_v49 = vadd.f32 1.0, %v9169_v5  ;;  %v7415_v44 = vmul.f32 -1.442695, %v10503_v35  ;;  %v3231_v18 = vadd.f32 %v3129_v59, %v10379_v40  ;;  %v8067_v12 = vadd.f32 %v8066_v60, %v8065_v54  ;;  %v10514_v54 = vpop.f32.mrf.mxu1  ;;  %v10519_v5 = vld [vmem:[#allocation2 + $0x1c] ss:$0 sps:$4 sm:$0x11]  }
 0x224   : > { %v8068_v6 = vpop.f32.mrf.mxu0 }
 0x225   : > { %9182 = vrcp.f32 %v3393_v49  ;;  %v10510_v50 = vadd.f32 %v10462_v26, %v3231_v18  ;;  %v3132_v46 = vadd.f32 %v8067_v12, %v3131_v25  ;;  %v10521_v49 = vld [vmem:[#allocation2 + $0x2c] ss:$0 sps:$4 sm:$0x11]  }
 0x226   : > { %v9171_v45 = vpop.eup %9170  ;;  %9184 = vpow2.f32 %v7415_v44  ;;  %v8069_v51 = vpop.f32.mrf.mxu0 }
 0x227   : > { %v9173_v63 = vpop.eup %9172  ;;  %v3486_v55 = vmul.f32 %v9171_v45, %v10468_v52  ;;  %v7416_v27 = vmul.f32 -1.442695, %v10510_v50  ;;  %v3232_v40 = vadd.f32 %v3132_v46, %v2571_v0  ;;  %v8070_v1 = vadd.f32 %v8069_v51, %v8068_v6  ;;  %v3519_v0 = vld [vmem:[#allocation2 + $0x18] sm:$0xf]  ;;  %v3144_v51 = vpop.f32.mrf.mxu1 }
 0x228   : > { %v3394_v31 = vadd.f32 1.0, %v9173_v63  ;;  %v8071_v17 = vpop.f32.mrf.mxu0  ;;  %v10526_v63 = vld [vmem:[#allocation2 + $0x3c] ss:$0 sps:$4 sm:$0x11]  }
 0x229   : > { %v7686_v32 = vpack.c.bf16 %v3486_v55, %v3486_v55  ;;  %9186 = vpow2.f32 %v7416_v27  ;;  %v10517_v33 = vadd.f32 %v10462_v26, %v3232_v40  ;;  %v3137_v59 = vadd.f32 %v8688_v21, %v8070_v1 }
 0x22a   : > { %v9175_v60 = vpop.eup %9174  ;;  %9188 = vrcp.f32 %v3394_v31  ;;  %v8072_v52 = vpop.f32.mrf.mxu0  ;;  %v4178_v40 = vrot.slane %v10519_v5, 5 }
 0x22b   : > { %v9177_v44 = vpop.eup %9176  ;;  %v3678_v18 = vadd.bf16 %v7686_v32, %v3518_v43  ;;  %v3487_v12 = vmul.f32 %v9175_v60, %v10472_v8  ;;  %v7417_v25 = vmul.f32 -1.442695, %v10517_v33  ;;  %v3233_v6 = vadd.f32 %v3137_v59, %v10375_v24  ;;  %v10532_v8 = vld [vmem:[#allocation2 + $0x4c] ss:$0 sps:$4 sm:$0x11]  }
 0x22c   : > { %v3395_v46 = vadd.f32 1.0, %v9177_v44  ;;  %v8073_v45 = vadd.f32 %v8072_v52, %v8071_v17  ;;  %v8074_v21 = vpop.f32.mrf.mxu0  ;;  %v10536_v24 = vadd.f32 %v10400_v41, %v10330_v56  ;;  %v3520_v52 = vld [vmem:[#allocation2 + $0x24] sm:$0xf]  ;;  %v10546_v41 = vpop.f32.mrf.mxu1 }
 0x22d   : > { %3710 = vst [vmem:[#allocation2 + $0x14] sm:$0xf] %v3678_v18  ;;  %v7687_v55 = vpack.c.bf16 %v3487_v12, %v3487_v12  ;;  %9190 = vpow2.f32 %v7417_v25  ;;  %v10529_v27 = vadd.f32 %v10462_v26, %v3233_v6  ;;  %v10543_v12 = vadd.f32 %v10413_v38, %v10363_v10 }
 0x22e   : > { %v9179_v1 = vpop.eup %9178  ;;  %9192 = vrcp.f32 %v3395_v46  ;;  %v3140_v43 = vadd.f32 %v8689_v15, %v8073_v45  ;;  %v8075_v31 = vpop.f32.mrf.mxu0  ;;  %v10549_v46 = vld [vmem:[#allocation2 + $0x5c] ss:$0 sps:$4 sm:$0x11]   ;;  %v3745_v45 = vld [vmem:[#allocation2 + $0x10] sm:$0x8]  ;;  %v10560_v38 = vadd.f32 %v10437_v22, %v10419_v30  ;;  %v10573_v30 = vadd.f32 %v10452_v53, %v10441_v61 }
 0x22f   : > { %v9181_v32 = vpop.eup %9180  ;;  %v3679_v59 = vadd.bf16 %v7687_v55, %v3519_v0  ;;  %v3488_v60 = vmul.f32 %v9179_v1, %v10477_v62  ;;  %v7418_v44 = vmul.f32 -1.442695, %v10529_v27  ;;  %v8076_v18 = vadd.f32 %v8075_v31, %v8074_v21  ;;  %v10552_v55 = vld [vmem:[#allocation2 + $0x6c] ss:$0 sps:$4 sm:$0x11]  }
 0x230   : > { %v3396_v25 = vadd.f32 1.0, %v9181_v32  ;;  %v3234_v56 = vadd.f32 %v3140_v43, %v10382_v39  ;;  %v8077_v15 = vpop.f32.mrf.mxu0  ;;  %v10556_v39 = vadd.f32 %v10425_v36, %v10392_v16  ;;  %v10567_v31 = vld [vmem:[#allocation2 + $0x8c] ss:$0 sps:$4 sm:$0x11]  }
 0x231   : > { %3711 = vst [vmem:[#allocation2 + $0x18] sm:$0xf] %v3679_v59  ;;  %v7688_v62 = vpack.c.bf16 %v3488_v60, %v3488_v60  ;;  %9194 = vpow2.f32 %v7418_v44  ;;  %v3145_v0 = vadd.f32 %v8076_v18, %v3144_v51  ;;  %v10565_v51 = vld [vmem:[#allocation2 + $0x7c] ss:$0 sps:$4 sm:$0x11]   ;;  %11928 = vst [vmem:[#allocation24_spill] sm:$0xff] %v10567_v31 }
 0x232   : > { %v9183_v10 = vpop.eup %9182  ;;  %9196 = vrcp.f32 %v3396_v25  ;;  %v10563_v1 = vadd.f32 %v10462_v26, %v3234_v56  ;;  %v8078_v43 = vpop.f32.mrf.mxu0  ;;  %v3521_v44 = vld [vmem:[#allocation2 + $0x28] sm:$0xf] }
 0x233   : > { %v9185_v32 = vpop.eup %9184  ;;  %v3680_v59 = vadd.bf16 %v7688_v62, %v3520_v52  ;;  %v3489_v60 = vmul.f32 %v9183_v10, %v10482_v13  ;;  %v3235_v16 = vadd.f32 %v3145_v0, %v10395_v28  ;;  %v8079_v36 = vadd.f32 %v8078_v43, %v8077_v15  ;;  %v3147_v25 = vpop.f32.mrf.mxu1  ;;  %v3522_v0 = vld [vmem:[#allocation2 + $0x34] sm:$0xf] }
 0x234   : > { %v3397_v22 = vadd.f32 1.0, %v9185_v32  ;;  %v7419_v18 = vmul.f32 -1.442695, %v10563_v1  ;;  %v8080_v56 = vpop.f32.mrf.mxu0  ;;  %v3746_v21 = vld [vmem:[#allocation2 + $0x14] sm:$0xf] }
 0x235   : > { %3712 = vst [vmem:[#allocation2 + $0x24] sm:$0xf] %v3680_v59  ;;  %v7689_v52 = vpack.c.bf16 %v3489_v60, %v3489_v60  ;;  %v10578_v13 = vadd.f32 %v10462_v26, %v3235_v16  ;;  %v3148_v62 = vadd.f32 %v8079_v36, %v3147_v25  ;;  %v10580_v28 = vcombine.low %v3745_v45, %v3746_v21 }
 0x236   : > { %v9187_v15 = vpop.eup %9186  ;;  %9198 = vrcp.f32 %v3397_v22  ;;  %v8081_v61 = vpop.f32.mrf.mxu0 }
 0x237   : > { %v9189_v43 = vpop.eup %9188  ;;  %v3681_v32 = vadd.bf16 %v7689_v52, %v3521_v44  ;;  %v3398_v6 = vadd.f32 1.0, %v9187_v15  ;;  %9200 = vpow2.f32 %v7419_v18  ;;  %v7420_v59 = vmul.f32 -1.442695, %v10578_v13  ;;  %v10588_v22 = vpop.f32.mrf.mxu1  ;;  %v3523_v18 = vld [vmem:[#allocation2 + $0x38] sm:$0xf] }
 0x238   : > { %v3490_v60 = vmul.f32 %v9189_v43, %v10489_v34  ;;  %v3236_v45 = vadd.f32 %v3148_v62, %v10536_v24  ;;  %v8082_v16 = vadd.f32 %v8081_v61, %v8080_v56  ;;  %v8083_v36 = vpop.f32.mrf.mxu0  ;;  %v3747_v25 = vld [vmem:[#allocation2 + $0x18] sm:$0xf] }
 0x239   : > { %3713 = vst [vmem:[#allocation2 + $0x28] sm:$0xf] %v3681_v32  ;;  %9202 = vrcp.f32 %v3398_v6  ;;  %v10591_v10 = vcombine.low %v3746_v21, %v3747_v25  ;;  %v10593_v44 = vcombine.low %v3747_v25, %v3747_v25 }
 0x23a   : > { %v9191_v52 = vpop.eup %9190  ;;  %v7690_v34 = vpack.c.bf16 %v3490_v60, %v3490_v60  ;;  %9204 = vpow2.f32 %v7420_v59  ;;  %v10597_v24 = vadd.f32 %v10462_v26, %v3236_v45  ;;  %v3153_v56 = vadd.f32 %v10514_v54, %v8082_v16  ;;  %v8084_v62 = vpop.f32.mrf.mxu0 }
 0x23b   : > { %v9193_v15 = vpop.eup %9192  ;;  %v3399_v61 = vadd.f32 1.0, %v9191_v52  ;;  %v8085_v43 = vadd.f32 %v8084_v62, %v8083_v36  ;;  %v4177_v6 = vrot.slane %v10591_v10, 5  ;;  %v3985_v21 = vshrl.u32 %v10591_v10, 16  ;;  %v3160_v60 = vpop.f32.mrf.mxu1 }
 0x23c   : > { %v3682_v32 = vadd.bf16 %v7690_v34, %v3522_v0  ;;  %v3491_v25 = vmul.f32 %v9193_v15, %v10493_v9  ;;  %v7421_v17 = vmul.f32 -1.442695, %v10597_v24  ;;  %v3237_v59 = vadd.f32 %v3153_v56, %v10390_v14  ;;  %v8086_v45 = vpop.f32.mrf.mxu0 }
 0x23d   : > { %9206 = vrcp.f32 %v3399_v61  ;;  %v3156_v54 = vadd.f32 %v10546_v41, %v8085_v43  ;;  %v4179_v16 = vsel %vm795_vm3, %v4177_v6, %v4178_v40  ;;  %v4298_v36 = vshrl.u32 %v4177_v6, 16  ;;  %v10615_v53 = vpop.f32.mrf.mxu1 }
 0x23e   : > { %v9195_v52 = vpop.eup %9194  ;;  %3714 = vst [vmem:[#allocation2 + $0x34] sm:$0xf] %v3682_v32  ;;  %v7691_v0 = vpack.c.bf16 %v3491_v25, %v3491_v25  ;;  %9208 = vpow2.f32 %v7421_v17  ;;  %v10610_v9 = vadd.f32 %v10462_v26, %v3237_v59  ;;  %v8087_v34 = vpop.f32.mrf.mxu0  ;;  %v4301_v14 = vshll.u32 %v4177_v6, 16  ;;  %v3524_v25 = vld [vmem:[#allocation2 + $0x44] sm:$0xf] }
 0x23f   : > { %v9197_v56 = vpop.eup %9196  ;;  %v3400_v62 = vadd.f32 1.0, %v9195_v52  ;;  %v3238_v15 = vadd.f32 %v3156_v54, %v10398_v29  ;;  %v8088_v61 = vadd.f32 %v8087_v34, %v8086_v45  ;;  %v4300_v41 = vrot.slane %v4298_v36, 3  ;;  %v3163_v31 = vpop.f32.mrf.mxu1 }
 0x240   : > { %v3683_v43 = vadd.bf16 %v7691_v0, %v3523_v18  ;;  %v3492_v5 = vmul.f32 %v9197_v56, %v10498_v7  ;;  %v7422_v40 = vmul.f32 -1.442695, %v10610_v9  ;;  %v8089_v32 = vpop.f32.mrf.mxu0  ;;  %v4303_v17 = vrot.slane %v4301_v14, 4 }
 0x241   : > { %9210 = vrcp.f32 %v3400_v62  ;;  %v10618_v59 = vadd.f32 %v10462_v26, %v3238_v15  ;;  %v3161_v6 = vadd.f32 %v8088_v61, %v3160_v60  ;;  %v4306_v52 = vshrl.u32 %v4179_v16, 16 }
 0x242   : > { %3715 = vst [vmem:[#allocation2 + $0x38] sm:$0xf] %v3683_v43  ;;  %v7692_v29 = vpack.c.bf16 %v3492_v5, %v3492_v5  ;;  %9212 = vpow2.f32 %v7422_v40  ;;  %v8090_v45 = vpop.f32.mrf.mxu0  ;;  %v4304_v18 = vor.u32 %v4303_v17, %v4300_v41  ;;  %v4309_v54 = vshll.u32 %v4179_v16, 16  ;;  %v3525_v5 = vld [vmem:[#allocation2 + $0x48] sm:$0xf] }
 0x243   : > { %v9199_v7 = vpop.eup %9198  ;;  %v7423_v36 = vmul.f32 -1.442695, %v10618_v59  ;;  %v3239_v0 = vadd.f32 %v3161_v6, %v10407_v58  ;;  %v8091_v34 = vadd.f32 %v8090_v45, %v8089_v32  ;;  %v4308_v14 = vrot.slane %v4306_v52, 3 }
 0x244   : > { %v9201_v56 = vpop.eup %9200  ;;  %v3684_v62 = vadd.bf16 %v7692_v29, %v3524_v25  ;;  %v3493_v15 = vmul.f32 %v9199_v7, %v10503_v35  ;;  %v8092_v60 = vpop.f32.mrf.mxu0  ;;  %v4311_v61 = vrot.slane %v4309_v54, 4  ;;  %v3987_v43 = vrot.slane %v3985_v21, 4  ;;  %v3526_v7 = vld [vmem:[#allocation2 + $0x54] sm:$0xf] }
 0x245   : > { %v3401_v40 = vadd.f32 1.0, %v9201_v56  ;;  %9214 = vpow2.f32 %v7423_v36  ;;  %v10624_v16 = vadd.f32 %v10462_v26, %v3239_v0  ;;  %v3164_v41 = vadd.f32 %v8091_v34, %v3163_v31 }
 0x246   : > { %v9203_v17 = vpop.eup %9202  ;;  %3716 = vst [vmem:[#allocation2 + $0x44] sm:$0xf] %v3684_v62  ;;  %v7693_v58 = vpack.c.bf16 %v3493_v15, %v3493_v15  ;;  %v4312_v32 = vor.u32 %v4311_v61, %v4308_v14  ;;  %v8093_v6 = vpop.f32.mrf.mxu0  ;;  %v3988_v25 = vshll.u32 %v10591_v10, 16  ;;  %v11929_v35 = vshrl.u32 %v10580_v28, 16 }
 0x247   : > { %v9205_v29 = vpop.eup %9204  ;;  %v3494_v21 = vmul.f32 %v9203_v17, %v10510_v50  ;;  %9216 = vrcp.f32 %v3401_v40  ;;  %v7424_v45 = vmul.f32 -1.442695, %v10624_v16  ;;  %v3240_v54 = vadd.f32 %v3164_v41, %v10543_v12 }
 0x248   : > { %v10629_v52 = vrot.slane %v11929_v35, 3  ;;  %v3685_v31 = vadd.bf16 %v7693_v58, %v3525_v5  ;;  %v3402_v36 = vadd.f32 1.0, %v9205_v29  ;;  %v10635_v0 = vsel %vm850_vm4, %v4304_v18, %v4312_v32  ;;  %v8095_v10 = vpop.f32.mrf.mxu0  ;;  %v3527_v32 = vld [vmem:[#allocation2 + $0x58] sm:$0xf] }
 0x249   : > { %v8094_v34 = vadd.f32 %v8093_v6, %v8092_v60  ;;  %v7694_v14 = vpack.c.bf16 %v3494_v21, %v3494_v21  ;;  %9218 = vpow2.f32 %v7424_v45  ;;  %v10638_v56 = vadd.f32 %v10462_v26, %v3240_v54  ;;  %8726 = vmatprep.mubr.bf16.mxu0 %v10635_v0 }
 0x24a   : > { %v3990_v50 = vrot.slane %v3988_v25, 5  ;;  %v9207_v62 = vpop.eup %9206  ;;  %3717 = vst [vmem:[#allocation2 + $0x48] sm:$0xf] %v3685_v31  ;;  %9220 = vrcp.f32 %v3402_v36  ;;  %v11930_v15 = vshll.u32 %v10580_v28, 16  ;;  %v4280_v18 = vshrl.u32 %v10593_v44, 16  ;;  %v8096_v60 = vpop.f32.mrf.mxu0 }
 0x24b   : > { %v3169_v12 = vadd.f32 %v10588_v22, %v8094_v34  ;;  %v9209_v5 = vpop.eup %9208  ;;  %v3686_v40 = vadd.bf16 %v7694_v14, %v3526_v7  ;;  %v3495_v41 = vmul.f32 %v9207_v62, %v10517_v33  ;;  %v7425_v17 = vmul.f32 -1.442695, %v10638_v56  ;;  %v10653_v7 = vld [vmem:[#allocation2 + $0x28] sm:$0xf]  ;;  %v10656_v62 = vpop.f32.mrf.mxu1 }
 0x24c   : > { %v4277_v61 = vrot.slane %v11930_v15, 4  ;;  %v3991_v58 = vor.u32 %v3990_v50, %v3987_v43  ;;  %v3403_v6 = vadd.f32 1.0, %v9209_v5  ;;  %v4282_v22 = vrot.slane %v4280_v18, 3  ;;  %v8098_v29 = vpop.f32.mrf.mxu0  ;;  %v3748_v15 = vld [vmem:[#allocation2 + $0x20] sm:$0x8] }
 0x24d   : > { %v3241_v25 = vadd.f32 %v3169_v12, %v10403_v11  ;;  %3718 = vst [vmem:[#allocation2 + $0x54] sm:$0xf] %v3686_v40  ;;  %v7695_v28 = vpack.c.bf16 %v3495_v41, %v3495_v41  ;;  %9222 = vpow2.f32 %v7425_v17  ;;  %v4283_v43 = vshll.u32 %v10593_v44, 16  ;;  %v3749_v12 = vld [vmem:[#allocation2 + $0x24] sm:$0xf] }
 0x24e   : > { %v4278_v35 = vor.u32 %v4277_v61, %v10629_v52  ;;  %v4289_v21 = vshrl.u32 %v3991_v58, 16  ;;  %v4292_v45 = vshll.u32 %v3991_v58, 16  ;;  %v9211_v54 = vpop.eup %9210  ;;  %9224 = vrcp.f32 %v3403_v6  ;;  %v8099_v11 = vpop.f32.mrf.mxu0  ;;  %v3528_v61 = vld [vmem:[#allocation2 + $0x64] sm:$0xf] }
 0x24f   : > { %v10650_v33 = vadd.f32 %v10462_v26, %v3241_v25  ;;  %v8097_v31 = vadd.f32 %v8096_v60, %v8095_v10  ;;  %v9213_v36 = vpop.eup %9212  ;;  %v3687_v52 = vadd.bf16 %v7695_v28, %v3527_v32  ;;  %v3496_v34 = vmul.f32 %v9211_v54, %v10529_v27 }
 0x250   : > { %v4291_v14 = vrot.slane %v4289_v21, 3  ;;  %v4294_v50 = vrot.slane %v4292_v45, 4  ;;  %v3404_v18 = vadd.f32 1.0, %v9213_v36  ;;  %v4285_v40 = vrot.slane %v4283_v43, 4  ;;  %v10660_v10 = vpop.f32.mrf.mxu0  ;;  %v3176_v45 = vpop.f32.mrf.mxu1  ;;  %v9055_v43 = vld [vmem:[#allocation3 + $0x2f0] sm:$0xff]  }
 0x251   : > { %v7426_v5 = vmul.f32 -1.442695, %v10650_v33  ;;  %v3172_v44 = vadd.f32 %v10615_v53, %v8097_v31  ;;  %3719 = vst [vmem:[#allocation2 + $0x58] sm:$0xf] %v3687_v52  ;;  %v7696_v60 = vpack.c.bf16 %v3496_v34, %v3496_v34  ;;  %v10665_v27 = vcombine.low %v3749_v12, %v10653_v7  ;;  %v3529_v34 = vld [vmem:[#allocation2 + $0x68] sm:$0xf] }
 0x252   : > { %v10662_v41 = vor.u32 %v4294_v50, %v4291_v14  ;;  %v8100_v17 = vadd.f32 %v8099_v11, %v8098_v29  ;;  %v9215_v58 = vpop.eup %9214  ;;  %9226 = vrcp.f32 %v3404_v18  ;;  %v4286_v32 = vor.u32 %v4285_v40, %v4282_v22  ;;  %v10670_v28 = vpop.f32.mrf.mxu0 }
 0x253   : > { %v3242_v6 = vadd.f32 %v3172_v44, %v10411_v19  ;;  %v10668_v25 = vcombine.low %v3748_v15, %v3749_v12  ;;  %v3688_v53 = vadd.bf16 %v7696_v60, %v3528_v61  ;;  %v3405_v21 = vadd.f32 1.0, %v9215_v58  ;;  %v9064_v58 = vld [vmem:[#allocation3 + $0x2e8] sm:$0xff]  }
 0x254   : > { %9228 = vpow2.f32 %v7426_v5  ;;  %5284 = vmatprep.mubr.bf16.mxu1 %v10662_v41  ;;  %v4180_v54 = vrot.slane %v10665_v27, 5  ;;  %v9217_v31 = vpop.eup %9216  ;;  %v10675_v29 = vsel %vm850_vm4, %v4278_v35, %v4286_v32  ;;  %v3177_v19 = vadd.f32 %v8100_v17, %v3176_v45  ;;  %v10681_v36 = vpop.f32.mrf.mxu0 }
 0x255   : > { %v10678_v22 = vadd.f32 %v10462_v26, %v3242_v6  ;;  %v3993_v11 = vshrl.u32 %v10665_v27, 16  ;;  %3720 = vst [vmem:[#allocation2 + $0x64] sm:$0xf] %v3688_v53  ;;  %v3497_v52 = vmul.f32 %v9217_v31, %v10563_v1  ;;  %9230 = vrcp.f32 %v3405_v21  ;;  %5285 = vmatmul.mubr.bf16.vlgmr.msra.gmra.mxu1 %v10675_v29  ;;  %v3530_v21 = vld [vmem:[#allocation2 + $0x74] sm:$0xf] }
 0x256   : > { %v11931_v14 = vrot.slane %v10521_v49, 5  ;;  %v4341_v50 = vshrl.u32 %v4180_v54, 16  ;;  %v9219_v12 = vpop.eup %9218  ;;  %8759 = vmatpush3.bf16.msra.mxu1 %v10445_v42  ;;  %v4344_v61 = vshll.u32 %v4180_v54, 16  ;;  %v3243_v17 = vadd.f32 %v3177_v19, %v10421_v3  ;;  %v10692_v53 = vpop.f32.mrf.mxu0 }
 0x257   : > { %v7427_v15 = vmul.f32 -1.442695, %v10678_v22  ;;  %v9221_v40 = vpop.eup %9220  ;;  %v7697_v44 = vpack.c.bf16 %v3497_v52, %v3497_v52  ;;  %v3406_v1 = vadd.f32 1.0, %v9219_v12  ;;  %8760 = vmatprep.subr.bf16.mxu1 %v9055_v43  ;;  %v3995_v3 = vrot.slane %v3993_v11, 4  ;;  %v10702_v11 = vpop.f32.mrf.mxu1 }
 0x258   : > { %v4182_v35 = vsel %vm795_vm3, %v4180_v54, %v11931_v14  ;;  %v4343_v60 = vrot.slane %v4341_v50, 3  ;;  %v3498_v49 = vmul.f32 %v9221_v40, %v10578_v13  ;;  %v4346_v32 = vrot.slane %v4344_v61, 4  ;;  %v9083_v13 = vld [vmem:[#allocation3 + $0x2b8] sm:$0xff]   ;;  %v9073_v61 = vld [vmem:[#allocation3 + $0x2e0] sm:$0xff]  }
 0x259   : > { %v4349_v18 = vshrl.u32 %v4182_v35, 16  ;;  %v4352_v5 = vshll.u32 %v4182_v35, 16  ;;  %9232 = vpow2.f32 %v7427_v15  ;;  %v3689_v42 = vadd.bf16 %v7697_v44, %v3529_v34  ;;  %v10705_v44 = vpop.f32.mrf.mxu0  ;;  %8294 = vmatprep.subr.bf16.mxu0 %v9083_v13 }
 0x25a   : > { %9234 = vrcp.f32 %v3406_v1  ;;  %v10695_v54 = vadd.f32 %v10462_v26, %v3243_v17  ;;  %v9223_v31 = vpop.eup %9222  ;;  %v7698_v52 = vpack.c.bf16 %v3498_v49, %v3498_v49  ;;  %v4347_v14 = vor.u32 %v4346_v32, %v4343_v60  ;;  %8761 = vmatpush3.bf16.msra.mxu1 %v9055_v43  ;;  %v9089_v1 = vld [vmem:[#allocation3 + $0x2b0] sm:$0xff]   ;;  %v3531_v60 = vld [vmem:[#allocation2 + $0x78] sm:$0xf] }
 0x25b   : > { %v4351_v6 = vrot.slane %v4349_v18, 3  ;;  %v4354_v45 = vrot.slane %v4352_v5, 4  ;;  %v3996_v19 = vshll.u32 %v10665_v27, 16  ;;  %v9225_v35 = vpop.eup %9224  ;;  %3721 = vst [vmem:[#allocation2 + $0x68] sm:$0xf] %v3689_v42  ;;  %v3407_v50 = vadd.f32 1.0, %v9223_v31  ;;  %8762 = vmatprep.subr.bf16.mxu1 %v9064_v58 }
 0x25c   : > { %v7428_v34 = vmul.f32 -1.442695, %v10695_v54  ;;  %v7477_v15 = vcombine.low %v10653_v7, %v10653_v7  ;;  %v9084_v18 = vld [vmem:[#allocation3 + $0x278] sm:$0xff]   ;;  %v3690_v5 = vadd.bf16 %v7698_v52, %v3530_v21  ;;  %v3499_v40 = vmul.f32 %v9225_v35, %v10597_v24 }
 0x25d   : > { %v4355_v12 = vor.u32 %v4354_v45, %v4351_v6  ;;  %v3998_v27 = vrot.slane %v3996_v19, 5  ;;  %v4315_v43 = vshrl.u32 %v10668_v25, 16  ;;  %9236 = vrcp.f32 %v3407_v50  ;;  %v10712_v42 = vld [vmem:[#allocation2 + $0x38] sm:$0xf]  ;;  %v9090_v19 = vld [vmem:[#allocation3 + $0x270] sm:$0xff]  }
 0x25e   : > { %v4318_v7 = vshll.u32 %v10668_v25, 16  ;;  %v4323_v49 = vshrl.u32 %v7477_v15, 16  ;;  %3722 = vst [vmem:[#allocation2 + $0x74] sm:$0xf] %v3690_v5  ;;  %v7699_v32 = vpack.c.bf16 %v3499_v40, %v3499_v40  ;;  %9238 = vpow2.f32 %v7428_v34  ;;  %8763 = vmatpush3.bf16.msra.mxu1 %v9064_v58  ;;  %v9082_v25 = vld [vmem:[#allocation3 + $0x2d8] sm:$0xff]   ;;  %v10717_v5 = vpop.f32.mrf.mxu0  ;;  %v9096_v58 = vld [vmem:[#allocation3 + $0x2a8] sm:$0xff]  }
 0x25f   : > { %v10708_v17 = vsel %vm850_vm4, %v4347_v14, %v4355_v12  ;;  %v3999_v24 = vor.u32 %v3998_v27, %v3995_v3  ;;  %v4317_v6 = vrot.slane %v4315_v43, 3  ;;  %v9227_v21 = vpop.eup %9226  ;;  %v4326_v52 = vshll.u32 %v7477_v15, 16  ;;  %8764 = vmatprep.subr.bf16.mxu1 %v9073_v61  ;;  %v3179_v3 = vpop.f32.mrf.mxu1  ;;  %v3532_v40 = vld [vmem:[#allocation2 + $0x84] sm:$0xf] }
 0x260   : > { %8727 = vmatmul.mubr.bf16.vlgmr.msra.gmra.mxu0 %v10708_v17  ;;  %v4320_v45 = vrot.slane %v4318_v7, 4  ;;  %v4325_v31 = vrot.slane %v4323_v49, 3  ;;  %v8103_v14 = vadd.f32 %v10670_v28, %v10660_v10  ;;  %v3691_v35 = vadd.bf16 %v7699_v32, %v3531_v60  ;;  %v10719_v28 = vld [vmem:[#allocation2 + $0x34] sm:$0xf] }
 0x261   : > { %8295 = vmatpush3.bf16.msra.mxu0 %v9084_v18  ;;  %v9229_v13 = vpop.eup %9228  ;;  %v3500_v50 = vmul.f32 %v9227_v21, %v10610_v9  ;;  %v4332_v12 = vshrl.u32 %v3999_v24, 16  ;;  %v4335_v34 = vshll.u32 %v3999_v24, 16  ;;  %v4328_v43 = vrot.slane %v4326_v52, 4 }
 0x262   : > { %8296 = vmatprep.subr.bf16.mxu0 %v9089_v1  ;;  %v3408_v15 = vadd.f32 1.0, %v9229_v13  ;;  %v4321_v27 = vor.u32 %v4320_v45, %v4317_v6  ;;  %v3180_v10 = vadd.f32 %v8103_v14, %v3179_v3  ;;  %v9231_v18 = vpop.eup %9230  ;;  %3723 = vst [vmem:[#allocation2 + $0x78] sm:$0xf] %v3691_v35  ;;  %v10723_v9 = vcombine.low %v10719_v28, %v10712_v42  ;;  %v9095_v6 = vld [vmem:[#allocation3 + $0x2d0] sm:$0xff]   ;;  %v3533_v45 = vld [vmem:[#allocation2 + $0x88] sm:$0xf]  ;;  %v10732_v35 = vpop.f32.mrf.mxu0 }
 0x263   : > { %v7700_v7 = vpack.c.bf16 %v3500_v50, %v3500_v50  ;;  %v4334_v60 = vrot.slane %v4332_v12, 3  ;;  %v4337_v49 = vrot.slane %v4335_v34, 4  ;;  %8765 = vmatpush3.bf16.msra.mxu1 %v9073_v61  ;;  %v3501_v1 = vmul.f32 %v9231_v18, %v10618_v59  ;;  %v9097_v59 = vld [vmem:[#allocation3 + $0x268] sm:$0xff]  }
 0x264   : > { %9240 = vrcp.f32 %v3408_v15  ;;  %v4329_v32 = vor.u32 %v4328_v43, %v4325_v31  ;;  %v3244_v24 = vadd.f32 %v3180_v10, %v10556_v39  ;;  %8766 = vmatprep.subr.bf16.mxu1 %v9082_v25  ;;  %v4183_v14 = vrot.slane %v10723_v9, 5  ;;  %v3751_v43 = vld [vmem:[#allocation2 + $0x30] sm:$0x8]  ;;  %v3534_v10 = vld [vmem:[#allocation2 + $0x94] sm:$0xf] }
 0x265   : > { %8297 = vmatpush3.bf16.msra.mxu0 %v9090_v19  ;;  %v3692_v21 = vadd.bf16 %v7700_v7, %v3532_v40  ;;  %v10727_v52 = vor.u32 %v4337_v49, %v4334_v60  ;;  %v8106_v13 = vadd.f32 %v10692_v53, %v10681_v36  ;;  %v7701_v31 = vpack.c.bf16 %v3501_v1, %v3501_v1  ;;  %v10748_v60 = vpop.f32.mrf.mxu0  ;;  %v9102_v1 = vld [vmem:[#allocation3 + $0x2a0] sm:$0xff]  }
 0x266   : > { %8298 = vmatprep.subr.bf16.mxu0 %v9096_v58  ;;  %v9233_v61 = vpop.eup %9232  ;;  %v10735_v39 = vsel %vm850_vm4, %v4321_v27, %v4329_v32  ;;  %v10738_v19 = vadd.f32 %v10462_v26, %v3244_v24  ;;  %v4001_v50 = vshrl.u32 %v10723_v9, 16  ;;  %v11932_v36 = vrot.slane %v10526_v63, 5  ;;  %v9103_v32 = vld [vmem:[#allocation3 + $0x260] sm:$0xff]  }
 0x267   : > { %v9235_v3 = vpop.eup %9234  ;;  %3724 = vst [vmem:[#allocation2 + $0x84] sm:$0xf] %v3692_v21  ;;  %v3409_v12 = vadd.f32 1.0, %v9233_v61  ;;  %5292 = vmatprep.mubr.bf16.mxu1 %v10727_v52  ;;  %v4384_v34 = vshrl.u32 %v4183_v14, 16  ;;  %v4387_v58 = vshll.u32 %v4183_v14, 16  ;;  %8767 = vmatpush3.bf16.msra.mxu1 %v9082_v25  ;;  %v3693_v40 = vadd.bf16 %v7701_v31, %v3533_v45 }
 0x268   : > { %v4185_v53 = vsel %vm795_vm3, %v4183_v14, %v11932_v36  ;;  %v3502_v15 = vmul.f32 %v9235_v3, %v10624_v16  ;;  %5293 = vmatmul.mubr.bf16.gmra.mxu1 %v10735_v39  ;;  %v7429_v26 = vmul.f32 -1.442695, %v10738_v19  ;;  %8768 = vmatprep.subr.bf16.mxu1 %v9095_v6  ;;  %v3185_v16 = vadd.f32 %v10656_v62, %v8106_v13 }
 0x269   : > { %v4392_v27 = vshrl.u32 %v4185_v53, 16  ;;  %9242 = vrcp.f32 %v3409_v12  ;;  %v4386_v18 = vrot.slane %v4384_v34, 3  ;;  %v4389_v7 = vrot.slane %v4387_v58, 4  ;;  %8299 = vmatpush3.bf16.msra.mxu0 %v9097_v59  ;;  %3725 = vst [vmem:[#allocation2 + $0x88] sm:$0xf] %v3693_v40 }
 0x26a   : > { %v4395_v63 = vshll.u32 %v4185_v53, 16  ;;  %v7702_v25 = vpack.c.bf16 %v3502_v15, %v3502_v15  ;;  %9244 = vpow2.f32 %v7429_v26  ;;  %v9237_v24 = vpop.eup %9236  ;;  %v4003_v14 = vrot.slane %v4001_v50, 4  ;;  %8300 = vmatprep.subr.bf16.mxu0 %v9102_v1  ;;  %v3535_v53 = vld [vmem:[#allocation2 + $0x98] sm:$0xf]  ;;  %v10757_v50 = vpop.f32.mrf.mxu0  ;;  %v3754_v26 = vld [vmem:[#allocation2 + $0x40] sm:$0x8] }
 0x26b   : > { %v4394_v49 = vrot.slane %v4392_v27, 3  ;;  %v4390_v21 = vor.u32 %v4389_v7, %v4386_v18  ;;  %v4004_v61 = vshll.u32 %v10723_v9, 16  ;;  %8769 = vmatpush3.bf16.msra.mxu1 %v9095_v6  ;;  %v9239_v31 = vpop.eup %9238  ;;  %v3503_v12 = vmul.f32 %v9237_v24, %v10638_v56  ;;  %v10762_v56 = vld [vmem:[%s11786_s2] ss:$0 sm:$0xff]  ;;  %v10772_v7 = vld [vmem:[#allocation2 + $0x48] sm:$0xf] }
 0x26c   : > { %v4397_v45 = vrot.slane %v4395_v63, 4  ;;  %v3694_v3 = vadd.bf16 %v7702_v25, %v3534_v10  ;;  %v3245_v59 = vadd.f32 %v3185_v16, %v10417_v47  ;;  %v7478_v36 = vcombine.low %v3751_v43, %v10719_v28  ;;  %v3755_v24 = vld [vmem:[#allocation2 + $0x44] sm:$0xf] }
 0x26d   : > { %v3410_v62 = vadd.f32 1.0, %v9239_v31  ;;  %v4006_v34 = vrot.slane %v4004_v61, 5  ;;  %v7479_v58 = vcombine.low %v10712_v42, %v10712_v42  ;;  %8301 = vmatpush3.bf16.msra.mxu0 %v9103_v32  ;;  %v7703_v9 = vpack.c.bf16 %v3503_v12, %v3503_v12  ;;  %v10774_v32 = vpop.f32.mrf.mxu1  ;;  %v3536_v31 = vld [vmem:[#allocation2 + $0xa4] sm:$0xf] }
 0x26e   : > { %v4398_v13 = vor.u32 %v4397_v45, %v4394_v49  ;;  %3726 = vst [vmem:[#allocation2 + $0x94] sm:$0xf] %v3694_v3  ;;  %v10765_v47 = vadd.f32 %v10762_v56, %v3245_v59  ;;  %v4358_v28 = vshrl.u32 %v7478_v36, 16  ;;  %v4361_v6 = vshll.u32 %v7478_v36, 16 }
 0x26f   : > { %9246 = vrcp.f32 %v3410_v62  ;;  %v4007_v42 = vor.u32 %v4006_v34, %v4003_v14  ;;  %v4366_v15 = vshrl.u32 %v7479_v58, 16  ;;  %v3695_v27 = vadd.bf16 %v7703_v9, %v3535_v53  ;;  %v3192_v9 = vpop.f32.mrf.mxu1 }
 0x270   : > { %v10768_v40 = vsel %vm850_vm4, %v4390_v21, %v4398_v13  ;;  %v7430_v43 = vmul.f32 -1.442695, %v10765_v47  ;;  %v4360_v10 = vrot.slane %v4358_v28, 3  ;;  %v4363_v18 = vrot.slane %v4361_v6, 4  ;;  %v10776_v21 = vpop.f32.mrf.mxu0  ;;  %v9108_v6 = vld [vmem:[#allocation3 + $0x2c8] sm:$0xff]  }
 0x271   : > { %8730 = vmatprep.mubr.bf16.mxu0 %v10768_v40  ;;  %v9241_v63 = vpop.eup %9240  ;;  %v4375_v25 = vshrl.u32 %v4007_v42, 16  ;;  %v4378_v49 = vshll.u32 %v4007_v42, 16  ;;  %v4368_v16 = vrot.slane %v4366_v15, 3  ;;  %v4369_v1 = vshll.u32 %v7479_v58, 16  ;;  %3727 = vst [vmem:[#allocation2 + $0x98] sm:$0xf] %v3695_v27  ;;  %8770 = vmatprep.subr.bf16.mxu1 %v9108_v6 }
 0x272   : > { %v3504_v45 = vmul.f32 %v9241_v63, %v10650_v33  ;;  %9248 = vpow2.f32 %v7430_v43  ;;  %v4364_v14 = vor.u32 %v4363_v18, %v4360_v10  ;;  %v8109_v61 = vadd.f32 %v10717_v5, %v10705_v44  ;;  %v10789_v5 = vpop.f32.mrf.mxu0  ;;  %v9109_v42 = vld [vmem:[#allocation3 + $0x298] sm:$0xff]   ;;  %8771 = vmatpush3.bf16.msra.mxu1 %v9108_v6 }
 0x273   : > { %v4377_v3 = vrot.slane %v4375_v25, 3  ;;  %v4380_v12 = vrot.slane %v4378_v49, 4  ;;  %v4371_v59 = vrot.slane %v4369_v1, 4  ;;  %v7512_v36 = vcombine.low %v3755_v24, %v10772_v7  ;;  %v9110_v18 = vld [vmem:[#allocation3 + $0x258] sm:$0xff]   ;;  %8302 = vmatprep.subr.bf16.mxu0 %v9109_v42 }
 0x274   : > { %v7704_v53 = vpack.c.bf16 %v3504_v45, %v3504_v45  ;;  %v3188_v62 = vadd.f32 %v10702_v11, %v8109_v61  ;;  %v8112_v13 = vadd.f32 %v10748_v60, %v10732_v35  ;;  %v10785_v34 = vcombine.low %v3754_v26, %v3755_v24  ;;  %8303 = vmatpush3.bf16.msra.mxu0 %v9110_v18  ;;  %v10814_v18 = vpop.f32.mrf.mxu1 }
 0x275   : > { %v10787_v33 = vor.u32 %v4380_v12, %v4377_v3  ;;  %v4372_v58 = vor.u32 %v4371_v59, %v4368_v16  ;;  %v4186_v28 = vrot.slane %v7512_v36, 5  ;;  %v4009_v44 = vshrl.u32 %v7512_v36, 16  ;;  %v3537_v16 = vld [vmem:[#allocation2 + $0xa8] sm:$0xf] }
 0x276   : > { %v9243_v15 = vpop.eup %9242  ;;  %v3696_v27 = vadd.bf16 %v7704_v53, %v3536_v31  ;;  %v3246_v43 = vadd.f32 %v3188_v62, %v10423_v20  ;;  %v3193_v11 = vadd.f32 %v8112_v13, %v3192_v9  ;;  %v4012_v10 = vshll.u32 %v7512_v36, 16  ;;  %v8117_v31 = vpop.f32.mrf.mxu0 }
 0x277   : > { %v9245_v35 = vpop.eup %9244  ;;  %v3505_v60 = vmul.f32 %v9243_v15, %v10678_v22  ;;  %5300 = vmatprep.mubr.bf16.mxu1 %v10787_v33  ;;  %v10795_v26 = vsel %vm850_vm4, %v4364_v14, %v4372_v58  ;;  %v11933_v63 = vrot.slane %v10532_v8, 5  ;;  %v4427_v49 = vshrl.u32 %v4186_v28, 16 }
 0x278   : > { %3728 = vst [vmem:[#allocation2 + $0xa4] sm:$0xf] %v3696_v27  ;;  %v3411_v20 = vadd.f32 1.0, %v9245_v35  ;;  %5301 = vmatmul.mubr.bf16.gmra.mxu1 %v10795_v26  ;;  %v10802_v1 = vadd.f32 %v10762_v56, %v3246_v43  ;;  %v4430_v22 = vshll.u32 %v4186_v28, 16  ;;  %v3247_v8 = vadd.f32 %v3193_v11, %v10431_v4  ;;  %v8119_v43 = vpop.f32.mrf.mxu0  ;;  %v3538_v11 = vld [vmem:[#allocation2 + $0xb4] sm:$0xf] }
 0x279   : > { %v4188_v25 = vsel %vm795_vm3, %v4186_v28, %v11933_v63  ;;  %v7705_v45 = vpack.c.bf16 %v3505_v60, %v3505_v60  ;;  %v4429_v14 = vrot.slane %v4427_v49, 3  ;;  %v4011_v13 = vrot.slane %v4009_v44, 4  ;;  %v9115_v49 = vld [vmem:[#allocation3 + $0x290] sm:$0xff]  }
 0x27a   : > { %v4435_v24 = vshrl.u32 %v4188_v25, 16  ;;  %v4438_v61 = vshll.u32 %v4188_v25, 16  ;;  %9250 = vrcp.f32 %v3411_v20  ;;  %v7431_v3 = vmul.f32 -1.442695, %v10802_v1  ;;  %8304 = vmatprep.subr.bf16.mxu0 %v9115_v49 }
 0x27b   : > { %v4432_v12 = vrot.slane %v4430_v22, 4  ;;  %v3697_v36 = vadd.bf16 %v7705_v45, %v3537_v16  ;;  %v10807_v62 = vadd.f32 %v10762_v56, %v3247_v8  ;;  %v4014_v28 = vrot.slane %v4012_v10, 5  ;;  %v9116_v16 = vld [vmem:[#allocation3 + $0x250] sm:$0xff]  }
 0x27c   : > { %v4437_v59 = vrot.slane %v4435_v24, 3  ;;  %v4440_v53 = vrot.slane %v4438_v61, 4  ;;  %v9247_v58 = vpop.eup %9246  ;;  %9252 = vpow2.f32 %v7431_v3  ;;  %v7481_v4 = vcombine.low %v10772_v7, %v10772_v7  ;;  %8305 = vmatpush3.bf16.msra.mxu0 %v9116_v16 }
 0x27d   : > { %v4433_v9 = vor.u32 %v4432_v12, %v4429_v14  ;;  %3729 = vst [vmem:[#allocation2 + $0xa8] sm:$0xf] %v3697_v36  ;;  %v3506_v6 = vmul.f32 %v9247_v58, %v10695_v54  ;;  %v7432_v15 = vmul.f32 -1.442695, %v10807_v62  ;;  %v4401_v27 = vshrl.u32 %v10785_v34, 16  ;;  %v8120_v36 = vpop.f32.mrf.mxu0 }
 0x27e   : > { %v4441_v42 = vor.u32 %v4440_v53, %v4437_v59  ;;  %v4015_v44 = vor.u32 %v4014_v28, %v4011_v13  ;;  %v4404_v35 = vshll.u32 %v10785_v34, 16  ;;  %v4409_v60 = vshrl.u32 %v7481_v4, 16  ;;  %v3759_v14 = vld [vmem:[#allocation2 + $0x58] sm:$0xf]  ;;  %v3758_v12 = vld [vmem:[#allocation2 + $0x54] sm:$0xf]  ;;  %v3195_v53 = vpop.f32.mrf.mxu1 }
 0x27f   : > { %v4412_v10 = vshll.u32 %v7481_v4, 16  ;;  %v9249_v63 = vpop.eup %9248  ;;  %v7706_v25 = vpack.c.bf16 %v3506_v6, %v3506_v6  ;;  %9254 = vpow2.f32 %v7432_v15  ;;  %v4403_v54 = vrot.slane %v4401_v27, 3  ;;  %v3757_v59 = vld [vmem:[#allocation2 + $0x50] sm:$0x8] }
 0x280   : > { %v10818_v7 = vsel %vm850_vm4, %v4433_v9, %v4441_v42  ;;  %v3412_v20 = vadd.f32 1.0, %v9249_v63  ;;  %v4418_v22 = vshrl.u32 %v4015_v44, 16  ;;  %v4421_v24 = vshll.u32 %v4015_v44, 16 }
 0x281   : > { %8731 = vmatmul.mubr.bf16.gmra.mxu0 %v10818_v7  ;;  %v4406_v45 = vrot.slane %v4404_v35, 4  ;;  %v3698_v61 = vadd.bf16 %v7706_v25, %v3538_v11  ;;  %v4411_v34 = vrot.slane %v4409_v60, 3  ;;  %v4414_v8 = vrot.slane %v4412_v10, 4 }
 0x282   : > { %v8115_v3 = vadd.f32 %v10776_v21, %v10757_v50  ;;  %9256 = vrcp.f32 %v3412_v20  ;;  %v4420_v13 = vrot.slane %v4418_v22, 3  ;;  %v4423_v58 = vrot.slane %v4421_v24, 4  ;;  %v3539_v20 = vld [vmem:[#allocation2 + $0xb8] sm:$0xf] }
 0x283   : > { %v4407_v9 = vor.u32 %v4406_v45, %v4403_v54  ;;  %3730 = vst [vmem:[#allocation2 + $0xb4] sm:$0xf] %v3698_v61  ;;  %v4415_v28 = vor.u32 %v4414_v8, %v4411_v34  ;;  %v7513_v6 = vcombine.low %v3758_v12, %v3759_v14  ;;  %v8118_v42 = vadd.f32 %v8117_v31, %v10789_v5 }
 0x284   : > { %v3196_v4 = vadd.f32 %v8115_v3, %v3195_v53  ;;  %v10824_v15 = vor.u32 %v4423_v58, %v4420_v13  ;;  %v7482_v27 = vcombine.low %v3757_v59, %v3758_v12  ;;  %v10826_v50 = vcombine.low %v3759_v14, %v3759_v14  ;;  %v8122_v12 = vpop.f32.mrf.mxu0  ;;  %v9121_v59 = vld [vmem:[#allocation3 + $0x2c0] sm:$0xff]   ;;  %v9122_v58 = vld [vmem:[#allocation3 + $0x288] sm:$0xff]  }
 0x285   : > { %v8121_v21 = vadd.f32 %v8120_v36, %v8119_v43  ;;  %v10829_v11 = vsel %vm850_vm4, %v4407_v9, %v4415_v28  ;;  %v4189_v35 = vrot.slane %v7513_v6, 5  ;;  %v3201_v60 = vadd.f32 %v10774_v32, %v8118_v42  ;;  %8772 = vmatprep.subr.bf16.mxu1 %v9121_v59  ;;  %8306 = vmatprep.subr.bf16.mxu0 %v9122_v58  ;;  %v9128_v58 = vld [vmem:[#allocation3 + $0x280] sm:$0xff]  }
 0x286   : > { %v3248_v44 = vadd.f32 %v3196_v4, %v10560_v38  ;;  %5308 = vmatprep.mubr.bf16.mxu1 %v10824_v15  ;;  %v4017_v10 = vshrl.u32 %v7513_v6, 16  ;;  %v4020_v63 = vshll.u32 %v7513_v6, 16  ;;  %v4444_v25 = vshrl.u32 %v7482_v27, 16  ;;  %8773 = vmatpush3.bf16.msra.mxu1 %v9121_v59 }
 0x287   : > { %v4447_v5 = vshll.u32 %v7482_v27, 16  ;;  %v9251_v31 = vpop.eup %9250  ;;  %5309 = vmatmul.mubr.bf16.gmra.mxu1 %v10829_v11  ;;  %v11934_v43 = vrot.slane %v10549_v46, 5  ;;  %v4470_v38 = vshrl.u32 %v4189_v35, 16  ;;  %v4473_v16 = vshll.u32 %v4189_v35, 16 }
 0x288   : > { %v10836_v54 = vadd.f32 %v10762_v56, %v3248_v44  ;;  %v3507_v32 = vmul.f32 %v9251_v31, %v10738_v19  ;;  %v3249_v45 = vadd.f32 %v3201_v60, %v10428_v2  ;;  %v4019_v3 = vrot.slane %v4017_v10, 4  ;;  %v9123_v2 = vld [vmem:[#allocation3 + $0x248] sm:$0xff]   ;;  %v8123_v31 = vpop.f32.mrf.mxu0 }
 0x289   : > { %v4191_v49 = vsel %vm795_vm3, %v4189_v35, %v11934_v43  ;;  %v9253_v14 = vpop.eup %9252  ;;  %v4472_v34 = vrot.slane %v4470_v38, 3  ;;  %v4475_v8 = vrot.slane %v4473_v16, 4  ;;  %v4022_v28 = vrot.slane %v4020_v63, 5  ;;  %8307 = vmatpush3.bf16.msra.mxu0 %v9123_v2 }
 0x28a   : > { %v4478_v22 = vshrl.u32 %v4191_v49, 16  ;;  %v4481_v24 = vshll.u32 %v4191_v49, 16  ;;  %v7433_v61 = vmul.f32 -1.442695, %v10836_v54  ;;  %v7707_v46 = vpack.c.bf16 %v3507_v32, %v3507_v32  ;;  %v10859_v59 = vpop.f32.mrf.mxu0  ;;  %8308 = vmatprep.subr.bf16.mxu0 %v9128_v58 }
 0x28b   : > { %v3413_v36 = vadd.f32 1.0, %v9253_v14  ;;  %v4476_v19 = vor.u32 %v4475_v8, %v4472_v34  ;;  %v10845_v9 = vadd.f32 %v10762_v56, %v3249_v45  ;;  %v4446_v27 = vrot.slane %v4444_v25, 3  ;;  %v3762_v25 = vld [vmem:[#allocation2 + $0x68] sm:$0xf]  ;;  %v3760_v45 = vld [vmem:[#allocation2 + $0x60] sm:$0x8] }
 0x28c   : > { %v4480_v53 = vrot.slane %v4478_v22, 3  ;;  %v4483_v13 = vrot.slane %v4481_v24, 4  ;;  %9258 = vpow2.f32 %v7433_v61  ;;  %v9255_v4 = vpop.eup %9254  ;;  %v3699_v6 = vadd.bf16 %v7707_v46, %v3539_v20  ;;  %v10855_v22 = vpop.f32.mrf.mxu1  ;;  %v3761_v24 = vld [vmem:[#allocation2 + $0x64] sm:$0xf] }
 0x28d   : > { %9260 = vrcp.f32 %v3413_v36  ;;  %v3414_v44 = vadd.f32 1.0, %v9255_v4  ;;  %v7434_v35 = vmul.f32 -1.442695, %v10845_v9  ;;  %v4023_v60 = vor.u32 %v4022_v28, %v4019_v3 }
 0x28e   : > { %v4484_v42 = vor.u32 %v4483_v13, %v4480_v53  ;;  %v4449_v10 = vrot.slane %v4447_v5, 4  ;;  %3731 = vst [vmem:[#allocation2 + $0xb8] sm:$0xf] %v3699_v6  ;;  %v4452_v63 = vshrl.u32 %v10826_v50, 16  ;;  %v4455_v49 = vshll.u32 %v10826_v50, 16  ;;  %v3208_v2 = vpop.f32.mrf.mxu1 }
 0x28f   : > { %v3204_v38 = vadd.f32 %v10814_v18, %v8121_v21  ;;  %v9257_v16 = vpop.eup %9256  ;;  %9262 = vrcp.f32 %v3414_v44  ;;  %v4461_v32 = vshrl.u32 %v4023_v60, 16  ;;  %v4464_v20 = vshll.u32 %v4023_v60, 16  ;;  %v3540_v50 = vld [vmem:[#allocation2 + $0xc4] sm:$0xf] }
 0x290   : > { %v10849_v43 = vsel %vm850_vm4, %v4476_v19, %v4484_v42  ;;  %v4450_v5 = vor.u32 %v4449_v10, %v4446_v27  ;;  %v3508_v14 = vmul.f32 %v9257_v16, %v10765_v47  ;;  %9264 = vpow2.f32 %v7434_v35  ;;  %v9129_v19 = vld [vmem:[#allocation3 + $0x240] sm:$0xff]  }
 0x291   : > { %8734 = vmatprep.mubr.bf16.mxu0 %v10849_v43  ;;  %v4454_v61 = vrot.slane %v4452_v63, 3  ;;  %v4457_v34 = vrot.slane %v4455_v49, 4  ;;  %v4463_v8 = vrot.slane %v4461_v32, 3  ;;  %v4466_v18 = vrot.slane %v4464_v20, 4  ;;  %v8126_v63 = vpop.f32.mrf.mxu0  ;;  %8309 = vmatpush3.bf16.msra.mxu0 %v9129_v19  ;;  %v3541_v19 = vld [vmem:[#allocation2 + $0xc8] sm:$0xf] }
 0x292   : > { %v3250_v21 = vadd.f32 %v3204_v38, %v10435_v23  ;;  %v7514_v3 = vcombine.low %v3761_v24, %v3762_v25  ;;  %v7708_v46 = vpack.c.bf16 %v3508_v14, %v3508_v14  ;;  %v8124_v53 = vadd.f32 %v8123_v31, %v8122_v12 }
 0x293   : > { %v4458_v36 = vor.u32 %v4457_v34, %v4454_v61  ;;  %v7484_v13 = vcombine.low %v3760_v45, %v3761_v24  ;;  %v10861_v28 = vor.u32 %v4466_v18, %v4463_v8  ;;  %v11935_v35 = vrot.slane %v10552_v55, 5 }
 0x294   : > { %v10864_v47 = vadd.f32 %v10762_v56, %v3250_v21  ;;  %v4192_v4 = vrot.slane %v7514_v3, 5  ;;  %v4025_v6 = vshrl.u32 %v7514_v3, 16  ;;  %v3700_v42 = vadd.bf16 %v7708_v46, %v3540_v50  ;;  %v8128_v46 = vpop.f32.mrf.mxu0 }
 0x295   : > { %v10867_v23 = vsel %vm850_vm4, %v4450_v5, %v4458_v36  ;;  %v3209_v27 = vadd.f32 %v8124_v53, %v3208_v2  ;;  %v4028_v44 = vshll.u32 %v7514_v3, 16  ;;  %5316 = vmatprep.mubr.bf16.mxu1 %v10861_v28  ;;  %v7485_v34 = vcombine.low %v3762_v25, %v3762_v25 }
 0x296   : > { %v7435_v12 = vmul.f32 -1.442695, %v10864_v47  ;;  %v4194_v60 = vsel %vm795_vm3, %v4192_v4, %v11935_v35  ;;  %v4513_v10 = vshrl.u32 %v4192_v4, 16  ;;  %v4516_v31 = vshll.u32 %v4192_v4, 16  ;;  %3732 = vst [vmem:[#allocation2 + $0xc4] sm:$0xf] %v3700_v42  ;;  %5317 = vmatmul.mubr.bf16.gmra.mxu1 %v10867_v23 }
 0x297   : > { %v4521_v49 = vshrl.u32 %v4194_v60, 16  ;;  %v4524_v38 = vshll.u32 %v4194_v60, 16  ;;  %v3251_v16 = vadd.f32 %v3209_v27, %v10443_v48  ;;  %v4027_v32 = vrot.slane %v4025_v6, 4  ;;  %v9134_v42 = vld [vmem:[#allocation3 + $0x438] sm:$0xff]  }
 0x298   : > { %9266 = vpow2.f32 %v7435_v12  ;;  %v4515_v20 = vrot.slane %v4513_v10, 3  ;;  %v4518_v5 = vrot.slane %v4516_v31, 4  ;;  %v4030_v24 = vrot.slane %v4028_v44, 5  ;;  %v10881_v44 = vpop.f32.mrf.mxu1  ;;  %v9136_v60 = vld [vmem:[#allocation3 + $0x478] sm:$0xff]   ;;  %8430 = vmatprep.subr.bf16.mxu1 %v9134_v42 }
 0x299   : > { %v9259_v45 = vpop.eup %9258  ;;  %v4523_v55 = vrot.slane %v4521_v49, 3  ;;  %v4526_v14 = vrot.slane %v4524_v38, 4  ;;  %v10877_v61 = vadd.f32 %v10762_v56, %v3251_v16  ;;  %v4487_v3 = vshrl.u32 %v7484_v13, 16  ;;  %v3765_v16 = vld [vmem:[#allocation2 + $0x78] sm:$0xf]  ;;  %8806 = vmatprep.subr.bf16.mxu0 %v9136_v60 }
 0x29a   : > { %v9261_v50 = vpop.eup %9260  ;;  %v3415_v8 = vadd.f32 1.0, %v9259_v45  ;;  %v4519_v18 = vor.u32 %v4518_v5, %v4515_v20  ;;  %v4031_v21 = vor.u32 %v4030_v24, %v4027_v32  ;;  %v4490_v58 = vshll.u32 %v7484_v13, 16  ;;  %v8129_v32 = vpop.f32.mrf.mxu0  ;;  %v3542_v5 = vld [vmem:[#allocation2 + $0xd4] sm:$0xf] }
 0x29b   : > { %v3509_v48 = vmul.f32 %v9261_v50, %v10802_v1  ;;  %v4527_v36 = vor.u32 %v4526_v14, %v4523_v55  ;;  %v7436_v53 = vmul.f32 -1.442695, %v10877_v61  ;;  %v4489_v6 = vrot.slane %v4487_v3, 3  ;;  %v3763_v1 = vld [vmem:[#allocation2 + $0x70] sm:$0x8] }
 0x29c   : > { %9268 = vrcp.f32 %v3415_v8  ;;  %v4504_v2 = vshrl.u32 %v4031_v21, 16  ;;  %v4507_v4 = vshll.u32 %v4031_v21, 16  ;;  %v9263_v27 = vpop.eup %9262  ;;  %v4492_v35 = vrot.slane %v4490_v58, 4  ;;  %v3764_v14 = vld [vmem:[#allocation2 + $0x74] sm:$0xf]  ;;  %v3211_v21 = vpop.f32.mrf.mxu1 }
 0x29d   : > { %v7709_v25 = vpack.c.bf16 %v3509_v48, %v3509_v48  ;;  %v10884_v12 = vsel %vm850_vm4, %v4519_v18, %v4527_v36  ;;  %9270 = vpow2.f32 %v7436_v53  ;;  %v9265_v10 = vpop.eup %9264  ;;  %v3510_v13 = vmul.f32 %v9263_v27, %v10807_v62 }
 0x29e   : > { %8735 = vmatmul.mubr.bf16.gmra.mxu0 %v10884_v12  ;;  %v4506_v31 = vrot.slane %v4504_v2, 3  ;;  %v4509_v49 = vrot.slane %v4507_v4, 4  ;;  %v4495_v38 = vshrl.u32 %v7485_v34, 16  ;;  %v3416_v24 = vadd.f32 1.0, %v9265_v10 }
 0x29f   : > { %v3701_v20 = vadd.bf16 %v7709_v25, %v3541_v19  ;;  %v4493_v45 = vor.u32 %v4492_v35, %v4489_v6  ;;  %v4498_v55 = vshll.u32 %v7485_v34, 16  ;;  %v7710_v50 = vpack.c.bf16 %v3510_v13, %v3510_v13 }
 0x2a0   : > { %v10888_v8 = vor.u32 %v4509_v49, %v4506_v31  ;;  %v4497_v18 = vrot.slane %v4495_v38, 3  ;;  %v8127_v62 = vadd.f32 %v8126_v63, %v10859_v59  ;;  %9272 = vrcp.f32 %v3416_v24 }
 0x2a1   : > { %3733 = vst [vmem:[#allocation2 + $0xc8] sm:$0xf] %v3701_v20  ;;  %v4500_v3 = vrot.slane %v4498_v55, 4  ;;  %v7515_v48 = vcombine.low %v3764_v14, %v3765_v16  ;;  %v8130_v36 = vadd.f32 %v8129_v32, %v8128_v46  ;;  %v3702_v53 = vadd.bf16 %v7710_v50, %v3542_v5  ;;  %v8131_v5 = vpop.f32.mrf.mxu0 }
 0x2a2   : > { %5324 = vmatprep.mubr.bf16.mxu1 %v10888_v8  ;;  %v3212_v58 = vadd.f32 %v8127_v62, %v3211_v21  ;;  %v7486_v19 = vcombine.low %v3763_v1, %v3764_v14  ;;  %v7487_v34 = vcombine.low %v3765_v16, %v3765_v16  ;;  %v11936_v60 = vrot.slane %v10565_v51, 5 }
 0x2a3   : > { %v4501_v2 = vor.u32 %v4500_v3, %v4497_v18  ;;  %v4195_v4 = vrot.slane %v7515_v48, 5  ;;  %v3217_v6 = vadd.f32 %v10855_v22, %v8130_v36  ;;  %v4033_v42 = vshrl.u32 %v7515_v48, 16  ;;  %3734 = vst [vmem:[#allocation2 + $0xd4] sm:$0xf] %v3702_v53  ;;  %v3543_v36 = vld [vmem:[#allocation2 + $0xd8] sm:$0xf] }
 0x2a4   : > { %v3252_v59 = vadd.f32 %v3212_v58, %v10573_v30  ;;  %v4036_v63 = vshll.u32 %v7515_v48, 16  ;;  %v4530_v27 = vshrl.u32 %v7486_v19, 16  ;;  %v4533_v25 = vshll.u32 %v7486_v19, 16 }
 0x2a5   : > { %v9267_v35 = vpop.eup %9266  ;;  %v10895_v46 = vsel %vm850_vm4, %v4493_v45, %v4501_v2  ;;  %v4197_v1 = vsel %vm795_vm3, %v4195_v4, %v11936_v60  ;;  %v4556_v10 = vshrl.u32 %v4195_v4, 16  ;;  %v4559_v13 = vshll.u32 %v4195_v4, 16  ;;  %v8132_v4 = vpop.f32.mrf.mxu0 }
 0x2a6   : > { %v3417_v31 = vadd.f32 1.0, %v9267_v35  ;;  %5325 = vmatmul.mubr.bf16.gmra.mxu1 %v10895_v46  ;;  %v10902_v22 = vadd.f32 %v10762_v56, %v3252_v59  ;;  %v4564_v30 = vshrl.u32 %v4197_v1, 16  ;;  %v4567_v49 = vshll.u32 %v4197_v1, 16  ;;  %v3766_v35 = vld [vmem:[#allocation2 + $0x80] sm:$0x8] }
 0x2a7   : > { %v4558_v38 = vrot.slane %v4556_v10, 3  ;;  %v4561_v16 = vrot.slane %v4559_v13, 4  ;;  %v3253_v32 = vadd.f32 %v3217_v6, %v10455_v57  ;;  %v4035_v20 = vrot.slane %v4033_v42, 4  ;;  %v3767_v1 = vld [vmem:[#allocation2 + $0x84] sm:$0xf] }
 0x2a8   : > { %9274 = vrcp.f32 %v3417_v31  ;;  %v7437_v51 = vmul.f32 -1.442695, %v10902_v22  ;;  %v4566_v24 = vrot.slane %v4564_v30, 3  ;;  %v4569_v45 = vrot.slane %v4567_v49, 4 }
 0x2a9   : > { %v9269_v55 = vpop.eup %9268  ;;  %v4562_v14 = vor.u32 %v4561_v16, %v4558_v38  ;;  %v10907_v50 = vadd.f32 %v10762_v56, %v3253_v32  ;;  %v4038_v18 = vrot.slane %v4036_v63, 5  ;;  %v4532_v62 = vrot.slane %v4530_v27, 3  ;;  %v3768_v27 = vld [vmem:[#allocation2 + $0x88] sm:$0xf] }
 0x2aa   : > { %v9271_v21 = vpop.eup %9270  ;;  %v3511_v3 = vmul.f32 %v9269_v55, %v10836_v54  ;;  %9276 = vpow2.f32 %v7437_v51  ;;  %v4570_v48 = vor.u32 %v4569_v45, %v4566_v24  ;;  %v4535_v57 = vrot.slane %v4533_v25, 4 }
 0x2ab   : > { %v3418_v53 = vadd.f32 1.0, %v9271_v21  ;;  %v7438_v58 = vmul.f32 -1.442695, %v10907_v50  ;;  %v4039_v19 = vor.u32 %v4038_v18, %v4035_v20  ;;  %v4538_v2 = vshrl.u32 %v7487_v34, 16 }
 0x2ac   : > { %v7711_v6 = vpack.c.bf16 %v3511_v3, %v3511_v3  ;;  %v10912_v42 = vsel %vm850_vm4, %v4562_v14, %v4570_v48  ;;  %v4536_v59 = vor.u32 %v4535_v57, %v4532_v62  ;;  %v4541_v63 = vshll.u32 %v7487_v34, 16  ;;  %v3544_v34 = vld [vmem:[#allocation2 + $0xe4] sm:$0xf]  ;;  %v11937_v57 = vld [vmem:[#allocation24_spill] sm:$0xff] }
 0x2ad   : > { %9278 = vrcp.f32 %v3418_v53  ;;  %8738 = vmatprep.mubr.bf16.mxu0 %v10912_v42  ;;  %v4547_v54 = vshrl.u32 %v4039_v19, 16  ;;  %v4550_v25 = vshll.u32 %v4039_v19, 16  ;;  %v4540_v60 = vrot.slane %v4538_v2, 3  ;;  %v9273_v10 = vpop.eup %9272 }
 0x2ae   : > { %v3703_v13 = vadd.bf16 %v7711_v6, %v3543_v36  ;;  %9280 = vpow2.f32 %v7438_v58  ;;  %v4543_v31 = vrot.slane %v4541_v63, 4  ;;  %v8133_v30 = vadd.f32 %v8132_v4, %v8131_v5 }
 0x2af   : > { %v3512_v49 = vmul.f32 %v9273_v10, %v10845_v9  ;;  %v4549_v38 = vrot.slane %v4547_v54, 3  ;;  %v4552_v16 = vrot.slane %v4550_v25, 4  ;;  %v7516_v32 = vcombine.low %v3767_v1, %v3768_v27 }
 0x2b0   : > { %3735 = vst [vmem:[#allocation2 + $0xd8] sm:$0xf] %v3703_v13  ;;  %v4544_v20 = vor.u32 %v4543_v31, %v4540_v60  ;;  %v3220_v51 = vadd.f32 %v10881_v44, %v8133_v30  ;;  %v7488_v24 = vcombine.low %v3766_v35, %v3767_v1  ;;  %v7489_v45 = vcombine.low %v3768_v27, %v3768_v27  ;;  %v3545_v13 = vld [vmem:[#allocation2 + $0xe8] sm:$0xf] }
 0x2b1   : > { %v7712_v55 = vpack.c.bf16 %v3512_v49, %v3512_v49  ;;  %v10917_v14 = vor.u32 %v4552_v16, %v4549_v38  ;;  %v4198_v18 = vrot.slane %v7516_v32, 5  ;;  %v4041_v62 = vshrl.u32 %v7516_v32, 16 }
 0x2b2   : > { %v10920_v21 = vsel %vm850_vm4, %v4536_v59, %v4544_v20  ;;  %v3254_v9 = vadd.f32 %v3220_v51, %v10457_v37  ;;  %v4044_v5 = vshll.u32 %v7516_v32, 16  ;;  %v4573_v3 = vshrl.u32 %v7488_v24, 16 }
 0x2b3   : > { %v3704_v48 = vadd.bf16 %v7712_v55, %v3544_v34  ;;  %5332 = vmatprep.mubr.bf16.mxu1 %v10917_v14  ;;  %v11938_v36 = vrot.slane %v11937_v57, 5  ;;  %v4599_v53 = vshrl.u32 %v4198_v18, 16  ;;  %v4602_v58 = vshll.u32 %v4198_v18, 16  ;;  %v9079_v34 = vld [vmem:[#allocation2 + $0x9c] ss:$0 sps:$4 sm:$0x11]  }
 0x2b4   : > { %5333 = vmatmul.mubr.bf16.gmra.mxu1 %v10920_v21  ;;  %v10929_v19 = vadd.f32 %v10762_v56, %v3254_v9  ;;  %v4043_v6 = vrot.slane %v4041_v62, 4  ;;  %v4046_v27 = vrot.slane %v4044_v5, 5  ;;  %v4575_v35 = vrot.slane %v4573_v3, 3 }
 0x2b5   : > { %v4200_v44 = vsel %vm795_vm3, %v4198_v18, %v11938_v36  ;;  %v9275_v37 = vpop.eup %9274  ;;  %3736 = vst [vmem:[#allocation2 + $0xe4] sm:$0xf] %v3704_v48  ;;  %v4601_v59 = vrot.slane %v4599_v53, 3  ;;  %v4604_v63 = vrot.slane %v4602_v58, 4  ;;  %v4576_v30 = vshll.u32 %v7488_v24, 16 }
 0x2b6   : > { %v4607_v2 = vshrl.u32 %v4200_v44, 16  ;;  %v4610_v4 = vshll.u32 %v4200_v44, 16  ;;  %v3513_v54 = vmul.f32 %v9275_v37, %v10864_v47  ;;  %v7439_v25 = vmul.f32 -1.442695, %v10929_v19  ;;  %v3771_v47 = vld [vmem:[#allocation2 + $0x98] sm:$0xf] }
 0x2b7   : > { %v9277_v10 = vpop.eup %9276  ;;  %v4605_v31 = vor.u32 %v4604_v63, %v4601_v59  ;;  %v4047_v56 = vor.u32 %v4046_v27, %v4043_v6  ;;  %v4581_v49 = vshrl.u32 %v7489_v45, 16  ;;  %v4578_v55 = vrot.slane %v4576_v30, 4  ;;  %v3770_v48 = vld [vmem:[#allocation2 + $0x94] sm:$0xf]  ;;  %v3769_v24 = vld [vmem:[#allocation2 + $0x90] sm:$0x8] }
 0x2b8   : > { %v4609_v60 = vrot.slane %v4607_v2, 3  ;;  %v4612_v1 = vrot.slane %v4610_v4, 4  ;;  %v7713_v38 = vpack.c.bf16 %v3513_v54, %v3513_v54  ;;  %v3419_v16 = vadd.f32 1.0, %v9277_v10  ;;  %v3546_v2 = vld [vmem:[#allocation2 + $0xf4] sm:$0xf] }
 0x2b9   : > { %9282 = vpow2.f32 %v7439_v25  ;;  %v4590_v20 = vshrl.u32 %v4047_v56, 16  ;;  %v4593_v51 = vshll.u32 %v4047_v56, 16  ;;  %v4583_v18 = vrot.slane %v4581_v49, 3 }
 0x2ba   : > { %v4613_v32 = vor.u32 %v4612_v1, %v4609_v60  ;;  %v9279_v62 = vpop.eup %9278  ;;  %v3705_v9 = vadd.bf16 %v7713_v38, %v3545_v13  ;;  %9284 = vrcp.f32 %v3419_v16  ;;  %v4584_v3 = vshll.u32 %v7489_v45, 16  ;;  %v9086_v38 = vld [vmem:[#allocation2 + $0xac] ss:$0 sps:$4 sm:$0x11]  }
 0x2bb   : > { %v9281_v57 = vpop.eup %9280  ;;  %v3514_v36 = vmul.f32 %v9279_v62, %v10877_v61  ;;  %v4592_v44 = vrot.slane %v4590_v20, 3  ;;  %v4595_v53 = vrot.slane %v4593_v51, 4  ;;  %v4579_v58 = vor.u32 %v4578_v55, %v4575_v35  ;;  %v3774_v51 = vld [vmem:[#allocation2 + $0xa8] sm:$0xf] }
 0x2bc   : > { %v10934_v5 = vsel %vm850_vm4, %v4605_v31, %v4613_v32  ;;  %3737 = vst [vmem:[#allocation2 + $0xe8] sm:$0xf] %v3705_v9  ;;  %v3420_v4 = vadd.f32 1.0, %v9281_v57  ;;  %v4586_v6 = vrot.slane %v4584_v3, 4  ;;  %v7517_v37 = vcombine.low %v3770_v48, %v3771_v47  ;;  %v3773_v57 = vld [vmem:[#allocation2 + $0xa4] sm:$0xf] }
 0x2bd   : > { %8739 = vmatmul.mubr.bf16.gmra.mxu0 %v10934_v5  ;;  %v4202_v59 = vrot.slane %v9079_v34, 5  ;;  %v7714_v63 = vpack.c.bf16 %v3514_v36, %v3514_v36  ;;  %v10938_v27 = vor.u32 %v4595_v53, %v4592_v44  ;;  %v7490_v45 = vcombine.low %v3769_v24, %v3770_v48 }
 0x2be   : > { %v7491_v54 = vcombine.low %v3771_v47, %v3771_v47  ;;  %9286 = vrcp.f32 %v3420_v4  ;;  %v4587_v25 = vor.u32 %v4586_v6, %v4583_v18  ;;  %v4201_v60 = vrot.slane %v7517_v37, 5 }
 0x2bf   : > { %v4049_v61 = vshrl.u32 %v7517_v37, 16  ;;  %v3706_v1 = vadd.bf16 %v7714_v63, %v3546_v2  ;;  %5340 = vmatprep.mubr.bf16.mxu1 %v10938_v27  ;;  %v4052_v10 = vshll.u32 %v7517_v37, 16  ;;  %v4616_v35 = vshrl.u32 %v7490_v45, 16 }
 0x2c0   : > { %v4619_v13 = vshll.u32 %v7490_v45, 16  ;;  %v10942_v31 = vsel %vm850_vm4, %v4579_v58, %v4587_v25  ;;  %v4203_v56 = vsel %vm795_vm3, %v4201_v60, %v4202_v59  ;;  %v4642_v30 = vshrl.u32 %v4201_v60, 16 }
 0x2c1   : > { %v4645_v49 = vshll.u32 %v4201_v60, 16  ;;  %3738 = vst [vmem:[#allocation2 + $0xf4] sm:$0xf] %v3706_v1  ;;  %5341 = vmatmul.mubr.bf16.gmra.mxu1 %v10942_v31  ;;  %v4650_v16 = vshrl.u32 %v4203_v56, 16  ;;  %v4653_v32 = vshll.u32 %v4203_v56, 16  ;;  %v4051_v34 = vrot.slane %v4049_v61, 4 }
 0x2c2   : > { %v4054_v20 = vrot.slane %v4052_v10, 5  ;;  %v4644_v55 = vrot.slane %v4642_v30, 3  ;;  %v4618_v47 = vrot.slane %v4616_v35, 3  ;;  %v4621_v62 = vrot.slane %v4619_v13, 4 }
 0x2c3   : > { %v4647_v18 = vrot.slane %v4645_v49, 4  ;;  %v4652_v9 = vrot.slane %v4650_v16, 3  ;;  %v4655_v3 = vrot.slane %v4653_v32, 4  ;;  %v4624_v24 = vshrl.u32 %v7491_v54, 16  ;;  %v3772_v49 = vld [vmem:[#allocation2 + $0xa0] sm:$0x8] }
 0x2c4   : > { %v4055_v48 = vor.u32 %v4054_v20, %v4051_v34  ;;  %v4622_v44 = vor.u32 %v4621_v62, %v4618_v47  ;;  %v4627_v53 = vshll.u32 %v7491_v54, 16  ;;  %v7518_v58 = vcombine.low %v3773_v57, %v3774_v51  ;;  %v3547_v16 = vld [vmem:[#allocation2 + $0xf8] sm:$0xf] }
 0x2c5   : > { %v4648_v36 = vor.u32 %v4647_v18, %v4644_v55  ;;  %v4656_v4 = vor.u32 %v4655_v3, %v4652_v9  ;;  %v4626_v59 = vrot.slane %v4624_v24, 3  ;;  %v4205_v60 = vrot.slane %v9086_v38, 5 }
 0x2c6   : > { %v9283_v2 = vpop.eup %9282  ;;  %v4633_v6 = vshrl.u32 %v4055_v48, 16  ;;  %v4636_v37 = vshll.u32 %v4055_v48, 16  ;;  %v4629_v45 = vrot.slane %v4627_v53, 4  ;;  %v4204_v25 = vrot.slane %v7518_v58, 5 }
 0x2c7   : > { %v3421_v63 = vadd.f32 1.0, %v9283_v2  ;;  %v9285_v61 = vpop.eup %9284  ;;  %v10947_v1 = vsel %vm850_vm4, %v4648_v36, %v4656_v4  ;;  %v4057_v13 = vshrl.u32 %v7518_v58, 16  ;;  %v4060_v36 = vshll.u32 %v7518_v58, 16  ;;  %v9092_v58 = vld [vmem:[#allocation2 + $0xbc] ss:$0 sps:$4 sm:$0x11]  }
 0x2c8   : > { %v4635_v10 = vrot.slane %v4633_v6, 3  ;;  %v4638_v35 = vrot.slane %v4636_v37, 4  ;;  %v3515_v56 = vmul.f32 %v9285_v61, %v10902_v22  ;;  %8742 = vmatprep.mubr.bf16.mxu0 %v10947_v1  ;;  %v4630_v54 = vor.u32 %v4629_v45, %v4626_v59  ;;  %v10957_v22 = vld [vmem:[#allocation2 + $0xb8] sm:$0xf]  ;;  %v3548_v37 = vld [vmem:[#allocation2 + $0x104] sm:$0xf] }
 0x2c9   : > { %9288 = vrcp.f32 %v3421_v63  ;;  %v4206_v30 = vsel %vm795_vm3, %v4204_v25, %v4205_v60  ;;  %v4685_v38 = vshrl.u32 %v4204_v25, 16  ;;  %v4688_v34 = vshll.u32 %v4204_v25, 16 }
 0x2ca   : > { %v10952_v32 = vor.u32 %v4638_v35, %v4635_v10  ;;  %v4693_v20 = vshrl.u32 %v4206_v30, 16  ;;  %v7715_v55 = vpack.c.bf16 %v3515_v56, %v3515_v56  ;;  %v10955_v18 = vsel %vm850_vm4, %v4622_v44, %v4630_v54  ;;  %v3776_v44 = vld [vmem:[#allocation2 + $0xb4] sm:$0xf] }
 0x2cb   : > { %11939 = vst [vmem:[#allocation6_spill] sm:$0xff] %v10955_v18  ;;  %v4696_v47 = vshll.u32 %v4206_v30, 16  ;;  %v4059_v62 = vrot.slane %v4057_v13, 4  ;;  %v9287_v9 = vpop.eup %9286  ;;  %v4687_v3 = vrot.slane %v4685_v38, 3  ;;  %v4690_v48 = vrot.slane %v4688_v34, 4 }
 0x2cc   : > { %5348 = vmatprep.mubr.bf16.mxu1 %v10952_v32  ;;  %v4695_v24 = vrot.slane %v4693_v20, 3  ;;  %v3707_v53 = vadd.bf16 %v7715_v55, %v3547_v16  ;;  %v3516_v2 = vmul.f32 %v9287_v9, %v10907_v50  ;;  %v7492_v6 = vcombine.low %v3772_v49, %v3773_v57 }
 0x2cd   : > { %5349 = vmatmul.mubr.bf16.gmra.mxu1 %v10955_v18  ;;  %v4698_v4 = vrot.slane %v4696_v47, 4  ;;  %v4691_v59 = vor.u32 %v4690_v48, %v4687_v3  ;;  %v4062_v63 = vrot.slane %v4060_v36, 5  ;;  %v7493_v45 = vcombine.low %v3774_v51, %v3774_v51 }
 0x2ce   : > { %v7519_v25 = vcombine.low %v3776_v44, %v10957_v22  ;;  %3739 = vst [vmem:[#allocation2 + $0xf8] sm:$0xf] %v3707_v53  ;;  %v7716_v60 = vpack.c.bf16 %v3516_v2, %v3516_v2  ;;  %v4659_v10 = vshrl.u32 %v7492_v6, 16  ;;  %v4662_v35 = vshll.u32 %v7492_v6, 16  ;;  %v3775_v53 = vld [vmem:[#allocation2 + $0xb0] sm:$0x8] }
 0x2cf   : > { %v4699_v61 = vor.u32 %v4698_v4, %v4695_v24  ;;  %v4063_v13 = vor.u32 %v4062_v63, %v4059_v62  ;;  %v4667_v56 = vshrl.u32 %v7493_v45, 16  ;;  %v4670_v50 = vshll.u32 %v7493_v45, 16 }
 0x2d0   : > { %v4207_v54 = vrot.slane %v7519_v25, 5  ;;  %v3708_v30 = vadd.bf16 %v7716_v60, %v3548_v37  ;;  %v4661_v49 = vrot.slane %v4659_v10, 3  ;;  %v4664_v16 = vrot.slane %v4662_v35, 4  ;;  %v3780_v35 = vld [vmem:[#allocation2 + $0xc8] sm:$0xf] }
 0x2d1   : > { %v10964_v57 = vsel %vm850_vm4, %v4691_v59, %v4699_v61  ;;  %v4676_v51 = vshrl.u32 %v4063_v13, 16  ;;  %v4679_v38 = vshll.u32 %v4063_v13, 16  ;;  %v4669_v34 = vrot.slane %v4667_v56, 3  ;;  %v9099_v59 = vld [vmem:[#allocation2 + $0xcc] ss:$0 sps:$4 sm:$0x11]  }
 0x2d2   : > { %8743 = vmatmul.mubr.bf16.gmra.mxu0 %v10964_v57  ;;  %v4672_v20 = vrot.slane %v4670_v50, 4  ;;  %3740 = vst [vmem:[#allocation2 + $0x104] sm:$0xf] %v3708_v30  ;;  %v4665_v55 = vor.u32 %v4664_v16, %v4661_v49  ;;  %v4208_v47 = vrot.slane %v9092_v58, 5  ;;  %v4728_v9 = vshrl.u32 %v4207_v54, 16 }
 0x2d3   : > { %v4731_v62 = vshll.u32 %v4207_v54, 16  ;;  %v4678_v3 = vrot.slane %v4676_v51, 3  ;;  %v4681_v48 = vrot.slane %v4679_v38, 4  ;;  %v4065_v36 = vshrl.u32 %v7519_v25, 16  ;;  %v3549_v30 = vld [vmem:[#allocation2 + $0x108] sm:$0xf] }
 0x2d4   : > { %v4673_v24 = vor.u32 %v4672_v20, %v4669_v34  ;;  %v4209_v2 = vsel %vm795_vm3, %v4207_v54, %v4208_v47  ;;  %v4730_v4 = vrot.slane %v4728_v9, 3  ;;  %v4068_v37 = vshll.u32 %v7519_v25, 16  ;;  %v3779_v51 = vld [vmem:[#allocation2 + $0xc4] sm:$0xf] }
 0x2d5   : > { %v4733_v6 = vrot.slane %v4731_v62, 4  ;;  %v10968_v45 = vor.u32 %v4681_v48, %v4678_v3  ;;  %v4736_v61 = vshrl.u32 %v4209_v2, 16  ;;  %v4739_v10 = vshll.u32 %v4209_v2, 16  ;;  %v3778_v2 = vld [vmem:[#allocation2 + $0xc0] sm:$0x8] }
 0x2d6   : > { %v9289_v63 = vpop.eup %9288  ;;  %v10971_v60 = vsel %vm850_vm4, %v4665_v55, %v4673_v24  ;;  %v4067_v56 = vrot.slane %v4065_v36, 4  ;;  %v4070_v50 = vrot.slane %v4068_v37, 5  ;;  %v7494_v49 = vcombine.low %v3775_v53, %v3776_v44 }
 0x2d7   : > { %11940 = vst [vmem:[#allocation7_spill] sm:$0xff] %v10968_v45  ;;  %11941 = vst [vmem:[#allocation8_spill] sm:$0xff] %v10971_v60  ;;  %v3517_v58 = vmul.f32 %v9289_v63, %v10929_v19  ;;  %v4734_v13 = vor.u32 %v4733_v6, %v4730_v4  ;;  %5356 = vmatprep.mubr.bf16.mxu1 %v10968_v45  ;;  %v4738_v54 = vrot.slane %v4736_v61, 3  ;;  %v4741_v25 = vrot.slane %v4739_v10, 4 }
 0x2d8   : > { %v7495_v16 = vcombine.low %v10957_v22, %v10957_v22  ;;  %5357 = vmatmul.mubr.bf16.gmra.mxu1 %v10971_v60  ;;  %v4071_v34 = vor.u32 %v4070_v50, %v4067_v56  ;;  %v7520_v20 = vcombine.low %v3779_v51, %v3780_v35  ;;  %v4211_v55 = vrot.slane %v9099_v59, 5 }
 0x2d9   : > { %v7717_v38 = vpack.c.bf16 %v3517_v58, %v3517_v58  ;;  %v4742_v19 = vor.u32 %v4741_v25, %v4738_v54  ;;  %v4702_v47 = vshrl.u32 %v7494_v49, 16  ;;  %v4705_v9 = vshll.u32 %v7494_v49, 16 }
 0x2da   : > { %v4710_v62 = vshrl.u32 %v7495_v16, 16  ;;  %v4719_v48 = vshrl.u32 %v4071_v34, 16  ;;  %v4722_v24 = vshll.u32 %v4071_v34, 16  ;;  %v4713_v36 = vshll.u32 %v7495_v16, 16 }
 0x2db   : > { %v3709_v3 = vadd.bf16 %v7717_v38, %v3549_v30  ;;  %v10979_v44 = vsel %vm850_vm4, %v4734_v13, %v4742_v19  ;;  %v4704_v22 = vrot.slane %v4702_v47, 3  ;;  %v4707_v53 = vrot.slane %v4705_v9, 4  ;;  %v9105_v34 = vld [vmem:[#allocation2 + $0xdc] ss:$0 sps:$4 sm:$0x11]  }
 0x2dc   : > { %v4712_v4 = vrot.slane %v4710_v62, 3  ;;  %8746 = vmatprep.mubr.bf16.mxu0 %v10979_v44  ;;  %v4721_v6 = vrot.slane %v4719_v48, 3  ;;  %v4724_v37 = vrot.slane %v4722_v24, 4  ;;  %v4715_v59 = vrot.slane %v4713_v36, 4 }
 0x2dd   : > { %3741 = vst [vmem:[#allocation2 + $0x108] sm:$0xf] %v3709_v3  ;;  %v4210_v63 = vrot.slane %v7520_v20, 5  ;;  %v4708_v61 = vor.u32 %v4707_v53, %v4704_v22  ;;  %v4073_v10 = vshrl.u32 %v7520_v20, 16  ;;  %v4076_v58 = vshll.u32 %v7520_v20, 16 }
 0x2de   : > { %v7496_v56 = vcombine.low %v3778_v2, %v3779_v51  ;;  %v10982_v50 = vor.u32 %v4724_v37, %v4721_v6  ;;  %v4716_v30 = vor.u32 %v4715_v59, %v4712_v4  ;;  %v7497_v20 = vcombine.low %v3780_v35, %v3780_v35  ;;  %v3783_v51 = vld [vmem:[#allocation2 + $0xd8] sm:$0xf]  ;;  %v3782_v53 = vld [vmem:[#allocation2 + $0xd4] sm:$0xf] }
 0x2df   : > { %v4212_v13 = vsel %vm795_vm3, %v4210_v63, %v4211_v55  ;;  %v4771_v54 = vshrl.u32 %v4210_v63, 16  ;;  %v4774_v25 = vshll.u32 %v4210_v63, 16  ;;  %v4075_v38 = vrot.slane %v4073_v10, 4 }
 0x2e0   : > { %11942 = vst [vmem:[#allocation9_spill] sm:$0xff] %v10982_v50  ;;  %v4779_v49 = vshrl.u32 %v4212_v13, 16  ;;  %v4782_v16 = vshll.u32 %v4212_v13, 16  ;;  %5364 = vmatprep.mubr.bf16.mxu1 %v10982_v50  ;;  %v10987_v19 = vsel %vm850_vm4, %v4708_v61, %v4716_v30  ;;  %v4078_v9 = vrot.slane %v4076_v58, 5 }
 0x2e1   : > { %11943 = vst [vmem:[#allocation10_spill] sm:$0xff] %v10987_v19  ;;  %v4773_v47 = vrot.slane %v4771_v54, 3  ;;  %5365 = vmatmul.mubr.bf16.gmra.mxu1 %v10987_v19  ;;  %v4776_v62 = vrot.slane %v4774_v25, 4  ;;  %v4745_v48 = vshrl.u32 %v7496_v56, 16  ;;  %v4748_v36 = vshll.u32 %v7496_v56, 16 }
 0x2e2   : > { %v4781_v3 = vrot.slane %v4779_v49, 3  ;;  %v4784_v55 = vrot.slane %v4782_v16, 4  ;;  %v4079_v24 = vor.u32 %v4078_v9, %v4075_v38  ;;  %v4753_v2 = vshrl.u32 %v7497_v20, 16  ;;  %v3781_v38 = vld [vmem:[#allocation2 + $0xd0] sm:$0x8] }
 0x2e3   : > { %v4756_v22 = vshll.u32 %v7497_v20, 16  ;;  %v4777_v4 = vor.u32 %v4776_v62, %v4773_v47  ;;  %v4747_v37 = vrot.slane %v4745_v48, 3  ;;  %v7521_v59 = vcombine.low %v3782_v53, %v3783_v51 }
 0x2e4   : > { %v4785_v6 = vor.u32 %v4784_v55, %v4781_v3  ;;  %v4762_v63 = vshrl.u32 %v4079_v24, 16  ;;  %v4765_v61 = vshll.u32 %v4079_v24, 16  ;;  %v4750_v10 = vrot.slane %v4748_v36, 4  ;;  %v9112_v3 = vld [vmem:[#allocation2 + $0xec] ss:$0 sps:$4 sm:$0x11]  }
 0x2e5   : > { %v4755_v35 = vrot.slane %v4753_v2, 3  ;;  %v4758_v30 = vrot.slane %v4756_v22, 4  ;;  %v4213_v13 = vrot.slane %v7521_v59, 5  ;;  %v4214_v54 = vrot.slane %v9105_v34, 5  ;;  %v3786_v2 = vld [vmem:[#allocation2 + $0xe8] sm:$0xf] }
 0x2e6   : > { %v10991_v58 = vsel %vm850_vm4, %v4777_v4, %v4785_v6  ;;  %v4764_v56 = vrot.slane %v4762_v63, 3  ;;  %v4767_v25 = vrot.slane %v4765_v61, 4  ;;  %v4751_v49 = vor.u32 %v4750_v10, %v4747_v37 }
 0x2e7   : > { %8747 = vmatmul.mubr.bf16.gmra.mxu0 %v10991_v58  ;;  %v4081_v16 = vshrl.u32 %v7521_v59, 16  ;;  %v4759_v47 = vor.u32 %v4758_v30, %v4755_v35  ;;  %v4215_v9 = vsel %vm795_vm3, %v4213_v13, %v4214_v54  ;;  %v4814_v20 = vshrl.u32 %v4213_v13, 16  ;;  %v3785_v35 = vld [vmem:[#allocation2 + $0xe4] sm:$0xf] }
 0x2e8   : > { %v4817_v62 = vshll.u32 %v4213_v13, 16  ;;  %v10995_v55 = vor.u32 %v4767_v25, %v4764_v56  ;;  %v4822_v48 = vshrl.u32 %v4215_v9, 16  ;;  %v4825_v24 = vshll.u32 %v4215_v9, 16 }
 0x2e9   : > { %v4083_v36 = vrot.slane %v4081_v16, 4  ;;  %v10998_v34 = vsel %vm850_vm4, %v4751_v49, %v4759_v47  ;;  %v4816_v22 = vrot.slane %v4814_v20, 3  ;;  %v4084_v6 = vshll.u32 %v7521_v59, 16 }
 0x2ea   : > { %11944 = vst [vmem:[#allocation11_spill] sm:$0xff] %v10995_v55  ;;  %11945 = vst [vmem:[#allocation13_spill] sm:$0xff] %v10998_v34  ;;  %v4819_v4 = vrot.slane %v4817_v62, 4  ;;  %5372 = vmatprep.mubr.bf16.mxu1 %v10995_v55  ;;  %v4824_v37 = vrot.slane %v4822_v48, 3  ;;  %v4827_v63 = vrot.slane %v4825_v24, 4  ;;  %v7498_v61 = vcombine.low %v3781_v38, %v3782_v53 }
 0x2eb   : > { %v7499_v10 = vcombine.low %v3783_v51, %v3783_v51  ;;  %5373 = vmatmul.mubr.bf16.gmra.mxu1 %v10998_v34  ;;  %v4086_v13 = vrot.slane %v4084_v6, 5  ;;  %v7522_v54 = vcombine.low %v3785_v35, %v3786_v2  ;;  %v4217_v56 = vrot.slane %v9112_v3, 5  ;;  %v3784_v6 = vld [vmem:[#allocation2 + $0xe0] sm:$0x8] }
 0x2ec   : > { %v4820_v30 = vor.u32 %v4819_v4, %v4816_v22  ;;  %v4828_v25 = vor.u32 %v4827_v63, %v4824_v37  ;;  %v4788_v16 = vshrl.u32 %v7498_v61, 16  ;;  %v4791_v49 = vshll.u32 %v7498_v61, 16 }
 0x2ed   : > { %v4796_v47 = vshrl.u32 %v7499_v10, 16  ;;  %v4087_v9 = vor.u32 %v4086_v13, %v4083_v36  ;;  %v4799_v20 = vshll.u32 %v7499_v10, 16  ;;  %v4216_v59 = vrot.slane %v7522_v54, 5  ;;  %v9118_v10 = vld [vmem:[#allocation2 + $0xfc] ss:$0 sps:$4 sm:$0x11]  }
 0x2ee   : > { %v4089_v62 = vshrl.u32 %v7522_v54, 16  ;;  %v11003_v48 = vsel %vm850_vm4, %v4820_v30, %v4828_v25  ;;  %v4790_v53 = vrot.slane %v4788_v16, 3  ;;  %v4793_v51 = vrot.slane %v4791_v49, 4  ;;  %v3787_v13 = vld [vmem:[#allocation2 + $0xf0] sm:$0x8] }
 0x2ef   : > { %v4798_v38 = vrot.slane %v4796_v47, 3  ;;  %8750 = vmatprep.mubr.bf16.mxu0 %v11003_v48  ;;  %v4805_v24 = vshrl.u32 %v4087_v9, 16  ;;  %v4808_v22 = vshll.u32 %v4087_v9, 16  ;;  %v4801_v4 = vrot.slane %v4799_v20, 4  ;;  %v3789_v49 = vld [vmem:[#allocation2 + $0xf8] sm:$0xf] }
 0x2f0   : > { %v4218_v3 = vsel %vm795_vm3, %v4216_v59, %v4217_v56  ;;  %v4794_v37 = vor.u32 %v4793_v51, %v4790_v53  ;;  %v4857_v63 = vshrl.u32 %v4216_v59, 16  ;;  %v4860_v36 = vshll.u32 %v4216_v59, 16  ;;  %v3788_v9 = vld [vmem:[#allocation2 + $0xf4] sm:$0xf] }
 0x2f1   : > { %v4865_v61 = vshrl.u32 %v4218_v3, 16  ;;  %v4807_v34 = vrot.slane %v4805_v24, 3  ;;  %v4810_v30 = vrot.slane %v4808_v22, 4  ;;  %v4802_v25 = vor.u32 %v4801_v4, %v4798_v38 }
 0x2f2   : > { %v4868_v16 = vshll.u32 %v4218_v3, 16  ;;  %v4859_v47 = vrot.slane %v4857_v63, 3  ;;  %v4862_v55 = vrot.slane %v4860_v36, 4  ;;  %v4091_v50 = vrot.slane %v4089_v62, 4 }
 0x2f3   : > { %v4867_v19 = vrot.slane %v4865_v61, 3  ;;  %v11007_v20 = vor.u32 %v4810_v30, %v4807_v34  ;;  %v11010_v56 = vsel %vm850_vm4, %v4794_v37, %v4802_v25  ;;  %v4092_v59 = vshll.u32 %v7522_v54, 16 }
 0x2f4   : > { %11947 = vst [vmem:[#allocation17_spill] sm:$0xff] %v11010_v56  ;;  %v4870_v53 = vrot.slane %v4868_v16, 4  ;;  %v4863_v51 = vor.u32 %v4862_v55, %v4859_v47  ;;  %v7500_v60 = vcombine.low %v3784_v6, %v3785_v35  ;;  %v7501_v45 = vcombine.low %v3786_v2, %v3786_v2 }
 0x2f5   : > { %11946 = vst [vmem:[#allocation15_spill] sm:$0xff] %v11007_v20  ;;  %v7523_v24 = vcombine.low %v3788_v9, %v3789_v49  ;;  %5380 = vmatprep.mubr.bf16.mxu1 %v11007_v20  ;;  %v4094_v22 = vrot.slane %v4092_v59, 5  ;;  %v4220_v4 = vrot.slane %v9118_v10, 5  ;;  %v7502_v3 = vcombine.low %v3787_v13, %v3788_v9 }
 0x2f6   : > { %v4871_v38 = vor.u32 %v4870_v53, %v4867_v19  ;;  %5381 = vmatmul.mubr.bf16.gmra.mxu1 %v11010_v56  ;;  %v4831_v62 = vshrl.u32 %v7500_v60, 16  ;;  %v4834_v34 = vshll.u32 %v7500_v60, 16  ;;  %v4839_v63 = vshrl.u32 %v7501_v45, 16 }
 0x2f7   : > { %v4842_v36 = vshll.u32 %v7501_v45, 16  ;;  %v4095_v54 = vor.u32 %v4094_v22, %v4091_v50  ;;  %v4219_v55 = vrot.slane %v7523_v24, 5  ;;  %v4097_v35 = vshrl.u32 %v7523_v24, 16 }
 0x2f8   : > { %v11015_v37 = vsel %vm850_vm4, %v4863_v51, %v4871_v38  ;;  %v4833_v2 = vrot.slane %v4831_v62, 3  ;;  %v4836_v6 = vrot.slane %v4834_v34, 4  ;;  %v4841_v19 = vrot.slane %v4839_v63, 3  ;;  %v3792_v51 = vld [vmem:[#allocation2 + $0x108] sm:$0xf] }
 0x2f9   : > { %8751 = vmatmul.mubr.bf16.gmra.mxu0 %v11015_v37  ;;  %v4844_v61 = vrot.slane %v4842_v36, 4  ;;  %v4848_v10 = vshrl.u32 %v4095_v54, 16  ;;  %v4851_v13 = vshll.u32 %v4095_v54, 16  ;;  %v4221_v30 = vsel %vm795_vm3, %v4219_v55, %v4220_v4  ;;  %v9125_v63 = vld [vmem:[#allocation2 + $0x10c] ss:$0 sps:$4 sm:$0x11]  }
 0x2fa   : > { %v4900_v25 = vshrl.u32 %v4219_v55, 16  ;;  %v4837_v60 = vor.u32 %v4836_v6, %v4833_v2  ;;  %v4903_v45 = vshll.u32 %v4219_v55, 16  ;;  %v4908_v47 = vshrl.u32 %v4221_v30, 16  ;;  %v3791_v6 = vld [vmem:[#allocation2 + $0x104] sm:$0xf] }
 0x2fb   : > { %v4845_v16 = vor.u32 %v4844_v61, %v4841_v19  ;;  %v4850_v9 = vrot.slane %v4848_v10, 3  ;;  %v4853_v53 = vrot.slane %v4851_v13, 4  ;;  %v4911_v59 = vshll.u32 %v4221_v30, 16 }
 0x2fc   : > { %v4902_v50 = vrot.slane %v4900_v25, 3  ;;  %v4905_v22 = vrot.slane %v4903_v45, 4  ;;  %v4910_v62 = vrot.slane %v4908_v47, 3  ;;  %v4099_v34 = vrot.slane %v4097_v35, 4 }
 0x2fd   : > { %v11020_v38 = vsel %vm850_vm4, %v4837_v60, %v4845_v16  ;;  %v11022_v36 = vor.u32 %v4853_v53, %v4850_v9  ;;  %v4913_v4 = vrot.slane %v4911_v59, 4  ;;  %v4100_v54 = vshll.u32 %v7523_v24, 16 }
 0x2fe   : > { %11948 = vst [vmem:[#allocation18_spill] sm:$0xff] %v11020_v38  ;;  %v7503_v2 = vcombine.low %v3789_v49, %v3789_v49  ;;  %v4906_v55 = vor.u32 %v4905_v22, %v4902_v50  ;;  %v4874_v19 = vshrl.u32 %v7502_v3, 16  ;;  %v4877_v61 = vshll.u32 %v7502_v3, 16 }
 0x2ff   : > { %11949 = vst [vmem:[#allocation22_spill] sm:$0xff] %v11022_v36  ;;  %v7524_v10 = vcombine.low %v3791_v6, %v3792_v51  ;;  %5388 = vmatprep.mubr.bf16.mxu1 %v11022_v36  ;;  %v4914_v13 = vor.u32 %v4913_v4, %v4910_v62  ;;  %v4102_v30 = vrot.slane %v4100_v54, 5  ;;  %v4223_v47 = vrot.slane %v9125_v63, 5  ;;  %v3790_v62 = vld [vmem:[#allocation2 + $0x100] sm:$0x8] }
 0x300   : > { %v4882_v25 = vshrl.u32 %v7503_v2, 16  ;;  %v4885_v60 = vshll.u32 %v7503_v2, 16  ;;  %5389 = vmatmul.mubr.bf16.gmra.mxu1 %v11020_v38  ;;  %v4876_v35 = vrot.slane %v4874_v19, 3  ;;  %v4879_v16 = vrot.slane %v4877_v61, 4  ;;  %v3743_v61 = vld [vmem:[#allocation2 + $0x4] sm:$0xf] }
 0x301   : > { %v4222_v45 = vrot.slane %v7524_v10, 5  ;;  %v11027_v24 = vsel %vm850_vm4, %v4906_v55, %v4914_v13  ;;  %v4103_v49 = vor.u32 %v4102_v30, %v4099_v34  ;;  %v4105_v13 = vshrl.u32 %v7524_v10, 16  ;;  %v3744_v34 = vld [vmem:[#allocation2 + $0x8] sm:$0xf] }
 0x302   : > { %v4884_v9 = vrot.slane %v4882_v25, 3  ;;  %v4887_v53 = vrot.slane %v4885_v60, 4  ;;  %8754 = vmatprep.mubr.bf16.mxu0 %v11027_v24  ;;  %v4880_v3 = vor.u32 %v4879_v16, %v4876_v35  ;;  %v3742_v16 = vld [vmem:[#allocation2] sm:$0x8]  ;;  %v4108_v56 = vshll.u32 %v7524_v10, 16 }
 0x303   : > { %v4224_v50 = vsel %vm795_vm3, %v4222_v45, %v4223_v47  ;;  %v5040_v59 = vshrl.u32 %v4222_v45, 16  ;;  %v5043_v22 = vshll.u32 %v4222_v45, 16  ;;  %v4891_v4 = vshrl.u32 %v4103_v49, 16 }
 0x304   : > { %v4894_v54 = vshll.u32 %v4103_v49, 16  ;;  %v4888_v2 = vor.u32 %v4887_v53, %v4884_v9  ;;  %v5048_v19 = vshrl.u32 %v4224_v50, 16  ;;  %v5051_v55 = vshll.u32 %v4224_v50, 16 }
 0x305   : > { %v5042_v63 = vrot.slane %v5040_v59, 3  ;;  %v5045_v38 = vrot.slane %v5043_v22, 4  ;;  %v4893_v30 = vrot.slane %v4891_v4, 3  ;;  %v4107_v36 = vrot.slane %v4105_v13, 4 }
 0x306   : > { %v4896_v25 = vrot.slane %v4894_v54, 4  ;;  %v11032_v60 = vsel %vm850_vm4, %v4880_v3, %v4888_v2  ;;  %v5050_v35 = vrot.slane %v5048_v19, 3  ;;  %v5053_v45 = vrot.slane %v5051_v55, 4 }
 0x307   : > { %v5046_v47 = vor.u32 %v5045_v38, %v5042_v63  ;;  %v7504_v9 = vcombine.low %v3790_v62, %v3791_v6  ;;  %v7505_v53 = vcombine.low %v3792_v51, %v3792_v51  ;;  %v7508_v59 = vcombine.low %v3743_v61, %v3744_v34 }
 0x308   : > { %v11034_v49 = vor.u32 %v4896_v25, %v4893_v30  ;;  %v5054_v22 = vor.u32 %v5053_v45, %v5050_v35  ;;  %v4110_v50 = vrot.slane %v4108_v56, 5  ;;  %v7472_v20 = vcombine.low %v3742_v16, %v3743_v61  ;;  %v9133_v16 = vld [vmem:[#allocation2 + $0xc] ss:$0 sps:$4 sm:$0x11]  }
 0x309   : > { %v7473_v18 = vcombine.low %v3744_v34, %v3744_v34  ;;  %v5014_v4 = vshrl.u32 %v7504_v9, 16  ;;  %v5017_v3 = vshll.u32 %v7504_v9, 16  ;;  %v5022_v54 = vshrl.u32 %v7505_v53, 16 }
 0x30a   : > { %5396 = vmatprep.mubr.bf16.mxu1 %v11034_v49  ;;  %v5025_v2 = vshll.u32 %v7505_v53, 16  ;;  %v11039_v38 = vsel %vm850_vm4, %v5046_v47, %v5054_v22  ;;  %v4111_v10 = vor.u32 %v4110_v50, %v4107_v36  ;;  %v3977_v19 = vshrl.u32 %v7508_v59, 16 }
 0x30b   : > { %5397 = vmatmul.mubr.bf16.gmra.mxu1 %v11032_v60  ;;  %11950 = vst [vmem:[#allocation23_spill] sm:$0xff] %v11039_v38  ;;  %v3980_v6 = vshll.u32 %v7508_v59, 16  ;;  %8755 = vmatmul.mubr.bf16.gmra.mxu0 %v11039_v38  ;;  %v5016_v51 = vrot.slane %v5014_v4, 3  ;;  %v5019_v56 = vrot.slane %v5017_v3, 4  ;;  %v5024_v62 = vrot.slane %v5022_v54, 3 }
 0x30c   : > { %v5027_v61 = vrot.slane %v5025_v2, 4  ;;  %v5031_v63 = vshrl.u32 %v4111_v10, 16  ;;  %v5034_v55 = vshll.u32 %v4111_v10, 16  ;;  %v3979_v13 = vrot.slane %v3977_v19, 4 }
 0x30d   : > { %v3982_v34 = vrot.slane %v3980_v6, 5  ;;  %v4229_v25 = vshrl.u32 %v7472_v20, 16  ;;  %v4232_v35 = vshll.u32 %v7472_v20, 16  ;;  %v4237_v36 = vshrl.u32 %v7473_v18, 16 }
 0x30e   : > { %v5028_v30 = vor.u32 %v5027_v61, %v5024_v62  ;;  %v5033_v45 = vrot.slane %v5031_v63, 3  ;;  %v5036_v47 = vrot.slane %v5034_v55, 4  ;;  %v5020_v53 = vor.u32 %v5019_v56, %v5016_v51 }
 0x30f   : > { %v3983_v9 = vor.u32 %v3982_v34, %v3979_v13  ;;  %v4231_v22 = vrot.slane %v4229_v25, 3  ;;  %v4234_v50 = vrot.slane %v4232_v35, 4  ;;  %v4240_v38 = vshll.u32 %v7473_v18, 16 }
 0x310   : > { %v11042_v4 = vor.u32 %v5036_v47, %v5033_v45  ;;  %v4239_v2 = vrot.slane %v4237_v36, 3  ;;  %v4174_v6 = vrot.slane %v7508_v59, 5  ;;  %v4175_v62 = vrot.slane %v9133_v16, 5  ;;  %v9141_v16 = vld [vmem:[#allocation3 + $0x470] sm:$0xff]  }
 0x311   : > { %v4246_v3 = vshrl.u32 %v3983_v9, 16  ;;  %v4249_v54 = vshll.u32 %v3983_v9, 16  ;;  %v4235_v10 = vor.u32 %v4234_v50, %v4231_v22  ;;  %v4242_v19 = vrot.slane %v4240_v38, 4  ;;  %v9135_v22 = vld [vmem:[#allocation3 + $0x3f8] sm:$0xff]  }
 0x312   : > { %5404 = vmatprep.mubr.bf16.mxu1 %v11042_v4  ;;  %v11046_v20 = vsel %vm850_vm4, %v5020_v53, %v5028_v30  ;;  %v4176_v18 = vsel %vm795_vm3, %v4174_v6, %v4175_v62  ;;  %v4255_v56 = vshrl.u32 %v4174_v6, 16  ;;  %v4258_v55 = vshll.u32 %v4174_v6, 16  ;;  %v9419_v53 = vld [vmem:[#allocation3 + $0x478] sm:$0xff]   ;;  %v9139_v6 = vld [vmem:[#allocation3 + $0x428] sm:$0xff]  }
 0x313   : > { %v4248_v61 = vrot.slane %v4246_v3, 3  ;;  %v4251_v63 = vrot.slane %v4249_v54, 4  ;;  %5405 = vmatmul.mubr.bf16.gmra.mxu1 %v11046_v20  ;;  %v4243_v51 = vor.u32 %v4242_v19, %v4239_v2  ;;  %v4263_v34 = vshrl.u32 %v4176_v18, 16  ;;  %v9137_v54 = vld [vmem:[#allocation3 + $0x430] sm:$0xff]   ;;  %v9146_v2 = vld [vmem:[#allocation3 + $0x468] sm:$0xff]  }
 0x314   : > { %v4266_v25 = vshll.u32 %v4176_v18, 16  ;;  %v4257_v38 = vrot.slane %v4255_v56, 3  ;;  %v4260_v35 = vrot.slane %v4258_v55, 4  ;;  %v9138_v19 = vld [vmem:[#allocation3 + $0x3f0] sm:$0xff]  }
 0x315   : > { %v4252_v13 = vor.u32 %v4251_v63, %v4248_v61  ;;  %v4244_v59 = vsel %vm850_vm4, %v4235_v10, %v4243_v51  ;;  %v4265_v30 = vrot.slane %v4263_v34, 3  ;;  %v8174_v9 = vpop.f32.mrf.mxu1  ;;  %v9140_v61 = vld [vmem:[#allocation3 + $0x3e8] sm:$0xff]   ;;  %v9154_v51 = vld [vmem:[#allocation3 + $0x458] sm:$0xff]  }
 0x316   : > { %v4268_v45 = vrot.slane %v4266_v25, 4  ;;  %v4261_v47 = vor.u32 %v4260_v35, %v4257_v38  ;;  %v9144_v34 = vld [vmem:[#allocation3 + $0x418] sm:$0xff]   ;;  %v9147_v38 = vld [vmem:[#allocation3 + $0x410] sm:$0xff]   ;;  %v9156_v35 = vld [vmem:[#allocation3 + $0x448] sm:$0xff]  }
 0x317   : > { %5750 = vmatprep.mubr.bf16.mxu0 %v4252_v13  ;;  %v8175_v50 = vpop.f32.mrf.mxu1  ;;  %v9155_v13 = vld [vmem:[#allocation3 + $0x450] sm:$0xff]   ;;  %v9145_v25 = vld [vmem:[#allocation3 + $0x3d8] sm:$0xff]  }
 0x318   : > { %5751 = vmatmul.mubr.bf16.vlgmr.msra.gmra.mxu0 %v4244_v59  ;;  %v4269_v36 = vor.u32 %v4268_v45, %v4265_v30  ;;  %v8176_v10 = vadd.f32 %v8175_v50, %v8174_v9  ;;  %v9148_v45 = vld [vmem:[#allocation3 + $0x3d0] sm:$0xff]   ;;  %v9157_v9 = vld [vmem:[#allocation3 + $0x440] sm:$0xff]  }
 0x319   : > { %5758 = vmatprep.mubr.bf16.mxu0 %v10662_v41  ;;  %8807 = vmatpush3.bf16.msra.mxu0 %v9419_v53  ;;  %v9151_v41 = vld [vmem:[#allocation3 + $0x460] sm:$0xff]   ;;  %v11057_v63 = vpop.f32.mrf.mxu1 }
 0x31a   : > { %8808 = vmatprep.subr.bf16.mxu0 %v9141_v16  ;;  %v4270_v3 = vsel %vm850_vm4, %v4261_v47, %v4269_v36  ;;  %v9149_v36 = vld [vmem:[#allocation3 + $0x408] sm:$0xff]  }
 0x31b   : > { %8774 = vmatprep.mubr.bf16.mxu1 %v4270_v3  ;;  %v11063_v55 = vpop.f32.mrf.mxu1  ;;  %v9150_v3 = vld [vmem:[#allocation3 + $0x3c8] sm:$0xff]  }
 0x31c   : > { %8775 = vmatmul.mubr.bf16.vlgmr.msra.gmra.mxu1 %v10635_v0  ;;  %v9142_v0 = vld [vmem:[#allocation3 + $0x420] sm:$0xff]  }
 0x31d   : > { %8809 = vmatpush3.bf16.msra.mxu0 %v9141_v16  ;;  %8778 = vmatprep.mubr.bf16.mxu1 %v10708_v17 }
 0x31e   : > { %8431 = vmatpush3.bf16.msra.mxu1 %v9135_v22  ;;  %8810 = vmatprep.subr.bf16.mxu0 %v9146_v2 }
 0x31f   : > { %8432 = vmatprep.subr.bf16.mxu1 %v9137_v54 }
 0x320   : > { %5759 = vmatmul.mubr.bf16.gmra.mxu0 %v10675_v29  ;;  %v8728_v62 = vpop.f32.mrf.mxu0  ;;  %v9143_v29 = vld [vmem:[#allocation3 + $0x3e0] sm:$0xff]  }
 0x321   : > { %5766 = vmatprep.mubr.bf16.mxu0 %v10727_v52  ;;  %8811 = vmatpush3.bf16.msra.mxu0 %v9146_v2  ;;  %v9152_v2 = vld [vmem:[#allocation3 + $0x400] sm:$0xff]  }
 0x322   : > { %8433 = vmatpush3.bf16.msra.mxu1 %v9138_v19  ;;  %8812 = vmatprep.subr.bf16.mxu0 %v9151_v41  ;;  %v5447_v18 = vpop.f32.mrf.mxu0  ;;  %v9153_v19 = vld [vmem:[#allocation3 + $0x3c0] sm:$0xff]  }
 0x323   : > { %8434 = vmatprep.subr.bf16.mxu1 %v9139_v6  ;;  %v11059_v56 = vadd.f32 %v8176_v10, %v5447_v18 }
 0x324   : > { %8779 = vmatmul.mubr.bf16.gmra.mxu1 %v10768_v40  ;;  %v8729_v54 = vpop.f32.mrf.mxu0 }
 0x325   : > { %8813 = vmatpush3.bf16.msra.mxu0 %v9151_v41  ;;  %8782 = vmatprep.mubr.bf16.mxu1 %v10818_v7 }
 0x326   : > { %8435 = vmatpush3.bf16.msra.mxu1 %v9140_v61  ;;  %8814 = vmatprep.subr.bf16.mxu0 %v9154_v51  ;;  %v11082_v61 = vpop.f32.mrf.mxu0 }
 0x327   : > { %8436 = vmatprep.subr.bf16.mxu1 %v9142_v0 }
 0x328   : > { %5767 = vmatmul.mubr.bf16.gmra.mxu0 %v10735_v39  ;;  %v8180_v59 = vpop.f32.mrf.mxu1 }
 0x329   : > { %5774 = vmatprep.mubr.bf16.mxu0 %v10787_v33  ;;  %8815 = vmatpush3.bf16.msra.mxu0 %v9154_v51 }
 0x32a   : > { %8437 = vmatpush3.bf16.msra.mxu1 %v9143_v29  ;;  %8816 = vmatprep.subr.bf16.mxu0 %v9155_v13  ;;  %v8181_v16 = vpop.f32.mrf.mxu1 }
 0x32b   : > { %8438 = vmatprep.subr.bf16.mxu1 %v9144_v34  ;;  %v8182_v30 = vadd.f32 %v8181_v16, %v8180_v59 }
 0x32c   : > { %8783 = vmatmul.mubr.bf16.gmra.mxu1 %v10849_v43  ;;  %v8183_v47 = vpop.f32.mrf.mxu1 }
 0x32d   : > { %8817 = vmatpush3.bf16.msra.mxu0 %v9155_v13  ;;  %8786 = vmatprep.mubr.bf16.mxu1 %v10884_v12  ;;  %v11069_v53 = vadd.f32 %v8728_v62, %v8182_v30 }
 0x32e   : > { %8439 = vmatpush3.bf16.msra.mxu1 %v9145_v25  ;;  %8818 = vmatprep.subr.bf16.mxu0 %v9156_v35  ;;  %v8184_v22 = vpop.f32.mrf.mxu1 }
 0x32f   : > { %8440 = vmatprep.subr.bf16.mxu1 %v9147_v38  ;;  %v8185_v50 = vadd.f32 %v8184_v22, %v8183_v47 }
 0x330   : > { %5775 = vmatmul.mubr.bf16.gmra.mxu0 %v10795_v26 }
 0x331   : > { %5782 = vmatprep.mubr.bf16.mxu0 %v10824_v15  ;;  %8819 = vmatpush3.bf16.msra.mxu0 %v9156_v35  ;;  %v11073_v10 = vadd.f32 %v8729_v54, %v8185_v50 }
 0x332   : > { %8441 = vmatpush3.bf16.msra.mxu1 %v9148_v45  ;;  %8820 = vmatprep.subr.bf16.mxu0 %v9157_v9 }
 0x333   : > { %8442 = vmatprep.subr.bf16.mxu1 %v9149_v36 }
 0x334   : > { %8787 = vmatmul.mubr.bf16.gmra.mxu1 %v10912_v42 }
 0x335   : > { %8821 = vmatpush3.bf16.msra.mxu0 %v9157_v9  ;;  %8790 = vmatprep.mubr.bf16.mxu1 %v10934_v5 }
 0x336   : > { %8443 = vmatpush3.bf16.msra.mxu1 %v9150_v3 }
 0x337   : > { %8444 = vmatprep.subr.bf16.mxu1 %v9152_v2 }
 0x338   : > { %5783 = vmatmul.mubr.bf16.gmra.mxu0 %v10829_v11  ;;  %v8186_v41 = vpop.f32.mrf.mxu1 }
 0x339   : > { %5790 = vmatprep.mubr.bf16.mxu0 %v10861_v28 }
 0x33a   : > { %8445 = vmatpush3.bf16.msra.mxu1 %v9153_v19  ;;  %v8187_v6 = vpop.f32.mrf.mxu1 }
 0x33b   : > { %v8188_v62 = vadd.f32 %v8187_v6, %v8186_v41  ;;  %v11951_v41 = vld [vmem:[#allocation6_spill] sm:$0xff] }
 0x33c   : > { %8791 = vmatmul.mubr.bf16.gmra.mxu1 %v10947_v1  ;;  %v11085_v0 = vpop.f32.mrf.mxu1 }
 0x33d   : > { %8794 = vmatprep.mubr.bf16.mxu1 %v10964_v57 }
 0x33e   : > { %v11088_v29 = vpop.f32.mrf.mxu1 }
 0x340   : > { %5791 = vmatmul.mubr.bf16.gmra.mxu0 %v10867_v23 }
 0x341   : > { %5798 = vmatprep.mubr.bf16.mxu0 %v10888_v8  ;;  %v8732_v51 = vpop.f32.mrf.mxu0 }
 0x343   : > { %v5463_v18 = vpop.f32.mrf.mxu0 }
 0x344   : > { %8795 = vmatmul.mubr.bf16.gmra.mxu1 %v10979_v44  ;;  %v11090_v13 = vadd.f32 %v8188_v62, %v5463_v18  ;;  %v11954_v18 = vld [vmem:[#allocation9_spill] sm:$0xff] }
 0x345   : > { %8798 = vmatprep.mubr.bf16.mxu1 %v10991_v58  ;;  %v8733_v45 = vpop.f32.mrf.mxu0 }
 0x347   : > { %v8192_v34 = vpop.f32.mrf.mxu1  ;;  %v11108_v3 = vpop.f32.mrf.mxu0 }
 0x348   : > { %5799 = vmatmul.mubr.bf16.gmra.mxu0 %v10895_v46 }
 0x349   : > { %5806 = vmatprep.mubr.bf16.mxu0 %v10917_v14  ;;  %v8193_v25 = vpop.f32.mrf.mxu1 }
 0x34a   : > { %v8194_v59 = vadd.f32 %v8193_v25, %v8192_v34 }
 0x34b   : > { %v8195_v38 = vpop.f32.mrf.mxu1 }
 0x34c   : > { %8799 = vmatmul.mubr.bf16.gmra.mxu1 %v11003_v48  ;;  %v11097_v35 = vadd.f32 %v8732_v51, %v8194_v59  ;;  %v11953_v51 = vld [vmem:[#allocation8_spill] sm:$0xff] }
 0x34d   : > { %8802 = vmatprep.mubr.bf16.mxu1 %v11015_v37  ;;  %v8196_v16 = vpop.f32.mrf.mxu1 }
 0x34e   : > { %v8197_v30 = vadd.f32 %v8196_v16, %v8195_v38 }
 0x350   : > { %5807 = vmatmul.mubr.bf16.gmra.mxu0 %v10920_v21  ;;  %v11101_v47 = vadd.f32 %v8733_v45, %v8197_v30  ;;  %v11956_v45 = vld [vmem:[#allocation11_spill] sm:$0xff] }
 0x351   : > { %5814 = vmatprep.mubr.bf16.mxu0 %v10938_v27 }
 0x354   : > { %8803 = vmatmul.mubr.bf16.gmra.mxu1 %v11027_v24 }
 0x355   : > { %6311 = vmatprep.mubr.bf16.mxu1 %v10727_v52  ;;  %v11952_v52 = vld [vmem:[#allocation7_spill] sm:$0xff] }
 0x356   : > { %v8198_v9 = vpop.f32.mrf.mxu1 }
 0x358   : > { %5815 = vmatmul.mubr.bf16.gmra.mxu0 %v10942_v31  ;;  %v8199_v36 = vpop.f32.mrf.mxu1 }
 0x359   : > { %5822 = vmatprep.mubr.bf16.mxu0 %v10952_v32  ;;  %v8200_v22 = vadd.f32 %v8199_v36, %v8198_v9 }
 0x35a   : > { %v8201_v50 = vpop.f32.mrf.mxu1 }
 0x35c   : > { %6312 = vmatmul.mubr.bf16.vlgmr.msra.gmra.mxu1 %v10735_v39  ;;  %v8202_v54 = vpop.f32.mrf.mxu1 }
 0x35d   : > { %6319 = vmatprep.mubr.bf16.mxu1 %v10787_v33  ;;  %v11111_v19 = vadd.f32 %v8202_v54, %v8201_v50  ;;  %v11958_v50 = vld [vmem:[#allocation15_spill] sm:$0xff] }
 0x35e   : > { %v8736_v2 = vpop.f32.mrf.mxu0 }
 0x360   : > { %5823 = vmatmul.mubr.bf16.gmra.mxu0 %v11951_v41  ;;  %v5479_v6 = vpop.f32.mrf.mxu0 }
 0x361   : > { %5830 = vmatprep.mubr.bf16.mxu0 %v11952_v52  ;;  %v11115_v62 = vadd.f32 %v8200_v22, %v5479_v6  ;;  %v11957_v22 = vld [vmem:[#allocation13_spill] sm:$0xff] }
 0x362   : > { %v8737_v30 = vpop.f32.mrf.mxu0 }
 0x364   : > { %6320 = vmatmul.mubr.bf16.gmra.mxu1 %v10795_v26  ;;  %v11955_v26 = vld [vmem:[#allocation10_spill] sm:$0xff]  ;;  %v11133_v54 = vpop.f32.mrf.mxu0 }
 0x365   : > { %6327 = vmatprep.mubr.bf16.mxu1 %v10824_v15 }
 0x366   : > { %v8204_v39 = vpop.f32.mrf.mxu1 }
 0x368   : > { %5831 = vmatmul.mubr.bf16.gmra.mxu0 %v11953_v51  ;;  %v8205_v33 = vpop.f32.mrf.mxu1 }
 0x369   : > { %5838 = vmatprep.mubr.bf16.mxu0 %v11954_v18  ;;  %v8206_v34 = vadd.f32 %v8205_v33, %v8204_v39 }
 0x36a   : > { %v8207_v25 = vpop.f32.mrf.mxu1 }
 0x36b   : > { %v11121_v59 = vadd.f32 %v8736_v2, %v8206_v34  ;;  %v11960_v34 = vld [vmem:[#allocation22_spill] sm:$0xff] }
 0x36c   : > { %6328 = vmatmul.mubr.bf16.gmra.mxu1 %v10829_v11  ;;  %v8208_v38 = vpop.f32.mrf.mxu1 }
 0x36d   : > { %6335 = vmatprep.mubr.bf16.mxu1 %v10861_v28  ;;  %v8209_v16 = vadd.f32 %v8208_v38, %v8207_v25 }
 0x36f   : > { %v11126_v15 = vadd.f32 %v8737_v30, %v8209_v16 }
 0x370   : > { %5839 = vmatmul.mubr.bf16.gmra.mxu0 %v11955_v26 }
 0x371   : > { %5846 = vmatprep.mubr.bf16.mxu0 %v11956_v45 }
 0x374   : > { %6336 = vmatmul.mubr.bf16.gmra.mxu1 %v10867_v23  ;;  %v8210_v9 = vpop.f32.mrf.mxu1 }
 0x375   : > { %6343 = vmatprep.mubr.bf16.mxu1 %v10888_v8  ;;  %v11959_v8 = vld [vmem:[#allocation17_spill] sm:$0xff] }
 0x376   : > { %v8211_v36 = vpop.f32.mrf.mxu1 }
 0x377   : > { %v8212_v11 = vadd.f32 %v8211_v36, %v8210_v9 }
 0x378   : > { %5847 = vmatmul.mubr.bf16.gmra.mxu0 %v11957_v22  ;;  %v8213_v28 = vpop.f32.mrf.mxu1 }
 0x379   : > { %5854 = vmatprep.mubr.bf16.mxu0 %v11958_v50 }
 0x37a   : > { %v8214_v2 = vpop.f32.mrf.mxu1 }
 0x37b   : > { %v11135_v39 = vadd.f32 %v8214_v2, %v8213_v28 }
 0x37c   : > { %6344 = vmatmul.mubr.bf16.gmra.mxu1 %v10895_v46  ;;  %v11961_v46 = vld [vmem:[#allocation18_spill] sm:$0xff] }
 0x37d   : > { %v8740_v6 = vpop.f32.mrf.mxu0  ;;  %6351 = vmatprep.mubr.bf16.mxu1 %v10917_v14 }
 0x37f   : > { %v5495_v23 = vpop.f32.mrf.mxu0 }
 0x380   : > { %v11139_v33 = vadd.f32 %v8212_v11, %v5495_v23  ;;  %5855 = vmatmul.mubr.bf16.gmra.mxu0 %v11959_v8 }
 0x381   : > { %5862 = vmatprep.mubr.bf16.mxu0 %v11960_v34  ;;  %v8216_v25 = vpop.f32.mrf.mxu1  ;;  %v8741_v11 = vpop.f32.mrf.mxu0 }
 0x383   : > { %v8217_v38 = vpop.f32.mrf.mxu1 }
 0x384   : > { %6352 = vmatmul.mubr.bf16.gmra.mxu1 %v10920_v21  ;;  %v8218_v16 = vadd.f32 %v8217_v38, %v8216_v25 }
 0x385   : > { %6359 = vmatprep.mubr.bf16.mxu1 %v10938_v27  ;;  %v8219_v30 = vpop.f32.mrf.mxu1  ;;  %v11154_v27 = vpop.f32.mrf.mxu0 }
 0x386   : > { %v11145_v9 = vadd.f32 %v8740_v6, %v8218_v16 }
 0x387   : > { %v8220_v14 = vpop.f32.mrf.mxu1 }
 0x388   : > { %5863 = vmatmul.mubr.bf16.gmra.mxu0 %v11961_v46  ;;  %v8221_v36 = vadd.f32 %v8220_v14, %v8219_v30 }
 0x389   : > { %5870 = vmatprep.mubr.bf16.mxu0 %v11034_v49 }
 0x38a   : > { %v11149_v28 = vadd.f32 %v8741_v11, %v8221_v36 }
 0x38c   : > { %6360 = vmatmul.mubr.bf16.gmra.mxu1 %v10942_v31 }
 0x38d   : > { %v8222_v2 = vpop.f32.mrf.mxu1  ;;  %6367 = vmatprep.mubr.bf16.mxu1 %v10952_v32 }
 0x38f   : > { %v8223_v21 = vpop.f32.mrf.mxu1 }
 0x390   : > { %5871 = vmatmul.mubr.bf16.gmra.mxu0 %v11032_v60  ;;  %v8224_v6 = vadd.f32 %v8223_v21, %v8222_v2 }
 0x391   : > { %8822 = vmatprep.mubr.bf16.mxu0 %v10708_v17  ;;  %v8225_v23 = vpop.f32.mrf.mxu1 }
 0x392   : > { %v8744_v25 = vpop.f32.mrf.mxu0 }
 0x393   : > { %v8226_v38 = vpop.f32.mrf.mxu1 }
 0x394   : > { %v8227_v16 = vadd.f32 %v8226_v38, %v8225_v23  ;;  %v5511_v30 = vpop.f32.mrf.mxu0  ;;  %6368 = vmatmul.mubr.bf16.gmra.mxu1 %v11951_v41 }
 0x395   : > { %v11158_v14 = vadd.f32 %v8224_v6, %v5511_v30  ;;  %6375 = vmatprep.mubr.bf16.mxu1 %v11952_v52 }
 0x396   : > { %v8745_v31 = vpop.f32.mrf.mxu0 }
 0x398   : > { %8823 = vmatmul.mubr.bf16.vlgmr.msra.gmra.mxu0 %v10768_v40  ;;  %v5514_v32 = vpop.f32.mrf.mxu0  ;;  %v8228_v36 = vpop.f32.mrf.mxu1 }
 0x399   : > { %8826 = vmatprep.mubr.bf16.mxu0 %v10818_v7  ;;  %v11163_v11 = vadd.f32 %v8227_v16, %v5514_v32 }
 0x39a   : > { %v8229_v17 = vpop.f32.mrf.mxu1 }
 0x39b   : > { %v8230_v2 = vadd.f32 %v8229_v17, %v8228_v36  ;;  %v3794_v17 = vld [vmem:[#allocation2 + $0x114] sm:$0xf] }
 0x39c   : > { %6376 = vmatmul.mubr.bf16.gmra.mxu1 %v11953_v51  ;;  %v8231_v21 = vpop.f32.mrf.mxu1 }
 0x39d   : > { %6383 = vmatprep.mubr.bf16.mxu1 %v11954_v18  ;;  %v11167_v41 = vadd.f32 %v8744_v25, %v8230_v2 }
 0x39e   : > { %v8232_v6 = vpop.f32.mrf.mxu1 }
 0x39f   : > { %v8233_v52 = vadd.f32 %v8232_v6, %v8231_v21 }
 0x3a0   : > { %8827 = vmatmul.mubr.bf16.gmra.mxu0 %v10849_v43 }
 0x3a1   : > { %8830 = vmatprep.mubr.bf16.mxu0 %v10884_v12  ;;  %v11171_v40 = vadd.f32 %v8745_v31, %v8233_v52  ;;  %v8234_v7 = vpop.f32.mrf.mxu1 }
 0x3a3   : > { %v8235_v23 = vpop.f32.mrf.mxu1 }
 0x3a4   : > { %6384 = vmatmul.mubr.bf16.gmra.mxu1 %v11955_v26  ;;  %v8236_v38 = vadd.f32 %v8235_v23, %v8234_v7 }
 0x3a5   : > { %6391 = vmatprep.mubr.bf16.mxu1 %v11956_v45  ;;  %v8237_v51 = vpop.f32.mrf.mxu1 }
 0x3a7   : > { %v8748_v16 = vpop.f32.mrf.mxu0  ;;  %v8238_v18 = vpop.f32.mrf.mxu1 }
 0x3a8   : > { %8831 = vmatmul.mubr.bf16.gmra.mxu0 %v10912_v42  ;;  %v8239_v43 = vadd.f32 %v8238_v18, %v8237_v51  ;;  %v3795_v42 = vld [vmem:[#allocation2 + $0x118] sm:$0xf] }
 0x3a9   : > { %8834 = vmatprep.mubr.bf16.mxu0 %v10934_v5  ;;  %v5527_v25 = vpop.f32.mrf.mxu0  ;;  %v7525_v6 = vcombine.low %v3794_v17, %v3795_v42 }
 0x3aa   : > { %v11177_v30 = vadd.f32 %v8236_v38, %v5527_v25 }
 0x3ab   : > { %v8749_v12 = vpop.f32.mrf.mxu0  ;;  %v8240_v31 = vpop.f32.mrf.mxu1  ;;  %v4113_v7 = vshrl.u32 %v7525_v6, 16  ;;  %v4116_v23 = vshll.u32 %v7525_v6, 16  ;;  %v4225_v51 = vrot.slane %v7525_v6, 5 }
 0x3ac   : > { %6392 = vmatmul.mubr.bf16.gmra.mxu1 %v11957_v22 }
 0x3ad   : > { %v5530_v32 = vpop.f32.mrf.mxu0  ;;  %6399 = vmatprep.mubr.bf16.mxu1 %v11958_v50  ;;  %v8241_v26 = vpop.f32.mrf.mxu1  ;;  %v9159_v50 = vld [vmem:[#allocation2 + $0x11c] ss:$0 sps:$4 sm:$0x11]   ;;  %v4118_v25 = vrot.slane %v4116_v23, 5  ;;  %v6067_v6 = vshrl.u32 %v4225_v51, 16 }
 0x3ae   : > { %v11181_v45 = vadd.f32 %v8239_v43, %v5530_v32  ;;  %v8242_v36 = vadd.f32 %v8241_v26, %v8240_v31  ;;  %v4115_v43 = vrot.slane %v4113_v7, 4 }
 0x3af   : > { %v8243_v5 = vpop.f32.mrf.mxu1 }
 0x3b0   : > { %8835 = vmatmul.mubr.bf16.gmra.mxu0 %v10947_v1  ;;  %v11185_v2 = vadd.f32 %v8748_v16, %v8242_v36  ;;  %v4226_v16 = vrot.slane %v9159_v50, 5  ;;  %v3793_v36 = vld [vmem:[#allocation2 + $0x110] sm:$0x8] }
 0x3b1   : > { %8838 = vmatprep.mubr.bf16.mxu0 %v10964_v57  ;;  %v8244_v21 = vpop.f32.mrf.mxu1  ;;  %v7506_v23 = vcombine.low %v3793_v36, %v3794_v17 }
 0x3b2   : > { %v8245_v52 = vadd.f32 %v8244_v21, %v8243_v5  ;;  %v4227_v26 = vsel %vm795_vm3, %v4225_v51, %v4226_v16 }
 0x3b3   : > { %v6075_v50 = vshrl.u32 %v4227_v26, 16  ;;  %v6078_v7 = vshll.u32 %v4227_v26, 16 }
 0x3b4   : > { %6400 = vmatmul.mubr.bf16.gmra.mxu1 %v11959_v8  ;;  %v11188_v22 = vadd.f32 %v8749_v12, %v8245_v52  ;;  %v6070_v52 = vshll.u32 %v4225_v51, 16  ;;  %v6044_v51 = vshll.u32 %v7506_v23, 16 }
 0x3b5   : > { %6407 = vmatprep.mubr.bf16.mxu1 %v11960_v34 }
 0x3b6   : > { %v8246_v38 = vpop.f32.mrf.mxu1 }
 0x3b8   : > { %8839 = vmatmul.mubr.bf16.gmra.mxu0 %v10979_v44  ;;  %v8247_v1 = vpop.f32.mrf.mxu1 }
 0x3b9   : > { %8842 = vmatprep.mubr.bf16.mxu0 %v10991_v58  ;;  %v8752_v57 = vpop.f32.mrf.mxu0  ;;  %v8248_v18 = vadd.f32 %v8247_v1, %v8246_v38  ;;  %v4119_v58 = vor.u32 %v4118_v25, %v4115_v43  ;;  %v7507_v38 = vcombine.low %v3795_v42, %v3795_v42  ;;  %v6069_v43 = vrot.slane %v6067_v6, 3 }
 0x3ba   : > { %v8249_v8 = vpop.f32.mrf.mxu1  ;;  %v6072_v25 = vrot.slane %v6070_v52, 4 }
 0x3bb   : > { %v5543_v12 = vpop.f32.mrf.mxu0  ;;  %v6058_v1 = vshrl.u32 %v4119_v58, 16  ;;  %v6061_v16 = vshll.u32 %v4119_v58, 16  ;;  %v6052_v26 = vshll.u32 %v7507_v38, 16 }
 0x3bc   : > { %v11193_v31 = vadd.f32 %v8248_v18, %v5543_v12  ;;  %6408 = vmatmul.mubr.bf16.gmra.mxu1 %v11961_v46  ;;  %v8250_v34 = vpop.f32.mrf.mxu1  ;;  %v6080_v12 = vrot.slane %v6078_v7, 4  ;;  %v6073_v6 = vor.u32 %v6072_v25, %v6069_v43 }
 0x3bd   : > { %v8753_v32 = vpop.f32.mrf.mxu0  ;;  %6415 = vmatprep.mubr.bf16.mxu1 %v11034_v49  ;;  %v8251_v44 = vadd.f32 %v8250_v34, %v8249_v8  ;;  %v6077_v8 = vrot.slane %v6075_v50, 3  ;;  %v6041_v34 = vshrl.u32 %v7506_v23, 16  ;;  %v6060_v17 = vrot.slane %v6058_v1, 3 }
 0x3be   : > { %v6063_v42 = vrot.slane %v6061_v16, 4  ;;  %v6046_v50 = vrot.slane %v6044_v51, 4 }
 0x3bf   : > { %v5546_v5 = vpop.f32.mrf.mxu0  ;;  %v6043_v52 = vrot.slane %v6041_v34, 3 }
 0x3c0   : > { %8843 = vmatmul.mubr.bf16.gmra.mxu0 %v11003_v48  ;;  %v11199_v21 = vadd.f32 %v8251_v44, %v5546_v5  ;;  %v8252_v46 = vpop.f32.mrf.mxu1  ;;  %v6049_v44 = vshrl.u32 %v7507_v38, 16  ;;  %v11962_v5 = vld [vmem:[#allocation23_spill] sm:$0xff]  ;;  %v6064_v7 = vor.u32 %v6063_v42, %v6060_v17 }
 0x3c1   : > { %8846 = vmatprep.mubr.bf16.mxu0 %v11015_v37 }
 0x3c2   : > { %v8253_v49 = vpop.f32.mrf.mxu1  ;;  %v6051_v23 = vrot.slane %v6049_v44, 3 }
 0x3c3   : > { %v8254_v18 = vadd.f32 %v8253_v49, %v8252_v46 }
 0x3c4   : > { %6416 = vmatmul.mubr.bf16.gmra.mxu1 %v11032_v60  ;;  %v8255_v48 = vpop.f32.mrf.mxu1  ;;  %v6081_v60 = vor.u32 %v6080_v12, %v6077_v8 }
 0x3c5   : > { %6423 = vmatprep.mubr.bf16.mxu1 %v11042_v4  ;;  %v11204_v37 = vadd.f32 %v8752_v57, %v8254_v18  ;;  %v6054_v4 = vrot.slane %v6052_v26, 4  ;;  %v6047_v18 = vor.u32 %v6046_v50, %v6043_v52 }
 0x3c6   : > { %v8256_v58 = vpop.f32.mrf.mxu1  ;;  %v6082_v1 = vsel %vm850_vm4, %v6073_v6, %v6081_v60 }
 0x3c7   : > { %v8257_v36 = vadd.f32 %v8256_v58, %v8255_v48  ;;  %v6055_v43 = vor.u32 %v6054_v4, %v6051_v23 }
 0x3c8   : > { %8847 = vmatmul.mubr.bf16.gmra.mxu0 %v11027_v24 }
 0x3c9   : > { %8850 = vmatprep.mubr.bf16.mxu0 %v11962_v5  ;;  %v11208_v46 = vadd.f32 %v8753_v32, %v8257_v36  ;;  %v6056_v34 = vsel %vm850_vm4, %v6047_v18, %v6055_v43 }
 0x3cb   : > { %v8258_v57 = vpop.f32.mrf.mxu1  ;;  %v8756_v49 = vpop.f32.mrf.mxu0 }
 0x3cc   : > { %6424 = vmatmul.mubr.bf16.gmra.mxu1 %v11046_v20 }
 0x3cd   : > { %v8259_v38 = vpop.f32.mrf.mxu1  ;;  %v5559_v16 = vpop.f32.mrf.mxu0  ;;  %6431 = vmatprep.mubr.bf16.mxu1 %v6064_v7  ;;  %v8179_v7 = vadd.f32 %v11063_v55, %v11057_v63 }
 0x3ce   : > { %v8260_v24 = vadd.f32 %v8259_v38, %v8258_v57 }
 0x3cf   : > { %v8261_v25 = vpop.f32.mrf.mxu1  ;;  %v8757_v32 = vpop.f32.mrf.mxu0 }
 0x3d0   : > { %8851 = vmatmul.mubr.bf16.gmra.mxu0 %v6082_v1  ;;  %v11212_v8 = vadd.f32 %v8260_v24, %v5559_v16  ;;  %v5451_v1 = vadd.f32 %v8179_v7, %v11082_v61  ;;  %v8191_v7 = vadd.f32 %v11088_v29, %v11085_v0 }
 0x3d1   : > { %v8262_v48 = vpop.f32.mrf.mxu1  ;;  %v5562_v51 = vpop.f32.mrf.mxu0 }
 0x3d2   : > { %v8263_v12 = vadd.f32 %v8262_v48, %v8261_v25 }
 0x3d3   : > { %v8264_v44 = vpop.f32.mrf.mxu1 }
 0x3d4   : > { %v11215_v20 = vadd.f32 %v8263_v12, %v5562_v51  ;;  %6432 = vmatmul.mubr.bf16.gmra.mxu1 %v6056_v34 }
 0x3d5   : > { %v8265_v17 = vpop.f32.mrf.mxu1 }
 0x3d6   : > { %v8266_v42 = vadd.f32 %v8265_v17, %v8264_v44 }
 0x3d7   : > { %v8267_v26 = vpop.f32.mrf.mxu1 }
 0x3d8   : > { %v8310_v58 = vpop.f32.mrf.mxu0  ;;  %v11217_v36 = vadd.f32 %v8756_v49, %v8266_v42 }
 0x3d9   : > { %v8268_v5 = vpop.f32.mrf.mxu1 }
 0x3da   : > { %v8311_v6 = vpop.f32.mrf.mxu0  ;;  %v8269_v60 = vadd.f32 %v8268_v5, %v8267_v26 }
 0x3db   : > { %v8312_v52 = vadd.f32 %v8311_v6, %v8310_v58 }
 0x3dc   : > { %v8313_v50 = vpop.f32.mrf.mxu0  ;;  %v11221_v23 = vadd.f32 %v8757_v32, %v8269_v60  ;;  %v8776_v4 = vpop.f32.mrf.mxu1 }
 0x3dd   : > { %v5753_v57 = vadd.f32 %v8312_v52, %v11059_v56 }
 0x3de   : > { %v8314_v38 = vpop.f32.mrf.mxu0  ;;  %v5913_v24 = vpop.f32.mrf.mxu1 }
 0x3df   : > { %v8315_v16 = vadd.f32 %v8314_v38, %v8313_v50  ;;  %v11225_v49 = vadd.f32 %v5913_v24, %v5753_v57 }
 0x3e0   : > { %v8316_v18 = vpop.f32.mrf.mxu0  ;;  %v8777_v43 = vpop.f32.mrf.mxu1 }
 0x3e1   : > { %v5756_v25 = vadd.f32 %v8315_v16, %v5451_v1 }
 0x3e2   : > { %v8317_v48 = vpop.f32.mrf.mxu0  ;;  %v5916_v12 = vpop.f32.mrf.mxu1 }
 0x3e3   : > { %v8318_v34 = vadd.f32 %v8317_v48, %v8316_v18  ;;  %v11227_v51 = vadd.f32 %v5916_v12, %v5756_v25 }
 0x3e4   : > { %v8319_v63 = vpop.f32.mrf.mxu0  ;;  %v8780_v32 = vpop.f32.mrf.mxu1 }
 0x3e5   : > { %v5761_v55 = vadd.f32 %v8318_v34, %v11069_v53 }
 0x3e6   : > { %v8320_v56 = vpop.f32.mrf.mxu0  ;;  %v5929_v44 = vpop.f32.mrf.mxu1 }
 0x3e7   : > { %v8321_v17 = vadd.f32 %v8320_v56, %v8319_v63  ;;  %v11230_v61 = vadd.f32 %v8776_v4, %v5761_v55  ;;  %v5467_v4 = vadd.f32 %v8191_v7, %v11108_v3 }
 0x3e8   : > { %v8322_v42 = vpop.f32.mrf.mxu0  ;;  %v8781_v58 = vpop.f32.mrf.mxu1 }
 0x3e9   : > { %v5764_v26 = vadd.f32 %v8321_v17, %v11073_v10 }
 0x3ea   : > { %v8323_v5 = vpop.f32.mrf.mxu0  ;;  %v5932_v6 = vpop.f32.mrf.mxu1 }
 0x3eb   : > { %v8324_v60 = vadd.f32 %v8323_v5, %v8322_v42  ;;  %v11233_v52 = vadd.f32 %v8777_v43, %v5764_v26 }
 0x3ec   : > { %v8325_v50 = vpop.f32.mrf.mxu0  ;;  %v8784_v57 = vpop.f32.mrf.mxu1 }
 0x3ed   : > { %v5769_v53 = vadd.f32 %v8324_v60, %v11090_v13 }
 0x3ee   : > { %v8326_v38 = vpop.f32.mrf.mxu0  ;;  %v5945_v1 = vpop.f32.mrf.mxu1 }
 0x3ef   : > { %v8327_v24 = vadd.f32 %v8326_v38, %v8325_v50  ;;  %v11239_v16 = vadd.f32 %v5929_v44, %v5769_v53  ;;  %v5483_v38 = vadd.f32 %v11111_v19, %v11133_v54 }
 0x3f0   : > { %v8328_v10 = vpop.f32.mrf.mxu0  ;;  %v8785_v25 = vpop.f32.mrf.mxu1 }
 0x3f1   : > { %v5772_v18 = vadd.f32 %v8327_v24, %v5467_v4 }
 0x3f2   : > { %v8329_v48 = vpop.f32.mrf.mxu0  ;;  %v5948_v43 = vpop.f32.mrf.mxu1 }
 0x3f3   : > { %v8330_v12 = vadd.f32 %v8329_v48, %v8328_v10  ;;  %v11241_v34 = vadd.f32 %v5932_v6, %v5772_v18 }
 0x3f4   : > { %v8331_v63 = vpop.f32.mrf.mxu0  ;;  %v8788_v29 = vpop.f32.mrf.mxu1 }
 0x3f5   : > { %v5777_v0 = vadd.f32 %v8330_v12, %v11097_v35 }
 0x3f6   : > { %v8332_v13 = vpop.f32.mrf.mxu0  ;;  %v5961_v55 = vpop.f32.mrf.mxu1 }
 0x3f7   : > { %v8333_v56 = vadd.f32 %v8332_v13, %v8331_v63  ;;  %v11244_v3 = vadd.f32 %v8780_v32, %v5777_v0 }
 0x3f8   : > { %v8334_v17 = vpop.f32.mrf.mxu0  ;;  %v8789_v42 = vpop.f32.mrf.mxu1 }
 0x3f9   : > { %v5780_v44 = vadd.f32 %v8333_v56, %v11101_v47 }
 0x3fa   : > { %v8335_v26 = vpop.f32.mrf.mxu0  ;;  %v5964_v5 = vpop.f32.mrf.mxu1 }
 0x3fb   : > { %v8336_v60 = vadd.f32 %v8335_v26, %v8334_v17  ;;  %v11247_v50 = vadd.f32 %v8781_v58, %v5780_v44 }
 0x3fc   : > { %v8337_v6 = vpop.f32.mrf.mxu0  ;;  %v11250_v53 = vpop.f32.mrf.mxu1 }
 0x3fd   : > { %v5785_v7 = vadd.f32 %v8336_v60, %v11115_v62 }
 0x3fe   : > { %v8338_v35 = vpop.f32.mrf.mxu0  ;;  %v5977_v32 = vpop.f32.mrf.mxu1 }
 0x3ff   : > { %v8339_v4 = vadd.f32 %v8338_v35, %v8337_v6  ;;  %v11254_v24 = vadd.f32 %v5945_v1, %v5785_v7 }
 0x400   : > { %v8340_v47 = vpop.f32.mrf.mxu0  ;;  %v11256_v18 = vpop.f32.mrf.mxu1 }
 0x401   : > { %v5788_v10 = vadd.f32 %v8339_v4, %v5483_v38 }
 0x402   : > { %v8341_v48 = vpop.f32.mrf.mxu0  ;;  %v5980_v58 = vpop.f32.mrf.mxu1 }
 0x403   : > { %v8342_v12 = vadd.f32 %v8341_v48, %v8340_v47  ;;  %v11258_v63 = vadd.f32 %v5948_v43, %v5788_v10 }
 0x404   : > { %v8343_v62 = vpop.f32.mrf.mxu0  ;;  %v11261_v13 = vpop.f32.mrf.mxu1 }
 0x405   : > { %v5793_v0 = vadd.f32 %v8342_v12, %v11121_v59 }
 0x406   : > { %v8344_v56 = vpop.f32.mrf.mxu0  ;;  %v11263_v19 = vpop.f32.mrf.mxu1 }
 0x407   : > { %v8345_v54 = vadd.f32 %v8344_v56, %v8343_v62  ;;  %v11265_v1 = vadd.f32 %v8784_v57, %v5793_v0  ;;  %v5499_v57 = vadd.f32 %v11135_v39, %v11154_v27 }
 0x408   : > { %v8346_v17 = vpop.f32.mrf.mxu0  ;;  %v11268_v26 = vpop.f32.mrf.mxu1 }
 0x409   : > { %v5796_v44 = vadd.f32 %v8345_v54, %v11126_v15 }
 0x40a   : > { %v8347_v60 = vpop.f32.mrf.mxu0  ;;  %v11270_v6 = vpop.f32.mrf.mxu1 }
 0x40b   : > { %v8348_v43 = vadd.f32 %v8347_v60, %v8346_v17  ;;  %v11272_v7 = vadd.f32 %v8785_v25, %v5796_v44 }
 0x40c   : > { %v8349_v59 = vpop.f32.mrf.mxu0  ;;  %v11275_v38 = vpop.f32.mrf.mxu1 }
 0x40d   : > { %v5801_v35 = vadd.f32 %v8348_v43, %v11139_v33 }
 0x40e   : > { %v8350_v4 = vpop.f32.mrf.mxu0  ;;  %v11279_v47 = vpop.f32.mrf.mxu1 }
 0x40f   : > { %v8351_v15 = vadd.f32 %v8350_v4, %v8349_v59  ;;  %v11281_v10 = vadd.f32 %v5961_v55, %v5801_v35 }
 0x410   : > { %v8352_v48 = vpop.f32.mrf.mxu0  ;;  %v11283_v62 = vpop.f32.mrf.mxu1 }
 0x411   : > { %v5804_v12 = vadd.f32 %v8351_v15, %v5499_v57 }
 0x412   : > { %v8353_v25 = vpop.f32.mrf.mxu0  ;;  %v11285_v0 = vpop.f32.mrf.mxu1 }
 0x413   : > { %v8354_v56 = vadd.f32 %v8353_v25, %v8352_v48  ;;  %v11287_v33 = vadd.f32 %v5964_v5, %v5804_v12 }
 0x414   : > { %v8355_v54 = vpop.f32.mrf.mxu0  ;;  %v11290_v44 = vpop.f32.mrf.mxu1 }
 0x415   : > { %11963 = vst [vmem:[#allocation25_spill] sm:$0xff] %v11287_v33  ;;  %v5809_v17 = vadd.f32 %v8354_v56, %v11145_v9 }
 0x416   : > { %v8356_v39 = vpop.f32.mrf.mxu0  ;;  %v11292_v27 = vpop.f32.mrf.mxu1 }
 0x417   : > { %v8357_v55 = vadd.f32 %v8356_v39, %v8355_v54  ;;  %v11294_v60 = vadd.f32 %v8788_v29, %v5809_v17 }
 0x418   : > { %v8358_v43 = vpop.f32.mrf.mxu0  ;;  %v11297_v35 = vpop.f32.mrf.mxu1 }
 0x419   : > { %v5812_v59 = vadd.f32 %v8357_v55, %v11149_v28 }
 0x41a   : > { %v8359_v4 = vpop.f32.mrf.mxu0  ;;  %v11299_v57 = vpop.f32.mrf.mxu1 }
 0x41b   : > { %v8360_v5 = vadd.f32 %v8359_v4, %v8358_v43  ;;  %v11301_v15 = vadd.f32 %v8789_v42, %v5812_v59 }
 0x41c   : > { %v8361_v9 = vpop.f32.mrf.mxu0  ;;  %v11304_v12 = vpop.f32.mrf.mxu1 }
 0x41d   : > { %v5817_v48 = vadd.f32 %v8360_v5, %v11158_v14 }
 0x41e   : > { %v8362_v25 = vpop.f32.mrf.mxu0  ;;  %v11306_v56 = vpop.f32.mrf.mxu1 }
 0x41f   : > { %v8363_v29 = vadd.f32 %v8362_v25, %v8361_v9  ;;  %v11308_v54 = vadd.f32 %v5977_v32, %v5817_v48 }
 0x420   : > { %v8364_v28 = vpop.f32.mrf.mxu0  ;;  %v11311_v39 = vpop.f32.mrf.mxu1 }
 0x421   : > { %11964 = vst [vmem:[#allocation20_spill] sm:$0xff] %v11308_v54  ;;  %v5820_v17 = vadd.f32 %v8363_v29, %v11163_v11 }
 0x422   : > { %v8365_v55 = vpop.f32.mrf.mxu0  ;;  %v11313_v43 = vpop.f32.mrf.mxu1 }
 0x423   : > { %v8366_v42 = vadd.f32 %v8365_v55, %v8364_v28  ;;  %v11315_v59 = vadd.f32 %v5980_v58, %v5820_v17 }
 0x424   : > { %v8367_v14 = vpop.f32.mrf.mxu0  ;;  %v11318_v5 = vpop.f32.mrf.mxu1 }
 0x425   : > { %11965 = vst [vmem:[#allocation26_spill] sm:$0xff] %v11315_v59  ;;  %v5825_v4 = vadd.f32 %v8366_v42, %v11167_v41 }
 0x426   : > { %v8368_v33 = vpop.f32.mrf.mxu0  ;;  %v11320_v9 = vpop.f32.mrf.mxu1 }
 0x427   : > { %v8369_v32 = vadd.f32 %v8368_v33, %v8367_v14  ;;  %v11323_v48 = vadd.f32 %v11250_v53, %v5825_v4 }
 0x428   : > { %v8370_v11 = vpop.f32.mrf.mxu0  ;;  %v11326_v29 = vpop.f32.mrf.mxu1 }
 0x429   : > { %v5828_v25 = vadd.f32 %v8369_v32, %v11171_v40 }
 0x42a   : > { %v8371_v28 = vpop.f32.mrf.mxu0  ;;  %v11328_v58 = vpop.f32.mrf.mxu1 }
 0x42b   : > { %v8372_v17 = vadd.f32 %v8371_v28, %v8370_v11  ;;  %v11331_v41 = vadd.f32 %v11256_v18, %v5828_v25 }
 0x42c   : > { %v8373_v55 = vpop.f32.mrf.mxu0  ;;  %v11334_v59 = vpop.f32.mrf.mxu1 }
 0x42d   : > { %11966 = vst [vmem:[#allocation27_spill] sm:$0xff] %v11331_v41  ;;  %v5833_v42 = vadd.f32 %v8372_v17, %v11177_v30 }
 0x42e   : > { %v8374_v33 = vpop.f32.mrf.mxu0  ;;  %v11336_v53 = vpop.f32.mrf.mxu1 }
 0x42f   : > { %v8375_v14 = vadd.f32 %v8374_v33, %v8373_v55  ;;  %v11339_v40 = vadd.f32 %v11263_v19, %v5833_v42 }
 0x430   : > { %v8376_v4 = vpop.f32.mrf.mxu0  ;;  %v11342_v54 = vpop.f32.mrf.mxu1 }
 0x431   : > { %11967 = vst [vmem:[#allocation19_spill] sm:$0xff] %v11339_v40  ;;  %v5836_v32 = vadd.f32 %v8375_v14, %v11181_v45 }
 0x432   : > { %v8377_v11 = vpop.f32.mrf.mxu0  ;;  %v11344_v18 = vpop.f32.mrf.mxu1 }
 0x433   : > { %v8378_v25 = vadd.f32 %v8377_v11, %v8376_v4  ;;  %v11347_v30 = vadd.f32 %v11270_v6, %v5836_v32 }
 0x434   : > { %v8379_v28 = vpop.f32.mrf.mxu0  ;;  %v11350_v41 = vpop.f32.mrf.mxu1 }
 0x435   : > { %11968 = vst [vmem:[#allocation28_spill] sm:$0xff] %v11347_v30  ;;  %v5841_v17 = vadd.f32 %v8378_v25, %v11185_v2 }
 0x436   : > { %v8380_v55 = vpop.f32.mrf.mxu0  ;;  %v11352_v19 = vpop.f32.mrf.mxu1 }
 0x437   : > { %v8381_v42 = vadd.f32 %v8380_v55, %v8379_v28  ;;  %v11355_v45 = vadd.f32 %v11261_v13, %v5841_v17 }
 0x438   : > { %v8382_v33 = vpop.f32.mrf.mxu0  ;;  %v11358_v40 = vpop.f32.mrf.mxu1 }
 0x439   : > { %11969 = vst [vmem:[#allocation29_spill] sm:$0xff] %v11355_v45  ;;  %v5844_v14 = vadd.f32 %v8381_v42, %v11188_v22 }
 0x43a   : > { %v8383_v4 = vpop.f32.mrf.mxu0  ;;  %v11360_v6 = vpop.f32.mrf.mxu1 }
 0x43b   : > { %v8384_v32 = vadd.f32 %v8383_v4, %v8382_v33  ;;  %v11363_v2 = vadd.f32 %v11268_v26, %v5844_v14 }
 0x43c   : > { %v8385_v11 = vpop.f32.mrf.mxu0  ;;  %v11366_v30 = vpop.f32.mrf.mxu1 }
 0x43d   : > { %11970 = vst [vmem:[#allocation21_spill] sm:$0xff] %v11363_v2  ;;  %v5849_v25 = vadd.f32 %v8384_v32, %v11193_v31 }
 0x43e   : > { %v8386_v28 = vpop.f32.mrf.mxu0  ;;  %v11368_v13 = vpop.f32.mrf.mxu1 }
 0x43f   : > { %v8387_v17 = vadd.f32 %v8386_v28, %v8385_v11  ;;  %v11371_v22 = vadd.f32 %v11279_v47, %v5849_v25 }
 0x440   : > { %v8388_v55 = vpop.f32.mrf.mxu0  ;;  %v11374_v45 = vpop.f32.mrf.mxu1 }
 0x441   : > { %11971 = vst [vmem:[#allocation30_spill] sm:$0xff] %v11371_v22  ;;  %v5852_v42 = vadd.f32 %v8387_v17, %v11199_v21 }
 0x442   : > { %v8389_v33 = vpop.f32.mrf.mxu0  ;;  %v11376_v26 = vpop.f32.mrf.mxu1 }
 0x443   : > { %v8390_v14 = vadd.f32 %v8389_v33, %v8388_v55  ;;  %v11379_v31 = vadd.f32 %v11285_v0, %v5852_v42 }
 0x444   : > { %v8391_v4 = vpop.f32.mrf.mxu0  ;;  %v11382_v2 = vpop.f32.mrf.mxu1 }
 0x445   : > { %11972 = vst [vmem:[#allocation31_spill] sm:$0xff] %v11379_v31  ;;  %v5857_v32 = vadd.f32 %v8390_v14, %v11204_v37 }
 0x446   : > { %v8392_v11 = vpop.f32.mrf.mxu0  ;;  %v11384_v47 = vpop.f32.mrf.mxu1 }
 0x447   : > { %v8393_v25 = vadd.f32 %v8392_v11, %v8391_v4  ;;  %v11387_v21 = vadd.f32 %v11275_v38, %v5857_v32 }
 0x448   : > { %v8394_v28 = vpop.f32.mrf.mxu0  ;;  %v11390_v22 = vpop.f32.mrf.mxu1 }
 0x449   : > { %11973 = vst [vmem:[#allocation12_spill] sm:$0xff] %v11387_v21  ;;  %v5860_v17 = vadd.f32 %v8393_v25, %v11208_v46 }
 0x44a   : > { %v8395_v55 = vpop.f32.mrf.mxu0  ;;  %v11392_v0 = vpop.f32.mrf.mxu1 }
 0x44b   : > { %v8396_v42 = vadd.f32 %v8395_v55, %v8394_v28  ;;  %v11395_v37 = vadd.f32 %v11283_v62, %v5860_v17 }
 0x44c   : > { %v8397_v33 = vpop.f32.mrf.mxu0  ;;  %v11398_v31 = vpop.f32.mrf.mxu1 }
 0x44d   : > { %11974 = vst [vmem:[#allocation14_spill] sm:$0xff] %v11395_v37  ;;  %v5865_v14 = vadd.f32 %v8396_v42, %v11212_v8 }
 0x44e   : > { %v8398_v4 = vpop.f32.mrf.mxu0  ;;  %v11400_v38 = vpop.f32.mrf.mxu1 }
 0x44f   : > { %v8399_v32 = vadd.f32 %v8398_v4, %v8397_v33  ;;  %v11403_v46 = vadd.f32 %v11292_v27, %v5865_v14  ;;  %v8454_v27 = vadd.f32 %v11320_v9, %v11318_v5 }
 0x450   : > { %v8400_v11 = vpop.f32.mrf.mxu0  ;;  %v11406_v21 = vpop.f32.mrf.mxu1 }
 0x451   : > { %v5868_v25 = vadd.f32 %v8399_v32, %v11215_v20 }
 0x452   : > { %v8401_v28 = vpop.f32.mrf.mxu0  ;;  %v11408_v62 = vpop.f32.mrf.mxu1 }
 0x453   : > { %v8402_v17 = vadd.f32 %v8401_v28, %v8400_v11  ;;  %v11411_v8 = vadd.f32 %v11299_v57, %v5868_v25  ;;  %v8448_v57 = vadd.f32 %v11306_v56, %v11304_v12  ;;  %v11431_v28 = vld [vmem:[%s11786_s2 + $0x1] ss:$0 sm:$0xff] }
 0x454   : > { %v8403_v55 = vpop.f32.mrf.mxu0  ;;  %v11414_v37 = vpop.f32.mrf.mxu1 }
 0x455   : > { %v5873_v42 = vadd.f32 %v8402_v17, %v11217_v36 }
 0x456   : > { %v8404_v33 = vpop.f32.mrf.mxu0  ;;  %v11421_v14 = vpop.f32.mrf.mxu1 }
 0x457   : > { %v11419_v20 = vadd.f32 %v11290_v44, %v5873_v42  ;;  %v8405_v4 = vadd.f32 %v8404_v33, %v8403_v55  ;;  %v8457_v44 = vadd.f32 %v11328_v58, %v11326_v29  ;;  %v8451_v55 = vadd.f32 %v11313_v43, %v11311_v39 }
 0x458   : > { %v8824_v32 = vpop.f32.mrf.mxu0  ;;  %v11426_v25 = vpop.f32.mrf.mxu1  ;;  %v8460_v39 = vadd.f32 %v11336_v53, %v11334_v59 }
 0x459   : > { %v5876_v11 = vadd.f32 %v8405_v4, %v11221_v23  ;;  %v6483_v36 = vadd.f32 %v8824_v32, %v8454_v27 }
 0x45a   : > { %v6474_v5 = vpop.f32.mrf.mxu0  ;;  %v11439_v12 = vpop.f32.mrf.mxu1 }
 0x45b   : > { %v11436_v9 = vadd.f32 %v11297_v35, %v5876_v11  ;;  %v6603_v17 = vadd.f32 %v6483_v36, %v11230_v61  ;;  %v6475_v23 = vadd.f32 %v8448_v57, %v6474_v5 }
 0x45c   : > { %v8825_v56 = vpop.f32.mrf.mxu0  ;;  %v11447_v27 = vpop.f32.mrf.mxu1 }
 0x45d   : > { %v11444_v42 = vadd.f32 %v11431_v28, %v6603_v17  ;;  %v6601_v33 = vadd.f32 %v6475_v23, %v11225_v49  ;;  %v6486_v29 = vadd.f32 %v8825_v56, %v8457_v44  ;;  %v8466_v49 = vadd.f32 %v11352_v19, %v11350_v41 }
 0x45e   : > { %v6477_v58 = vpop.f32.mrf.mxu0  ;;  %v11454_v32 = vpop.f32.mrf.mxu1  ;;  %v8463_v56 = vadd.f32 %v11344_v18, %v11342_v54 }
 0x45f   : > { %v7620_v35 = vmul.f32 -1.442695, %v11444_v42  ;;  %v11451_v61 = vadd.f32 %v11431_v28, %v6601_v33  ;;  %v6604_v4 = vadd.f32 %v6486_v29, %v11233_v52  ;;  %v6478_v57 = vadd.f32 %v8451_v55, %v6477_v58 }
 0x460   : > { %v8828_v43 = vpop.f32.mrf.mxu0  ;;  %v11465_v44 = vpop.f32.mrf.mxu1  ;;  %v8469_v52 = vadd.f32 %v11360_v6, %v11358_v40  ;;  %v8478_v58 = vadd.f32 %v11384_v47, %v11382_v2 }
 0x461   : > { %9290 = vpow2.f32 %v7620_v35  ;;  %v7618_v11 = vmul.f32 -1.442695, %v11451_v61  ;;  %v11462_v36 = vadd.f32 %v11431_v28, %v6604_v4  ;;  %v6602_v5 = vadd.f32 %v6478_v57, %v11227_v51 }
 0x462   : > { %v6499_v17 = vadd.f32 %v8828_v43, %v8466_v49  ;;  %v6490_v23 = vpop.f32.mrf.mxu0  ;;  %v11473_v53 = vpop.f32.mrf.mxu1 }
 0x463   : > { %9292 = vpow2.f32 %v7618_v11  ;;  %v7621_v59 = vmul.f32 -1.442695, %v11462_v36  ;;  %v11471_v41 = vadd.f32 %v11431_v28, %v6602_v5  ;;  %v6491_v19 = vadd.f32 %v8460_v39, %v6490_v23 }
 0x464   : > { %v6607_v51 = vadd.f32 %v6499_v17, %v11244_v3  ;;  %v8829_v55 = vpop.f32.mrf.mxu0  ;;  %v11480_v33 = vpop.f32.mrf.mxu1  ;;  %v8472_v5 = vadd.f32 %v11368_v13, %v11366_v30 }
 0x465   : > { %9294 = vpow2.f32 %v7621_v59  ;;  %v7619_v40 = vmul.f32 -1.442695, %v11471_v41  ;;  %v6605_v6 = vadd.f32 %v6491_v19, %v11239_v16  ;;  %v6502_v29 = vadd.f32 %v8829_v55, %v8469_v52 }
 0x466   : > { %v11485_v35 = vadd.f32 %v11431_v28, %v6607_v51  ;;  %v6493_v4 = vpop.f32.mrf.mxu0  ;;  %v8501_v18 = vpop.f32.mrf.mxu1  ;;  %v8475_v19 = vadd.f32 %v11376_v26, %v11374_v45  ;;  %v8490_v45 = vadd.f32 %v11421_v14, %v11414_v37 }
 0x467   : > { %9296 = vpow2.f32 %v7619_v40  ;;  %v11488_v54 = vadd.f32 %v11431_v28, %v6605_v6  ;;  %v6608_v3 = vadd.f32 %v6502_v29, %v11247_v50  ;;  %v6494_v57 = vadd.f32 %v8463_v56, %v6493_v4 }
 0x468   : > { %v7624_v16 = vmul.f32 -1.442695, %v11485_v35  ;;  %v8832_v39 = vpop.f32.mrf.mxu0  ;;  %v11497_v47 = vpop.f32.mrf.mxu1  ;;  %v8481_v50 = vadd.f32 %v11392_v0, %v11390_v22  ;;  %v8484_v40 = vadd.f32 %v11400_v38, %v11398_v31  ;;  %v8493_v31 = vadd.f32 %v11439_v12, %v11426_v25 }
 0x469   : > { %v7622_v49 = vmul.f32 -1.442695, %v11488_v54  ;;  %v11494_v43 = vadd.f32 %v11431_v28, %v6608_v3  ;;  %v6606_v2 = vadd.f32 %v6494_v57, %v11241_v34  ;;  %v6515_v11 = vadd.f32 %v8832_v39, %v8478_v58 }
 0x46a   : > { %9298 = vpow2.f32 %v7624_v16  ;;  %v6506_v52 = vpop.f32.mrf.mxu0  ;;  %v8504_v34 = vpop.f32.mrf.mxu1  ;;  %v11537_v25 = vadd.f32 %v11473_v53, %v11465_v44 }
 0x46b   : > { %9300 = vpow2.f32 %v7622_v49  ;;  %v7625_v17 = vmul.f32 -1.442695, %v11494_v43  ;;  %v11505_v23 = vadd.f32 %v11431_v28, %v6606_v2  ;;  %v6611_v59 = vadd.f32 %v6515_v11, %v11265_v1 }
 0x46c   : > { %v6507_v56 = vadd.f32 %v8472_v5, %v6506_v52  ;;  %v8833_v51 = vpop.f32.mrf.mxu0  ;;  %v8506_v22 = vpop.f32.mrf.mxu1  ;;  %v8487_v1 = vadd.f32 %v11408_v62, %v11406_v21  ;;  %v11527_v21 = vadd.f32 %v11454_v32, %v11447_v27  ;;  %v8502_v52 = vadd.f32 %v8501_v18, %v11480_v33 }
 0x46d   : > { %9302 = vpow2.f32 %v7625_v17  ;;  %v7623_v30 = vmul.f32 -1.442695, %v11505_v23  ;;  %v11512_v13 = vadd.f32 %v11431_v28, %v6611_v59  ;;  %v6518_v0 = vadd.f32 %v8833_v51, %v8481_v50 }
 0x46e   : > { %v9291_v55 = vpop.eup %9290  ;;  %v6609_v26 = vadd.f32 %v6507_v56, %v11254_v24  ;;  %v6509_v6 = vpop.f32.mrf.mxu0  ;;  %v8505_v51 = vadd.f32 %v8504_v34, %v11497_v47 }
 0x46f   : > { %v6771_v29 = vadd.f32 1.0, %v9291_v55  ;;  %9304 = vpow2.f32 %v7623_v30  ;;  %v7628_v58 = vmul.f32 -1.442695, %v11512_v13  ;;  %v6612_v4 = vadd.f32 %v6518_v0, %v11272_v7  ;;  %v8507_v3 = vpop.f32.mrf.mxu1 }
 0x470   : > { %v9293_v57 = vpop.eup %9292  ;;  %v11530_v37 = vadd.f32 %v11431_v28, %v6609_v26  ;;  %v6510_v24 = vadd.f32 %v8475_v19, %v6509_v6  ;;  %v8836_v38 = vpop.f32.mrf.mxu0 }
 0x471   : > { %9306 = vrcp.f32 %v6771_v29  ;;  %v6769_v62 = vadd.f32 1.0, %v9293_v57  ;;  %v11533_v14 = vadd.f32 %v11431_v28, %v6612_v4  ;;  %v8509_v7 = vpop.f32.mrf.mxu1  ;;  %v6531_v16 = vadd.f32 %v8836_v38, %v8490_v45  ;;  %v11975_v4 = vld [vmem:[#allocation25_spill] sm:$0xff] }
 0x472   : > { %v9295_v39 = vpop.eup %9294  ;;  %9308 = vpow2.f32 %v7628_v58  ;;  %v7626_v12 = vmul.f32 -1.442695, %v11530_v37  ;;  %v6610_v27 = vadd.f32 %v6510_v24, %v11258_v63  ;;  %v6522_v32 = vpop.f32.mrf.mxu0  ;;  %v11555_v29 = vadd.f32 %v8507_v3, %v8506_v22 }
 0x473   : > { %9310 = vrcp.f32 %v6769_v62  ;;  %v6772_v49 = vadd.f32 1.0, %v9295_v39  ;;  %v7629_v2 = vmul.f32 -1.442695, %v11533_v14  ;;  %v6615_v11 = vadd.f32 %v6531_v16, %v11294_v60  ;;  %v8510_v5 = vpop.f32.mrf.mxu1 }
 0x474   : > { %v9297_v50 = vpop.eup %9296  ;;  %9312 = vpow2.f32 %v7626_v12  ;;  %v11545_v44 = vadd.f32 %v11431_v28, %v6610_v27  ;;  %v6523_v53 = vadd.f32 %v8484_v40, %v6522_v32  ;;  %v8837_v17 = vpop.f32.mrf.mxu0 }
 0x475   : > { %9314 = vrcp.f32 %v6772_v49  ;;  %v6770_v59 = vadd.f32 1.0, %v9297_v50  ;;  %v11548_v63 = vadd.f32 %v11431_v28, %v6615_v11  ;;  %v8512_v19 = vpop.f32.mrf.mxu1  ;;  %v6534_v56 = vadd.f32 %v8837_v17, %v8493_v31 }
 0x476   : > { %9316 = vpow2.f32 %v7629_v2  ;;  %v7627_v60 = vmul.f32 -1.442695, %v11545_v44  ;;  %v6613_v33 = vadd.f32 %v6523_v53, %v11281_v10  ;;  %v6525_v18 = vpop.f32.mrf.mxu0 }
 0x477   : > { %v9299_v30 = vpop.eup %9298  ;;  %9318 = vrcp.f32 %v6770_v59  ;;  %v7632_v0 = vmul.f32 -1.442695, %v11548_v63  ;;  %v6616_v55 = vadd.f32 %v6534_v56, %v11301_v15  ;;  %v8513_v40 = vpop.f32.mrf.mxu1  ;;  %v6526_v45 = vadd.f32 %v8487_v1, %v6525_v18  ;;  %v11976_v59 = vld [vmem:[#allocation20_spill] sm:$0xff] }
 0x478   : > { %v9301_v26 = vpop.eup %9300  ;;  %v6775_v6 = vadd.f32 1.0, %v9299_v30  ;;  %9320 = vpow2.f32 %v7627_v60  ;;  %v11558_v47 = vadd.f32 %v11431_v28, %v6613_v33  ;;  %v8840_v34 = vpop.f32.mrf.mxu0  ;;  %v11564_v1 = vadd.f32 %v8510_v5, %v8509_v7  ;;  %v11977_v60 = vld [vmem:[#allocation27_spill] sm:$0xff] }
 0x479   : > { %v6773_v58 = vadd.f32 1.0, %v9301_v26  ;;  %9322 = vpow2.f32 %v7632_v0  ;;  %v11561_v10 = vadd.f32 %v11431_v28, %v6616_v55  ;;  %v6614_v57 = vadd.f32 %v6526_v45, %v11975_v4  ;;  %v8515_v31 = vpop.f32.mrf.mxu1 }
 0x47a   : > { %v9303_v15 = vpop.eup %9302  ;;  %9324 = vrcp.f32 %v6775_v6  ;;  %v7630_v22 = vmul.f32 -1.442695, %v11558_v47  ;;  %v6547_v3 = vadd.f32 %v8840_v34, %v8502_v52  ;;  %v6538_v24 = vpop.f32.mrf.mxu0  ;;  %v11571_v27 = vadd.f32 %v8513_v40, %v8512_v19 }
 0x47b   : > { %9326 = vrcp.f32 %v6773_v58  ;;  %v6776_v38 = vadd.f32 1.0, %v9303_v15  ;;  %v7633_v62 = vmul.f32 -1.442695, %v11561_v10  ;;  %v11569_v16 = vadd.f32 %v11431_v28, %v6614_v57  ;;  %v8516_v39 = vpop.f32.mrf.mxu1  ;;  %v6899_v57 = vld [vmem:[#allocation2 + $0x24] sm:$0xf] }
 0x47c   : > { %v9305_v12 = vpop.eup %9304  ;;  %9328 = vpow2.f32 %v7630_v22  ;;  %v6619_v32 = vadd.f32 %v6547_v3, %v11323_v48  ;;  %v6539_v7 = vadd.f32 %v11527_v21, %v6538_v24  ;;  %v8841_v49 = vpop.f32.mrf.mxu0  ;;  %v11579_v17 = vadd.f32 %v8516_v39, %v8515_v31  ;;  %v11978_v22 = vld [vmem:[#allocation26_spill] sm:$0xff] }
 0x47d   : > { %9330 = vrcp.f32 %v6776_v38  ;;  %v6774_v2 = vadd.f32 1.0, %v9305_v12  ;;  %v7631_v11 = vmul.f32 -1.442695, %v11569_v16  ;;  %v8518_v5 = vpop.f32.mrf.mxu1  ;;  %v6550_v50 = vadd.f32 %v8841_v49, %v8505_v51 }
 0x47e   : > { %v9307_v52 = vpop.eup %9306  ;;  %9332 = vpow2.f32 %v7633_v62  ;;  %v11577_v53 = vadd.f32 %v11431_v28, %v6619_v32  ;;  %v6617_v19 = vadd.f32 %v6539_v7, %v11976_v59  ;;  %v6541_v56 = vpop.f32.mrf.mxu0  ;;  %v6897_v7 = vld [vmem:[#allocation2 + $0x14] sm:$0xf] }
 0x47f   : > { %v9309_v48 = vpop.eup %9308  ;;  %v6867_v21 = vmul.f32 %v9307_v52, %v11444_v42  ;;  %9334 = vrcp.f32 %v6774_v2  ;;  %v6620_v33 = vadd.f32 %v6550_v50, %v11977_v60  ;;  %v8519_v18 = vpop.f32.mrf.mxu1  ;;  %v6542_v30 = vadd.f32 %v11537_v25, %v6541_v56 }
 0x480   : > { %v9311_v51 = vpop.eup %9310  ;;  %v6779_v0 = vadd.f32 1.0, %v9309_v48  ;;  %9336 = vpow2.f32 %v7631_v11  ;;  %v7636_v55 = vmul.f32 -1.442695, %v11577_v53  ;;  %v11587_v40 = vadd.f32 %v11431_v28, %v6617_v19  ;;  %v8844_v45 = vpop.f32.mrf.mxu0  ;;  %v6900_v48 = vld [vmem:[#allocation2 + $0x28] sm:$0xf] }
 0x481   : > { %v9313_v26 = vpop.eup %9312  ;;  %v7720_v6 = vpack.c.bf16 %v6867_v21, %v6867_v21  ;;  %v6865_v34 = vmul.f32 %v9311_v51, %v11451_v61  ;;  %v11591_v42 = vadd.f32 %v11431_v28, %v6620_v33  ;;  %v11593_v58 = vadd.f32 %v8519_v18, %v8518_v5  ;;  %v8521_v4 = vpop.f32.mrf.mxu1 }
 0x482   : > { %v9315_v25 = vpop.eup %9314  ;;  %9338 = vrcp.f32 %v6779_v0  ;;  %v6777_v31 = vadd.f32 1.0, %v9313_v26  ;;  %v7634_v15 = vmul.f32 -1.442695, %v11587_v40  ;;  %v6618_v3 = vadd.f32 %v6542_v30, %v11978_v22  ;;  %v6554_v24 = vpop.f32.mrf.mxu0 }
 0x483   : > { %v9317_v38 = vpop.eup %9316  ;;  %v7059_v62 = vadd.bf16 %v7720_v6, %v6899_v57  ;;  %v7718_v39 = vpack.c.bf16 %v6865_v34, %v6865_v34  ;;  %v6868_v61 = vmul.f32 %v9315_v25, %v11462_v36  ;;  %9340 = vpow2.f32 %v7636_v55  ;;  %v8522_v12 = vpop.f32.mrf.mxu1  ;;  %v6898_v6 = vld [vmem:[#allocation2 + $0x18] sm:$0xf] }
 0x484   : > { %v9319_v32 = vpop.eup %9318  ;;  %9342 = vrcp.f32 %v6777_v31  ;;  %v6780_v49 = vadd.f32 1.0, %v9317_v38  ;;  %v7637_v2 = vmul.f32 -1.442695, %v11591_v42  ;;  %v11600_v11 = vadd.f32 %v11431_v28, %v6618_v3  ;;  %v8845_v5 = vpop.f32.mrf.mxu0  ;;  %v11979_v25 = vld [vmem:[#allocation29_spill] sm:$0xff] }
 0x485   : > { %v9321_v50 = vpop.eup %9320  ;;  %7091 = vst [vmem:[#allocation2 + $0x24] sm:$0xf] %v7059_v62  ;;  %v7057_v52 = vadd.bf16 %v7718_v39, %v6897_v7  ;;  %v7721_v59 = vpack.c.bf16 %v6868_v61, %v6868_v61  ;;  %v6866_v19 = vmul.f32 %v9319_v32, %v11471_v41  ;;  %9344 = vpow2.f32 %v7634_v15  ;;  %v11603_v36 = vpop.f32.mrf.mxu1  ;;  %v11980_v7 = vld [vmem:[#allocation19_spill] sm:$0xff] }
 0x486   : > { %v9323_v56 = vpop.eup %9322  ;;  %9346 = vrcp.f32 %v6780_v49  ;;  %v6778_v21 = vadd.f32 1.0, %v9321_v50  ;;  %v7635_v60 = vmul.f32 -1.442695, %v11600_v11  ;;  %v6563_v33 = vadd.f32 %v8844_v45, %v11571_v27  ;;  %v11607_v18 = vpop.f32.mrf.mxu0 }
 0x487   : > { %v9325_v30 = vpop.eup %9324  ;;  %7089 = vst [vmem:[#allocation2 + $0x14] sm:$0xf] %v7057_v52  ;;  %v7060_v51 = vadd.bf16 %v7721_v59, %v6900_v48  ;;  %v7719_v0 = vpack.c.bf16 %v6866_v19, %v6866_v19  ;;  %v6783_v55 = vadd.f32 1.0, %v9323_v56  ;;  %9348 = vpow2.f32 %v7637_v2  ;;  %v8525_v41 = vpop.f32.mrf.mxu1 }
 0x488   : > { %v9327_v26 = vpop.eup %9326  ;;  %v6871_v34 = vmul.f32 %v9325_v30, %v11485_v35  ;;  %9350 = vrcp.f32 %v6778_v21  ;;  %v6623_v57 = vadd.f32 %v6563_v33, %v11979_v25  ;;  %v11611_v31 = vadd.f32 %v8522_v12, %v8521_v4  ;;  %v11613_v27 = vpop.f32.mrf.mxu0 }
 0x489   : > { %v9329_v45 = vpop.eup %9328  ;;  %7092 = vst [vmem:[#allocation2 + $0x28] sm:$0xf] %v7060_v51  ;;  %v7058_v15 = vadd.bf16 %v7719_v0, %v6898_v6  ;;  %v6869_v22 = vmul.f32 %v9327_v26, %v11488_v54  ;;  %9352 = vrcp.f32 %v6783_v55  ;;  %v6555_v3 = vadd.f32 %v11555_v29, %v6554_v24  ;;  %v11617_v38 = vpop.f32.mrf.mxu1  ;;  %v6903_v29 = vld [vmem:[#allocation2 + $0x44] sm:$0xf]  ;;  %v6901_v24 = vld [vmem:[#allocation2 + $0x34] sm:$0xf] }
 0x48a   : > { %v9331_v62 = vpop.eup %9330  ;;  %v7724_v35 = vpack.c.bf16 %v6871_v34, %v6871_v34  ;;  %v6781_v4 = vadd.f32 1.0, %v9329_v45  ;;  %9354 = vpow2.f32 %v7635_v60  ;;  %v11627_v39 = vadd.f32 %v11431_v28, %v6623_v57  ;;  %v11629_v61 = vpop.f32.mrf.mxu0  ;;  %v6904_v0 = vld [vmem:[#allocation2 + $0x48] sm:$0xf]  ;;  %v11981_v26 = vld [vmem:[#allocation21_spill] sm:$0xff] }
 0x48b   : > { %v9333_v54 = vpop.eup %9332  ;;  %7090 = vst [vmem:[#allocation2 + $0x18] sm:$0xf] %v7058_v15  ;;  %v7722_v12 = vpack.c.bf16 %v6869_v22, %v6869_v22  ;;  %v6872_v32 = vmul.f32 %v9331_v62, %v11494_v43  ;;  %v6621_v49 = vadd.f32 %v6555_v3, %v11980_v7  ;;  %v6566_v2 = vadd.f32 %v8845_v5, %v11579_v17  ;;  %v8528_v50 = vpop.f32.mrf.mxu1 }
 0x48c   : > { %v9335_v52 = vpop.eup %9334  ;;  %v7123_v59 = vld [vmem:[#allocation2 + $0x24] sm:$0xf]  ;;  %v7063_v19 = vadd.bf16 %v7724_v35, %v6903_v29  ;;  %9356 = vrcp.f32 %v6781_v4  ;;  %v6784_v56 = vadd.f32 1.0, %v9333_v54  ;;  %v7640_v48 = vmul.f32 -1.442695, %v11627_v39  ;;  %v11635_v21 = vpop.f32.mrf.mxu0 }
 0x48d   : > { %v9337_v60 = vpop.eup %9336  ;;  %7155 = vst [vmem:[%s11624_s7 + $0x8] sm:$0xf] %v7123_v59  ;;  %v7061_v33 = vadd.bf16 %v7722_v12, %v6901_v24  ;;  %v7725_v30 = vpack.c.bf16 %v6872_v32, %v6872_v32  ;;  %v6870_v43 = vmul.f32 %v9335_v52, %v11505_v23  ;;  %v11640_v51 = vadd.f32 %v11431_v28, %v6621_v49  ;;  %v11642_v17 = vpop.f32.mrf.mxu1  ;;  %v6902_v35 = vld [vmem:[#allocation2 + $0x38] sm:$0xf]  ;;  %v11982_v59 = vld [vmem:[#allocation28_spill] sm:$0xff] }
 0x48e   : > { %v7121_v5 = vld [vmem:[#allocation2 + $0x14] sm:$0xf]  ;;  %7095 = vst [vmem:[#allocation2 + $0x44] sm:$0xf] %v7063_v19  ;;  %9358 = vrcp.f32 %v6784_v56  ;;  %v6782_v55 = vadd.f32 1.0, %v9337_v60  ;;  %v6624_v6 = vadd.f32 %v6566_v2, %v11981_v26  ;;  %v8526_v34 = vadd.f32 %v8525_v41, %v11603_v36  ;;  %v11646_v25 = vpop.f32.mrf.mxu0 }
 0x48f   : > { %v9339_v57 = vpop.eup %9338  ;;  %7153 = vst [vmem:[%s11624_s7] sm:$0xf] %v7121_v5  ;;  %7093 = vst [vmem:[#allocation2 + $0x34] sm:$0xf] %v7061_v33  ;;  %v7064_v23 = vadd.bf16 %v7725_v30, %v6904_v0  ;;  %v7723_v45 = vpack.c.bf16 %v6870_v43, %v6870_v43  ;;  %9360 = vpow2.f32 %v7640_v48  ;;  %v7638_v15 = vmul.f32 -1.442695, %v11640_v51  ;;  %v11650_v22 = vpop.f32.mrf.mxu1 }
 0x490   : > { %v9341_v3 = vpop.eup %9340  ;;  %v7124_v62 = vld [vmem:[#allocation2 + $0x28] sm:$0xf]  ;;  %v6875_v4 = vmul.f32 %v9339_v57, %v11512_v13  ;;  %9362 = vrcp.f32 %v6782_v55  ;;  %v11654_v36 = vadd.f32 %v11431_v28, %v6624_v6  ;;  %v6558_v41 = vadd.f32 %v11564_v1, %v11607_v18  ;;  %v11665_v18 = vpop.f32.mrf.mxu0  ;;  %v6907_v56 = vld [vmem:[#allocation2 + $0x64] sm:$0xf]  ;;  %v6905_v6 = vld [vmem:[#allocation2 + $0x54] sm:$0xf] }
 0x491   : > { %v9343_v54 = vpop.eup %9342  ;;  %7156 = vst [vmem:[%s11624_s7 + $0xc] sm:$0xf] %v7124_v62  ;;  %7096 = vst [vmem:[#allocation2 + $0x48] sm:$0xf] %v7064_v23  ;;  %v7062_v29 = vadd.bf16 %v7723_v45, %v6902_v35  ;;  %v6787_v24 = vadd.f32 1.0, %v9341_v3  ;;  %9364 = vpow2.f32 %v7638_v15  ;;  %v6579_v12 = vadd.f32 %v11613_v27, %v8526_v34  ;;  %v11660_v32 = vpop.f32.mrf.mxu1  ;;  %v11983_v27 = vld [vmem:[#allocation12_spill] sm:$0xff] }
 0x492   : > { %v9345_v7 = vpop.eup %9344  ;;  %v7122_v13 = vld [vmem:[#allocation2 + $0x18] sm:$0xf]  ;;  %v7728_v49 = vpack.c.bf16 %v6875_v4, %v6875_v4  ;;  %v6873_v2 = vmul.f32 %v9343_v54, %v11530_v37  ;;  %v7641_v52 = vmul.f32 -1.442695, %v11654_v36  ;;  %v6622_v1 = vadd.f32 %v6558_v41, %v11982_v59  ;;  %v6586_v35 = vpop.f32.mrf.mxu0  ;;  %v6908_v41 = vld [vmem:[#allocation2 + $0x68] sm:$0xf] }
 0x493   : > { %v9347_v19 = vpop.eup %9346  ;;  %7154 = vst [vmem:[%s11624_s7 + $0x4] sm:$0xf] %v7122_v13  ;;  %7094 = vst [vmem:[#allocation2 + $0x38] sm:$0xf] %v7062_v29  ;;  %9366 = vrcp.f32 %v6787_v24  ;;  %v6785_v48 = vadd.f32 1.0, %v9345_v7  ;;  %v6627_v60 = vadd.f32 %v6579_v12, %v11983_v27  ;;  %v8529_v33 = vadd.f32 %v8528_v50, %v11617_v38  ;;  %v11670_v30 = vpop.f32.mrf.mxu1 }
 0x494   : > { %v9349_v37 = vpop.eup %9348  ;;  %v7067_v43 = vadd.bf16 %v7728_v49, %v6907_v56  ;;  %v7726_v5 = vpack.c.bf16 %v6873_v2, %v6873_v2  ;;  %v6876_v0 = vmul.f32 %v9347_v19, %v11533_v14  ;;  %9368 = vpow2.f32 %v7641_v52  ;;  %v11984_v49 = vld [vmem:[#allocation30_spill] sm:$0xff] }
 0x495   : > { %v9351_v55 = vpop.eup %9350  ;;  %v7127_v26 = vld [vmem:[#allocation2 + $0x44] sm:$0xf]  ;;  %9370 = vrcp.f32 %v6785_v48  ;;  %v6788_v34 = vadd.f32 1.0, %v9349_v37  ;;  %v11674_v57 = vadd.f32 %v11431_v28, %v6622_v1  ;;  %v11677_v38 = vadd.f32 %v11431_v28, %v6627_v60  ;;  %v11679_v50 = vpop.f32.mrf.mxu1 }
 0x496   : > { %v9353_v23 = vpop.eup %9352  ;;  %7159 = vst [vmem:[%s11624_s7 + $0x18] sm:$0xf] %v7127_v26  ;;  %v7125_v45 = vld [vmem:[#allocation2 + $0x34] sm:$0xf]  ;;  %7099 = vst [vmem:[#allocation2 + $0x64] sm:$0xf] %v7067_v43  ;;  %v7065_v14 = vadd.bf16 %v7726_v5, %v6905_v6  ;;  %v7729_v15 = vpack.c.bf16 %v6876_v0, %v6876_v0  ;;  %v6874_v3 = vmul.f32 %v9351_v55, %v11545_v44  ;;  %v11698_v37 = vpop.f32.mrf.mxu0 }
 0x497   : > { %v6571_v62 = vadd.f32 %v11593_v58, %v11629_v61  ;;  %v9355_v4 = vpop.eup %9354  ;;  %7157 = vst [vmem:[%s11624_s7 + $0x10] sm:$0xf] %v7125_v45  ;;  %v6879_v54 = vmul.f32 %v9353_v23, %v11548_v63  ;;  %9372 = vrcp.f32 %v6788_v34  ;;  %v7639_v29 = vmul.f32 -1.442695, %v11674_v57  ;;  %v6906_v61 = vld [vmem:[#allocation2 + $0x58] sm:$0xf]  ;;  %v8537_v1 = vpop.f32.mrf.mxu1 }
 0x498   : > { %v7644_v24 = vmul.f32 -1.442695, %v11677_v38  ;;  %v7128_v12 = vld [vmem:[#allocation2 + $0x48] sm:$0xf]  ;;  %7097 = vst [vmem:[#allocation2 + $0x54] sm:$0xf] %v7065_v14  ;;  %v7068_v7 = vadd.bf16 %v7729_v15, %v6908_v41  ;;  %v7727_v13 = vpack.c.bf16 %v6874_v3, %v6874_v3  ;;  %v6582_v63 = vadd.f32 %v11635_v21, %v8529_v33 }
 0x499   : > { %v6786_v44 = vadd.f32 1.0, %v9355_v4  ;;  %v6625_v2 = vadd.f32 %v6571_v62, %v11984_v49  ;;  %v9357_v58 = vpop.eup %9356  ;;  %7160 = vst [vmem:[%s11624_s7 + $0x1c] sm:$0xf] %v7128_v12  ;;  %v7732_v52 = vpack.c.bf16 %v6879_v54, %v6879_v54  ;;  %9374 = vpow2.f32 %v7639_v29  ;;  %v6911_v48 = vld [vmem:[#allocation2 + $0x84] sm:$0xf]  ;;  %v8539_v3 = vpop.f32.mrf.mxu1 }
 0x49a   : > { %v8532_v59 = vadd.f32 %v11650_v22, %v11642_v17  ;;  %v7126_v19 = vld [vmem:[#allocation2 + $0x38] sm:$0xf]  ;;  %7100 = vst [vmem:[#allocation2 + $0x68] sm:$0xf] %v7068_v7  ;;  %v7066_v56 = vadd.bf16 %v7727_v13, %v6906_v61  ;;  %v6877_v27 = vmul.f32 %v9357_v58, %v11558_v47  ;;  %v11985_v21 = vld [vmem:[#allocation14_spill] sm:$0xff]  ;;  %v6574_v17 = vadd.f32 %v11611_v31, %v11646_v25  ;;  %v11986_v31 = vld [vmem:[#allocation31_spill] sm:$0xff] }
 0x49b   : > { %9376 = vrcp.f32 %v6786_v44  ;;  %v11696_v60 = vadd.f32 %v11431_v28, %v6625_v2  ;;  %v9359_v43 = vpop.eup %9358  ;;  %7158 = vst [vmem:[%s11624_s7 + $0x14] sm:$0xf] %v7126_v19  ;;  %v7071_v5 = vadd.bf16 %v7732_v52, %v6911_v48  ;;  %v6628_v33 = vadd.f32 %v6582_v63, %v11985_v21  ;;  %v6909_v23 = vld [vmem:[#allocation2 + $0x74] sm:$0xf]  ;;  %v6912_v4 = vld [vmem:[#allocation2 + $0x88] sm:$0xf] }
 0x49c   : > { %9378 = vpow2.f32 %v7644_v24  ;;  %v9361_v22 = vpop.eup %9360  ;;  %7098 = vst [vmem:[#allocation2 + $0x58] sm:$0xf] %v7066_v56  ;;  %v7730_v0 = vpack.c.bf16 %v6877_v27, %v6877_v27  ;;  %v6880_v47 = vmul.f32 %v9359_v43, %v11561_v10  ;;  %v8535_v26 = vadd.f32 %v11670_v30, %v11660_v32  ;;  %v6589_v30 = vpop.f32.mrf.mxu0  ;;  %v6910_v58 = vld [vmem:[#allocation2 + $0x78] sm:$0xf]  ;;  %v6915_v21 = vld [vmem:[#allocation2 + $0xa4] sm:$0xf] }
 0x49d   : > { %v7642_v55 = vmul.f32 -1.442695, %v11696_v60  ;;  %v9363_v6 = vpop.eup %9362  ;;  %v7131_v34 = vld [vmem:[#allocation2 + $0x64] sm:$0xf]  ;;  %7103 = vst [vmem:[#allocation2 + $0x84] sm:$0xf] %v7071_v5  ;;  %v11709_v14 = vadd.f32 %v11431_v28, %v6628_v33  ;;  %v6626_v25 = vadd.f32 %v6574_v17, %v11986_v31  ;;  %v6587_v15 = vadd.f32 %v8532_v59, %v6586_v35  ;;  %v8540_v59 = vpop.f32.mrf.mxu1 }
 0x49e   : > { %v6791_v45 = vadd.f32 1.0, %v9361_v22  ;;  %v9365_v62 = vpop.eup %9364  ;;  %7163 = vst [vmem:[%s11624_s7 + $0x28] sm:$0xf] %v7131_v34  ;;  %v7069_v10 = vadd.bf16 %v7730_v0, %v6909_v23  ;;  %v7733_v41 = vpack.c.bf16 %v6880_v47, %v6880_v47  ;;  %v6878_v32 = vmul.f32 %v9363_v6, %v11569_v16 }
 0x49f   : > { %9380 = vpow2.f32 %v7642_v55  ;;  %v7129_v54 = vld [vmem:[#allocation2 + $0x54] sm:$0xf]  ;;  %v6789_v29 = vadd.f32 1.0, %v9365_v62  ;;  %v7645_v24 = vmul.f32 -1.442695, %v11709_v14  ;;  %v11716_v12 = vadd.f32 %v11431_v28, %v6626_v25 }
 0x4a0   : > { %9382 = vrcp.f32 %v6791_v45  ;;  %v9367_v35 = vpop.eup %9366  ;;  %7161 = vst [vmem:[%s11624_s7 + $0x20] sm:$0xf] %v7129_v54  ;;  %7101 = vst [vmem:[#allocation2 + $0x74] sm:$0xf] %v7069_v10  ;;  %v7072_v7 = vadd.bf16 %v7733_v41, %v6912_v4  ;;  %v7731_v13 = vpack.c.bf16 %v6878_v32, %v6878_v32  ;;  %v6629_v44 = vadd.f32 %v6587_v15, %v11403_v46 }
 0x4a1   : > { %v8538_v16 = vadd.f32 %v8537_v1, %v11679_v50  ;;  %v9369_v49 = vpop.eup %9368  ;;  %v7132_v2 = vld [vmem:[#allocation2 + $0x68] sm:$0xf]  ;;  %v6883_v61 = vmul.f32 %v9367_v35, %v11577_v53  ;;  %9384 = vrcp.f32 %v6789_v29  ;;  %v7643_v52 = vmul.f32 -1.442695, %v11716_v12 }
 0x4a2   : > { %v6590_v63 = vadd.f32 %v8535_v26, %v6589_v30  ;;  %v9371_v19 = vpop.eup %9370  ;;  %7164 = vst [vmem:[%s11624_s7 + $0x2c] sm:$0xf] %v7132_v2  ;;  %7104 = vst [vmem:[#allocation2 + $0x88] sm:$0xf] %v7072_v7  ;;  %v7070_v56 = vadd.bf16 %v7731_v13, %v6910_v58  ;;  %v6792_v48 = vadd.f32 1.0, %v9369_v49  ;;  %9386 = vpow2.f32 %v7645_v24 }
 0x4a3   : > { %v11725_v46 = vadd.f32 %v11431_v28, %v6629_v44  ;;  %v7130_v50 = vld [vmem:[#allocation2 + $0x58] sm:$0xf]  ;;  %v7736_v1 = vpack.c.bf16 %v6883_v61, %v6883_v61  ;;  %v6881_v53 = vmul.f32 %v9371_v19, %v11587_v40  ;;  %9388 = vpow2.f32 %v7643_v52  ;;  %v6913_v26 = vld [vmem:[#allocation2 + $0x94] sm:$0xf] }
 0x4a4   : > { %v6595_v27 = vadd.f32 %v11665_v18, %v8538_v16  ;;  %v9373_v43 = vpop.eup %9372  ;;  %7162 = vst [vmem:[%s11624_s7 + $0x24] sm:$0xf] %v7130_v50  ;;  %v7135_v5 = vld [vmem:[#allocation2 + $0x84] sm:$0xf]  ;;  %7102 = vst [vmem:[#allocation2 + $0x78] sm:$0xf] %v7070_v56  ;;  %9390 = vrcp.f32 %v6792_v48  ;;  %v6630_v17 = vadd.f32 %v6590_v63, %v11411_v8  ;;  %v8541_v22 = vadd.f32 %v8540_v59, %v8539_v3 }
 0x4a5   : > { %v7646_v33 = vmul.f32 -1.442695, %v11725_v46  ;;  %7167 = vst [vmem:[%s11624_s7 + $0x38] sm:$0xf] %v7135_v5  ;;  %v7075_v0 = vadd.bf16 %v7736_v1, %v6915_v21  ;;  %v7734_v47 = vpack.c.bf16 %v6881_v53, %v6881_v53  ;;  %v6884_v40 = vmul.f32 %v9373_v43, %v11591_v42  ;;  %v6914_v24 = vld [vmem:[#allocation2 + $0x98] sm:$0xf] }
 0x4a6   : > { %v6631_v55 = vadd.f32 %v6595_v27, %v11419_v20  ;;  %v9375_v18 = vpop.eup %9374  ;;  %v11736_v6 = vadd.f32 %v11431_v28, %v6630_v17  ;;  %v6598_v34 = vadd.f32 %v11698_v37, %v8541_v22  ;;  %v6916_v20 = vld [vmem:[#allocation2 + $0xa8] sm:$0xf]  ;;  %v6919_v63 = vld [vmem:[#allocation2 + $0xc4] sm:$0xf]  ;;  %v6917_v1 = vld [vmem:[#allocation2 + $0xb4] sm:$0xf] }
 0x4a7   : > { %9392 = vpow2.f32 %v7646_v33  ;;  %v7133_v45 = vld [vmem:[#allocation2 + $0x74] sm:$0xf]  ;;  %7107 = vst [vmem:[#allocation2 + $0xa4] sm:$0xf] %v7075_v0  ;;  %v7073_v8 = vadd.bf16 %v7734_v47, %v6913_v26  ;;  %v7737_v31 = vpack.c.bf16 %v6884_v40, %v6884_v40  ;;  %v6790_v25 = vadd.f32 1.0, %v9375_v18 }
 0x4a8   : > { %v9377_v23 = vpop.eup %9376  ;;  %v11740_v15 = vadd.f32 %v11431_v28, %v6631_v55  ;;  %7165 = vst [vmem:[%s11624_s7 + $0x30] sm:$0xf] %v7133_v45  ;;  %v7647_v62 = vmul.f32 -1.442695, %v11736_v6  ;;  %v6632_v10 = vadd.f32 %v6598_v34, %v11436_v9  ;;  %v6920_v33 = vld [vmem:[#allocation2 + $0xc8] sm:$0xf] }
 0x4a9   : > { %v9379_v42 = vpop.eup %9378  ;;  %v6882_v3 = vmul.f32 %v9377_v23, %v11600_v11  ;;  %v7136_v37 = vld [vmem:[#allocation2 + $0x88] sm:$0xf]  ;;  %7105 = vst [vmem:[#allocation2 + $0x94] sm:$0xf] %v7073_v8  ;;  %v7076_v4 = vadd.bf16 %v7737_v31, %v6916_v20  ;;  %9394 = vrcp.f32 %v6790_v25  ;;  %v6918_v23 = vld [vmem:[#allocation2 + $0xb8] sm:$0xf] }
 0x4aa   : > { %v6795_v41 = vadd.f32 1.0, %v9379_v42  ;;  %v7648_v32 = vmul.f32 -1.442695, %v11740_v15  ;;  %7168 = vst [vmem:[%s11624_s7 + $0x3c] sm:$0xf] %v7136_v37  ;;  %9396 = vpow2.f32 %v7647_v62  ;;  %v11749_v54 = vadd.f32 %v11431_v28, %v6632_v10 }
 0x4ab   : > { %v7735_v30 = vpack.c.bf16 %v6882_v3, %v6882_v3  ;;  %v7134_v11 = vld [vmem:[#allocation2 + $0x78] sm:$0xf]  ;;  %7108 = vst [vmem:[#allocation2 + $0xa8] sm:$0xf] %v7076_v4 }
 0x4ac   : > { %v9381_v29 = vpop.eup %9380  ;;  %9398 = vrcp.f32 %v6795_v41  ;;  %7166 = vst [vmem:[%s11624_s7 + $0x34] sm:$0xf] %v7134_v11  ;;  %v7649_v13 = vmul.f32 -1.442695, %v11749_v54  ;;  %v6921_v41 = vld [vmem:[#allocation2 + $0xd4] sm:$0xf] }
 0x4ad   : > { %v9383_v9 = vpop.eup %9382  ;;  %v7074_v35 = vadd.bf16 %v7735_v30, %v6914_v24  ;;  %v6793_v7 = vadd.f32 1.0, %v9381_v29  ;;  %9400 = vpow2.f32 %v7648_v32 }
 0x4ae   : > { %v6887_v44 = vmul.f32 %v9383_v9, %v11627_v39  ;;  %v9385_v16 = vpop.eup %9384  ;;  %v7139_v49 = vld [vmem:[#allocation2 + $0xa4] sm:$0xf]  ;;  %v6924_v9 = vld [vmem:[#allocation2 + $0xe8] sm:$0xf] }
 0x4af   : > { %7106 = vst [vmem:[#allocation2 + $0x98] sm:$0xf] %v7074_v35  ;;  %9402 = vrcp.f32 %v6793_v7  ;;  %v9387_v28 = vpop.eup %9386  ;;  %7171 = vst [vmem:[%s11624_s7 + $0x48] sm:$0xf] %v7139_v49  ;;  %v6885_v58 = vmul.f32 %v9385_v16, %v11640_v51 }
 0x4b0   : > { %v7740_v2 = vpack.c.bf16 %v6887_v44, %v6887_v44  ;;  %9404 = vpow2.f32 %v7649_v13  ;;  %v9389_v61 = vpop.eup %9388  ;;  %v7137_v52 = vld [vmem:[#allocation2 + $0x94] sm:$0xf]  ;;  %v6796_v59 = vadd.f32 1.0, %v9387_v28  ;;  %v6922_v44 = vld [vmem:[#allocation2 + $0xd8] sm:$0xf] }
 0x4b1   : > { %v9391_v19 = vpop.eup %9390  ;;  %7169 = vst [vmem:[%s11624_s7 + $0x40] sm:$0xf] %v7137_v52  ;;  %v7738_v48 = vpack.c.bf16 %v6885_v58, %v6885_v58  ;;  %v6794_v39 = vadd.f32 1.0, %v9389_v61 }
 0x4b2   : > { %v7079_v56 = vadd.bf16 %v7740_v2, %v6919_v63  ;;  %v7140_v50 = vld [vmem:[#allocation2 + $0xa8] sm:$0xf]  ;;  %v6888_v53 = vmul.f32 %v9391_v19, %v11654_v36  ;;  %9406 = vrcp.f32 %v6796_v59  ;;  %v6926_v19 = vld [vmem:[#allocation2 + $0xf8] sm:$0xf] }
 0x4b3   : > { %7172 = vst [vmem:[%s11624_s7 + $0x4c] sm:$0xf] %v7140_v50  ;;  %v7077_v51 = vadd.bf16 %v7738_v48, %v6917_v1  ;;  %9408 = vrcp.f32 %v6794_v39  ;;  %v6927_v1 = vld [vmem:[#allocation2 + $0x104] sm:$0xf] }
 0x4b4   : > { %v9393_v27 = vpop.eup %9392  ;;  %7111 = vst [vmem:[#allocation2 + $0xc4] sm:$0xf] %v7079_v56  ;;  %v7741_v43 = vpack.c.bf16 %v6888_v53, %v6888_v53 }
 0x4b5   : > { %v6797_v5 = vadd.f32 1.0, %v9393_v27  ;;  %7109 = vst [vmem:[#allocation2 + $0xb4] sm:$0xf] %v7077_v51 }
 0x4b6   : > { %v7138_v21 = vld [vmem:[#allocation2 + $0x98] sm:$0xf]  ;;  %v9395_v17 = vpop.eup %9394  ;;  %v7080_v22 = vadd.bf16 %v7741_v43, %v6920_v33 }
 0x4b7   : > { %7170 = vst [vmem:[%s11624_s7 + $0x44] sm:$0xf] %v7138_v21  ;;  %9410 = vrcp.f32 %v6797_v5  ;;  %v9397_v0 = vpop.eup %9396  ;;  %v6886_v47 = vmul.f32 %v9395_v17, %v11674_v57  ;;  %v6923_v57 = vld [vmem:[#allocation2 + $0xe4] sm:$0xf] }
 0x4b8   : > { %7112 = vst [vmem:[#allocation2 + $0xc8] sm:$0xf] %v7080_v22  ;;  %v6798_v40 = vadd.f32 1.0, %v9397_v0 }
 0x4b9   : > { %v9399_v36 = vpop.eup %9398  ;;  %v7739_v18 = vpack.c.bf16 %v6886_v47, %v6886_v47 }
 0x4ba   : > { %v9401_v55 = vpop.eup %9400  ;;  %v6891_v26 = vmul.f32 %v9399_v36, %v11677_v38  ;;  %9412 = vrcp.f32 %v6798_v40 }
 0x4bb   : > { %v7143_v34 = vld [vmem:[#allocation2 + $0xc4] sm:$0xf]  ;;  %v6799_v45 = vadd.f32 1.0, %v9401_v55  ;;  %v7078_v31 = vadd.bf16 %v7739_v18, %v6918_v23 }
 0x4bc   : > { %v9403_v8 = vpop.eup %9402  ;;  %7175 = vst [vmem:[%s11624_s7 + $0x58] sm:$0xf] %v7143_v34  ;;  %v7744_v25 = vpack.c.bf16 %v6891_v26, %v6891_v26  ;;  %v7141_v20 = vld [vmem:[#allocation2 + $0xb4] sm:$0xf] }
 0x4bd   : > { %v9405_v42 = vpop.eup %9404  ;;  %v6889_v3 = vmul.f32 %v9403_v8, %v11696_v60  ;;  %9414 = vrcp.f32 %v6799_v45  ;;  %7173 = vst [vmem:[%s11624_s7 + $0x50] sm:$0xf] %v7141_v20  ;;  %7110 = vst [vmem:[#allocation2 + $0xb8] sm:$0xf] %v7078_v31 }
 0x4be   : > { %v7083_v62 = vadd.bf16 %v7744_v25, %v6923_v57  ;;  %v6800_v10 = vadd.f32 1.0, %v9405_v42 }
 0x4bf   : > { %v7742_v38 = vpack.c.bf16 %v6889_v3, %v6889_v3  ;;  %v9407_v37 = vpop.eup %9406  ;;  %v7144_v4 = vld [vmem:[#allocation2 + $0xc8] sm:$0xf] }
 0x4c0   : > { %7115 = vst [vmem:[#allocation2 + $0xe4] sm:$0xf] %v7083_v62  ;;  %9416 = vrcp.f32 %v6800_v10  ;;  %v9409_v32 = vpop.eup %9408  ;;  %7176 = vst [vmem:[%s11624_s7 + $0x5c] sm:$0xf] %v7144_v4  ;;  %v6892_v29 = vmul.f32 %v9407_v37, %v11709_v14 }
 0x4c1   : > { %v7081_v30 = vadd.bf16 %v7742_v38, %v6921_v41  ;;  %v6890_v11 = vmul.f32 %v9409_v32, %v11716_v12  ;;  %v6925_v12 = vld [vmem:[#allocation2 + $0xf4] sm:$0xf] }
 0x4c2   : > { %v7745_v60 = vpack.c.bf16 %v6892_v29, %v6892_v29 }
 0x4c3   : > { %7113 = vst [vmem:[#allocation2 + $0xd4] sm:$0xf] %v7081_v30  ;;  %v7743_v35 = vpack.c.bf16 %v6890_v11, %v6890_v11 }
 0x4c4   : > { %v9411_v24 = vpop.eup %9410  ;;  %v7142_v7 = vld [vmem:[#allocation2 + $0xb8] sm:$0xf]  ;;  %v7084_v13 = vadd.bf16 %v7745_v60, %v6924_v9 }
 0x4c5   : > { %v6893_v16 = vmul.f32 %v9411_v24, %v11725_v46  ;;  %7174 = vst [vmem:[%s11624_s7 + $0x54] sm:$0xf] %v7142_v7  ;;  %v7082_v49 = vadd.bf16 %v7743_v35, %v6922_v44 }
 0x4c6   : > { %7116 = vst [vmem:[#allocation2 + $0xe8] sm:$0xf] %v7084_v13 }
 0x4c7   : > { %v7147_v28 = vld [vmem:[#allocation2 + $0xe4] sm:$0xf]  ;;  %v7746_v2 = vpack.c.bf16 %v6893_v16, %v6893_v16  ;;  %v9413_v14 = vpop.eup %9412  ;;  %7114 = vst [vmem:[#allocation2 + $0xd8] sm:$0xf] %v7082_v49 }
 0x4c8   : > { %7179 = vst [vmem:[%s11624_s7 + $0x68] sm:$0xf] %v7147_v28  ;;  %v6894_v61 = vmul.f32 %v9413_v14, %v11736_v6 }
 0x4c9   : > { %v7085_v58 = vadd.bf16 %v7746_v2, %v6925_v12 }
 0x4ca   : > { %v9415_v52 = vpop.eup %9414  ;;  %v7145_v63 = vld [vmem:[#allocation2 + $0xd4] sm:$0xf]  ;;  %v7747_v59 = vpack.c.bf16 %v6894_v61, %v6894_v61 }
 0x4cb   : > { %7177 = vst [vmem:[%s11624_s7 + $0x60] sm:$0xf] %v7145_v63  ;;  %7117 = vst [vmem:[#allocation2 + $0xf4] sm:$0xf] %v7085_v58  ;;  %v6895_v46 = vmul.f32 %v9415_v52, %v11740_v15  ;;  %v6928_v15 = vld [vmem:[#allocation2 + $0x108] sm:$0xf] }
 0x4cc   : > { %v7086_v39 = vadd.bf16 %v7747_v59, %v6926_v19 }
 0x4cd   : > { %v9417_v56 = vpop.eup %9416  ;;  %v7748_v48 = vpack.c.bf16 %v6895_v46, %v6895_v46  ;;  %v7148_v50 = vld [vmem:[#allocation2 + $0xe8] sm:$0xf] }
 0x4ce   : > { %v6896_v53 = vmul.f32 %v9417_v56, %v11749_v54  ;;  %7180 = vst [vmem:[%s11624_s7 + $0x6c] sm:$0xf] %v7148_v50  ;;  %v7146_v6 = vld [vmem:[#allocation2 + $0xd8] sm:$0xf]  ;;  %7118 = vst [vmem:[#allocation2 + $0xf8] sm:$0xf] %v7086_v39 }
 0x4cf   : > { %v7087_v27 = vadd.bf16 %v7748_v48, %v6927_v1  ;;  %7178 = vst [vmem:[%s11624_s7 + $0x64] sm:$0xf] %v7146_v6 }
 0x4d0   : > { %v7749_v51 = vpack.c.bf16 %v6896_v53, %v6896_v53 }
 0x4d1   : > { %7119 = vst [vmem:[#allocation2 + $0x104] sm:$0xf] %v7087_v27 }
 0x4d2   : > { %v7149_v43 = vld [vmem:[#allocation2 + $0xf4] sm:$0xf]  ;;  %v7088_v5 = vadd.bf16 %v7749_v51, %v6928_v15 }
 0x4d3   : > { %7181 = vst [vmem:[%s11624_s7 + $0x70] sm:$0xf] %v7149_v43 }
 0x4d4   : > { %7120 = vst [vmem:[#allocation2 + $0x108] sm:$0xf] %v7088_v5 }
 0x4d5   : > { %v7150_v21 = vld [vmem:[#allocation2 + $0xf8] sm:$0xf] }
 0x4d6   : > { %7182 = vst [vmem:[%s11624_s7 + $0x74] sm:$0xf] %v7150_v21 }
 0x4d8   : > { %v7151_v33 = vld [vmem:[#allocation2 + $0x104] sm:$0xf] }
 0x4d9   : > { %7183 = vst [vmem:[%s11624_s7 + $0x78] sm:$0xf] %v7151_v33 }
 0x4db   : > { %v7152_v17 = vld [vmem:[#allocation2 + $0x108] sm:$0xf] }
 0x4dc   : > { %7184 = vst [vmem:[%s11624_s7 + $0x7c] sm:$0xf] %v7152_v17 }
 0x4dd PF: > { %s14_s12 = sadd.s32 1, %s9456_s12  }
 0x4de   : > { %p11_p1 = scmp.ge.s32.totalorder %s14_s12, 4  }
 0x4e0   :  { %13 = sbr.rel (!%p11_p1) target bundleno = 1 (0x1), region = 74 }
 0x4e5   :  { %7206 = vsyncpa [#allocation4], 1 }
 0x4e6   :  { %7208 = vsyncpa [#allocation4 + $0x1], 1 }

</bundles_post_ra>
